<compile_context>
chip_gen: v6e
topology: v6e:2x2x1
jax: 0.10.0
libtpu: 0.0.40
codegen_flags: <defaults>
</compile_context>

<pallas_src>
import numpy as np

import jax
import jax.numpy as jnp
from jax.experimental import pallas as pl
from jax.experimental.pallas import tpu as pltpu

_LEAKY_SLOPE = 0.01  # nn.LeakyReLU() default negative_slope


# ---------------------------------------------------------------------------
# Module helpers (mirroring the PyTorch spec)
# ---------------------------------------------------------------------------
def calculate_input_size(latent_size, cnn_net_arch):
    size = latent_size
    for out_channels, kernel_size, stride, padding in reversed(cnn_net_arch):
        size = (size - 1) * stride - 2 * padding + kernel_size
    return size


def _conv_out(size, k, s, p):
    return (size + 2 * p - k) // s + 1


def _round8(n):
    return ((n + 7) // 8) * 8


class _Geom:
    """Per-sample zero-padded raster: rows = Hp*Wp flattened padded pixels."""

    def __init__(self, H, W, C, pad, max_read_k):
        self.H, self.W, self.C, self.pad = H, W, C, pad
        self.Hp, self.Wp = H + 2 * pad, W + 2 * pad
        self.P = self.Hp * self.Wp                 # real raster rows
        self.rows_c = _round8(self.P)              # dense-compute row count
        span = max(max_read_k - 1, 1) * (self.Wp + 1)
        self.P_ext = _round8(self.rows_c + span)   # buffer rows (slice slack)
        self.shift = self.Wp + 1                   # dst offset of a s=1,p=1 conv


# ---------------------------------------------------------------------------
# Encoder (Pallas)
# ---------------------------------------------------------------------------
class EncoderPallas:
    def __init__(self, input_shape, latent_shape, cnn_net_arch, key):
        channels, height, width = input_shape
        latent_channels, latent_h, latent_w = latent_shape
        self.input_shape = tuple(input_shape)
        self.latent_channels = int(latent_channels)
        self.cnn_net_arch = [tuple(int(v) for v in a) for a in cnn_net_arch]
        self.target = calculate_input_size(min(latent_h, latent_w),
                                           self.cnn_net_arch)

        # Parameters, PyTorch Conv2d default init, kept in torch OIHW layout.
        self.layers = []                           # forward order
        in_c = channels
        for (out_c, k, s, p) in self.cnn_net_arch:
            key, k1, k2, k3 = jax.random.split(key, 4)
            self.layers.append(self._init_conv(k1, in_c, out_c, k, s, p))   # stage conv
            self.layers.append(self._init_conv(k2, out_c, out_c, 3, 1, 1))  # res conv1
            self.layers.append(self._init_conv(k3, out_c, out_c, 3, 1, 1))  # res conv2
            in_c = out_c
        key, k4 = jax.random.split(key)
        self.layers.append(self._init_conv(k4, in_c, latent_channels, 3, 1, 1))

        self._build_plan()
        self._calls = {}                           # pallas_call cache per batch

    @staticmethod
    def _init_conv(key, in_c, out_c, k, s, p):
        wk, bk = jax.random.split(key)
        bound = 1.0 / float(np.sqrt(in_c * k * k))
        w = jax.random.uniform(wk, (out_c, in_c, k, k), jnp.float32, -bound, bound)
        b = jax.random.uniform(bk, (out_c,), jnp.float32, -bound, bound)
        return (w, b, k, s, p)

    # -- static planning (geometry, masks, weights, the fused kernel) ---------
    def _build_plan(self):
        arch = self.cnn_net_arch
        C0 = self.input_shape[0]
        H = W = self.target
        n_stages = len(arch)

        # raster geometries (per batch element)
        k0, p0 = arch[0][1], arch[0][3]
        g_in = _Geom(H, W, C0, pad=p0, max_read_k=k0)

        stage_geoms = []
        h, w = H, W
        for i, (out_c, k, s, p) in enumerate(arch):
            h, w = _conv_out(h, k, s, p), _conv_out(w, k, s, p)
            if i + 1 < n_stages:
                k_next, p_next = arch[i + 1][1], arch[i + 1][3]
            else:
                k_next, p_next = 3, 1                       # final latent conv
            stage_geoms.append(_Geom(h, w, out_c, pad=max(1, p_next),
                                     max_read_k=max(3, k_next)))
        g_out = _Geom(h, w, self.latent_channels, pad=stage_geoms[-1].pad,
                      max_read_k=1)

        # ---- host-side constant kernel inputs --------------------------------
        args = []

        def add_arg(a):
            args.append(a)
            return len(args)                 # ref index (input raster is ref 0)

        def add_conv_params(layer):
            wgt, bias, k, s, p = layer
            out_c, in_c = int(wgt.shape[0]), int(wgt.shape[1])
            w_flat = jnp.transpose(wgt, (2, 3, 1, 0)).reshape(k * k * in_c, out_c)
            wi = add_arg(w_flat.astype(jnp.bfloat16))        # MXU operand in bf16
            bi = add_arg(jnp.reshape(bias, (1, out_c)).astype(jnp.float32))
            return wi, bi

        def interior_mask(g):
            # mask[r] = 1 iff destination row (r + shift) is an interior pixel
            m = np.zeros((g.rows_c, 1), np.float32)
            for r in range(g.P):
                d = r + g.shift
                if d < g.P:
                    dh, dw = divmod(d, g.Wp)
                    if g.pad <= dh < g.pad + g.H and g.pad <= dw < g.pad + g.W:
                        m[r, 0] = 1.0
            return jnp.asarray(m)

        def decim_matrix(src_g, dst_g, s, p):
            off = src_g.pad - p
            assert off >= 0, "source raster padding must cover the conv padding"
            D = np.zeros((dst_g.W, src_g.Wp), np.float32)    # (W_dst, Wp_src)
            for ow in range(dst_g.W):
                D[ow, off + ow * s] = 1.0
            return jnp.asarray(D), off

        stage_plans = []
        src_g = g_in
        for i, (out_c, k, s, p) in enumerate(arch):
            g = stage_geoms[i]
            w_sc, b_sc = add_conv_params(self.layers[3 * i])
            w_r1, b_r1 = add_conv_params(self.layers[3 * i + 1])
            w_r2, b_r2 = add_conv_params(self.layers[3 * i + 2])
            decim, off = decim_matrix(src_g, g, s, p)
            stage_plans.append(dict(
                src_g=src_g, g=g, k=k, s=s, off=off,
                w_sc=w_sc, b_sc=b_sc, w_r1=w_r1, b_r1=b_r1,
                w_r2=w_r2, b_r2=b_r2,
                decim=add_arg(decim), mask=add_arg(interior_mask(g))))
            src_g = g
        w_f, b_f = add_conv_params(self.layers[-1])
        final_plan = dict(g=g_out, w=w_f, b=b_f, mask=stage_plans[-1]["mask"])

        n_in = 1 + len(args)

        # ---- the fused kernel -------------------------------------------------
        def leaky(v):
            return jnp.where(v >= 0.0, v, _LEAKY_SLOPE * v)

        def kernel(*refs):
            in_refs, out_ref = refs[:n_in], refs[n_in]
            o_bufs = refs[n_in + 1:]
            x0 = in_refs[0]

            def cref(i):
                return in_refs[i]

            def conv_dense(src_ref, g_src, k, w_i, b_i):
                """One fused im2col matmul over all g_src.rows_c rows."""
                rows = g_src.rows_c
                shifts = [ih * g_src.Wp + iw for ih in range(k) for iw in range(k)]
                slab = jnp.concatenate(
                    [src_ref[sh:sh + rows, :] for sh in shifts], axis=1)
                acc = jnp.dot(slab.astype(jnp.bfloat16), cref(w_i)[...],
                              preferred_element_type=jnp.float32)
                return acc + cref(b_i)[...]

            def write_raster(dst_ref, g, y):
                cout = y.shape[-1]
                dst_ref[0:g.shift, :] = jnp.zeros((g.shift, cout), jnp.float32)
                dst_ref[g.shift:g.shift + g.rows_c, :] = y
                tail = g.P_ext - g.shift - g.rows_c
                if tail > 0:
                    dst_ref[g.shift + g.rows_c:g.P_ext, :] = jnp.zeros(
                        (tail, cout), jnp.float32)

            def conv_s1(src_ref, dst_ref, g, w_i, b_i, m_i, act, res_ref=None):
                """3x3 / stride-1 / pad-1 conv between identical-geometry rasters."""
                y = conv_dense(src_ref, g, 3, w_i, b_i)
                if res_ref is not None:                       # ResidualBlock skip
                    y = y + res_ref[g.shift:g.shift + g.rows_c, :]
                if act:
                    y = leaky(y)
                y = y * cref(m_i)[...]                        # zero halo + tail rows
                write_raster(dst_ref, g, y)

            def stage_conv(src_ref, dst_ref, acc_ref, sp):
                """Stage conv (arbitrary kernel/stride/pad) + LeakyReLU."""
                g_s, g = sp["src_g"], sp["g"]
                s, off = sp["s"], sp["off"]
                acc_ref[...] = leaky(conv_dense(src_ref, g_s, sp["k"],
                                                sp["w_sc"], sp["b_sc"]))
                dst_ref[...] = jnp.zeros((g.P_ext, g.C), jnp.float32)
                dec = cref(sp["decim"])[...]                  # (W_dst, Wp_src)
                for oh in range(g.H):
                    r0 = (oh * s + off) * g_s.Wp              # one source pixel row
                    d0 = (oh + g.pad) * g.Wp + g.pad
                    blk = acc_ref[r0:r0 + g_s.Wp, :]
                    dst_ref[d0:d0 + g.W, :] = jnp.dot(
                        dec, blk, preferred_element_type=jnp.float32)

            def make_stage_body(sp, src_ref, o_ref):
                def stage_body(x_buf, h_buf, acc_buf):
                    g = sp["g"]
                    stage_conv(src_ref, x_buf, acc_buf, sp)               # conv+LReLU
                    conv_s1(x_buf, h_buf, g, sp["w_r1"], sp["b_r1"],
                            sp["mask"], act=True)                         # res conv1
                    conv_s1(h_buf, o_ref, g, sp["w_r2"], sp["b_r2"],
                            sp["mask"], act=True, res_ref=x_buf)          # res conv2+skip
                return stage_body

            src_ref = x0
            for si, sp in enumerate(stage_plans):
                g, g_s = sp["g"], sp["src_g"]
                pl.run_scoped(
                    make_stage_body(sp, src_ref, o_bufs[si]),
                    pltpu.VMEM((g.P_ext, g.C), jnp.float32),      # x_buf
                    pltpu.VMEM((g.P_ext, g.C), jnp.float32),      # h_buf
                    pltpu.VMEM((g_s.rows_c, g.C), jnp.float32))   # dense-conv scratch
                src_ref = o_bufs[si]

            conv_s1(src_ref, out_ref, final_plan["g"], final_plan["w"],
                    final_plan["b"], final_plan["mask"], act=False)       # final conv

        # ---- scratch + VMEM budget --------------------------------------------
        scratch_shapes = [pltpu.VMEM((g.P_ext, g.C), jnp.float32)
                          for g in stage_geoms]

        fb = 4
        need = 2 * g_in.P_ext * g_in.C * fb
        need += 2 * g_out.P_ext * g_out.C * fb
        need += 2 * sum(int(a.size) * a.dtype.itemsize for a in args)
        need += sum(g.P_ext * g.C * fb for g in stage_geoms)
        need += max((2 * sp["g"].P_ext + sp["src_g"].rows_c) * sp["g"].C * fb
                    for sp in stage_plans)
        vmem_limit = int(min(max(4 * need, 16 * 1024 * 1024), 64 * 1024 * 1024))

        self._g_in, self._g_out = g_in, g_out
        self._args = tuple(args)
        self._kernel = kernel
        self._scratch_shapes = scratch_shapes
        self._vmem_limit = vmem_limit

    # -- per-batch pallas_call --------------------------------------------------
    def _get_call(self, B):
        fn = self._calls.get(B)
        if fn is not None:
            return fn
        g_in, g_out = self._g_in, self._g_out
        x_spec = pl.BlockSpec((None, g_in.P_ext, g_in.C), lambda b: (b, 0, 0))
        const_specs = [pl.BlockSpec(a.shape, lambda b: (0, 0))
                       for a in self._args]
        out_spec = pl.BlockSpec((None, g_out.P_ext, g_out.C), lambda b: (b, 0, 0))
        fn = pl.pallas_call(
            self._kernel,
            out_shape=jax.ShapeDtypeStruct((B, g_out.P_ext, g_out.C), jnp.float32),
            grid=(B,),
            in_specs=[x_spec] + const_specs,
            out_specs=out_spec,
            scratch_shapes=list(self._scratch_shapes),
            compiler_params=pltpu.CompilerParams(
                dimension_semantics=("parallel",),
                vmem_limit_bytes=self._vmem_limit),
        )
        self._calls[B] = fn
        return fn

    # -- forward ---------------------------------------------------------------
    def __call__(self, x):
        # x: (B, C, H, W) or (C, H, W), NCHW like the PyTorch module.
        if x.ndim == 3:
            x = x[None]
        B, C = x.shape[0], x.shape[1]
        t = self.target
        # TODO(synk): torchvision T.Resize(antialias=True) is approximated with
        # jax.image.resize (plain-JAX preprocessing, not a Pallas kernel).
        x = jax.image.resize(x, (B, C, t, t), method="bilinear", antialias=True)

        g = self._g_in
        x = jnp.transpose(x, (0, 2, 3, 1))                               # NHWC
        x = jnp.pad(x, ((0, 0), (g.pad, g.pad), (g.pad, g.pad), (0, 0)))
        x = x.reshape(B, g.P, C)
        x = jnp.pad(x, ((0, 0), (0, g.P_ext - g.P), (0, 0)))             # tail zeros

        out = self._get_call(B)(x, *self._args)       # (B, P_ext_out, C_lat)

        go = self._g_out
        out = out[:, :go.P, :].reshape(B, go.Hp, go.Wp, self.latent_channels)
        out = out[:, go.pad:go.pad + go.H, go.pad:go.pad + go.W, :]
        return jnp.transpose(out, (0, 3, 1, 2))                          # NCHW


# ---------------------------------------------------------------------------
# Plain-JAX reference for a silent sanity check
# ---------------------------------------------------------------------------
def _reference_forward(model, x):
    if x.ndim == 3:
        x = x[None]
    B, C = x.shape[0], x.shape[1]
    t = model.target
    x = jax.image.resize(x, (B, C, t, t), method="bilinear", antialias=True)
    x = jnp.transpose(x, (0, 2, 3, 1))                                   # NHWC

    def conv(v, layer):
        w, b, k, s, p = layer
        w_hwio = jnp.transpose(w, (2, 3, 1, 0))
        y = jax.lax.conv_general_dilated(
            v, w_hwio, window_strides=(s, s), padding=((p, p), (p, p)),
            dimension_numbers=("NHWC", "HWIO", "NHWC"),
            precision=jax.lax.Precision.HIGHEST)
        return y + b.reshape(1, 1, 1, -1)

    def leaky(v):
        return jnp.where(v >= 0.0, v, _LEAKY_SLOPE * v)

    li = 0
    for _ in model.cnn_net_arch:
        x = leaky(conv(x, model.layers[li])); li += 1                    # stage conv
        res = x
        h = leaky(conv(x, model.layers[li])); li += 1                    # res conv1
        h = conv(h, model.layers[li]); li += 1                           # res conv2
        x = leaky(h + res)
    x = conv(x, model.layers[li])                                        # final conv
    return jnp.transpose(x, (0, 3, 1, 2))                                # NCHW


if __name__ == "__main__":
    key = jax.random.PRNGKey(0)
    k_model, k_x = jax.random.split(key)

    input_shape = (4, 16, 16)            # (C, H, W)
    latent_shape = (8, 4, 4)             # (C, H, W)
    cnn_net_arch = [(16, 3, 2, 1), (32, 3, 2, 1)]
    batch = 2

    model = EncoderPallas(input_shape, latent_shape, cnn_net_arch, k_model)
    x = jax.random.normal(k_x, (batch,) + input_shape, jnp.float32)

    out = jax.block_until_ready(model(x))
    ref = jax.block_until_ready(_reference_forward(model, x))

    assert out.shape == (batch, latent_shape[0], 4, 4), out.shape
    err = float(jnp.max(jnp.abs(out - ref)))
    assert err < 2.5e-2, f"max abs err {err}"
    print("KERNEL_OK")
</pallas_src>

<mosaic_0001>
module attributes {stable_mosaic.version = 11 : i64} {
  func.func @kernel(%arg0: i32, %arg1: memref<1x264x4xf32, #tpu.memory_space<vmem>>, %arg2: memref<36x16xbf16, #tpu.memory_space<vmem>>, %arg3: memref<1x16xf32, #tpu.memory_space<vmem>>, %arg4: memref<144x16xbf16, #tpu.memory_space<vmem>>, %arg5: memref<1x16xf32, #tpu.memory_space<vmem>>, %arg6: memref<144x16xbf16, #tpu.memory_space<vmem>>, %arg7: memref<1x16xf32, #tpu.memory_space<vmem>>, %arg8: memref<7x15xf32, #tpu.memory_space<vmem>>, %arg9: memref<88x1xf32, #tpu.memory_space<vmem>>, %arg10: memref<144x32xbf16, #tpu.memory_space<vmem>>, %arg11: memref<1x32xf32, #tpu.memory_space<vmem>>, %arg12: memref<288x32xbf16, #tpu.memory_space<vmem>>, %arg13: memref<1x32xf32, #tpu.memory_space<vmem>>, %arg14: memref<288x32xbf16, #tpu.memory_space<vmem>>, %arg15: memref<1x32xf32, #tpu.memory_space<vmem>>, %arg16: memref<4x9xf32, #tpu.memory_space<vmem>>, %arg17: memref<40x1xf32, #tpu.memory_space<vmem>>, %arg18: memref<288x8xbf16, #tpu.memory_space<vmem>>, %arg19: memref<1x8xf32, #tpu.memory_space<vmem>>, %arg20: memref<1x48x8xf32, #tpu.memory_space<vmem>>, %arg21: memref<112x16xf32, #tpu.memory_space<vmem>>, %arg22: memref<56x32xf32, #tpu.memory_space<vmem>>) attributes {dimension_semantics = [#tpu.dimension_semantics<parallel>], iteration_bounds = array<i64: 2>, scalar_prefetch = 0 : i64, scratch_operands = 2 : i64, tpu.core_type = #tpu.core_type<tc>, window_params = [{transform_indices = @transform_0, window_bounds = array<i64: 1, 264, 4>}, {pipeline_mode = #tpu.pipeline_mode<synchronous>, transform_indices = @transform_1, window_bounds = array<i64: 36, 16>}, {pipeline_mode = #tpu.pipeline_mode<synchronous>, transform_indices = @transform_2, window_bounds = array<i64: 1, 16>}, {pipeline_mode = #tpu.pipeline_mode<synchronous>, transform_indices = @transform_3, window_bounds = array<i64: 144, 16>}, {pipeline_mode = #tpu.pipeline_mode<synchronous>, transform_indices = @transform_4, window_bounds = array<i64: 1, 16>}, {pipeline_mode = #tpu.pipeline_mode<synchronous>, transform_indices = @transform_5, window_bounds = array<i64: 144, 16>}, {pipeline_mode = #tpu.pipeline_mode<synchronous>, transform_indices = @transform_6, window_bounds = array<i64: 1, 16>}, {pipeline_mode = #tpu.pipeline_mode<synchronous>, transform_indices = @transform_7, window_bounds = array<i64: 7, 15>}, {pipeline_mode = #tpu.pipeline_mode<synchronous>, transform_indices = @transform_8, window_bounds = array<i64: 88, 1>}, {pipeline_mode = #tpu.pipeline_mode<synchronous>, transform_indices = @transform_9, window_bounds = array<i64: 144, 32>}, {pipeline_mode = #tpu.pipeline_mode<synchronous>, transform_indices = @transform_10, window_bounds = array<i64: 1, 32>}, {pipeline_mode = #tpu.pipeline_mode<synchronous>, transform_indices = @transform_11, window_bounds = array<i64: 288, 32>}, {pipeline_mode = #tpu.pipeline_mode<synchronous>, transform_indices = @transform_12, window_bounds = array<i64: 1, 32>}, {pipeline_mode = #tpu.pipeline_mode<synchronous>, transform_indices = @transform_13, window_bounds = array<i64: 288, 32>}, {pipeline_mode = #tpu.pipeline_mode<synchronous>, transform_indices = @transform_14, window_bounds = array<i64: 1, 32>}, {pipeline_mode = #tpu.pipeline_mode<synchronous>, transform_indices = @transform_15, window_bounds = array<i64: 4, 9>}, {pipeline_mode = #tpu.pipeline_mode<synchronous>, transform_indices = @transform_16, window_bounds = array<i64: 40, 1>}, {pipeline_mode = #tpu.pipeline_mode<synchronous>, transform_indices = @transform_17, window_bounds = array<i64: 288, 8>}, {pipeline_mode = #tpu.pipeline_mode<synchronous>, transform_indices = @transform_18, window_bounds = array<i64: 1, 8>}, {transform_indices = @transform_19, window_bounds = array<i64: 1, 48, 8>}]} {
    "tpu.region"() ({
      %alloca = memref.alloca() : memref<112x16xf32, #tpu.memory_space<vmem>>
      %alloca_25 = memref.alloca() : memref<112x16xf32, #tpu.memory_space<vmem>>
      %alloca_26 = memref.alloca() : memref<232x16xf32, #tpu.memory_space<vmem>>
      %c0_27 = arith.constant 0 : index
      %c0_28 = arith.constant 0 : index
      %c0_29 = arith.constant 0 : index
      %30 = vector.load %arg1[%c0_27, %c0_28, %c0_29] : memref<1x264x4xf32, #tpu.memory_space<vmem>>, vector<1x232x4xf32>
      %31 = vector.shape_cast %30 : vector<1x232x4xf32> to vector<232x4xf32>
      %c0_30 = arith.constant 0 : index
      %c1_31 = arith.constant 1 : index
      %c0_32 = arith.constant 0 : index
      %32 = vector.load %arg1[%c0_30, %c1_31, %c0_32] : memref<1x264x4xf32, #tpu.memory_space<vmem>>, vector<1x232x4xf32>
      %33 = vector.shape_cast %32 : vector<1x232x4xf32> to vector<232x4xf32>
      %c0_33 = arith.constant 0 : index
      %c2_34 = arith.constant 2 : index
      %c0_35 = arith.constant 0 : index
      %34 = vector.load %arg1[%c0_33, %c2_34, %c0_35] : memref<1x264x4xf32, #tpu.memory_space<vmem>>, vector<1x232x4xf32>
      %35 = vector.shape_cast %34 : vector<1x232x4xf32> to vector<232x4xf32>
      %c0_36 = arith.constant 0 : index
      %c15 = arith.constant 15 : index
      %c0_37 = arith.constant 0 : index
      %36 = vector.load %arg1[%c0_36, %c15, %c0_37] : memref<1x264x4xf32, #tpu.memory_space<vmem>>, vector<1x232x4xf32>
      %37 = vector.shape_cast %36 : vector<1x232x4xf32> to vector<232x4xf32>
      %c0_38 = arith.constant 0 : index
      %c16 = arith.constant 16 : index
      %c0_39 = arith.constant 0 : index
      %38 = vector.load %arg1[%c0_38, %c16, %c0_39] : memref<1x264x4xf32, #tpu.memory_space<vmem>>, vector<1x232x4xf32>
      %39 = vector.shape_cast %38 : vector<1x232x4xf32> to vector<232x4xf32>
      %c0_40 = arith.constant 0 : index
      %c17 = arith.constant 17 : index
      %c0_41 = arith.constant 0 : index
      %40 = vector.load %arg1[%c0_40, %c17, %c0_41] : memref<1x264x4xf32, #tpu.memory_space<vmem>>, vector<1x232x4xf32>
      %41 = vector.shape_cast %40 : vector<1x232x4xf32> to vector<232x4xf32>
      %c0_42 = arith.constant 0 : index
      %c30 = arith.constant 30 : index
      %c0_43 = arith.constant 0 : index
      %42 = vector.load %arg1[%c0_42, %c30, %c0_43] : memref<1x264x4xf32, #tpu.memory_space<vmem>>, vector<1x232x4xf32>
      %43 = vector.shape_cast %42 : vector<1x232x4xf32> to vector<232x4xf32>
      %c0_44 = arith.constant 0 : index
      %c31 = arith.constant 31 : index
      %c0_45 = arith.constant 0 : index
      %44 = vector.load %arg1[%c0_44, %c31, %c0_45] : memref<1x264x4xf32, #tpu.memory_space<vmem>>, vector<1x232x4xf32>
      %45 = vector.shape_cast %44 : vector<1x232x4xf32> to vector<232x4xf32>
      %c0_46 = arith.constant 0 : index
      %c32 = arith.constant 32 : index
      %c0_47 = arith.constant 0 : index
      %46 = vector.load %arg1[%c0_46, %c32, %c0_47] : memref<1x264x4xf32, #tpu.memory_space<vmem>>, vector<1x232x4xf32>
      %47 = vector.shape_cast %46 : vector<1x232x4xf32> to vector<232x4xf32>
      %48 = tpu.concatenate %31, %33, %35, %37, %39, %41, %43, %45, %47 in 1 : vector<232x4xf32>, vector<232x4xf32>, vector<232x4xf32>, vector<232x4xf32>, vector<232x4xf32>, vector<232x4xf32>, vector<232x4xf32>, vector<232x4xf32>, vector<232x4xf32> -> vector<232x36xf32>
      %49 = arith.truncf %48 : vector<232x36xf32> to vector<232x36xbf16>
      %c0_48 = arith.constant 0 : index
      %c0_49 = arith.constant 0 : index
      %50 = vector.load %arg2[%c0_48, %c0_49] : memref<36x16xbf16, #tpu.memory_space<vmem>>, vector<36x16xbf16>
      %cst_50 = arith.constant dense<0.000000e+00> : vector<232x16xf32>
      %51 = tpu.matmul %49, %50, %cst_50 {dimension_numbers = #tpu.dot_dimension_numbers<[1], [0], [0], [1], [0, 0, 1, 1], [], []>} : vector<232x36xbf16>, vector<36x16xbf16>, vector<232x16xf32> -> vector<232x16xf32>
      %c0_51 = arith.constant 0 : index
      %c0_52 = arith.constant 0 : index
      %52 = vector.load %arg3[%c0_51, %c0_52] : memref<1x16xf32, #tpu.memory_space<vmem>>, vector<1x16xf32>
      %53 = vector.broadcast %52 : vector<1x16xf32> to vector<232x16xf32>
      %54 = arith.addf %51, %53 : vector<232x16xf32>
      %cst_53 = arith.constant 0.000000e+00 : f32
      %55 = vector.broadcast %cst_53 : f32 to vector<232x16xf32>
      %56 = arith.cmpf oge, %54, %55 : vector<232x16xf32>
      %cst_54 = arith.constant 0.00999999977 : f32
      %57 = vector.broadcast %cst_54 : f32 to vector<232x16xf32>
      %58 = arith.mulf %57, %54 : vector<232x16xf32>
      %59 = arith.select %56, %54, %58 : vector<232x16xi1>, vector<232x16xf32>
      %c0_55 = arith.constant 0 : index
      %c0_56 = arith.constant 0 : index
      %60 = vector.load %alloca_26[%c0_55, %c0_56] : memref<232x16xf32, #tpu.memory_space<vmem>>, vector<232x16xf32>
      tpu.vector_store %alloca_26[%c0_55, %c0_56], %59 {strides = array<i32>} : memref<232x16xf32, #tpu.memory_space<vmem>>, vector<232x16xf32>,
      %cst_57 = arith.constant 0.000000e+00 : f32
      %61 = vector.broadcast %cst_57 : f32 to vector<112x16xf32>
      %c0_58 = arith.constant 0 : index
      %c0_59 = arith.constant 0 : index
      %62 = vector.load %alloca[%c0_58, %c0_59] : memref<112x16xf32, #tpu.memory_space<vmem>>, vector<112x16xf32>
      tpu.vector_store %alloca[%c0_58, %c0_59], %61 {strides = array<i32>} : memref<112x16xf32, #tpu.memory_space<vmem>>, vector<112x16xf32>,
      %c0_60 = arith.constant 0 : index
      %c0_61 = arith.constant 0 : index
      %63 = vector.load %arg8[%c0_60, %c0_61] : memref<7x15xf32, #tpu.memory_space<vmem>>, vector<7x15xf32>
      %c0_62 = arith.constant 0 : index
      %c0_63 = arith.constant 0 : index
      %64 = vector.load %alloca_26[%c0_62, %c0_63] : memref<232x16xf32, #tpu.memory_space<vmem>>, vector<15x16xf32>
      %cst_64 = arith.constant dense<0.000000e+00> : vector<7x16xf32>
      %65 = tpu.matmul %63, %64, %cst_64 {dimension_numbers = #tpu.dot_dimension_numbers<[1], [0], [0], [1], [0, 0, 1, 1], [], []>} : vector<7x15xf32>, vector<15x16xf32>, vector<7x16xf32> -> vector<7x16xf32>
      %c10 = arith.constant 10 : index
      %c0_65 = arith.constant 0 : index
      %66 = vector.load %alloca[%c10, %c0_65] : memref<112x16xf32, #tpu.memory_space<vmem>>, vector<7x16xf32>
      tpu.vector_store %alloca[%c10, %c0_65], %65 {strides = array<i32>} : memref<112x16xf32, #tpu.memory_space<vmem>>, vector<7x16xf32>,
      %c30_66 = arith.constant 30 : index
      %c0_67 = arith.constant 0 : index
      %67 = vector.load %alloca_26[%c30_66, %c0_67] : memref<232x16xf32, #tpu.memory_space<vmem>>, vector<15x16xf32>
      %cst_68 = arith.constant dense<0.000000e+00> : vector<7x16xf32>
      %68 = tpu.matmul %63, %67, %cst_68 {dimension_numbers = #tpu.dot_dimension_numbers<[1], [0], [0], [1], [0, 0, 1, 1], [], []>} : vector<7x15xf32>, vector<15x16xf32>, vector<7x16xf32> -> vector<7x16xf32>
      %c19 = arith.constant 19 : index
      %c0_69 = arith.constant 0 : index
      %69 = vector.load %alloca[%c19, %c0_69] : memref<112x16xf32, #tpu.memory_space<vmem>>, vector<7x16xf32>
      tpu.vector_store %alloca[%c19, %c0_69], %68 {strides = array<i32>} : memref<112x16xf32, #tpu.memory_space<vmem>>, vector<7x16xf32>,
      %c60 = arith.constant 60 : index
      %c0_70 = arith.constant 0 : index
      %70 = vector.load %alloca_26[%c60, %c0_70] : memref<232x16xf32, #tpu.memory_space<vmem>>, vector<15x16xf32>
      %cst_71 = arith.constant dense<0.000000e+00> : vector<7x16xf32>
      %71 = tpu.matmul %63, %70, %cst_71 {dimension_numbers = #tpu.dot_dimension_numbers<[1], [0], [0], [1], [0, 0, 1, 1], [], []>} : vector<7x15xf32>, vector<15x16xf32>, vector<7x16xf32> -> vector<7x16xf32>
      %c28 = arith.constant 28 : index
      %c0_72 = arith.constant 0 : index
      %72 = vector.load %alloca[%c28, %c0_72] : memref<112x16xf32, #tpu.memory_space<vmem>>, vector<7x16xf32>
      tpu.vector_store %alloca[%c28, %c0_72], %71 {strides = array<i32>} : memref<112x16xf32, #tpu.memory_space<vmem>>, vector<7x16xf32>,
      %c90 = arith.constant 90 : index
      %c0_73 = arith.constant 0 : index
      %73 = vector.load %alloca_26[%c90, %c0_73] : memref<232x16xf32, #tpu.memory_space<vmem>>, vector<15x16xf32>
      %cst_74 = arith.constant dense<0.000000e+00> : vector<7x16xf32>
      %74 = tpu.matmul %63, %73, %cst_74 {dimension_numbers = #tpu.dot_dimension_numbers<[1], [0], [0], [1], [0, 0, 1, 1], [], []>} : vector<7x15xf32>, vector<15x16xf32>, vector<7x16xf32> -> vector<7x16xf32>
      %c37 = arith.constant 37 : index
      %c0_75 = arith.constant 0 : index
      %75 = vector.load %alloca[%c37, %c0_75] : memref<112x16xf32, #tpu.memory_space<vmem>>, vector<7x16xf32>
      tpu.vector_store %alloca[%c37, %c0_75], %74 {strides = array<i32>} : memref<112x16xf32, #tpu.memory_space<vmem>>, vector<7x16xf32>,
      %c120 = arith.constant 120 : index
      %c0_76 = arith.constant 0 : index
      %76 = vector.load %alloca_26[%c120, %c0_76] : memref<232x16xf32, #tpu.memory_space<vmem>>, vector<15x16xf32>
      %cst_77 = arith.constant dense<0.000000e+00> : vector<7x16xf32>
      %77 = tpu.matmul %63, %76, %cst_77 {dimension_numbers = #tpu.dot_dimension_numbers<[1], [0], [0], [1], [0, 0, 1, 1], [], []>} : vector<7x15xf32>, vector<15x16xf32>, vector<7x16xf32> -> vector<7x16xf32>
      %c46 = arith.constant 46 : index
      %c0_78 = arith.constant 0 : index
      %78 = vector.load %alloca[%c46, %c0_78] : memref<112x16xf32, #tpu.memory_space<vmem>>, vector<7x16xf32>
      tpu.vector_store %alloca[%c46, %c0_78], %77 {strides = array<i32>} : memref<112x16xf32, #tpu.memory_space<vmem>>, vector<7x16xf32>,
      %c150 = arith.constant 150 : index
      %c0_79 = arith.constant 0 : index
      %79 = vector.load %alloca_26[%c150, %c0_79] : memref<232x16xf32, #tpu.memory_space<vmem>>, vector<15x16xf32>
      %cst_80 = arith.constant dense<0.000000e+00> : vector<7x16xf32>
      %80 = tpu.matmul %63, %79, %cst_80 {dimension_numbers = #tpu.dot_dimension_numbers<[1], [0], [0], [1], [0, 0, 1, 1], [], []>} : vector<7x15xf32>, vector<15x16xf32>, vector<7x16xf32> -> vector<7x16xf32>
      %c55 = arith.constant 55 : index
      %c0_81 = arith.constant 0 : index
      %81 = vector.load %alloca[%c55, %c0_81] : memref<112x16xf32, #tpu.memory_space<vmem>>, vector<7x16xf32>
      tpu.vector_store %alloca[%c55, %c0_81], %80 {strides = array<i32>} : memref<112x16xf32, #tpu.memory_space<vmem>>, vector<7x16xf32>,
      %c180 = arith.constant 180 : index
      %c0_82 = arith.constant 0 : index
      %82 = vector.load %alloca_26[%c180, %c0_82] : memref<232x16xf32, #tpu.memory_space<vmem>>, vector<15x16xf32>
      %cst_83 = arith.constant dense<0.000000e+00> : vector<7x16xf32>
      %83 = tpu.matmul %63, %82, %cst_83 {dimension_numbers = #tpu.dot_dimension_numbers<[1], [0], [0], [1], [0, 0, 1, 1], [], []>} : vector<7x15xf32>, vector<15x16xf32>, vector<7x16xf32> -> vector<7x16xf32>
      %c64 = arith.constant 64 : index
      %c0_84 = arith.constant 0 : index
      %84 = vector.load %alloca[%c64, %c0_84] : memref<112x16xf32, #tpu.memory_space<vmem>>, vector<7x16xf32>
      tpu.vector_store %alloca[%c64, %c0_84], %83 {strides = array<i32>} : memref<112x16xf32, #tpu.memory_space<vmem>>, vector<7x16xf32>,
      %c0_85 = arith.constant 0 : index
      %c0_86 = arith.constant 0 : index
      %85 = vector.load %alloca[%c0_85, %c0_86] : memref<112x16xf32, #tpu.memory_space<vmem>>, vector<88x16xf32>
      %c1_87 = arith.constant 1 : index
      %c0_88 = arith.constant 0 : index
      %86 = vector.load %alloca[%c1_87, %c0_88] : memref<112x16xf32, #tpu.memory_space<vmem>>, vector<88x16xf32>
      %c2_89 = arith.constant 2 : index
      %c0_90 = arith.constant 0 : index
      %87 = vector.load %alloca[%c2_89, %c0_90] : memref<112x16xf32, #tpu.memory_space<vmem>>, vector<88x16xf32>
      %c9 = arith.constant 9 : index
      %c0_91 = arith.constant 0 : index
      %88 = vector.load %alloca[%c9, %c0_91] : memref<112x16xf32, #tpu.memory_space<vmem>>, vector<88x16xf32>
      %c10_92 = arith.constant 10 : index
      %c0_93 = arith.constant 0 : index
      %89 = vector.load %alloca[%c10_92, %c0_93] : memref<112x16xf32, #tpu.memory_space<vmem>>, vector<88x16xf32>
      %c11 = arith.constant 11 : index
      %c0_94 = arith.constant 0 : index
      %90 = vector.load %alloca[%c11, %c0_94] : memref<112x16xf32, #tpu.memory_space<vmem>>, vector<88x16xf32>
      %c18 = arith.constant 18 : index
      %c0_95 = arith.constant 0 : index
      %91 = vector.load %alloca[%c18, %c0_95] : memref<112x16xf32, #tpu.memory_space<vmem>>, vector<88x16xf32>
      %c19_96 = arith.constant 19 : index
      %c0_97 = arith.constant 0 : index
      %92 = vector.load %alloca[%c19_96, %c0_97] : memref<112x16xf32, #tpu.memory_space<vmem>>, vector<88x16xf32>
      %c20 = arith.constant 20 : index
      %c0_98 = arith.constant 0 : index
      %93 = vector.load %alloca[%c20, %c0_98] : memref<112x16xf32, #tpu.memory_space<vmem>>, vector<88x16xf32>
      %94 = tpu.concatenate %85, %86, %87, %88, %89, %90, %91, %92, %93 in 1 : vector<88x16xf32>, vector<88x16xf32>, vector<88x16xf32>, vector<88x16xf32>, vector<88x16xf32>, vector<88x16xf32>, vector<88x16xf32>, vector<88x16xf32>, vector<88x16xf32> -> vector<88x144xf32>
      %95 = arith.truncf %94 : vector<88x144xf32> to vector<88x144xbf16>
      %c0_99 = arith.constant 0 : index
      %c0_100 = arith.constant 0 : index
      %96 = vector.load %arg4[%c0_99, %c0_100] : memref<144x16xbf16, #tpu.memory_space<vmem>>, vector<144x16xbf16>
      %cst_101 = arith.constant dense<0.000000e+00> : vector<88x16xf32>
      %97 = tpu.matmul %95, %96, %cst_101 {dimension_numbers = #tpu.dot_dimension_numbers<[1], [0], [0], [1], [0, 0, 1, 1], [], []>} : vector<88x144xbf16>, vector<144x16xbf16>, vector<88x16xf32> -> vector<88x16xf32>
      %c0_102 = arith.constant 0 : index
      %c0_103 = arith.constant 0 : index
      %98 = vector.load %arg5[%c0_102, %c0_103] : memref<1x16xf32, #tpu.memory_space<vmem>>, vector<1x16xf32>
      %99 = vector.broadcast %98 : vector<1x16xf32> to vector<88x16xf32>
      %100 = arith.addf %97, %99 : vector<88x16xf32>
      %cst_104 = arith.constant 0.000000e+00 : f32
      %101 = vector.broadcast %cst_104 : f32 to vector<88x16xf32>
      %102 = arith.cmpf oge, %100, %101 : vector<88x16xf32>
      %cst_105 = arith.constant 0.00999999977 : f32
      %103 = vector.broadcast %cst_105 : f32 to vector<88x16xf32>
      %104 = arith.mulf %103, %100 : vector<88x16xf32>
      %105 = arith.select %102, %100, %104 : vector<88x16xi1>, vector<88x16xf32>
      %c0_106 = arith.constant 0 : index
      %c0_107 = arith.constant 0 : index
      %106 = vector.load %arg9[%c0_106, %c0_107] : memref<88x1xf32, #tpu.memory_space<vmem>>, vector<88x1xf32>
      %107 = vector.broadcast %106 : vector<88x1xf32> to vector<88x16xf32>
      %108 = arith.mulf %105, %107 : vector<88x16xf32>
      %cst_108 = arith.constant 0.000000e+00 : f32
      %109 = vector.broadcast %cst_108 : f32 to vector<10x16xf32>
      %c0_109 = arith.constant 0 : index
      %c0_110 = arith.constant 0 : index
      %110 = vector.load %alloca_25[%c0_109, %c0_110] : memref<112x16xf32, #tpu.memory_space<vmem>>, vector<10x16xf32>
      tpu.vector_store %alloca_25[%c0_109, %c0_110], %109 {strides = array<i32>} : memref<112x16xf32, #tpu.memory_space<vmem>>, vector<10x16xf32>,
      %c10_111 = arith.constant 10 : index
      %c0_112 = arith.constant 0 : index
      %111 = vector.load %alloca_25[%c10_111, %c0_112] : memref<112x16xf32, #tpu.memory_space<vmem>>, vector<88x16xf32>
      tpu.vector_store %alloca_25[%c10_111, %c0_112], %108 {strides = array<i32>} : memref<112x16xf32, #tpu.memory_space<vmem>>, vector<88x16xf32>,
      %cst_113 = arith.constant 0.000000e+00 : f32
      %112 = vector.broadcast %cst_113 : f32 to vector<14x16xf32>
      %c98 = arith.constant 98 : index
      %c0_114 = arith.constant 0 : index
      %113 = vector.load %alloca_25[%c98, %c0_114] : memref<112x16xf32, #tpu.memory_space<vmem>>, vector<14x16xf32>
      tpu.vector_store %alloca_25[%c98, %c0_114], %112 {strides = array<i32>} : memref<112x16xf32, #tpu.memory_space<vmem>>, vector<14x16xf32>,
      %c0_115 = arith.constant 0 : index
      %c0_116 = arith.constant 0 : index
      %114 = vector.load %alloca_25[%c0_115, %c0_116] : memref<112x16xf32, #tpu.memory_space<vmem>>, vector<88x16xf32>
      %c1_117 = arith.constant 1 : index
      %c0_118 = arith.constant 0 : index
      %115 = vector.load %alloca_25[%c1_117, %c0_118] : memref<112x16xf32, #tpu.memory_space<vmem>>, vector<88x16xf32>
      %c2_119 = arith.constant 2 : index
      %c0_120 = arith.constant 0 : index
      %116 = vector.load %alloca_25[%c2_119, %c0_120] : memref<112x16xf32, #tpu.memory_space<vmem>>, vector<88x16xf32>
      %c9_121 = arith.constant 9 : index
      %c0_122 = arith.constant 0 : index
      %117 = vector.load %alloca_25[%c9_121, %c0_122] : memref<112x16xf32, #tpu.memory_space<vmem>>, vector<88x16xf32>
      %c10_123 = arith.constant 10 : index
      %c0_124 = arith.constant 0 : index
      %118 = vector.load %alloca_25[%c10_123, %c0_124] : memref<112x16xf32, #tpu.memory_space<vmem>>, vector<88x16xf32>
      %c11_125 = arith.constant 11 : index
      %c0_126 = arith.constant 0 : index
      %119 = vector.load %alloca_25[%c11_125, %c0_126] : memref<112x16xf32, #tpu.memory_space<vmem>>, vector<88x16xf32>
      %c18_127 = arith.constant 18 : index
      %c0_128 = arith.constant 0 : index
      %120 = vector.load %alloca_25[%c18_127, %c0_128] : memref<112x16xf32, #tpu.memory_space<vmem>>, vector<88x16xf32>
      %c19_129 = arith.constant 19 : index
      %c0_130 = arith.constant 0 : index
      %121 = vector.load %alloca_25[%c19_129, %c0_130] : memref<112x16xf32, #tpu.memory_space<vmem>>, vector<88x16xf32>
      %c20_131 = arith.constant 20 : index
      %c0_132 = arith.constant 0 : index
      %122 = vector.load %alloca_25[%c20_131, %c0_132] : memref<112x16xf32, #tpu.memory_space<vmem>>, vector<88x16xf32>
      %123 = tpu.concatenate %114, %115, %116, %117, %118, %119, %120, %121, %122 in 1 : vector<88x16xf32>, vector<88x16xf32>, vector<88x16xf32>, vector<88x16xf32>, vector<88x16xf32>, vector<88x16xf32>, vector<88x16xf32>, vector<88x16xf32>, vector<88x16xf32> -> vector<88x144xf32>
      %124 = arith.truncf %123 : vector<88x144xf32> to vector<88x144xbf16>
      %c0_133 = arith.constant 0 : index
      %c0_134 = arith.constant 0 : index
      %125 = vector.load %arg6[%c0_133, %c0_134] : memref<144x16xbf16, #tpu.memory_space<vmem>>, vector<144x16xbf16>
      %cst_135 = arith.constant dense<0.000000e+00> : vector<88x16xf32>
      %126 = tpu.matmul %124, %125, %cst_135 {dimension_numbers = #tpu.dot_dimension_numbers<[1], [0], [0], [1], [0, 0, 1, 1], [], []>} : vector<88x144xbf16>, vector<144x16xbf16>, vector<88x16xf32> -> vector<88x16xf32>
      %c0_136 = arith.constant 0 : index
      %c0_137 = arith.constant 0 : index
      %127 = vector.load %arg7[%c0_136, %c0_137] : memref<1x16xf32, #tpu.memory_space<vmem>>, vector<1x16xf32>
      %128 = vector.broadcast %127 : vector<1x16xf32> to vector<88x16xf32>
      %129 = arith.addf %126, %128 : vector<88x16xf32>
      %c10_138 = arith.constant 10 : index
      %c0_139 = arith.constant 0 : index
      %130 = vector.load %alloca[%c10_138, %c0_139] : memref<112x16xf32, #tpu.memory_space<vmem>>, vector<88x16xf32>
      %131 = arith.addf %129, %130 : vector<88x16xf32>
      %cst_140 = arith.constant 0.000000e+00 : f32
      %132 = vector.broadcast %cst_140 : f32 to vector<88x16xf32>
      %133 = arith.cmpf oge, %131, %132 : vector<88x16xf32>
      %cst_141 = arith.constant 0.00999999977 : f32
      %134 = vector.broadcast %cst_141 : f32 to vector<88x16xf32>
      %135 = arith.mulf %134, %131 : vector<88x16xf32>
      %136 = arith.select %133, %131, %135 : vector<88x16xi1>, vector<88x16xf32>
      %c0_142 = arith.constant 0 : index
      %c0_143 = arith.constant 0 : index
      %137 = vector.load %arg9[%c0_142, %c0_143] : memref<88x1xf32, #tpu.memory_space<vmem>>, vector<88x1xf32>
      %138 = vector.broadcast %137 : vector<88x1xf32> to vector<88x16xf32>
      %139 = arith.mulf %136, %138 : vector<88x16xf32>
      %cst_144 = arith.constant 0.000000e+00 : f32
      %140 = vector.broadcast %cst_144 : f32 to vector<10x16xf32>
      %c0_145 = arith.constant 0 : index
      %c0_146 = arith.constant 0 : index
      %141 = vector.load %arg21[%c0_145, %c0_146] : memref<112x16xf32, #tpu.memory_space<vmem>>, vector<10x16xf32>
      tpu.vector_store %arg21[%c0_145, %c0_146], %140 {strides = array<i32>} : memref<112x16xf32, #tpu.memory_space<vmem>>, vector<10x16xf32>,
      %c10_147 = arith.constant 10 : index
      %c0_148 = arith.constant 0 : index
      %142 = vector.load %arg21[%c10_147, %c0_148] : memref<112x16xf32, #tpu.memory_space<vmem>>, vector<88x16xf32>
      tpu.vector_store %arg21[%c10_147, %c0_148], %139 {strides = array<i32>} : memref<112x16xf32, #tpu.memory_space<vmem>>, vector<88x16xf32>,
      %cst_149 = arith.constant 0.000000e+00 : f32
      %143 = vector.broadcast %cst_149 : f32 to vector<14x16xf32>
      %c98_150 = arith.constant 98 : index
      %c0_151 = arith.constant 0 : index
      %144 = vector.load %arg21[%c98_150, %c0_151] : memref<112x16xf32, #tpu.memory_space<vmem>>, vector<14x16xf32>
      tpu.vector_store %arg21[%c98_150, %c0_151], %143 {strides = array<i32>} : memref<112x16xf32, #tpu.memory_space<vmem>>, vector<14x16xf32>,
      tpu.yield
    }) : () -> ()
    "tpu.region"() ({
      %alloca = memref.alloca() : memref<56x32xf32, #tpu.memory_space<vmem>>
      %alloca_25 = memref.alloca() : memref<56x32xf32, #tpu.memory_space<vmem>>
      %alloca_26 = memref.alloca() : memref<88x32xf32, #tpu.memory_space<vmem>>
      %c0_27 = arith.constant 0 : index
      %c0_28 = arith.constant 0 : index
      %30 = vector.load %arg21[%c0_27, %c0_28] : memref<112x16xf32, #tpu.memory_space<vmem>>, vector<88x16xf32>
      %c1_29 = arith.constant 1 : index
      %c0_30 = arith.constant 0 : index
      %31 = vector.load %arg21[%c1_29, %c0_30] : memref<112x16xf32, #tpu.memory_space<vmem>>, vector<88x16xf32>
      %c2_31 = arith.constant 2 : index
      %c0_32 = arith.constant 0 : index
      %32 = vector.load %arg21[%c2_31, %c0_32] : memref<112x16xf32, #tpu.memory_space<vmem>>, vector<88x16xf32>
      %c9 = arith.constant 9 : index
      %c0_33 = arith.constant 0 : index
      %33 = vector.load %arg21[%c9, %c0_33] : memref<112x16xf32, #tpu.memory_space<vmem>>, vector<88x16xf32>
      %c10 = arith.constant 10 : index
      %c0_34 = arith.constant 0 : index
      %34 = vector.load %arg21[%c10, %c0_34] : memref<112x16xf32, #tpu.memory_space<vmem>>, vector<88x16xf32>
      %c11 = arith.constant 11 : index
      %c0_35 = arith.constant 0 : index
      %35 = vector.load %arg21[%c11, %c0_35] : memref<112x16xf32, #tpu.memory_space<vmem>>, vector<88x16xf32>
      %c18 = arith.constant 18 : index
      %c0_36 = arith.constant 0 : index
      %36 = vector.load %arg21[%c18, %c0_36] : memref<112x16xf32, #tpu.memory_space<vmem>>, vector<88x16xf32>
      %c19 = arith.constant 19 : index
      %c0_37 = arith.constant 0 : index
      %37 = vector.load %arg21[%c19, %c0_37] : memref<112x16xf32, #tpu.memory_space<vmem>>, vector<88x16xf32>
      %c20 = arith.constant 20 : index
      %c0_38 = arith.constant 0 : index
      %38 = vector.load %arg21[%c20, %c0_38] : memref<112x16xf32, #tpu.memory_space<vmem>>, vector<88x16xf32>
      %39 = tpu.concatenate %30, %31, %32, %33, %34, %35, %36, %37, %38 in 1 : vector<88x16xf32>, vector<88x16xf32>, vector<88x16xf32>, vector<88x16xf32>, vector<88x16xf32>, vector<88x16xf32>, vector<88x16xf32>, vector<88x16xf32>, vector<88x16xf32> -> vector<88x144xf32>
      %40 = arith.truncf %39 : vector<88x144xf32> to vector<88x144xbf16>
      %c0_39 = arith.constant 0 : index
      %c0_40 = arith.constant 0 : index
      %41 = vector.load %arg10[%c0_39, %c0_40] : memref<144x32xbf16, #tpu.memory_space<vmem>>, vector<144x32xbf16>
      %cst_41 = arith.constant dense<0.000000e+00> : vector<88x32xf32>
      %42 = tpu.matmul %40, %41, %cst_41 {dimension_numbers = #tpu.dot_dimension_numbers<[1], [0], [0], [1], [0, 0, 1, 1], [], []>} : vector<88x144xbf16>, vector<144x32xbf16>, vector<88x32xf32> -> vector<88x32xf32>
      %c0_42 = arith.constant 0 : index
      %c0_43 = arith.constant 0 : index
      %43 = vector.load %arg11[%c0_42, %c0_43] : memref<1x32xf32, #tpu.memory_space<vmem>>, vector<1x32xf32>
      %44 = vector.broadcast %43 : vector<1x32xf32> to vector<88x32xf32>
      %45 = arith.addf %42, %44 : vector<88x32xf32>
      %cst_44 = arith.constant 0.000000e+00 : f32
      %46 = vector.broadcast %cst_44 : f32 to vector<88x32xf32>
      %47 = arith.cmpf oge, %45, %46 : vector<88x32xf32>
      %cst_45 = arith.constant 0.00999999977 : f32
      %48 = vector.broadcast %cst_45 : f32 to vector<88x32xf32>
      %49 = arith.mulf %48, %45 : vector<88x32xf32>
      %50 = arith.select %47, %45, %49 : vector<88x32xi1>, vector<88x32xf32>
      %c0_46 = arith.constant 0 : index
      %c0_47 = arith.constant 0 : index
      %51 = vector.load %alloca_26[%c0_46, %c0_47] : memref<88x32xf32, #tpu.memory_space<vmem>>, vector<88x32xf32>
      tpu.vector_store %alloca_26[%c0_46, %c0_47], %50 {strides = array<i32>} : memref<88x32xf32, #tpu.memory_space<vmem>>, vector<88x32xf32>,
      %cst_48 = arith.constant 0.000000e+00 : f32
      %52 = vector.broadcast %cst_48 : f32 to vector<56x32xf32>
      %c0_49 = arith.constant 0 : index
      %c0_50 = arith.constant 0 : index
      %53 = vector.load %alloca[%c0_49, %c0_50] : memref<56x32xf32, #tpu.memory_space<vmem>>, vector<56x32xf32>
      tpu.vector_store %alloca[%c0_49, %c0_50], %52 {strides = array<i32>} : memref<56x32xf32, #tpu.memory_space<vmem>>, vector<56x32xf32>,
      %c0_51 = arith.constant 0 : index
      %c0_52 = arith.constant 0 : index
      %54 = vector.load %arg16[%c0_51, %c0_52] : memref<4x9xf32, #tpu.memory_space<vmem>>, vector<4x9xf32>
      %c0_53 = arith.constant 0 : index
      %c0_54 = arith.constant 0 : index
      %55 = vector.load %alloca_26[%c0_53, %c0_54] : memref<88x32xf32, #tpu.memory_space<vmem>>, vector<9x32xf32>
      %cst_55 = arith.constant dense<0.000000e+00> : vector<4x32xf32>
      %56 = tpu.matmul %54, %55, %cst_55 {dimension_numbers = #tpu.dot_dimension_numbers<[1], [0], [0], [1], [0, 0, 1, 1], [], []>} : vector<4x9xf32>, vector<9x32xf32>, vector<4x32xf32> -> vector<4x32xf32>
      %c7_56 = arith.constant 7 : index
      %c0_57 = arith.constant 0 : index
      %57 = vector.load %alloca[%c7_56, %c0_57] : memref<56x32xf32, #tpu.memory_space<vmem>>, vector<4x32xf32>
      tpu.vector_store %alloca[%c7_56, %c0_57], %56 {strides = array<i32>} : memref<56x32xf32, #tpu.memory_space<vmem>>, vector<4x32xf32>,
      %c18_58 = arith.constant 18 : index
      %c0_59 = arith.constant 0 : index
      %58 = vector.load %alloca_26[%c18_58, %c0_59] : memref<88x32xf32, #tpu.memory_space<vmem>>, vector<9x32xf32>
      %cst_60 = arith.constant dense<0.000000e+00> : vector<4x32xf32>
      %59 = tpu.matmul %54, %58, %cst_60 {dimension_numbers = #tpu.dot_dimension_numbers<[1], [0], [0], [1], [0, 0, 1, 1], [], []>} : vector<4x9xf32>, vector<9x32xf32>, vector<4x32xf32> -> vector<4x32xf32>
      %c13_61 = arith.constant 13 : index
      %c0_62 = arith.constant 0 : index
      %60 = vector.load %alloca[%c13_61, %c0_62] : memref<56x32xf32, #tpu.memory_space<vmem>>, vector<4x32xf32>
      tpu.vector_store %alloca[%c13_61, %c0_62], %59 {strides = array<i32>} : memref<56x32xf32, #tpu.memory_space<vmem>>, vector<4x32xf32>,
      %c36 = arith.constant 36 : index
      %c0_63 = arith.constant 0 : index
      %61 = vector.load %alloca_26[%c36, %c0_63] : memref<88x32xf32, #tpu.memory_space<vmem>>, vector<9x32xf32>
      %cst_64 = arith.constant dense<0.000000e+00> : vector<4x32xf32>
      %62 = tpu.matmul %54, %61, %cst_64 {dimension_numbers = #tpu.dot_dimension_numbers<[1], [0], [0], [1], [0, 0, 1, 1], [], []>} : vector<4x9xf32>, vector<9x32xf32>, vector<4x32xf32> -> vector<4x32xf32>
      %c19_65 = arith.constant 19 : index
      %c0_66 = arith.constant 0 : index
      %63 = vector.load %alloca[%c19_65, %c0_66] : memref<56x32xf32, #tpu.memory_space<vmem>>, vector<4x32xf32>
      tpu.vector_store %alloca[%c19_65, %c0_66], %62 {strides = array<i32>} : memref<56x32xf32, #tpu.memory_space<vmem>>, vector<4x32xf32>,
      %c54 = arith.constant 54 : index
      %c0_67 = arith.constant 0 : index
      %64 = vector.load %alloca_26[%c54, %c0_67] : memref<88x32xf32, #tpu.memory_space<vmem>>, vector<9x32xf32>
      %cst_68 = arith.constant dense<0.000000e+00> : vector<4x32xf32>
      %65 = tpu.matmul %54, %64, %cst_68 {dimension_numbers = #tpu.dot_dimension_numbers<[1], [0], [0], [1], [0, 0, 1, 1], [], []>} : vector<4x9xf32>, vector<9x32xf32>, vector<4x32xf32> -> vector<4x32xf32>
      %c25 = arith.constant 25 : index
      %c0_69 = arith.constant 0 : index
      %66 = vector.load %alloca[%c25, %c0_69] : memref<56x32xf32, #tpu.memory_space<vmem>>, vector<4x32xf32>
      tpu.vector_store %alloca[%c25, %c0_69], %65 {strides = array<i32>} : memref<56x32xf32, #tpu.memory_space<vmem>>, vector<4x32xf32>,
      %c0_70 = arith.constant 0 : index
      %c0_71 = arith.constant 0 : index
      %67 = vector.load %alloca[%c0_70, %c0_71] : memref<56x32xf32, #tpu.memory_space<vmem>>, vector<40x32xf32>
      %c1_72 = arith.constant 1 : index
      %c0_73 = arith.constant 0 : index
      %68 = vector.load %alloca[%c1_72, %c0_73] : memref<56x32xf32, #tpu.memory_space<vmem>>, vector<40x32xf32>
      %c2_74 = arith.constant 2 : index
      %c0_75 = arith.constant 0 : index
      %69 = vector.load %alloca[%c2_74, %c0_75] : memref<56x32xf32, #tpu.memory_space<vmem>>, vector<40x32xf32>
      %c6_76 = arith.constant 6 : index
      %c0_77 = arith.constant 0 : index
      %70 = vector.load %alloca[%c6_76, %c0_77] : memref<56x32xf32, #tpu.memory_space<vmem>>, vector<40x32xf32>
      %c7_78 = arith.constant 7 : index
      %c0_79 = arith.constant 0 : index
      %71 = vector.load %alloca[%c7_78, %c0_79] : memref<56x32xf32, #tpu.memory_space<vmem>>, vector<40x32xf32>
      %c8_80 = arith.constant 8 : index
      %c0_81 = arith.constant 0 : index
      %72 = vector.load %alloca[%c8_80, %c0_81] : memref<56x32xf32, #tpu.memory_space<vmem>>, vector<40x32xf32>
      %c12_82 = arith.constant 12 : index
      %c0_83 = arith.constant 0 : index
      %73 = vector.load %alloca[%c12_82, %c0_83] : memref<56x32xf32, #tpu.memory_space<vmem>>, vector<40x32xf32>
      %c13_84 = arith.constant 13 : index
      %c0_85 = arith.constant 0 : index
      %74 = vector.load %alloca[%c13_84, %c0_85] : memref<56x32xf32, #tpu.memory_space<vmem>>, vector<40x32xf32>
      %c14_86 = arith.constant 14 : index
      %c0_87 = arith.constant 0 : index
      %75 = vector.load %alloca[%c14_86, %c0_87] : memref<56x32xf32, #tpu.memory_space<vmem>>, vector<40x32xf32>
      %76 = tpu.concatenate %67, %68, %69, %70, %71, %72, %73, %74, %75 in 1 : vector<40x32xf32>, vector<40x32xf32>, vector<40x32xf32>, vector<40x32xf32>, vector<40x32xf32>, vector<40x32xf32>, vector<40x32xf32>, vector<40x32xf32>, vector<40x32xf32> -> vector<40x288xf32>
      %77 = arith.truncf %76 : vector<40x288xf32> to vector<40x288xbf16>
      %c0_88 = arith.constant 0 : index
      %c0_89 = arith.constant 0 : index
      %78 = vector.load %arg12[%c0_88, %c0_89] : memref<288x32xbf16, #tpu.memory_space<vmem>>, vector<288x32xbf16>
      %cst_90 = arith.constant dense<0.000000e+00> : vector<40x32xf32>
      %79 = tpu.matmul %77, %78, %cst_90 {dimension_numbers = #tpu.dot_dimension_numbers<[1], [0], [0], [1], [0, 0, 1, 1], [], []>} : vector<40x288xbf16>, vector<288x32xbf16>, vector<40x32xf32> -> vector<40x32xf32>
      %c0_91 = arith.constant 0 : index
      %c0_92 = arith.constant 0 : index
      %80 = vector.load %arg13[%c0_91, %c0_92] : memref<1x32xf32, #tpu.memory_space<vmem>>, vector<1x32xf32>
      %81 = vector.broadcast %80 : vector<1x32xf32> to vector<40x32xf32>
      %82 = arith.addf %79, %81 : vector<40x32xf32>
      %cst_93 = arith.constant 0.000000e+00 : f32
      %83 = vector.broadcast %cst_93 : f32 to vector<40x32xf32>
      %84 = arith.cmpf oge, %82, %83 : vector<40x32xf32>
      %cst_94 = arith.constant 0.00999999977 : f32
      %85 = vector.broadcast %cst_94 : f32 to vector<40x32xf32>
      %86 = arith.mulf %85, %82 : vector<40x32xf32>
      %87 = arith.select %84, %82, %86 : vector<40x32xi1>, vector<40x32xf32>
      %c0_95 = arith.constant 0 : index
      %c0_96 = arith.constant 0 : index
      %88 = vector.load %arg17[%c0_95, %c0_96] : memref<40x1xf32, #tpu.memory_space<vmem>>, vector<40x1xf32>
      %89 = vector.broadcast %88 : vector<40x1xf32> to vector<40x32xf32>
      %90 = arith.mulf %87, %89 : vector<40x32xf32>
      %cst_97 = arith.constant 0.000000e+00 : f32
      %91 = vector.broadcast %cst_97 : f32 to vector<7x32xf32>
      %c0_98 = arith.constant 0 : index
      %c0_99 = arith.constant 0 : index
      %92 = vector.load %alloca_25[%c0_98, %c0_99] : memref<56x32xf32, #tpu.memory_space<vmem>>, vector<7x32xf32>
      tpu.vector_store %alloca_25[%c0_98, %c0_99], %91 {strides = array<i32>} : memref<56x32xf32, #tpu.memory_space<vmem>>, vector<7x32xf32>,
      %c7_100 = arith.constant 7 : index
      %c0_101 = arith.constant 0 : index
      %93 = vector.load %alloca_25[%c7_100, %c0_101] : memref<56x32xf32, #tpu.memory_space<vmem>>, vector<40x32xf32>
      tpu.vector_store %alloca_25[%c7_100, %c0_101], %90 {strides = array<i32>} : memref<56x32xf32, #tpu.memory_space<vmem>>, vector<40x32xf32>,
      %cst_102 = arith.constant 0.000000e+00 : f32
      %94 = vector.broadcast %cst_102 : f32 to vector<9x32xf32>
      %c47_103 = arith.constant 47 : index
      %c0_104 = arith.constant 0 : index
      %95 = vector.load %alloca_25[%c47_103, %c0_104] : memref<56x32xf32, #tpu.memory_space<vmem>>, vector<9x32xf32>
      tpu.vector_store %alloca_25[%c47_103, %c0_104], %94 {strides = array<i32>} : memref<56x32xf32, #tpu.memory_space<vmem>>, vector<9x32xf32>,
      %c0_105 = arith.constant 0 : index
      %c0_106 = arith.constant 0 : index
      %96 = vector.load %alloca_25[%c0_105, %c0_106] : memref<56x32xf32, #tpu.memory_space<vmem>>, vector<40x32xf32>
      %c1_107 = arith.constant 1 : index
      %c0_108 = arith.constant 0 : index
      %97 = vector.load %alloca_25[%c1_107, %c0_108] : memref<56x32xf32, #tpu.memory_space<vmem>>, vector<40x32xf32>
      %c2_109 = arith.constant 2 : index
      %c0_110 = arith.constant 0 : index
      %98 = vector.load %alloca_25[%c2_109, %c0_110] : memref<56x32xf32, #tpu.memory_space<vmem>>, vector<40x32xf32>
      %c6_111 = arith.constant 6 : index
      %c0_112 = arith.constant 0 : index
      %99 = vector.load %alloca_25[%c6_111, %c0_112] : memref<56x32xf32, #tpu.memory_space<vmem>>, vector<40x32xf32>
      %c7_113 = arith.constant 7 : index
      %c0_114 = arith.constant 0 : index
      %100 = vector.load %alloca_25[%c7_113, %c0_114] : memref<56x32xf32, #tpu.memory_space<vmem>>, vector<40x32xf32>
      %c8_115 = arith.constant 8 : index
      %c0_116 = arith.constant 0 : index
      %101 = vector.load %alloca_25[%c8_115, %c0_116] : memref<56x32xf32, #tpu.memory_space<vmem>>, vector<40x32xf32>
      %c12_117 = arith.constant 12 : index
      %c0_118 = arith.constant 0 : index
      %102 = vector.load %alloca_25[%c12_117, %c0_118] : memref<56x32xf32, #tpu.memory_space<vmem>>, vector<40x32xf32>
      %c13_119 = arith.constant 13 : index
      %c0_120 = arith.constant 0 : index
      %103 = vector.load %alloca_25[%c13_119, %c0_120] : memref<56x32xf32, #tpu.memory_space<vmem>>, vector<40x32xf32>
      %c14_121 = arith.constant 14 : index
      %c0_122 = arith.constant 0 : index
      %104 = vector.load %alloca_25[%c14_121, %c0_122] : memref<56x32xf32, #tpu.memory_space<vmem>>, vector<40x32xf32>
      %105 = tpu.concatenate %96, %97, %98, %99, %100, %101, %102, %103, %104 in 1 : vector<40x32xf32>, vector<40x32xf32>, vector<40x32xf32>, vector<40x32xf32>, vector<40x32xf32>, vector<40x32xf32>, vector<40x32xf32>, vector<40x32xf32>, vector<40x32xf32> -> vector<40x288xf32>
      %106 = arith.truncf %105 : vector<40x288xf32> to vector<40x288xbf16>
      %c0_123 = arith.constant 0 : index
      %c0_124 = arith.constant 0 : index
      %107 = vector.load %arg14[%c0_123, %c0_124] : memref<288x32xbf16, #tpu.memory_space<vmem>>, vector<288x32xbf16>
      %cst_125 = arith.constant dense<0.000000e+00> : vector<40x32xf32>
      %108 = tpu.matmul %106, %107, %cst_125 {dimension_numbers = #tpu.dot_dimension_numbers<[1], [0], [0], [1], [0, 0, 1, 1], [], []>} : vector<40x288xbf16>, vector<288x32xbf16>, vector<40x32xf32> -> vector<40x32xf32>
      %c0_126 = arith.constant 0 : index
      %c0_127 = arith.constant 0 : index
      %109 = vector.load %arg15[%c0_126, %c0_127] : memref<1x32xf32, #tpu.memory_space<vmem>>, vector<1x32xf32>
      %110 = vector.broadcast %109 : vector<1x32xf32> to vector<40x32xf32>
      %111 = arith.addf %108, %110 : vector<40x32xf32>
      %c7_128 = arith.constant 7 : index
      %c0_129 = arith.constant 0 : index
      %112 = vector.load %alloca[%c7_128, %c0_129] : memref<56x32xf32, #tpu.memory_space<vmem>>, vector<40x32xf32>
      %113 = arith.addf %111, %112 : vector<40x32xf32>
      %cst_130 = arith.constant 0.000000e+00 : f32
      %114 = vector.broadcast %cst_130 : f32 to vector<40x32xf32>
      %115 = arith.cmpf oge, %113, %114 : vector<40x32xf32>
      %cst_131 = arith.constant 0.00999999977 : f32
      %116 = vector.broadcast %cst_131 : f32 to vector<40x32xf32>
      %117 = arith.mulf %116, %113 : vector<40x32xf32>
      %118 = arith.select %115, %113, %117 : vector<40x32xi1>, vector<40x32xf32>
      %c0_132 = arith.constant 0 : index
      %c0_133 = arith.constant 0 : index
      %119 = vector.load %arg17[%c0_132, %c0_133] : memref<40x1xf32, #tpu.memory_space<vmem>>, vector<40x1xf32>
      %120 = vector.broadcast %119 : vector<40x1xf32> to vector<40x32xf32>
      %121 = arith.mulf %118, %120 : vector<40x32xf32>
      %cst_134 = arith.constant 0.000000e+00 : f32
      %122 = vector.broadcast %cst_134 : f32 to vector<7x32xf32>
      %c0_135 = arith.constant 0 : index
      %c0_136 = arith.constant 0 : index
      %123 = vector.load %arg22[%c0_135, %c0_136] : memref<56x32xf32, #tpu.memory_space<vmem>>, vector<7x32xf32>
      tpu.vector_store %arg22[%c0_135, %c0_136], %122 {strides = array<i32>} : memref<56x32xf32, #tpu.memory_space<vmem>>, vector<7x32xf32>,
      %c7_137 = arith.constant 7 : index
      %c0_138 = arith.constant 0 : index
      %124 = vector.load %arg22[%c7_137, %c0_138] : memref<56x32xf32, #tpu.memory_space<vmem>>, vector<40x32xf32>
      tpu.vector_store %arg22[%c7_137, %c0_138], %121 {strides = array<i32>} : memref<56x32xf32, #tpu.memory_space<vmem>>, vector<40x32xf32>,
      %cst_139 = arith.constant 0.000000e+00 : f32
      %125 = vector.broadcast %cst_139 : f32 to vector<9x32xf32>
      %c47_140 = arith.constant 47 : index
      %c0_141 = arith.constant 0 : index
      %126 = vector.load %arg22[%c47_140, %c0_141] : memref<56x32xf32, #tpu.memory_space<vmem>>, vector<9x32xf32>
      tpu.vector_store %arg22[%c47_140, %c0_141], %125 {strides = array<i32>} : memref<56x32xf32, #tpu.memory_space<vmem>>, vector<9x32xf32>,
      tpu.yield
    }) : () -> ()
    %c0 = arith.constant 0 : index
    %c0_0 = arith.constant 0 : index
    %0 = vector.load %arg22[%c0, %c0_0] : memref<56x32xf32, #tpu.memory_space<vmem>>, vector<40x32xf32>
    %c1 = arith.constant 1 : index
    %c0_1 = arith.constant 0 : index
    %1 = vector.load %arg22[%c1, %c0_1] : memref<56x32xf32, #tpu.memory_space<vmem>>, vector<40x32xf32>
    %c2 = arith.constant 2 : index
    %c0_2 = arith.constant 0 : index
    %2 = vector.load %arg22[%c2, %c0_2] : memref<56x32xf32, #tpu.memory_space<vmem>>, vector<40x32xf32>
    %c6 = arith.constant 6 : index
    %c0_3 = arith.constant 0 : index
    %3 = vector.load %arg22[%c6, %c0_3] : memref<56x32xf32, #tpu.memory_space<vmem>>, vector<40x32xf32>
    %c7 = arith.constant 7 : index
    %c0_4 = arith.constant 0 : index
    %4 = vector.load %arg22[%c7, %c0_4] : memref<56x32xf32, #tpu.memory_space<vmem>>, vector<40x32xf32>
    %c8 = arith.constant 8 : index
    %c0_5 = arith.constant 0 : index
    %5 = vector.load %arg22[%c8, %c0_5] : memref<56x32xf32, #tpu.memory_space<vmem>>, vector<40x32xf32>
    %c12 = arith.constant 12 : index
    %c0_6 = arith.constant 0 : index
    %6 = vector.load %arg22[%c12, %c0_6] : memref<56x32xf32, #tpu.memory_space<vmem>>, vector<40x32xf32>
    %c13 = arith.constant 13 : index
    %c0_7 = arith.constant 0 : index
    %7 = vector.load %arg22[%c13, %c0_7] : memref<56x32xf32, #tpu.memory_space<vmem>>, vector<40x32xf32>
    %c14 = arith.constant 14 : index
    %c0_8 = arith.constant 0 : index
    %8 = vector.load %arg22[%c14, %c0_8] : memref<56x32xf32, #tpu.memory_space<vmem>>, vector<40x32xf32>
    %9 = tpu.concatenate %0, %1, %2, %3, %4, %5, %6, %7, %8 in 1 : vector<40x32xf32>, vector<40x32xf32>, vector<40x32xf32>, vector<40x32xf32>, vector<40x32xf32>, vector<40x32xf32>, vector<40x32xf32>, vector<40x32xf32>, vector<40x32xf32> -> vector<40x288xf32>
    %10 = arith.truncf %9 : vector<40x288xf32> to vector<40x288xbf16>
    %c0_9 = arith.constant 0 : index
    %c0_10 = arith.constant 0 : index
    %11 = vector.load %arg18[%c0_9, %c0_10] : memref<288x8xbf16, #tpu.memory_space<vmem>>, vector<288x8xbf16>
    %cst = arith.constant dense<0.000000e+00> : vector<40x8xf32>
    %12 = tpu.matmul %10, %11, %cst {dimension_numbers = #tpu.dot_dimension_numbers<[1], [0], [0], [1], [0, 0, 1, 1], [], []>} : vector<40x288xbf16>, vector<288x8xbf16>, vector<40x8xf32> -> vector<40x8xf32>
    %c0_11 = arith.constant 0 : index
    %c0_12 = arith.constant 0 : index
    %13 = vector.load %arg19[%c0_11, %c0_12] : memref<1x8xf32, #tpu.memory_space<vmem>>, vector<1x8xf32>
    %14 = vector.broadcast %13 : vector<1x8xf32> to vector<40x8xf32>
    %15 = arith.addf %12, %14 : vector<40x8xf32>
    %c0_13 = arith.constant 0 : index
    %c0_14 = arith.constant 0 : index
    %16 = vector.load %arg17[%c0_13, %c0_14] : memref<40x1xf32, #tpu.memory_space<vmem>>, vector<40x1xf32>
    %17 = vector.broadcast %16 : vector<40x1xf32> to vector<40x8xf32>
    %18 = arith.mulf %15, %17 : vector<40x8xf32>
    %cst_15 = arith.constant 0.000000e+00 : f32
    %19 = vector.broadcast %cst_15 : f32 to vector<7x8xf32>
    %c0_16 = arith.constant 0 : index
    %c0_17 = arith.constant 0 : index
    %c0_18 = arith.constant 0 : index
    %20 = vector.load %arg20[%c0_16, %c0_17, %c0_18] : memref<1x48x8xf32, #tpu.memory_space<vmem>>, vector<1x7x8xf32>
    %21 = vector.shape_cast %20 : vector<1x7x8xf32> to vector<7x8xf32>
    %22 = vector.shape_cast %19 : vector<7x8xf32> to vector<1x7x8xf32>
    tpu.vector_store %arg20[%c0_16, %c0_17, %c0_18], %22 {strides = array<i32>} : memref<1x48x8xf32, #tpu.memory_space<vmem>>, vector<1x7x8xf32>,
    %c0_19 = arith.constant 0 : index
    %c7_20 = arith.constant 7 : index
    %c0_21 = arith.constant 0 : index
    %23 = vector.load %arg20[%c0_19, %c7_20, %c0_21] : memref<1x48x8xf32, #tpu.memory_space<vmem>>, vector<1x40x8xf32>
    %24 = vector.shape_cast %23 : vector<1x40x8xf32> to vector<40x8xf32>
    %25 = vector.shape_cast %18 : vector<40x8xf32> to vector<1x40x8xf32>
    tpu.vector_store %arg20[%c0_19, %c7_20, %c0_21], %25 {strides = array<i32>} : memref<1x48x8xf32, #tpu.memory_space<vmem>>, vector<1x40x8xf32>,
    %cst_22 = arith.constant 0.000000e+00 : f32
    %26 = vector.broadcast %cst_22 : f32 to vector<1x8xf32>
    %c0_23 = arith.constant 0 : index
    %c47 = arith.constant 47 : index
    %c0_24 = arith.constant 0 : index
    %27 = vector.load %arg20[%c0_23, %c47, %c0_24] : memref<1x48x8xf32, #tpu.memory_space<vmem>>, vector<1x1x8xf32>
    %28 = vector.shape_cast %27 : vector<1x1x8xf32> to vector<1x8xf32>
    %29 = vector.shape_cast %26 : vector<1x8xf32> to vector<1x1x8xf32>
    tpu.vector_store %arg20[%c0_23, %c47, %c0_24], %29 {strides = array<i32>} : memref<1x48x8xf32, #tpu.memory_space<vmem>>, vector<1x1x8xf32>,
    return
  }
  func.func @transform_0(%arg0: i32) -> (i32, i32, i32) {
    %c0_i32 = arith.constant 0 : i32
    %c0_i32_0 = arith.constant 0 : i32
    %c0_i32_1 = arith.constant 0 : i32
    return %arg0, %c0_i32, %c0_i32_0 : i32, i32, i32
  }
  func.func @transform_1(%arg0: i32) -> (i32, i32) {
    %c0_i32 = arith.constant 0 : i32
    %c0_i32_0 = arith.constant 0 : i32
    %c0_i32_1 = arith.constant 0 : i32
    return %c0_i32, %c0_i32_0 : i32, i32
  }
  func.func @transform_2(%arg0: i32) -> (i32, i32) {
    %c0_i32 = arith.constant 0 : i32
    %c0_i32_0 = arith.constant 0 : i32
    %c0_i32_1 = arith.constant 0 : i32
    return %c0_i32, %c0_i32_0 : i32, i32
  }
  func.func @transform_3(%arg0: i32) -> (i32, i32) {
    %c0_i32 = arith.constant 0 : i32
    %c0_i32_0 = arith.constant 0 : i32
    %c0_i32_1 = arith.constant 0 : i32
    return %c0_i32, %c0_i32_0 : i32, i32
  }
  func.func @transform_4(%arg0: i32) -> (i32, i32) {
    %c0_i32 = arith.constant 0 : i32
    %c0_i32_0 = arith.constant 0 : i32
    %c0_i32_1 = arith.constant 0 : i32
    return %c0_i32, %c0_i32_0 : i32, i32
  }
  func.func @transform_5(%arg0: i32) -> (i32, i32) {
    %c0_i32 = arith.constant 0 : i32
    %c0_i32_0 = arith.constant 0 : i32
    %c0_i32_1 = arith.constant 0 : i32
    return %c0_i32, %c0_i32_0 : i32, i32
  }
  func.func @transform_6(%arg0: i32) -> (i32, i32) {
    %c0_i32 = arith.constant 0 : i32
    %c0_i32_0 = arith.constant 0 : i32
    %c0_i32_1 = arith.constant 0 : i32
    return %c0_i32, %c0_i32_0 : i32, i32
  }
  func.func @transform_7(%arg0: i32) -> (i32, i32) {
    %c0_i32 = arith.constant 0 : i32
    %c0_i32_0 = arith.constant 0 : i32
    %c0_i32_1 = arith.constant 0 : i32
    return %c0_i32, %c0_i32_0 : i32, i32
  }
  func.func @transform_8(%arg0: i32) -> (i32, i32) {
    %c0_i32 = arith.constant 0 : i32
    %c0_i32_0 = arith.constant 0 : i32
    %c0_i32_1 = arith.constant 0 : i32
    return %c0_i32, %c0_i32_0 : i32, i32
  }
  func.func @transform_9(%arg0: i32) -> (i32, i32) {
    %c0_i32 = arith.constant 0 : i32
    %c0_i32_0 = arith.constant 0 : i32
    %c0_i32_1 = arith.constant 0 : i32
    return %c0_i32, %c0_i32_0 : i32, i32
  }
  func.func @transform_10(%arg0: i32) -> (i32, i32) {
    %c0_i32 = arith.constant 0 : i32
    %c0_i32_0 = arith.constant 0 : i32
    %c0_i32_1 = arith.constant 0 : i32
    return %c0_i32, %c0_i32_0 : i32, i32
  }
  func.func @transform_11(%arg0: i32) -> (i32, i32) {
    %c0_i32 = arith.constant 0 : i32
    %c0_i32_0 = arith.constant 0 : i32
    %c0_i32_1 = arith.constant 0 : i32
    return %c0_i32, %c0_i32_0 : i32, i32
  }
  func.func @transform_12(%arg0: i32) -> (i32, i32) {
    %c0_i32 = arith.constant 0 : i32
    %c0_i32_0 = arith.constant 0 : i32
    %c0_i32_1 = arith.constant 0 : i32
    return %c0_i32, %c0_i32_0 : i32, i32
  }
  func.func @transform_13(%arg0: i32) -> (i32, i32) {
    %c0_i32 = arith.constant 0 : i32
    %c0_i32_0 = arith.constant 0 : i32
    %c0_i32_1 = arith.constant 0 : i32
    return %c0_i32, %c0_i32_0 : i32, i32
  }
  func.func @transform_14(%arg0: i32) -> (i32, i32) {
    %c0_i32 = arith.constant 0 : i32
    %c0_i32_0 = arith.constant 0 : i32
    %c0_i32_1 = arith.constant 0 : i32
    return %c0_i32, %c0_i32_0 : i32, i32
  }
  func.func @transform_15(%arg0: i32) -> (i32, i32) {
    %c0_i32 = arith.constant 0 : i32
    %c0_i32_0 = arith.constant 0 : i32
    %c0_i32_1 = arith.constant 0 : i32
    return %c0_i32, %c0_i32_0 : i32, i32
  }
  func.func @transform_16(%arg0: i32) -> (i32, i32) {
    %c0_i32 = arith.constant 0 : i32
    %c0_i32_0 = arith.constant 0 : i32
    %c0_i32_1 = arith.constant 0 : i32
    return %c0_i32, %c0_i32_0 : i32, i32
  }
  func.func @transform_17(%arg0: i32) -> (i32, i32) {
    %c0_i32 = arith.constant 0 : i32
    %c0_i32_0 = arith.constant 0 : i32
    %c0_i32_1 = arith.constant 0 : i32
    return %c0_i32, %c0_i32_0 : i32, i32
  }
  func.func @transform_18(%arg0: i32) -> (i32, i32) {
    %c0_i32 = arith.constant 0 : i32
    %c0_i32_0 = arith.constant 0 : i32
    %c0_i32_1 = arith.constant 0 : i32
    return %c0_i32, %c0_i32_0 : i32, i32
  }
  func.func @transform_19(%arg0: i32) -> (i32, i32, i32) {
    %c0_i32 = arith.constant 0 : i32
    %c0_i32_0 = arith.constant 0 : i32
    %c0_i32_1 = arith.constant 0 : i32
    return %arg0, %c0_i32, %c0_i32_0 : i32, i32, i32
  }
}

</mosaic_0001>

<bundles_post_ra>
// kernel: tpu_custom_call.1
= control target key start
LH: loop header
LB: loop body
LE: loop exit
PB: predicated region body
PF: predicated region fallthrough
CT: control target
= control target key end

     0   :  { %s11114_s0 = inlined_call_operand.vmem [shape: f32[2,264,4], index: 0, kind: input, shape index: {}]   ;;  %s11115_s1 = inlined_call_operand.vmem [shape: bf16[36,16], index: 1, kind: input, shape index: {}]   ;;  %s11116_s2 = inlined_call_operand.vmem [shape: f32[1,16], index: 2, kind: input, shape index: {}]   ;;  %s11117_s3 = inlined_call_operand.vmem [shape: bf16[144,16], index: 3, kind: input, shape index: {}]   ;;  %s11118_s4 = inlined_call_operand.vmem [shape: f32[1,16], index: 4, kind: input, shape index: {}]   ;;  %s11119_s5 = inlined_call_operand.vmem [shape: bf16[144,16], index: 5, kind: input, shape index: {}]   ;;  %s11120_s6 = inlined_call_operand.vmem [shape: f32[1,16], index: 6, kind: input, shape index: {}]   ;;  %s11121_s7 = inlined_call_operand.vmem [shape: f32[7,15], index: 7, kind: input, shape index: {}]   ;;  %s11122_s8 = inlined_call_operand.vmem [shape: f32[88,1], index: 8, kind: input, shape index: {}]   ;;  %s11123_s9 = inlined_call_operand.vmem [shape: bf16[144,32], index: 9, kind: input, shape index: {}]   ;;  %s11124_s10 = inlined_call_operand.vmem [shape: f32[1,32], index: 10, kind: input, shape index: {}]   ;;  %s11125_s11 = inlined_call_operand.vmem [shape: bf16[288,32], index: 11, kind: input, shape index: {}]   ;;  %s11126_s12 = inlined_call_operand.vmem [shape: f32[1,32], index: 12, kind: input, shape index: {}]   ;;  %s11127_s13 = inlined_call_operand.vmem [shape: bf16[288,32], index: 13, kind: input, shape index: {}]   ;;  %s11128_s14 = inlined_call_operand.vmem [shape: f32[1,32], index: 14, kind: input, shape index: {}]   ;;  %s11129_s15 = inlined_call_operand.vmem [shape: f32[4,9], index: 15, kind: input, shape index: {}]   ;;  %s11130_s16 = inlined_call_operand.vmem [shape: f32[40,1], index: 16, kind: input, shape index: {}]   ;;  %s11131_s17 = inlined_call_operand.vmem [shape: bf16[288,8], index: 17, kind: input, shape index: {}]   ;;  %s11132_s18 = inlined_call_operand.vmem [shape: f32[1,8], index: 18, kind: input, shape index: {}]   ;;  %s11133_s19 = inlined_call_operand.vmem [shape: f32[2,48,8], index: 19, kind: output, shape index: {}]  }
   0x1   :  { %11165 = sst [smem:[#allocation10_spill]] %s11114_s0  ;;  %s8951_s0 = smov 0  }
   0x2   :  { %11166 = sst [smem:[#allocation11_spill]] %s11115_s1 }
   0x3   :  { %11167 = sst [smem:[#allocation12_spill]] %s11116_s2 }
   0x4   :  { %11168 = sst [smem:[#allocation13_spill]] %s11117_s3 }
   0x5   :  { %11169 = sst [smem:[#allocation14_spill]] %s11118_s4 }
   0x6   :  { %11170 = sst [smem:[#allocation15_spill]] %s11121_s7 }
   0x7   :  { %11171 = sst [smem:[#allocation16_spill]] %s11133_s19 }
   0x8 LB: > { %s6819_s30 = sadd.s32 4294967295, %s8817_s0   ;;  %p6823_p0 = scmp.ge.s32.totalorder %s8817_s0, 1  ;;  %s8817_s0 = sphi %s8951_s0, %s29_s0  }
   0x9   : > { %p537_p1 = scmp.lt.s32.totalorder %s8817_s0, 3 }
   0xb   : > { %p538_p2 = pnand %p6823_p0, %p537_p1 }
   0xc   : > { %p593_p3 = scmp.lt.s32.totalorder (!%p538_p2), %s6819_s30, 1  ;;  %s11172_s2 = sld [smem:[#allocation10_spill]] (!%p538_p2) }
   0xd   : > { %541 = sbr.rel (%p538_p2) target bundleno = 3139 (0xc43), region = 96  ;;  %s11173_s19 = sld [smem:[#allocation16_spill]] (!%p538_p2) }
  0x12   : > { %s11194_s30 = smov (!%p593_p3, %s6819_s30), 1 }
  0x13   : > { %s7342_s20 = smul.u32 264, %s11194_s30 }
  0x14   : > { %s7343_s21 = smul.u32 48, %s11194_s30 }
  0x15   : > { %s8962_s23 = scalar_lea.vmem %s11172_s2, %s7342_s20 }
  0x16   : > { %s8967_s3 = scalar_lea.vmem %s11173_s19, %s7343_s21 }
  0x17   : > { %v633_v0 = vld [vmem:[%s8962_s23 + $0x1] sm:$0xff]  ;;  %v634_v1 = vld [vmem:[%s8962_s23 + $0x9] sm:$0xff]  ;;  %v692_v4 = vld [vmem:[%s8962_s23 + $0x17] sm:$0xff]  ;;  %s11142_s26 = smov 4   ;;  %s11138_s27 = smov 12   ;;  %vm1694_vm0 = vcmask 130048  }
  0x18   : > { %v691_v2 = vld [vmem:[%s8962_s23 + $0xf] sm:$0xff]  ;;  %v7384_v3 = vpack.i.bf16 %v634_v1, %v633_v0  ;;  %v662_v5 = vld [vmem:[%s8962_s23 + $0x2] sm:$0xff]  ;;  %v8979_v9 = vld [vmem:[%s8962_s23 + $0x18] sm:$0xff]  ;;  %v8821_v16 = vmov 0.0   ;;  %s11140_s28 = smov 8   ;;  %s11150_s29 = smov 16  }
  0x19   : > { %v663_v6 = vld [vmem:[%s8962_s23 + $0xa] sm:$0xff]  ;;  %v7394_v7 = vpack.i.bf16 %v692_v4, %v691_v2  ;;  %v636_v13 = vld [vmem:[%s8962_s23 + $0x19] sm:$0xff]  ;;  %7151 = vmatprep.subr.bf16.mxu0 %v8821_v16  ;;  %2204 = vst.msk [vmem:[#allocation4] sm:$0xff] %vm1694_vm0, %v8821_v16  ;;  %2205 = vst.msk [vmem:[#allocation4 + $0x8] sm:$0xff] %vm1694_vm0, %v8821_v16  ;;  %7217 = vmatprep.subr.mxu1 %v8821_v16  ;;  %vm11163_vm1 = vmmov 0   ;;  %s11136_s30 = smov 20  }
  0x1a   : > { %v8976_v8 = vld [vmem:[%s8962_s23 + $0x10] sm:$0xff]  ;;  %7385 = vrot.lane.b32.xlu0 %v7384_v3, %s11142_s26  ;;  %v7389_v10 = vpack.i.bf16 %v663_v6, %v662_v5  ;;  %v724_v14 = vld [vmem:[%s8962_s23 + $0x1e] sm:$0xff]  ;;  %v725_v15 = vld [vmem:[%s8962_s23 + $0x26] sm:$0xff]  ;;  %2206 = vst.msk [vmem:[#allocation4 + $0x10] sm:$0xff] %vm1694_vm0, %v8821_v16  ;;  %7157 = vmatprep.mubr.msk.bf16.mxu0 %vm11163_vm1, %v8821_v16  ;;  %s11146_s20 = smov 24   ;;  %s11144_s21 = smov 28  }
  0x1b   : > { %7395 = vrot.lane.b32.xlu1 %v7394_v7, %s11138_s27  ;;  %v7399_v11 = vpack.i.bf16 %v8979_v9, %v8976_v8  ;;  %v635_v12 = vld [vmem:[%s8962_s23 + $0x11] sm:$0xff]  ;;  %2207 = vst.msk [vmem:[#allocation4 + $0x18] sm:$0xff] %vm1694_vm0, %v8821_v16  ;;  %2208 = vst.msk [vmem:[#allocation4 + $0x20] sm:$0xff] %vm1694_vm0, %v8821_v16  ;;  %v7409_v18 = vpack.i.bf16 %v725_v15, %v724_v14  ;;  %v693_v19 = vld [vmem:[%s8962_s23 + $0x1f] sm:$0xff]  ;;  %7221 = vmatprep.mubr.msk.f32.mxu1 %vm11163_vm1, %v8821_v16  ;;  %s11148_s1 = smov 32   ;;  %vm1932_vm2 = vcmask 1041408  }
  0x1c   : > { %2209 = vst.msk [vmem:[#allocation4 + $0x28] sm:$0xff] %vm1694_vm0, %v8821_v16  ;;  %2210 = vst.msk [vmem:[#allocation4 + $0x30] sm:$0xff] %vm1694_vm0, %v8821_v16  ;;  %v7404_v17 = vpack.i.bf16 %v636_v13, %v635_v12  ;;  %v694_v20 = vld [vmem:[%s8962_s23 + $0x27] sm:$0xff]  ;;  %v664_v25 = vld [vmem:[%s8962_s23 + $0x12] sm:$0xff]  ;;  %s11174_s24 = sld [smem:[#allocation11_spill]]  ;;  %vm1604_vm3 = vcmask 31744  }
  0x1d   : > { %2211 = vst.msk [vmem:[#allocation4 + $0x38] sm:$0xff] %vm1694_vm0, %v8821_v16  ;;  %2212 = vst.msk [vmem:[#allocation4 + $0x40] sm:$0xff] %vm1694_vm0, %v8821_v16  ;;  %v9032_v21 = vld [vmem:[%s8962_s23 + $0x20] sm:$0xff]  ;;  %v9035_v22 = vld [vmem:[%s8962_s23 + $0x28] sm:$0xff]  ;;  %v7414_v23 = vpack.i.bf16 %v694_v20, %v693_v19  ;;  %vm1634_vm4 = vcmask 64512   ;;  %vm1664_vm5 = vcmask 97280  }
  0x1e   : > { %2213 = vst.msk [vmem:[#allocation4 + $0x48] sm:$0xff] %vm1694_vm0, %v8821_v16  ;;  %2214 = vst.msk [vmem:[#allocation4 + $0x50] sm:$0xff] %vm1694_vm0, %v8821_v16  ;;  %7390 = vrot.lane.b32.xlu0 %v7389_v10, %s11140_s28  ;;  %v7419_v24 = vpack.i.bf16 %v9035_v22, %v9032_v21  ;;  %v665_v26 = vld [vmem:[%s8962_s23 + $0x1a] sm:$0xff]  ;;  %v638_v29 = vld [vmem:[%s8962_s23 + $0x29] sm:$0xff]  ;;  %vm1724_vm6 = vcmask 162816   ;;  %vm1754_vm7 = vcmask 195584  }
  0x1f   : > { %2215 = vst.msk [vmem:[#allocation4 + $0x58] sm:$0xff] %vm1694_vm0, %v8821_v16  ;;  %2216 = vst.msk [vmem:[#allocation4 + $0x60] sm:$0xff] %vm1694_vm0, %v8821_v16  ;;  %7400 = vrot.lane.b32.xlu1 %v7399_v11, %s11150_s29  ;;  %v7429_v27 = vpack.i.bf16 %v665_v26, %v664_v25  ;;  %v637_v28 = vld [vmem:[%s8962_s23 + $0x21] sm:$0xff]  ;;  %v726_v30 = vld [vmem:[%s8962_s23 + $0x2e] sm:$0xff]  ;;  %vm1784_vm8 = vcmask 228352   ;;  %vm1814_vm9 = vcmask 261120  }
  0x20   : > { %2217 = vst.msk [vmem:[#allocation4 + $0x68] sm:$0xff] %vm1694_vm0, %v8821_v16  ;;  %3465 = vst.msk [vmem:[#allocation5] sm:$0xff] %vm1694_vm0, %v8821_v16  ;;  %v727_v31 = vld [vmem:[%s8962_s23 + $0x36] sm:$0xff]  ;;  %v7444_v32 = vpack.i.bf16 %v638_v29, %v637_v28  ;;  %v666_v41 = vld [vmem:[%s8962_s23 + $0x22] sm:$0xff]  ;;  %vm1886_vm10 = vcmask 293888   ;;  %s11176_s2 = sld [smem:[#allocation12_spill]] }
  0x21   : > { %3479 = vst.msk [vmem:[#allocation5 + $0x62] sm:$0xff] %vm1694_vm0, %v8821_v16  ;;  %4207 = vst.msk [vmem:[#allocation2] sm:$0xff] %vm1694_vm0, %v8821_v16  ;;  %v7449_v33 = vpack.i.bf16 %v727_v31, %v726_v30  ;;  %v695_v34 = vld [vmem:[%s8962_s23 + $0x2f] sm:$0xff]  ;;  %v696_v35 = vld [vmem:[%s8962_s23 + $0x37] sm:$0xff]  ;;  %vm2225_vm13 = vcmask 1046528   ;;  %s11177_s7 = sld [smem:[#allocation15_spill]] }
  0x22   : > { %4220 = vst.msk [vmem:[#allocation2 + $0x62] sm:$0xff] %vm1694_vm0, %v8821_v16  ;;  %7405 = vrot.lane.b32.xlu0 %v7404_v17, %s11136_s30  ;;  %v9060_v36 = vld [vmem:[%s8962_s23 + $0x30] sm:$0xff]  ;;  %v9063_v37 = vld [vmem:[%s8962_s23 + $0x38] sm:$0xff]  ;;  %v7454_v38 = vpack.i.bf16 %v696_v35, %v695_v34  ;;  %v8302_v44 = vld [vmem:[%s11174_s24 + $0x8] sm:$0xff]   ;;  %vm2221_vm14 = vcmask 121856   ;;  %s11154_s25 = smov 64  }
  0x23   : > { %7410 = vrot.lane.b32.xlu1 %v7409_v18, %s11146_s20  ;;  %v7459_v39 = vpack.i.bf16 %v9063_v37, %v9060_v36  ;;  %v8301_v40 = vld [vmem:[%s11174_s24 + $0x10] ss:$0 sps:$4 sm:$0x33]   ;;  %v8303_v46 = vld [vmem:[%s11174_s24] sm:$0xff]   ;;  %v639_v47 = vld [vmem:[%s8962_s23 + $0x31] sm:$0xff]  ;;  %s11161_s22 = smov 80  }
  0x24   : > { %v667_v42 = vld [vmem:[%s8962_s23 + $0x2a] sm:$0xff]  ;;  %v1934_v43 = vsel %vm1932_vm2, %v8301_v40, 0  ;;  %v640_v48 = vld [vmem:[%s8962_s23 + $0x39] sm:$0xff]  ;;  %v641_v62 = vld [vmem:[%s8962_s23 + $0x41] sm:$0xff]  ;;  %s11188_s4 = sld [smem:[#allocation14_spill]]  ;;  %s11190_s19 = smov 80  }
  0x25   : > { %7152 = vmatpush3.bf16.msra.mxu0 %v1934_v43  ;;  %v7469_v45 = vpack.i.bf16 %v667_v42, %v666_v41  ;;  %v728_v49 = vld [vmem:[%s8962_s23 + $0x3e] sm:$0xff]  ;;  %v729_v50 = vld [vmem:[%s8962_s23 + $0x46] sm:$0xff]  ;;  %v7484_v51 = vpack.i.bf16 %v640_v48, %v639_v47  ;;  %v668_v59 = vld [vmem:[%s8962_s23 + $0x32] sm:$0xff]  ;;  %s11191_s24 = smov 112  }
  0x26   : > { %7415 = vrot.lane.b32.xlu0 %v7414_v23, %s11144_s21  ;;  %7153 = vmatprep.subr.bf16.mxu0 %v8821_v16  ;;  %v7489_v52 = vpack.i.bf16 %v729_v50, %v728_v49  ;;  %v697_v53 = vld [vmem:[%s8962_s23 + $0x3f] sm:$0xff]  ;;  %v698_v54 = vld [vmem:[%s8962_s23 + $0x47] sm:$0xff]  ;;  %v731_v1 = vld [vmem:[%s8962_s23 + $0x56] sm:$0xff] }
  0x27   : > { %7420 = vrot.lane.b32.xlu1 %v7419_v24, %s11148_s1  ;;  %v9095_v55 = vld [vmem:[%s8962_s23 + $0x40] sm:$0xff]  ;;  %v9098_v56 = vld [vmem:[%s8962_s23 + $0x48] sm:$0xff]  ;;  %v7494_v57 = vpack.i.bf16 %v698_v54, %v697_v53  ;;  %v700_v5 = vld [vmem:[%s8962_s23 + $0x57] sm:$0xff] }
  0x28   : > { %v7499_v58 = vpack.i.bf16 %v9098_v56, %v9095_v55  ;;  %v669_v60 = vld [vmem:[%s8962_s23 + $0x3a] sm:$0xff]  ;;  %v642_v63 = vld [vmem:[%s8962_s23 + $0x49] sm:$0xff]  ;;  %v643_v15 = vld [vmem:[%s8962_s23 + $0x51] sm:$0xff] }
  0x29   : > { %7154 = vmatpush3.bf16.msra.mxu0 %v8302_v44  ;;  %v7509_v61 = vpack.i.bf16 %v669_v60, %v668_v59  ;;  %v730_v0 = vld [vmem:[%s8962_s23 + $0x4e] sm:$0xff]  ;;  %v7524_v2 = vpack.i.bf16 %v642_v63, %v641_v62  ;;  %v9122_v7 = vld [vmem:[%s8962_s23 + $0x58] sm:$0xff]  ;;  %v670_v12 = vld [vmem:[%s8962_s23 + $0x42] sm:$0xff] }
  0x2a   : > { %7425 = vrot.lane.b32.xlu0 %v7404_v17, %s11142_s26  ;;  %7155 = vmatprep.subr.bf16.mxu0 %v8821_v16  ;;  %v7529_v3 = vpack.i.bf16 %v731_v1, %v730_v0  ;;  %v699_v4 = vld [vmem:[%s8962_s23 + $0x4f] sm:$0xff]  ;;  %v644_v17 = vld [vmem:[%s8962_s23 + $0x59] sm:$0xff]  ;;  %v733_v19 = vld [vmem:[%s8962_s23 + $0x66] sm:$0xff] }
  0x2b   : > { %7430 = vrot.lane.b32.xlu1 %v7429_v27, %s11140_s28  ;;  %v9119_v6 = vld [vmem:[%s8962_s23 + $0x50] sm:$0xff]  ;;  %v7534_v10 = vpack.i.bf16 %v700_v5, %v699_v4  ;;  %v732_v18 = vld [vmem:[%s8962_s23 + $0x5e] sm:$0xff]  ;;  %v7564_v20 = vpack.i.bf16 %v644_v17, %v643_v15  ;;  %v702_v25 = vld [vmem:[%s8962_s23 + $0x67] sm:$0xff] }
  0x2c   : > { %v7539_v11 = vpack.i.bf16 %v9122_v7, %v9119_v6  ;;  %v671_v13 = vld [vmem:[%s8962_s23 + $0x4a] sm:$0xff]  ;;  %v9143_v26 = vld [vmem:[%s8962_s23 + $0x60] sm:$0xff]  ;;  %v672_v30 = vld [vmem:[%s8962_s23 + $0x52] sm:$0xff] }
  0x2d   : > { %7156 = vmatpush3.bf16.msra.mxu0 %v8303_v46  ;;  %v7549_v14 = vpack.i.bf16 %v671_v13, %v670_v12  ;;  %v9146_v27 = vld [vmem:[%s8962_s23 + $0x68] sm:$0xff]  ;;  %v673_v31 = vld [vmem:[%s8962_s23 + $0x5a] sm:$0xff]  ;;  %v9167_v43 = vld [vmem:[%s8962_s23 + $0x70] sm:$0xff] }
  0x2e   : > { %7435 = vrot.lane.b32.xlu0 %v7414_v23, %s11138_s27  ;;  %v7569_v23 = vpack.i.bf16 %v733_v19, %v732_v18  ;;  %v7579_v29 = vpack.i.bf16 %v9146_v27, %v9143_v26  ;;  %v646_v34 = vld [vmem:[%s8962_s23 + $0x69] sm:$0xff]  ;;  %v704_v42 = vld [vmem:[%s8962_s23 + $0x77] sm:$0xff]  ;;  %v620_v60 = vld [vmem:[%s8962_s23 + $0x80] sm:$0xff] }
  0x2f   : > { %7440 = vrot.lane.b32.xlu1 %v7419_v24, %s11150_s29  ;;  %v701_v24 = vld [vmem:[%s8962_s23 + $0x5f] sm:$0xff]  ;;  %v734_v35 = vld [vmem:[%s8962_s23 + $0x6e] sm:$0xff] }
  0x30   : > { %v7574_v28 = vpack.i.bf16 %v702_v25, %v701_v24  ;;  %v703_v41 = vld [vmem:[%s8962_s23 + $0x6f] sm:$0xff]  ;;  %v9170_v44 = vld [vmem:[%s8962_s23 + $0x78] sm:$0xff]  ;;  %v674_v47 = vld [vmem:[%s8962_s23 + $0x62] sm:$0xff] }
  0x31   : > { %v7619_v46 = vpack.i.bf16 %v9170_v44, %v9167_v43  ;;  %v675_v48 = vld [vmem:[%s8962_s23 + $0x6a] sm:$0xff]  ;;  %v676_v0 = vld [vmem:[%s8962_s23 + $0x72] sm:$0xff]  ;;  %v677_v1 = vld [vmem:[%s8962_s23 + $0x7a] sm:$0xff] }
  0x32   : > { %7445 = vrot.lane.b32.xlu0 %v7444_v32, %s11136_s30  ;;  %s11175_s30 = smov 20   ;;  %v7629_v49 = vpack.i.bf16 %v675_v48, %v674_v47  ;;  %v647_v50 = vld [vmem:[%s8962_s23 + $0x71] sm:$0xff]  ;;  %v737_v53 = vld [vmem:[%s8962_s23 + $0x86] sm:$0xff] }
  0x33   : > { %7450 = vrot.lane.b32.xlu1 %v7449_v33, %s11146_s20  ;;  %v645_v33 = vld [vmem:[%s8962_s23 + $0x61] sm:$0xff]  ;;  %v650_v4 = vld [vmem:[%s8962_s23 + $0x89] sm:$0xff] }
  0x34   : > { %v706_v59 = vld [vmem:[%s8962_s23 + $0x87] sm:$0xff]  ;;  %v707_v13 = vld [vmem:[%s8962_s23 + $0x8f] sm:$0xff] }
  0x35   : > { %v604_v19 = vld [vmem:[%s8962_s23] sm:$0xff] }
  0x36   : > { %7455 = vrot.lane.b32.xlu0 %v7454_v38, %s11144_s21 }
  0x37   : > { %7460 = vrot.lane.b32.xlu1 %v7459_v39, %s11148_s1 }
  0x3a   : > { %7465 = vrot.lane.b32.xlu0 %v7444_v32, %s11142_s26  ;;  %v7589_v32 = vpack.i.bf16 %v673_v31, %v672_v30 }
  0x3b   : > { %7470 = vrot.lane.b32.xlu1 %v7469_v45, %s11140_s28  ;;  %v7614_v45 = vpack.i.bf16 %v704_v42, %v703_v41 }
  0x3e   : > { %7475 = vrot.lane.b32.xlu0 %v7454_v38, %s11138_s27  ;;  %v735_v38 = vld [vmem:[%s8962_s23 + $0x76] sm:$0xff] }
  0x3f   : > { %7480 = vrot.lane.b32.xlu1 %v7459_v39, %s11150_s29  ;;  %v7604_v39 = vpack.i.bf16 %v646_v34, %v645_v33  ;;  %v7609_v40 = vpack.i.bf16 %v735_v38, %v734_v35 }
  0x42   : > { %7485 = vrot.lane.b32.xlu0 %v7484_v51, %s11175_s30 }
  0x43   : > { %7490 = vrot.lane.b32.xlu1 %v7489_v52, %s11146_s20  ;;  %v736_v52 = vld [vmem:[%s8962_s23 + $0x7e] sm:$0xff] }
  0x46   : > { %7495 = vrot.lane.b32.xlu0 %v7494_v57, %s11144_s21 }
  0x47   : > { %7500 = vrot.lane.b32.xlu1 %v7499_v58, %s11148_s1 }
  0x4a   : > { %7505 = vrot.lane.b32.xlu0 %v7484_v51, %s11142_s26  ;;  %v648_v51 = vld [vmem:[%s8962_s23 + $0x79] sm:$0xff] }
  0x4b   : > { %7510 = vrot.lane.b32.xlu1 %v7509_v61, %s11140_s28  ;;  %v7644_v54 = vpack.i.bf16 %v648_v51, %v647_v50  ;;  %v621_v61 = vld [vmem:[%s8962_s23 + $0x88] sm:$0xff] }
  0x4c   : > { %v7659_v63 = vpack.i.bf16 %v621_v61, %v620_v60  ;;  %v679_v50 = vld [vmem:[%s8962_s23 + $0x8a] sm:$0xff] }
  0x4e   : > { %7515 = vrot.lane.b32.xlu0 %v7494_v57, %s11138_s27  ;;  %v7649_v57 = vpack.i.bf16 %v737_v53, %v736_v52 }
  0x4f   : > { %7520 = vrot.lane.b32.xlu1 %v7499_v58, %s11150_s29  ;;  %v705_v58 = vld [vmem:[%s8962_s23 + $0x7f] sm:$0xff] }
  0x50   : > { %v7654_v62 = vpack.i.bf16 %v706_v59, %v705_v58 }
  0x52   : > { %7525 = vrot.lane.b32.xlu0 %v7524_v2, %s11175_s30 }
  0x53   : > { %7530 = vrot.lane.b32.xlu1 %v7529_v3, %s11146_s20  ;;  %v649_v3 = vld [vmem:[%s8962_s23 + $0x81] sm:$0xff] }
  0x54   : > { %v7684_v18 = vpack.i.bf16 %v650_v4, %v649_v3 }
  0x56   : > { %7535 = vrot.lane.b32.xlu0 %v7534_v10, %s11144_s21 }
  0x57   : > { %7540 = vrot.lane.b32.xlu1 %v7539_v11, %s11148_s1 }
  0x5a   : > { %7545 = vrot.lane.b32.xlu0 %v7524_v2, %s11142_s26  ;;  %v7669_v2 = vpack.i.bf16 %v677_v1, %v676_v0 }
  0x5b   : > { %7550 = vrot.lane.b32.xlu1 %v7549_v14, %s11140_s28  ;;  %v708_v14 = vld [vmem:[%s8962_s23 + $0x97] sm:$0xff] }
  0x5c   : > { %v9210_v25 = vpack.i.bf16 %v708_v14, %v707_v13  ;;  %v651_v13 = vld [vmem:[%s8962_s23 + $0x91] sm:$0xff]  ;;  %v652_v14 = vld [vmem:[%s8962_s23 + $0x99] sm:$0xff] }
  0x5e   : > { %7555 = vrot.lane.b32.xlu0 %v7534_v10, %s11138_s27  ;;  %v738_v10 = vld [vmem:[%s8962_s23 + $0x8e] sm:$0xff] }
  0x5f   : > { %7560 = vrot.lane.b32.xlu1 %v7539_v11, %s11150_s29  ;;  %v739_v11 = vld [vmem:[%s8962_s23 + $0x96] sm:$0xff] }
  0x62   : > { %7565 = vrot.lane.b32.xlu0 %v7564_v20, %s11175_s30 }
  0x63   : > { %7570 = vrot.lane.b32.xlu1 %v7569_v23, %s11146_s20  ;;  %v7689_v23 = vpack.i.bf16 %v739_v11, %v738_v10 }
  0x66   : > { %7575 = vrot.lane.b32.xlu0 %v7574_v28, %s11144_s21 }
  0x67   : > { %7580 = vrot.lane.b32.xlu1 %v7579_v29, %s11148_s1 }
  0x6a   : > { %7585 = vrot.lane.b32.xlu0 %v7564_v20, %s11142_s26  ;;  %v605_v20 = vld [vmem:[%s8962_s23 + $0x8] sm:$0xff] }
  0x6b   : > { %7590 = vrot.lane.b32.xlu1 %v7589_v32, %s11140_s28 }
  0x6e   : > { %7595 = vrot.lane.b32.xlu0 %v7574_v28, %s11138_s27  ;;  %v622_v28 = vld [vmem:[%s8962_s23 + $0x90] sm:$0xff] }
  0x6f   : > { %7600 = vrot.lane.b32.xlu1 %v7579_v29, %s11150_s29  ;;  %v623_v29 = vld [vmem:[%s8962_s23 + $0x98] sm:$0xff] }
  0x72   : > { %7605 = vrot.lane.b32.xlu0 %v7604_v39, %s11175_s30 }
  0x73   : > { %7610 = vrot.lane.b32.xlu1 %v7609_v40, %s11146_s20 }
  0x76   : > { %7615 = vrot.lane.b32.xlu0 %v7614_v45, %s11144_s21 }
  0x77   : > { %7620 = vrot.lane.b32.xlu1 %v7619_v46, %s11148_s1 }
  0x7a   : > { %7625 = vrot.lane.b32.xlu0 %v7604_v39, %s11142_s26 }
  0x7b   : > { %7630 = vrot.lane.b32.xlu1 %v7629_v49, %s11140_s28  ;;  %v678_v49 = vld [vmem:[%s8962_s23 + $0x82] sm:$0xff] }
  0x7e   : > { %7635 = vrot.lane.b32.xlu0 %v7614_v45, %s11138_s27  ;;  %v7699_v45 = vpack.i.bf16 %v623_v29, %v622_v28 }
  0x7f   : > { %7640 = vrot.lane.b32.xlu1 %v7619_v46, %s11150_s29 }
  0x82   : > { %7645 = vrot.lane.b32.xlu0 %v7644_v54, %s11175_s30 }
  0x83   : > { %7650 = vrot.lane.b32.xlu1 %v7649_v57, %s11146_s20 }
  0x86   : > { %7655 = vrot.lane.b32.xlu0 %v7654_v62, %s11144_s21 }
  0x87   : > { %7660 = vrot.lane.b32.xlu1 %v7659_v63, %s11148_s1 }
  0x8a   : > { %7665 = vrot.lane.b32.xlu0 %v7644_v54, %s11142_s26 }
  0x8b   : > { %7670 = vrot.lane.b32.xlu1 %v7669_v2, %s11140_s28 }
  0x8c   : > { %v7386_v5 = vpop.permute.xlu0 %7385 }
  0x8d   : > { %v7396_v12 = vpop.permute.xlu1 %7395  ;;  %v7388_v15 = vunpack.i.h.bf16 %v7386_v5  ;;  %v7387_v17 = vunpack.i.l.bf16 %v7386_v5 }
  0x8e   : > { %7675 = vrot.lane.b32.xlu0 %v7654_v62, %s11138_s27  ;;  %v7398_v30 = vunpack.i.h.bf16 %v7396_v12  ;;  %v7397_v31 = vunpack.i.l.bf16 %v7396_v12  ;;  %v7709_v62 = vpack.i.bf16 %v679_v50, %v678_v49 }
  0x8f   : > { %7680 = vrot.lane.b32.xlu1 %v7659_v63, %s11150_s29  ;;  %v1605_v35 = vsel %vm1604_vm3, %v604_v19, %v7387_v17  ;;  %v1606_v38 = vsel %vm1604_vm3, %v605_v20, %v7388_v15  ;;  %v740_v20 = vld [vmem:[%s8962_s23 + $0x9e] sm:$0xff] }
  0x90   : > { %v7391_v24 = vpop.permute.xlu0 %7390 }
  0x91   : > { %v7393_v32 = vunpack.i.h.bf16 %v7391_v24  ;;  %v7392_v33 = vunpack.i.l.bf16 %v7391_v24  ;;  %v7401_v34 = vpop.permute.xlu1 %7400 }
  0x92   : > { %v7403_v39 = vunpack.i.h.bf16 %v7401_v34  ;;  %v7402_v40 = vunpack.i.l.bf16 %v7401_v34  ;;  %7685 = vrot.lane.b32.xlu0 %v7684_v18, %s11175_s30  ;;  %v710_v34 = vld [vmem:[%s8962_s23 + $0xa7] sm:$0xff] }
  0x93   : > { %v1635_v41 = vsel %vm1634_vm4, %v1605_v35, %v7392_v33  ;;  %v1636_v42 = vsel %vm1634_vm4, %v1606_v38, %v7393_v32  ;;  %7690 = vrot.lane.b32.xlu1 %v7689_v23, %s11146_s20  ;;  %v741_v23 = vld [vmem:[%s8962_s23 + $0xa6] sm:$0xff]  ;;  %v7724_v32 = vpack.i.bf16 %v652_v14, %v651_v13 }
  0x94   : > { %v1665_v46 = vsel %vm1664_vm5, %v1635_v41, %v7397_v31  ;;  %v1666_v47 = vsel %vm1664_vm5, %v1636_v42, %v7398_v30  ;;  %v7406_v48 = vpop.permute.xlu0 %7405  ;;  %v709_v33 = vld [vmem:[%s8962_s23 + $0x9f] sm:$0xff]  ;;  %v9257_v42 = vld [vmem:[%s8962_s23 + $0xa8] sm:$0xff] }
  0x95   : > { %v1695_v51 = vsel %vm1694_vm0, %v1665_v46, %v7402_v40  ;;  %v1696_v52 = vsel %vm1694_vm0, %v1666_v47, %v7403_v39  ;;  %v7408_v53 = vunpack.i.h.bf16 %v7406_v48  ;;  %v7407_v54 = vunpack.i.l.bf16 %v7406_v48  ;;  %v7411_v57 = vpop.permute.xlu1 %7410  ;;  %v9254_v41 = vld [vmem:[%s8962_s23 + $0xa0] sm:$0xff] }
  0x96   : > { %v7413_v58 = vunpack.i.h.bf16 %v7411_v57  ;;  %v7412_v59 = vunpack.i.l.bf16 %v7411_v57  ;;  %7695 = vrot.lane.b32.xlu0 %v9210_v25, %s11144_s21  ;;  %v7729_v39 = vpack.i.bf16 %v741_v23, %v740_v20  ;;  %v7734_v47 = vpack.i.bf16 %v710_v34, %v709_v33  ;;  %v681_v57 = vld [vmem:[%s8962_s23 + $0x9a] sm:$0xff]  ;;  %v654_v23 = vld [vmem:[%s8962_s23 + $0xa9] sm:$0xff] }
  0x97   : > { %v1725_v60 = vsel %vm1724_vm6, %v1695_v51, %v7407_v54  ;;  %v1726_v61 = vsel %vm1724_vm6, %v1696_v52, %v7408_v53  ;;  %7700 = vrot.lane.b32.xlu1 %v7699_v45, %s11148_s1  ;;  %v7739_v52 = vpack.i.bf16 %v9257_v42, %v9254_v41  ;;  %v680_v54 = vld [vmem:[%s8962_s23 + $0x92] sm:$0xff]  ;;  %v653_v20 = vld [vmem:[%s8962_s23 + $0xa1] sm:$0xff] }
  0x98   : > { %v7416_v63 = vpop.permute.xlu0 %7415  ;;  %v1755_v3 = vsel %vm1754_vm7, %v1725_v60, %v7412_v59  ;;  %v1756_v4 = vsel %vm1754_vm7, %v1726_v61, %v7413_v58 }
  0x99   : > { %v7418_v0 = vunpack.i.h.bf16 %v7416_v63  ;;  %v7417_v1 = vunpack.i.l.bf16 %v7416_v63  ;;  %v7421_v2 = vpop.permute.xlu1 %7420 }
  0x9a   : > { %v7423_v5 = vunpack.i.h.bf16 %v7421_v2  ;;  %v7422_v10 = vunpack.i.l.bf16 %v7421_v2  ;;  %7705 = vrot.lane.b32.xlu0 %v7684_v18, %s11142_s26 }
  0x9b   : > { %v1785_v11 = vsel %vm1784_vm8, %v1755_v3, %v7417_v1  ;;  %v1786_v12 = vsel %vm1784_vm8, %v1756_v4, %v7418_v0  ;;  %7710 = vrot.lane.b32.xlu1 %v7709_v62, %s11140_s28  ;;  %v7749_v3 = vpack.i.bf16 %v681_v57, %v680_v54 }
  0x9c   : > { %v1815_v15 = vsel %vm1814_vm9, %v1785_v11, %v7422_v10  ;;  %v1816_v17 = vsel %vm1814_vm9, %v1786_v12, %v7423_v5  ;;  %v7426_v19 = vpop.permute.xlu0 %7425 }
  0x9d   : > { %v7428_v24 = vunpack.i.h.bf16 %v7426_v19  ;;  %v7427_v18 = vunpack.i.l.bf16 %v7426_v19  ;;  %v7431_v28 = vpop.permute.xlu1 %7430  ;;  %v1844_v29 = vpack.c.bf16 %v1816_v17, %v1815_v15 }
  0x9e   : > { %v7433_v30 = vunpack.i.h.bf16 %v7431_v28  ;;  %v7432_v31 = vunpack.i.l.bf16 %v7431_v28  ;;  %7715 = vrot.lane.b32.xlu0 %v9210_v25, %s11138_s27 }
  0x9f   : > { %v1607_v35 = vsel %vm1604_vm3, %v8976_v8, %v7427_v18  ;;  %v1608_v38 = vsel %vm1604_vm3, %v8979_v9, %v7428_v24  ;;  %7720 = vrot.lane.b32.xlu1 %v7699_v45, %s11150_s29  ;;  %7158 = vmatmul.mubr.msk.bf16.vlgmr.msra.gmra.mxu0 %vm1886_vm10, %v1844_v29  ;;  %v742_v29 = vld [vmem:[%s8962_s23 + $0xae] sm:$0xff] }
  0xa0   : > { %v7436_v40 = vpop.permute.xlu0 %7435  ;;  %7161 = vmatprep.mubr.msk.bf16.mxu0 %vm11163_vm1, %v8821_v16  ;;  %v1638_v9 = vsel %vm1634_vm4, %v1608_v38, %v7433_v30  ;;  %v1637_v45 = vsel %vm1634_vm4, %v1607_v35, %v7432_v31  ;;  %v743_v30 = vld [vmem:[%s8962_s23 + $0xb6] sm:$0xff] }
  0xa1   : > { %v7438_v25 = vunpack.i.h.bf16 %v7436_v40  ;;  %v7437_v8 = vunpack.i.l.bf16 %v7436_v40  ;;  %v7441_v46 = vpop.permute.xlu1 %7440  ;;  %v711_v40 = vld [vmem:[%s8962_s23 + $0xaf] sm:$0xff] }
  0xa2   : > { %v7443_v48 = vunpack.i.h.bf16 %v7441_v46  ;;  %v7442_v49 = vunpack.i.l.bf16 %v7441_v46  ;;  %7725 = vrot.lane.b32.xlu0 %v7724_v32, %s11175_s30 }
  0xa3   : > { %v1667_v50 = vsel %vm1664_vm5, %v1637_v45, %v7437_v8  ;;  %v1668_v51 = vsel %vm1664_vm5, %v1638_v9, %v7438_v25  ;;  %7730 = vrot.lane.b32.xlu1 %v7729_v39, %s11146_s20  ;;  %v7764_v39 = vpack.i.bf16 %v654_v23, %v653_v20  ;;  %v712_v25 = vld [vmem:[%s8962_s23 + $0xb7] sm:$0xff]  ;;  %v7769_v9 = vpack.i.bf16 %v743_v30, %v742_v29 }
  0xa4   : > { %v7446_v53 = vpop.permute.xlu0 %7445  ;;  %v1697_v61 = vsel %vm1694_vm0, %v1667_v50, %v7442_v49  ;;  %v1698_v62 = vsel %vm1694_vm0, %v1668_v51, %v7443_v48  ;;  %v9299_v48 = vld [vmem:[%s8962_s23 + $0xb0] sm:$0xff]  ;;  %v9302_v49 = vld [vmem:[%s8962_s23 + $0xb8] sm:$0xff]  ;;  %v7774_v51 = vpack.i.bf16 %v712_v25, %v711_v40 }
  0xa5   : > { %v7448_v58 = vunpack.i.h.bf16 %v7446_v53  ;;  %v7447_v59 = vunpack.i.l.bf16 %v7446_v53  ;;  %v7451_v60 = vpop.permute.xlu1 %7450  ;;  %v655_v29 = vld [vmem:[%s8962_s23 + $0xb1] sm:$0xff]  ;;  %v656_v30 = vld [vmem:[%s8962_s23 + $0xb9] sm:$0xff] }
  0xa6   : > { %v7453_v63 = vunpack.i.h.bf16 %v7451_v60  ;;  %v7452_v0 = vunpack.i.l.bf16 %v7451_v60  ;;  %7735 = vrot.lane.b32.xlu0 %v7734_v47, %s11144_s21 }
  0xa7   : > { %v1727_v1 = vsel %vm1724_vm6, %v1697_v61, %v7447_v59  ;;  %v1728_v2 = vsel %vm1724_vm6, %v1698_v62, %v7448_v58  ;;  %7740 = vrot.lane.b32.xlu1 %v7739_v52, %s11148_s1  ;;  %v7779_v59 = vpack.i.bf16 %v9302_v49, %v9299_v48  ;;  %v682_v61 = vld [vmem:[%s8962_s23 + $0xa2] sm:$0xff]  ;;  %v683_v62 = vld [vmem:[%s8962_s23 + $0xaa] sm:$0xff] }
  0xa8   : > { %v7456_v4 = vpop.permute.xlu0 %7455  ;;  %v1757_v12 = vsel %vm1754_vm7, %v1727_v1, %v7452_v0  ;;  %v1758_v13 = vsel %vm1754_vm7, %v1728_v2, %v7453_v63 }
  0xa9   : > { %v7458_v5 = vunpack.i.h.bf16 %v7456_v4  ;;  %v7457_v10 = vunpack.i.l.bf16 %v7456_v4  ;;  %v7461_v11 = vpop.permute.xlu1 %7460 }
  0xaa   : > { %v7463_v14 = vunpack.i.h.bf16 %v7461_v11  ;;  %v7462_v15 = vunpack.i.l.bf16 %v7461_v11  ;;  %7745 = vrot.lane.b32.xlu0 %v7724_v32, %s11142_s26 }
  0xab   : > { %v1787_v17 = vsel %vm1784_vm8, %v1757_v12, %v7457_v10  ;;  %v1788_v19 = vsel %vm1784_vm8, %v1758_v13, %v7458_v5  ;;  %7750 = vrot.lane.b32.xlu1 %v7749_v3, %s11140_s28  ;;  %v7789_v12 = vpack.i.bf16 %v683_v62, %v682_v61 }
  0xac   : > { %v1817_v24 = vsel %vm1814_vm9, %v1787_v17, %v7462_v15  ;;  %v1818_v18 = vsel %vm1814_vm9, %v1788_v19, %v7463_v14  ;;  %v7466_v28 = vpop.permute.xlu0 %7465 }
  0xad   : > { %v7468_v31 = vunpack.i.h.bf16 %v7466_v28  ;;  %v7467_v32 = vunpack.i.l.bf16 %v7466_v28  ;;  %v7471_v33 = vpop.permute.xlu1 %7470  ;;  %v1845_v34 = vpack.c.bf16 %v1818_v18, %v1817_v24 }
  0xae   : > { %v7473_v35 = vunpack.i.h.bf16 %v7471_v33  ;;  %v7472_v38 = vunpack.i.l.bf16 %v7471_v33  ;;  %7755 = vrot.lane.b32.xlu0 %v7734_v47, %s11138_s27 }
  0xaf   : > { %v1609_v8 = vsel %vm1604_vm3, %v9032_v21, %v7467_v32  ;;  %v1610_v46 = vsel %vm1604_vm3, %v9035_v22, %v7468_v31  ;;  %7760 = vrot.lane.b32.xlu1 %v7739_v52, %s11150_s29  ;;  %7162 = vmatmul.mubr.msk.bf16.gmra.mxu0 %vm1886_vm10, %v1845_v34  ;;  %v744_v34 = vld [vmem:[%s8962_s23 + $0xbe] sm:$0xff] }
  0xb0   : > { %v7476_v45 = vpop.permute.xlu0 %7475  ;;  %7165 = vmatprep.mubr.msk.bf16.mxu0 %vm11163_vm1, %v8821_v16  ;;  %v1640_v22 = vsel %vm1634_vm4, %v1610_v46, %v7473_v35  ;;  %v1639_v52 = vsel %vm1634_vm4, %v1609_v8, %v7472_v38  ;;  %v745_v35 = vld [vmem:[%s8962_s23 + $0xc6] sm:$0xff] }
  0xb1   : > { %v7478_v47 = vunpack.i.h.bf16 %v7476_v45  ;;  %v7477_v21 = vunpack.i.l.bf16 %v7476_v45  ;;  %v7481_v50 = vpop.permute.xlu1 %7480  ;;  %v713_v45 = vld [vmem:[%s8962_s23 + $0xbf] sm:$0xff] }
  0xb2   : > { %v7483_v53 = vunpack.i.h.bf16 %v7481_v50  ;;  %v7482_v54 = vunpack.i.l.bf16 %v7481_v50  ;;  %7765 = vrot.lane.b32.xlu0 %v7764_v39, %s11175_s30 }
  0xb3   : > { %v1669_v57 = vsel %vm1664_vm5, %v1639_v52, %v7477_v21  ;;  %v1670_v58 = vsel %vm1664_vm5, %v1640_v22, %v7478_v47  ;;  %7770 = vrot.lane.b32.xlu1 %v7769_v9, %s11146_s20  ;;  %v7804_v9 = vpack.i.bf16 %v656_v30, %v655_v29  ;;  %v714_v47 = vld [vmem:[%s8962_s23 + $0xc7] sm:$0xff]  ;;  %v7809_v22 = vpack.i.bf16 %v745_v35, %v744_v34 }
  0xb4   : > { %v7486_v60 = vpop.permute.xlu0 %7485  ;;  %v1699_v2 = vsel %vm1694_vm0, %v1669_v57, %v7482_v54  ;;  %v1700_v3 = vsel %vm1694_vm0, %v1670_v58, %v7483_v53  ;;  %v9344_v53 = vld [vmem:[%s8962_s23 + $0xc0] sm:$0xff]  ;;  %v9347_v54 = vld [vmem:[%s8962_s23 + $0xc8] sm:$0xff]  ;;  %v7814_v58 = vpack.i.bf16 %v714_v47, %v713_v45 }
  0xb5   : > { %v7488_v63 = vunpack.i.h.bf16 %v7486_v60  ;;  %v7487_v0 = vunpack.i.l.bf16 %v7486_v60  ;;  %v7491_v1 = vpop.permute.xlu1 %7490  ;;  %v657_v34 = vld [vmem:[%s8962_s23 + $0xc1] sm:$0xff]  ;;  %v658_v35 = vld [vmem:[%s8962_s23 + $0xc9] sm:$0xff] }
  0xb6   : > { %v7493_v4 = vunpack.i.h.bf16 %v7491_v1  ;;  %v7492_v5 = vunpack.i.l.bf16 %v7491_v1  ;;  %7775 = vrot.lane.b32.xlu0 %v7774_v51, %s11144_s21 }
  0xb7   : > { %v1729_v10 = vsel %vm1724_vm6, %v1699_v2, %v7487_v0  ;;  %v1730_v11 = vsel %vm1724_vm6, %v1700_v3, %v7488_v63  ;;  %7780 = vrot.lane.b32.xlu1 %v7779_v59, %s11148_s1  ;;  %v7819_v0 = vpack.i.bf16 %v9347_v54, %v9344_v53  ;;  %v684_v2 = vld [vmem:[%s8962_s23 + $0xb2] sm:$0xff]  ;;  %v685_v3 = vld [vmem:[%s8962_s23 + $0xba] sm:$0xff] }
  0xb8   : > { %v7496_v13 = vpop.permute.xlu0 %7495  ;;  %v1759_v19 = vsel %vm1754_vm7, %v1729_v10, %v7492_v5  ;;  %v1760_v20 = vsel %vm1754_vm7, %v1730_v11, %v7493_v4 }
  0xb9   : > { %v7498_v14 = vunpack.i.h.bf16 %v7496_v13  ;;  %v7497_v15 = vunpack.i.l.bf16 %v7496_v13  ;;  %v7501_v17 = vpop.permute.xlu1 %7500 }
  0xba   : > { %v7503_v23 = vunpack.i.h.bf16 %v7501_v17  ;;  %v7502_v24 = vunpack.i.l.bf16 %v7501_v17  ;;  %7785 = vrot.lane.b32.xlu0 %v7764_v39, %s11142_s26 }
  0xbb   : > { %v1789_v18 = vsel %vm1784_vm8, %v1759_v19, %v7497_v15  ;;  %v1790_v28 = vsel %vm1784_vm8, %v1760_v20, %v7498_v14  ;;  %7790 = vrot.lane.b32.xlu1 %v7789_v12, %s11140_s28  ;;  %v7829_v19 = vpack.i.bf16 %v685_v3, %v684_v2 }
  0xbc   : > { %v1819_v31 = vsel %vm1814_vm9, %v1789_v18, %v7502_v24  ;;  %v1820_v32 = vsel %vm1814_vm9, %v1790_v28, %v7503_v23  ;;  %v7506_v33 = vpop.permute.xlu0 %7505 }
  0xbd   : > { %v7508_v38 = vunpack.i.h.bf16 %v7506_v33  ;;  %v7507_v39 = vunpack.i.l.bf16 %v7506_v33  ;;  %v7511_v40 = vpop.permute.xlu1 %7510  ;;  %v1846_v25 = vpack.c.bf16 %v1820_v32, %v1819_v31 }
  0xbe   : > { %v7513_v8 = vunpack.i.h.bf16 %v7511_v40  ;;  %v7512_v46 = vunpack.i.l.bf16 %v7511_v40  ;;  %7795 = vrot.lane.b32.xlu0 %v7774_v51, %s11138_s27 }
  0xbf   : > { %v1611_v21 = vsel %vm1604_vm3, %v9060_v36, %v7507_v39  ;;  %v1612_v50 = vsel %vm1604_vm3, %v9063_v37, %v7508_v38  ;;  %7800 = vrot.lane.b32.xlu1 %v7779_v59, %s11150_s29  ;;  %7166 = vmatmul.mubr.msk.bf16.gmra.mxu0 %vm1886_vm10, %v1846_v25  ;;  %v746_v25 = vld [vmem:[%s8962_s23 + $0xce] sm:$0xff] }
  0xc0   : > { %v7516_v52 = vpop.permute.xlu0 %7515  ;;  %7169 = vmatprep.mubr.msk.bf16.mxu0 %vm11163_vm1, %v8821_v16  ;;  %v1642_v37 = vsel %vm1634_vm4, %v1612_v50, %v7513_v8  ;;  %v1641_v59 = vsel %vm1634_vm4, %v1611_v21, %v7512_v46  ;;  %v747_v8 = vld [vmem:[%s8962_s23 + $0xd6] sm:$0xff] }
  0xc1   : > { %v7518_v51 = vunpack.i.h.bf16 %v7516_v52  ;;  %v7517_v36 = vunpack.i.l.bf16 %v7516_v52  ;;  %v7521_v57 = vpop.permute.xlu1 %7520  ;;  %v715_v52 = vld [vmem:[%s8962_s23 + $0xcf] sm:$0xff] }
  0xc2   : > { %v7523_v60 = vunpack.i.h.bf16 %v7521_v57  ;;  %v7522_v61 = vunpack.i.l.bf16 %v7521_v57  ;;  %7805 = vrot.lane.b32.xlu0 %v7804_v9, %s11175_s30 }
  0xc3   : > { %v1671_v62 = vsel %vm1664_vm5, %v1641_v59, %v7517_v36  ;;  %v1672_v63 = vsel %vm1664_vm5, %v1642_v37, %v7518_v51  ;;  %7810 = vrot.lane.b32.xlu1 %v7809_v22, %s11146_s20  ;;  %v7844_v22 = vpack.i.bf16 %v658_v35, %v657_v34  ;;  %v716_v51 = vld [vmem:[%s8962_s23 + $0xd7] sm:$0xff]  ;;  %v7849_v37 = vpack.i.bf16 %v747_v8, %v746_v25 }
  0xc4   : > { %v7526_v1 = vpop.permute.xlu0 %7525  ;;  %v1701_v11 = vsel %vm1694_vm0, %v1671_v62, %v7522_v61  ;;  %v1702_v12 = vsel %vm1694_vm0, %v1672_v63, %v7523_v60  ;;  %v630_v60 = vld [vmem:[%s8962_s23 + $0xd0] sm:$0xff]  ;;  %v631_v61 = vld [vmem:[%s8962_s23 + $0xd8] sm:$0xff] }
  0xc5   : > { %v7528_v4 = vunpack.i.h.bf16 %v7526_v1  ;;  %v7527_v5 = vunpack.i.l.bf16 %v7526_v1  ;;  %v7531_v10 = vpop.permute.xlu1 %7530  ;;  %v659_v25 = vld [vmem:[%s8962_s23 + $0xd1] sm:$0xff]  ;;  %v660_v8 = vld [vmem:[%s8962_s23 + $0xd9] sm:$0xff] }
  0xc6   : > { %v7533_v13 = vunpack.i.h.bf16 %v7531_v10  ;;  %v7532_v14 = vunpack.i.l.bf16 %v7531_v10  ;;  %7815 = vrot.lane.b32.xlu0 %v7814_v58, %s11144_s21 }
  0xc7   : > { %v1731_v15 = vsel %vm1724_vm6, %v1701_v11, %v7527_v5  ;;  %v1732_v17 = vsel %vm1724_vm6, %v1702_v12, %v7528_v4  ;;  %7820 = vrot.lane.b32.xlu1 %v7819_v0, %s11148_s1  ;;  %v7859_v5 = vpack.i.bf16 %v631_v61, %v630_v60  ;;  %v686_v11 = vld [vmem:[%s8962_s23 + $0xc2] sm:$0xff]  ;;  %v687_v12 = vld [vmem:[%s8962_s23 + $0xca] sm:$0xff] }
  0xc8   : > { %v7536_v20 = vpop.permute.xlu0 %7535  ;;  %v1761_v28 = vsel %vm1754_vm7, %v1731_v15, %v7532_v14  ;;  %v1762_v29 = vsel %vm1754_vm7, %v1732_v17, %v7533_v13  ;;  %v718_v60 = vld [vmem:[%s8962_s23 + $0xe7] sm:$0xff] }
  0xc9   : > { %v7538_v23 = vunpack.i.h.bf16 %v7536_v20  ;;  %v7537_v24 = vunpack.i.l.bf16 %v7536_v20  ;;  %v7541_v18 = vpop.permute.xlu1 %7540 }
  0xca   : > { %v7543_v30 = vunpack.i.h.bf16 %v7541_v18  ;;  %v7542_v31 = vunpack.i.l.bf16 %v7541_v18  ;;  %7825 = vrot.lane.b32.xlu0 %v7804_v9, %s11142_s26 }
  0xcb   : > { %v1791_v32 = vsel %vm1784_vm8, %v1761_v28, %v7537_v24  ;;  %v1792_v33 = vsel %vm1784_vm8, %v1762_v29, %v7538_v23  ;;  %7830 = vrot.lane.b32.xlu1 %v7829_v19, %s11140_s28  ;;  %v7869_v28 = vpack.i.bf16 %v687_v12, %v686_v11 }
  0xcc   : > { %v1821_v38 = vsel %vm1814_vm9, %v1791_v32, %v7542_v31  ;;  %v1822_v39 = vsel %vm1814_vm9, %v1792_v33, %v7543_v30  ;;  %v7546_v40 = vpop.permute.xlu0 %7545 }
  0xcd   : > { %v7548_v46 = vunpack.i.h.bf16 %v7546_v40  ;;  %v7547_v9 = vunpack.i.l.bf16 %v7546_v40  ;;  %v7551_v45 = vpop.permute.xlu1 %7550  ;;  %v1847_v47 = vpack.c.bf16 %v1822_v39, %v1821_v38 }
  0xce   : > { %v7553_v21 = vunpack.i.h.bf16 %v7551_v45  ;;  %v7552_v50 = vunpack.i.l.bf16 %v7551_v45  ;;  %7835 = vrot.lane.b32.xlu0 %v7814_v58, %s11138_s27 }
  0xcf   : > { %v1613_v36 = vsel %vm1604_vm3, %v9095_v55, %v7547_v9  ;;  %v1614_v57 = vsel %vm1604_vm3, %v9098_v56, %v7548_v46  ;;  %7840 = vrot.lane.b32.xlu1 %v7819_v0, %s11150_s29  ;;  %7170 = vmatmul.mubr.msk.bf16.gmra.mxu0 %vm1886_vm10, %v1847_v47  ;;  %v7854_v55 = vpack.i.bf16 %v716_v51, %v715_v52  ;;  %v748_v47 = vld [vmem:[%s8962_s23 + $0xde] sm:$0xff] }
  0xd0   : > { %v7556_v59 = vpop.permute.xlu0 %7555  ;;  %7173 = vmatprep.mubr.msk.bf16.mxu0 %vm11163_vm1, %v8821_v16  ;;  %v1644_v1 = vsel %vm1634_vm4, %v1614_v57, %v7553_v21  ;;  %v1643_v56 = vsel %vm1634_vm4, %v1613_v36, %v7552_v50  ;;  %v749_v21 = vld [vmem:[%s8962_s23 + $0xe6] sm:$0xff] }
  0xd1   : > { %v7558_v58 = vunpack.i.h.bf16 %v7556_v59  ;;  %v7557_v62 = vunpack.i.l.bf16 %v7556_v59  ;;  %v7561_v63 = vpop.permute.xlu1 %7560  ;;  %v717_v59 = vld [vmem:[%s8962_s23 + $0xdf] sm:$0xff] }
  0xd2   : > { %v7563_v0 = vunpack.i.h.bf16 %v7561_v63  ;;  %v7562_v2 = vunpack.i.l.bf16 %v7561_v63  ;;  %7845 = vrot.lane.b32.xlu0 %v7844_v22, %s11175_s30 }
  0xd3   : > { %v1673_v3 = vsel %vm1664_vm5, %v1643_v56, %v7557_v62  ;;  %v1674_v4 = vsel %vm1664_vm5, %v1644_v1, %v7558_v58  ;;  %7850 = vrot.lane.b32.xlu1 %v7849_v37, %s11146_s20  ;;  %v7884_v37 = vpack.i.bf16 %v660_v8, %v659_v25  ;;  %v7889_v62 = vpack.i.bf16 %v749_v21, %v748_v47  ;;  %v632_v1 = vld [vmem:[%s8962_s23 + $0xe0] sm:$0xff]  ;;  %v720_v56 = vld [vmem:[%s8962_s23 + $0xe8] sm:$0xff] }
  0xd4   : > { %v7566_v10 = vpop.permute.xlu0 %7565  ;;  %v1703_v17 = vsel %vm1694_vm0, %v1673_v3, %v7562_v2  ;;  %v1704_v19 = vsel %vm1694_vm0, %v1674_v4, %v7563_v0  ;;  %v7894_v3 = vpack.i.bf16 %v718_v60, %v717_v59  ;;  %v7899_v12 = vpack.i.bf16 %v720_v56, %v632_v1 }
  0xd5   : > { %v7568_v13 = vunpack.i.h.bf16 %v7566_v10  ;;  %v7567_v14 = vunpack.i.l.bf16 %v7566_v10  ;;  %v7571_v15 = vpop.permute.xlu1 %7570 }
  0xd6   : > { %v7573_v20 = vunpack.i.h.bf16 %v7571_v15  ;;  %v7572_v23 = vunpack.i.l.bf16 %v7571_v15  ;;  %7855 = vrot.lane.b32.xlu0 %v7854_v55, %s11144_s21 }
  0xd7   : > { %v1733_v24 = vsel %vm1724_vm6, %v1703_v17, %v7567_v14  ;;  %v1734_v18 = vsel %vm1724_vm6, %v1704_v19, %v7568_v13  ;;  %7860 = vrot.lane.b32.xlu1 %v7859_v5, %s11148_s1 }
  0xd8   : > { %v7576_v29 = vpop.permute.xlu0 %7575  ;;  %v1763_v33 = vsel %vm1754_vm7, %v1733_v24, %v7572_v23  ;;  %v1764_v34 = vsel %vm1754_vm7, %v1734_v18, %v7573_v20 }
  0xd9   : > { %v7578_v30 = vunpack.i.h.bf16 %v7576_v29  ;;  %v7577_v31 = vunpack.i.l.bf16 %v7576_v29  ;;  %v7581_v32 = vpop.permute.xlu1 %7580 }
  0xda   : > { %v7583_v35 = vunpack.i.h.bf16 %v7581_v32  ;;  %v7582_v38 = vunpack.i.l.bf16 %v7581_v32  ;;  %7865 = vrot.lane.b32.xlu0 %v7844_v22, %s11142_s26  ;;  %s11182_s26 = smov 64  }
  0xdb   : > { %v1793_v39 = vsel %vm1784_vm8, %v1763_v33, %v7577_v31  ;;  %v1794_v40 = vsel %vm1784_vm8, %v1764_v34, %v7578_v30  ;;  %7870 = vrot.lane.b32.xlu1 %v7869_v28, %s11140_s28  ;;  %s11159_s28 = smov 112  }
  0xdc   : > { %v1823_v46 = vsel %vm1814_vm9, %v1793_v39, %v7582_v38  ;;  %v1824_v9 = vsel %vm1814_vm9, %v1794_v40, %v7583_v35  ;;  %v7586_v45 = vpop.permute.xlu0 %7585 }
  0xdd   : > { %v7588_v50 = vunpack.i.h.bf16 %v7586_v45  ;;  %v7587_v22 = vunpack.i.l.bf16 %v7586_v45  ;;  %v7591_v52 = vpop.permute.xlu1 %7590  ;;  %v1848_v51 = vpack.c.bf16 %v1824_v9, %v1823_v46 }
  0xde   : > { %v7593_v36 = vunpack.i.h.bf16 %v7591_v52  ;;  %v7592_v57 = vunpack.i.l.bf16 %v7591_v52  ;;  %7875 = vrot.lane.b32.xlu0 %v7854_v55, %s11138_s27  ;;  %s11152_s27 = smov 96  }
  0xdf   : > { %v1615_v61 = vsel %vm1604_vm3, %v9119_v6, %v7587_v22  ;;  %v1616_v58 = vsel %vm1604_vm3, %v9122_v7, %v7588_v50  ;;  %7880 = vrot.lane.b32.xlu1 %v7859_v5, %s11150_s29  ;;  %7174 = vmatmul.mubr.msk.bf16.gmra.mxu0 %vm1886_vm10, %v1848_v51 }
  0xe0   : > { %v7596_v63 = vpop.permute.xlu0 %7595  ;;  %7177 = vmatprep.mubr.msk.bf16.mxu0 %vm11163_vm1, %v8821_v16  ;;  %v1646_v6 = vsel %vm1634_vm4, %v1616_v58, %v7593_v36  ;;  %v1645_v4 = vsel %vm1634_vm4, %v1615_v61, %v7592_v57 }
  0xe1   : > { %v7598_v55 = vunpack.i.h.bf16 %v7596_v63  ;;  %v7597_v0 = vunpack.i.l.bf16 %v7596_v63  ;;  %v7601_v2 = vpop.permute.xlu1 %7600 }
  0xe2   : > { %v7603_v7 = vunpack.i.h.bf16 %v7601_v2  ;;  %v7602_v10 = vunpack.i.l.bf16 %v7601_v2  ;;  %7885 = vrot.lane.b32.xlu0 %v7884_v37, %s11175_s30 }
  0xe3   : > { %v1675_v5 = vsel %vm1664_vm5, %v1645_v4, %v7597_v0  ;;  %v1676_v11 = vsel %vm1664_vm5, %v1646_v6, %v7598_v55  ;;  %7890 = vrot.lane.b32.xlu1 %v7889_v62, %s11146_s20  ;;  %s11180_s20 = smov 16  }
  0xe4   : > { %v7606_v13 = vpop.permute.xlu0 %7605  ;;  %v1705_v19 = vsel %vm1694_vm0, %v1675_v5, %v7602_v10  ;;  %v1706_v20 = vsel %vm1694_vm0, %v1676_v11, %v7603_v7 }
  0xe5   : > { %v7608_v14 = vunpack.i.h.bf16 %v7606_v13  ;;  %v7607_v15 = vunpack.i.l.bf16 %v7606_v13  ;;  %v7611_v17 = vpop.permute.xlu1 %7610 }
  0xe6   : > { %v7613_v23 = vunpack.i.h.bf16 %v7611_v17  ;;  %v7612_v24 = vunpack.i.l.bf16 %v7611_v17  ;;  %7895 = vrot.lane.b32.xlu0 %v7894_v3, %s11144_s21  ;;  %s11178_s21 = sld [smem:[#allocation13_spill]] }
  0xe7   : > { %v1735_v18 = vsel %vm1724_vm6, %v1705_v19, %v7607_v15  ;;  %v1736_v28 = vsel %vm1724_vm6, %v1706_v20, %v7608_v14  ;;  %7900 = vrot.lane.b32.xlu1 %v7899_v12, %s11148_s1 }
  0xe8   : > { %v7616_v29 = vpop.permute.xlu0 %7615  ;;  %v1765_v33 = vsel %vm1754_vm7, %v1735_v18, %v7612_v24  ;;  %v1766_v34 = vsel %vm1754_vm7, %v1736_v28, %v7613_v23 }
  0xe9   : > { %v7618_v30 = vunpack.i.h.bf16 %v7616_v29  ;;  %v7617_v31 = vunpack.i.l.bf16 %v7616_v29  ;;  %v7621_v32 = vpop.permute.xlu1 %7620 }
  0xea   : > { %v7623_v35 = vunpack.i.h.bf16 %v7621_v32  ;;  %v7622_v38 = vunpack.i.l.bf16 %v7621_v32 }
  0xeb   : > { %v1795_v39 = vsel %vm1784_vm8, %v1765_v33, %v7617_v31  ;;  %v1796_v40 = vsel %vm1784_vm8, %v1766_v34, %v7618_v30 }
  0xec   : > { %v1825_v25 = vsel %vm1814_vm9, %v1795_v39, %v7622_v38  ;;  %v1826_v8 = vsel %vm1814_vm9, %v1796_v40, %v7623_v35  ;;  %v7626_v46 = vpop.permute.xlu0 %7625 }
  0xed   : > { %v7628_v9 = vunpack.i.h.bf16 %v7626_v46  ;;  %v7627_v45 = vunpack.i.l.bf16 %v7626_v46  ;;  %v7631_v47 = vpop.permute.xlu1 %7630  ;;  %v1849_v21 = vpack.c.bf16 %v1826_v8, %v1825_v25 }
  0xee   : > { %v7633_v50 = vunpack.i.h.bf16 %v7631_v47  ;;  %v7632_v22 = vunpack.i.l.bf16 %v7631_v47 }
  0xef   : > { %v1617_v52 = vsel %vm1604_vm3, %v9143_v26, %v7627_v45  ;;  %v1618_v51 = vsel %vm1604_vm3, %v9146_v27, %v7628_v9  ;;  %7178 = vmatmul.mubr.msk.bf16.gmra.mxu0 %vm1886_vm10, %v1849_v21 }
  0xf0   : > { %v7636_v36 = vpop.permute.xlu0 %7635  ;;  %7181 = vmatprep.mubr.msk.bf16.mxu0 %vm11163_vm1, %v8821_v16  ;;  %v1648_v60 = vsel %vm1634_vm4, %v1618_v51, %v7633_v50  ;;  %v1647_v61 = vsel %vm1634_vm4, %v1617_v52, %v7632_v22 }
  0xf1   : > { %v7638_v57 = vunpack.i.h.bf16 %v7636_v36  ;;  %v7637_v37 = vunpack.i.l.bf16 %v7636_v36  ;;  %v7641_v59 = vpop.permute.xlu1 %7640 }
  0xf2   : > { %v7643_v58 = vunpack.i.h.bf16 %v7641_v59  ;;  %v7642_v62 = vunpack.i.l.bf16 %v7641_v59 }
  0xf3   : > { %v1677_v26 = vsel %vm1664_vm5, %v1647_v61, %v7637_v37  ;;  %v1678_v63 = vsel %vm1664_vm5, %v1648_v60, %v7638_v57 }
  0xf4   : > { %v7646_v27 = vpop.permute.xlu0 %7645  ;;  %v1707_v0 = vsel %vm1694_vm0, %v1677_v26, %v7642_v62  ;;  %v1708_v2 = vsel %vm1694_vm0, %v1678_v63, %v7643_v58 }
  0xf5   : > { %v7648_v1 = vunpack.i.h.bf16 %v7646_v27  ;;  %v7647_v56 = vunpack.i.l.bf16 %v7646_v27  ;;  %v7651_v55 = vpop.permute.xlu1 %7650 }
  0xf6   : > { %v7653_v3 = vunpack.i.h.bf16 %v7651_v55  ;;  %v7652_v6 = vunpack.i.l.bf16 %v7651_v55 }
  0xf7   : > { %v1737_v4 = vsel %vm1724_vm6, %v1707_v0, %v7647_v56  ;;  %v1738_v7 = vsel %vm1724_vm6, %v1708_v2, %v7648_v1 }
  0xf8   : > { %v7656_v10 = vpop.permute.xlu0 %7655  ;;  %v1767_v13 = vsel %vm1754_vm7, %v1737_v4, %v7652_v6  ;;  %v1768_v14 = vsel %vm1754_vm7, %v1738_v7, %v7653_v3 }
  0xf9   : > { %v7658_v5 = vunpack.i.h.bf16 %v7656_v10  ;;  %v7657_v11 = vunpack.i.l.bf16 %v7656_v10  ;;  %v7661_v12 = vpop.permute.xlu1 %7660 }
  0xfa   : > { %v7663_v15 = vunpack.i.h.bf16 %v7661_v12  ;;  %v7662_v17 = vunpack.i.l.bf16 %v7661_v12  ;;  %v8322_v12 = vld [vmem:[%s8962_s23 + $0x80] sm:$0xff] }
  0xfb   : > { %v1797_v19 = vsel %vm1784_vm8, %v1767_v13, %v7657_v11  ;;  %v1798_v20 = vsel %vm1784_vm8, %v1768_v14, %v7658_v5  ;;  %v8323_v14 = vld [vmem:[%s8962_s23 + $0x88] sm:$0xff] }
  0xfc   : > { %v1827_v23 = vsel %vm1814_vm9, %v1797_v19, %v7662_v17  ;;  %v1828_v24 = vsel %vm1814_vm9, %v1798_v20, %v7663_v15  ;;  %v7666_v18 = vpop.permute.xlu0 %7665 }
  0xfd   : > { %v7668_v28 = vunpack.i.h.bf16 %v7666_v18  ;;  %v7667_v29 = vunpack.i.l.bf16 %v7666_v18  ;;  %v7671_v30 = vpop.permute.xlu1 %7670  ;;  %v1850_v31 = vpack.c.bf16 %v1828_v24, %v1827_v23 }
  0xfe   : > { %v7673_v32 = vunpack.i.h.bf16 %v7671_v30  ;;  %v7672_v33 = vunpack.i.l.bf16 %v7671_v30 }
  0xff   : > { %v1619_v34 = vsel %vm1604_vm3, %v9167_v43, %v7667_v29  ;;  %v1620_v35 = vsel %vm1604_vm3, %v9170_v44, %v7668_v28  ;;  %7182 = vmatmul.mubr.msk.bf16.gmra.mxu0 %vm1886_vm10, %v1850_v31 }
 0x100   : > { %v7676_v38 = vpop.permute.xlu0 %7675  ;;  %7185 = vmatprep.mubr.msk.bf16.mxu0 %vm11163_vm1, %v8821_v16  ;;  %v1650_v8 = vsel %vm1634_vm4, %v1620_v35, %v7673_v32  ;;  %v1649_v46 = vsel %vm1634_vm4, %v1619_v34, %v7672_v33 }
 0x101   : > { %v7678_v39 = vunpack.i.h.bf16 %v7676_v38  ;;  %v7677_v40 = vunpack.i.l.bf16 %v7676_v38  ;;  %v7681_v25 = vpop.permute.xlu1 %7680 }
 0x102   : > { %v7683_v9 = vunpack.i.h.bf16 %v7681_v25  ;;  %v7682_v45 = vunpack.i.l.bf16 %v7681_v25 }
 0x103   : > { %v1679_v43 = vsel %vm1664_vm5, %v1649_v46, %v7677_v40  ;;  %v1680_v47 = vsel %vm1664_vm5, %v1650_v8, %v7678_v39 }
 0x104   : > { %v7686_v44 = vpop.permute.xlu0 %7685  ;;  %v1709_v52 = vsel %vm1694_vm0, %v1679_v43, %v7682_v45  ;;  %v1710_v51 = vsel %vm1694_vm0, %v1680_v47, %v7683_v9 }
 0x105   : > { %v7688_v21 = vunpack.i.h.bf16 %v7686_v44  ;;  %v7687_v50 = vunpack.i.l.bf16 %v7686_v44  ;;  %v7691_v22 = vpop.permute.xlu1 %7690 }
 0x106   : > { %v7693_v36 = vunpack.i.h.bf16 %v7691_v22  ;;  %v7692_v57 = vunpack.i.l.bf16 %v7691_v22 }
 0x107   : > { %v1739_v37 = vsel %vm1724_vm6, %v1709_v52, %v7687_v50  ;;  %v1740_v59 = vsel %vm1724_vm6, %v1710_v51, %v7688_v21 }
 0x108   : > { %v7696_v60 = vpop.permute.xlu0 %7695  ;;  %v1769_v26 = vsel %vm1754_vm7, %v1739_v37, %v7692_v57  ;;  %v1770_v63 = vsel %vm1754_vm7, %v1740_v59, %v7693_v36 }
 0x109   : > { %v7698_v61 = vunpack.i.h.bf16 %v7696_v60  ;;  %v7697_v58 = vunpack.i.l.bf16 %v7696_v60  ;;  %v7701_v62 = vpop.permute.xlu1 %7700 }
 0x10a   : > { %v7703_v27 = vunpack.i.h.bf16 %v7701_v62  ;;  %v7702_v1 = vunpack.i.l.bf16 %v7701_v62 }
 0x10b   : > { %v1799_v56 = vsel %vm1784_vm8, %v1769_v26, %v7697_v58  ;;  %v1800_v55 = vsel %vm1784_vm8, %v1770_v63, %v7698_v61  ;;  %v8324_v63 = vld [vmem:[%s8962_s23 + $0x90] sm:$0xff] }
 0x10c   : > { %v1829_v0 = vsel %vm1814_vm9, %v1799_v56, %v7702_v1  ;;  %v1830_v2 = vsel %vm1814_vm9, %v1800_v55, %v7703_v27  ;;  %v7706_v3 = vpop.permute.xlu0 %7705  ;;  %v8325_v1 = vld [vmem:[%s8962_s23 + $0x98] sm:$0xff] }
 0x10d   : > { %v7708_v6 = vunpack.i.h.bf16 %v7706_v3  ;;  %v7707_v4 = vunpack.i.l.bf16 %v7706_v3  ;;  %v7711_v7 = vpop.permute.xlu1 %7710  ;;  %v1851_v10 = vpack.c.bf16 %v1830_v2, %v1829_v0 }
 0x10e   : > { %v7713_v5 = vunpack.i.h.bf16 %v7711_v7  ;;  %v7712_v11 = vunpack.i.l.bf16 %v7711_v7 }
 0x10f   : > { %v1621_v13 = vsel %vm1604_vm3, %v8322_v12, %v7707_v4  ;;  %v1622_v15 = vsel %vm1604_vm3, %v8323_v14, %v7708_v6  ;;  %7186 = vmatmul.mubr.msk.bf16.gmra.mxu0 %vm1886_vm10, %v1851_v10 }
 0x110   : > { %v7716_v17 = vpop.permute.xlu0 %7715  ;;  %7189 = vmatprep.mubr.msk.bf16.mxu0 %vm11163_vm1, %v8821_v16  ;;  %v1652_v24 = vsel %vm1634_vm4, %v1622_v15, %v7713_v5  ;;  %v1651_v18 = vsel %vm1634_vm4, %v1621_v13, %v7712_v11 }
 0x111   : > { %v7718_v19 = vunpack.i.h.bf16 %v7716_v17  ;;  %v7717_v20 = vunpack.i.l.bf16 %v7716_v17  ;;  %v7721_v23 = vpop.permute.xlu1 %7720 }
 0x112   : > { %v7723_v28 = vunpack.i.h.bf16 %v7721_v23  ;;  %v7722_v29 = vunpack.i.l.bf16 %v7721_v23 }
 0x113   : > { %v1681_v30 = vsel %vm1664_vm5, %v1651_v18, %v7717_v20  ;;  %v1682_v31 = vsel %vm1664_vm5, %v1652_v24, %v7718_v19 }
 0x114   : > { %v7726_v32 = vpop.permute.xlu0 %7725  ;;  %v1711_v38 = vsel %vm1694_vm0, %v1681_v30, %v7722_v29  ;;  %v1712_v39 = vsel %vm1694_vm0, %v1682_v31, %v7723_v28 }
 0x115   : > { %v7728_v33 = vunpack.i.h.bf16 %v7726_v32  ;;  %v7727_v34 = vunpack.i.l.bf16 %v7726_v32  ;;  %v7731_v35 = vpop.permute.xlu1 %7730 }
 0x116   : > { %v7733_v40 = vunpack.i.h.bf16 %v7731_v35  ;;  %v7732_v25 = vunpack.i.l.bf16 %v7731_v35 }
 0x117   : > { %v1741_v8 = vsel %vm1724_vm6, %v1711_v38, %v7727_v34  ;;  %v1742_v46 = vsel %vm1724_vm6, %v1712_v39, %v7728_v33 }
 0x118   : > { %v7736_v9 = vpop.permute.xlu0 %7735  ;;  %v1771_v44 = vsel %vm1754_vm7, %v1741_v8, %v7732_v25  ;;  %v1772_v21 = vsel %vm1754_vm7, %v1742_v46, %v7733_v40 }
 0x119   : > { %v7738_v45 = vunpack.i.h.bf16 %v7736_v9  ;;  %v7737_v43 = vunpack.i.l.bf16 %v7736_v9  ;;  %v7741_v47 = vpop.permute.xlu1 %7740 }
 0x11a   : > { %v7743_v50 = vunpack.i.h.bf16 %v7741_v47  ;;  %v7742_v22 = vunpack.i.l.bf16 %v7741_v47 }
 0x11b   : > { %v1801_v52 = vsel %vm1784_vm8, %v1771_v44, %v7737_v43  ;;  %v1802_v51 = vsel %vm1784_vm8, %v1772_v21, %v7738_v45 }
 0x11c   : > { %v1831_v36 = vsel %vm1814_vm9, %v1801_v52, %v7742_v22  ;;  %v1832_v57 = vsel %vm1814_vm9, %v1802_v51, %v7743_v50  ;;  %v7746_v37 = vpop.permute.xlu0 %7745 }
 0x11d   : > { %v7748_v59 = vunpack.i.h.bf16 %v7746_v37  ;;  %v7747_v60 = vunpack.i.l.bf16 %v7746_v37  ;;  %v7751_v61 = vpop.permute.xlu1 %7750  ;;  %v1852_v58 = vpack.c.bf16 %v1832_v57, %v1831_v36 }
 0x11e   : > { %v7753_v62 = vunpack.i.h.bf16 %v7751_v61  ;;  %v7752_v26 = vunpack.i.l.bf16 %v7751_v61 }
 0x11f   : > { %v1623_v27 = vsel %vm1604_vm3, %v8324_v63, %v7747_v60  ;;  %v1624_v56 = vsel %vm1604_vm3, %v8325_v1, %v7748_v59  ;;  %7190 = vmatmul.mubr.msk.bf16.gmra.mxu0 %vm1886_vm10, %v1852_v58 }
 0x120   : > { %v7756_v55 = vpop.permute.xlu0 %7755  ;;  %7193 = vmatprep.mubr.msk.bf16.mxu0 %vm11163_vm1, %v8821_v16  ;;  %v1654_v6 = vsel %vm1634_vm4, %v1624_v56, %v7753_v62  ;;  %v1653_v4 = vsel %vm1634_vm4, %v1623_v27, %v7752_v26 }
 0x121   : > { %v7758_v0 = vunpack.i.h.bf16 %v7756_v55  ;;  %v7757_v2 = vunpack.i.l.bf16 %v7756_v55  ;;  %v7761_v3 = vpop.permute.xlu1 %7760 }
 0x122   : > { %v7763_v7 = vunpack.i.h.bf16 %v7761_v3  ;;  %v7762_v10 = vunpack.i.l.bf16 %v7761_v3 }
 0x123   : > { %v1683_v5 = vsel %vm1664_vm5, %v1653_v4, %v7757_v2  ;;  %v1684_v11 = vsel %vm1664_vm5, %v1654_v6, %v7758_v0 }
 0x124   : > { %v7766_v12 = vpop.permute.xlu0 %7765  ;;  %v1713_v17 = vsel %vm1694_vm0, %v1683_v5, %v7762_v10  ;;  %v1714_v19 = vsel %vm1694_vm0, %v1684_v11, %v7763_v7 }
 0x125   : > { %v7768_v13 = vunpack.i.h.bf16 %v7766_v12  ;;  %v7767_v14 = vunpack.i.l.bf16 %v7766_v12  ;;  %v7771_v15 = vpop.permute.xlu1 %7770 }
 0x126   : > { %v7773_v20 = vunpack.i.h.bf16 %v7771_v15  ;;  %v7772_v23 = vunpack.i.l.bf16 %v7771_v15 }
 0x127   : > { %v1743_v24 = vsel %vm1724_vm6, %v1713_v17, %v7767_v14  ;;  %v1744_v18 = vsel %vm1724_vm6, %v1714_v19, %v7768_v13 }
 0x128   : > { %v7776_v28 = vpop.permute.xlu0 %7775  ;;  %v1773_v32 = vsel %vm1754_vm7, %v1743_v24, %v7772_v23  ;;  %v1774_v33 = vsel %vm1754_vm7, %v1744_v18, %v7773_v20 }
 0x129   : > { %v7778_v29 = vunpack.i.h.bf16 %v7776_v28  ;;  %v7777_v30 = vunpack.i.l.bf16 %v7776_v28  ;;  %v7781_v31 = vpop.permute.xlu1 %7780 }
 0x12a   : > { %v7783_v34 = vunpack.i.h.bf16 %v7781_v31  ;;  %v7782_v35 = vunpack.i.l.bf16 %v7781_v31 }
 0x12b   : > { %v1803_v38 = vsel %vm1784_vm8, %v1773_v32, %v7777_v30  ;;  %v1804_v39 = vsel %vm1784_vm8, %v1774_v33, %v7778_v29 }
 0x12c   : > { %v1833_v40 = vsel %vm1814_vm9, %v1803_v38, %v7782_v35  ;;  %v1834_v25 = vsel %vm1814_vm9, %v1804_v39, %v7783_v34  ;;  %v7786_v8 = vpop.permute.xlu0 %7785 }
 0x12d   : > { %v7788_v46 = vunpack.i.h.bf16 %v7786_v8  ;;  %v7787_v9 = vunpack.i.l.bf16 %v7786_v8  ;;  %v7791_v45 = vpop.permute.xlu1 %7790  ;;  %v1853_v43 = vpack.c.bf16 %v1834_v25, %v1833_v40 }
 0x12e   : > { %v7793_v47 = vunpack.i.h.bf16 %v7791_v45  ;;  %v7792_v44 = vunpack.i.l.bf16 %v7791_v45 }
 0x12f   : > { %v1625_v21 = vsel %vm1604_vm3, %v9254_v41, %v7787_v9  ;;  %v1626_v50 = vsel %vm1604_vm3, %v9257_v42, %v7788_v46  ;;  %7194 = vmatmul.mubr.msk.bf16.gmra.mxu0 %vm1886_vm10, %v1853_v43 }
 0x130   : > { %v7796_v22 = vpop.permute.xlu0 %7795  ;;  %7197 = vmatprep.mubr.msk.bf16.mxu0 %vm11163_vm1, %v8821_v16  ;;  %v1656_v57 = vsel %vm1634_vm4, %v1626_v50, %v7793_v47  ;;  %v1655_v37 = vsel %vm1634_vm4, %v1625_v21, %v7792_v44 }
 0x131   : > { %v7798_v52 = vunpack.i.h.bf16 %v7796_v22  ;;  %v7797_v51 = vunpack.i.l.bf16 %v7796_v22  ;;  %v7801_v36 = vpop.permute.xlu1 %7800 }
 0x132   : > { %v7803_v59 = vunpack.i.h.bf16 %v7801_v36  ;;  %v7802_v60 = vunpack.i.l.bf16 %v7801_v36 }
 0x133   : > { %v1685_v41 = vsel %vm1664_vm5, %v1655_v37, %v7797_v51  ;;  %v1686_v61 = vsel %vm1664_vm5, %v1656_v57, %v7798_v52 }
 0x134   : > { %v7806_v42 = vpop.permute.xlu0 %7805  ;;  %v1715_v63 = vsel %vm1694_vm0, %v1685_v41, %v7802_v60  ;;  %v1716_v27 = vsel %vm1694_vm0, %v1686_v61, %v7803_v59 }
 0x135   : > { %v7808_v58 = vunpack.i.h.bf16 %v7806_v42  ;;  %v7807_v62 = vunpack.i.l.bf16 %v7806_v42  ;;  %v7811_v26 = vpop.permute.xlu1 %7810 }
 0x136   : > { %v7813_v1 = vunpack.i.h.bf16 %v7811_v26  ;;  %v7812_v56 = vunpack.i.l.bf16 %v7811_v26 }
 0x137   : > { %v1745_v55 = vsel %vm1724_vm6, %v1715_v63, %v7807_v62  ;;  %v1746_v0 = vsel %vm1724_vm6, %v1716_v27, %v7808_v58 }
 0x138   : > { %v7816_v2 = vpop.permute.xlu0 %7815  ;;  %v1775_v7 = vsel %vm1754_vm7, %v1745_v55, %v7812_v56  ;;  %v1776_v10 = vsel %vm1754_vm7, %v1746_v0, %v7813_v1 }
 0x139   : > { %v7818_v3 = vunpack.i.h.bf16 %v7816_v2  ;;  %v7817_v6 = vunpack.i.l.bf16 %v7816_v2  ;;  %v7821_v4 = vpop.permute.xlu1 %7820 }
 0x13a   : > { %v7823_v5 = vunpack.i.h.bf16 %v7821_v4  ;;  %v7822_v11 = vunpack.i.l.bf16 %v7821_v4 }
 0x13b   : > { %v1805_v12 = vsel %vm1784_vm8, %v1775_v7, %v7817_v6  ;;  %v1806_v13 = vsel %vm1784_vm8, %v1776_v10, %v7818_v3 }
 0x13c   : > { %v1835_v14 = vsel %vm1814_vm9, %v1805_v12, %v7822_v11  ;;  %v1836_v15 = vsel %vm1814_vm9, %v1806_v13, %v7823_v5  ;;  %v7826_v17 = vpop.permute.xlu0 %7825 }
 0x13d   : > { %v7828_v19 = vunpack.i.h.bf16 %v7826_v17  ;;  %v7827_v20 = vunpack.i.l.bf16 %v7826_v17  ;;  %v7831_v23 = vpop.permute.xlu1 %7830  ;;  %v1854_v24 = vpack.c.bf16 %v1836_v15, %v1835_v14 }
 0x13e   : > { %v7833_v18 = vunpack.i.h.bf16 %v7831_v23  ;;  %v7832_v28 = vunpack.i.l.bf16 %v7831_v23 }
 0x13f   : > { %v1627_v29 = vsel %vm1604_vm3, %v9299_v48, %v7827_v20  ;;  %v1628_v30 = vsel %vm1604_vm3, %v9302_v49, %v7828_v19  ;;  %7198 = vmatmul.mubr.msk.bf16.gmra.mxu0 %vm1886_vm10, %v1854_v24 }
 0x140   : > { %v7836_v31 = vpop.permute.xlu0 %7835  ;;  %7201 = vmatprep.mubr.msk.bf16.mxu0 %vm11163_vm1, %v8821_v16  ;;  %v1658_v35 = vsel %vm1634_vm4, %v1628_v30, %v7833_v18  ;;  %v1657_v38 = vsel %vm1634_vm4, %v1627_v29, %v7832_v28 }
 0x141   : > { %v7838_v32 = vunpack.i.h.bf16 %v7836_v31  ;;  %v7837_v33 = vunpack.i.l.bf16 %v7836_v31  ;;  %v7841_v34 = vpop.permute.xlu1 %7840 }
 0x142   : > { %v7843_v39 = vunpack.i.h.bf16 %v7841_v34  ;;  %v7842_v40 = vunpack.i.l.bf16 %v7841_v34 }
 0x143   : > { %v1687_v48 = vsel %vm1664_vm5, %v1657_v38, %v7837_v33  ;;  %v1688_v25 = vsel %vm1664_vm5, %v1658_v35, %v7838_v32 }
 0x144   : > { %v7846_v49 = vpop.permute.xlu0 %7845  ;;  %v1717_v45 = vsel %vm1694_vm0, %v1687_v48, %v7842_v40  ;;  %v1718_v43 = vsel %vm1694_vm0, %v1688_v25, %v7843_v39 }
 0x145   : > { %v7848_v8 = vunpack.i.h.bf16 %v7846_v49  ;;  %v7847_v46 = vunpack.i.l.bf16 %v7846_v49  ;;  %v7851_v9 = vpop.permute.xlu1 %7850  ;;  %v9599_v49 = vld [vmem:[%s11176_s2] ss:$0 sm:$0xff]  ;;  %s11156_s2 = smov 48  }
 0x146   : > { %v7853_v47 = vunpack.i.h.bf16 %v7851_v9  ;;  %v7852_v44 = vunpack.i.l.bf16 %v7851_v9 }
 0x147   : > { %v1747_v21 = vsel %vm1724_vm6, %v1717_v45, %v7847_v46  ;;  %v1748_v50 = vsel %vm1724_vm6, %v1718_v43, %v7848_v8 }
 0x148   : > { %v7856_v22 = vpop.permute.xlu0 %7855  ;;  %v1777_v57 = vsel %vm1754_vm7, %v1747_v21, %v7852_v44  ;;  %v1778_v37 = vsel %vm1754_vm7, %v1748_v50, %v7853_v47 }
 0x149   : > { %v7858_v52 = vunpack.i.h.bf16 %v7856_v22  ;;  %v7857_v51 = vunpack.i.l.bf16 %v7856_v22  ;;  %v7861_v36 = vpop.permute.xlu1 %7860 }
 0x14a   : > { %v7863_v59 = vunpack.i.h.bf16 %v7861_v36  ;;  %v7862_v60 = vunpack.i.l.bf16 %v7861_v36 }
 0x14b   : > { %v1807_v41 = vsel %vm1784_vm8, %v1777_v57, %v7857_v51  ;;  %v1808_v61 = vsel %vm1784_vm8, %v1778_v37, %v7858_v52  ;;  %v9612_v37 = vld [vmem:[%s11177_s7] sm:$0x7f]  ;;  %s11187_s7 = smov 12  }
 0x14c   : > { %v1837_v42 = vsel %vm1814_vm9, %v1807_v41, %v7862_v60  ;;  %v1838_v58 = vsel %vm1814_vm9, %v1808_v61, %v7863_v59  ;;  %v7866_v62 = vpop.permute.xlu0 %7865 }
 0x14d   : > { %v7868_v26 = vunpack.i.h.bf16 %v7866_v62  ;;  %v7867_v63 = vunpack.i.l.bf16 %v7866_v62  ;;  %v7871_v27 = vpop.permute.xlu1 %7870  ;;  %v1855_v1 = vpack.c.bf16 %v1838_v58, %v1837_v42 }
 0x14e   : > { %v7873_v56 = vunpack.i.h.bf16 %v7871_v27  ;;  %v7872_v55 = vunpack.i.l.bf16 %v7871_v27 }
 0x14f   : > { %v1629_v0 = vsel %vm1604_vm3, %v9344_v53, %v7867_v63  ;;  %v1630_v2 = vsel %vm1604_vm3, %v9347_v54, %v7868_v26  ;;  %7202 = vmatmul.mubr.msk.bf16.gmra.mxu0 %vm1886_vm10, %v1855_v1 }
 0x150   : > { %v7876_v3 = vpop.permute.xlu0 %7875  ;;  %7205 = vmatprep.mubr.msk.bf16.mxu0 %vm11163_vm1, %v8821_v16  ;;  %v1660_v10 = vsel %vm1634_vm4, %v1630_v2, %v7873_v56  ;;  %v1659_v5 = vsel %vm1634_vm4, %v1629_v0, %v7872_v55 }
 0x151   : > { %v7878_v6 = vunpack.i.h.bf16 %v7876_v3  ;;  %v7877_v4 = vunpack.i.l.bf16 %v7876_v3  ;;  %v7881_v7 = vpop.permute.xlu1 %7880 }
 0x152   : > { %v7883_v11 = vunpack.i.h.bf16 %v7881_v7  ;;  %v7882_v12 = vunpack.i.l.bf16 %v7881_v7 }
 0x153   : > { %v1689_v53 = vsel %vm1664_vm5, %v1659_v5, %v7877_v4  ;;  %v1690_v13 = vsel %vm1664_vm5, %v1660_v10, %v7878_v6 }
 0x154   : > { %v7886_v54 = vpop.permute.xlu0 %7885  ;;  %v1719_v19 = vsel %vm1694_vm0, %v1689_v53, %v7882_v12  ;;  %v1720_v20 = vsel %vm1694_vm0, %v1690_v13, %v7883_v11 }
 0x155   : > { %v7888_v14 = vunpack.i.h.bf16 %v7886_v54  ;;  %v7887_v15 = vunpack.i.l.bf16 %v7886_v54  ;;  %v7891_v17 = vpop.permute.xlu1 %7890 }
 0x156   : > { %v7893_v23 = vunpack.i.h.bf16 %v7891_v17  ;;  %v7892_v24 = vunpack.i.l.bf16 %v7891_v17 }
 0x157   : > { %v1749_v18 = vsel %vm1724_vm6, %v1719_v19, %v7887_v15  ;;  %v1750_v28 = vsel %vm1724_vm6, %v1720_v20, %v7888_v14 }
 0x158   : > { %v7896_v29 = vpop.permute.xlu0 %7895  ;;  %v1779_v33 = vsel %vm1754_vm7, %v1749_v18, %v7892_v24  ;;  %v1780_v34 = vsel %vm1754_vm7, %v1750_v28, %v7893_v23 }
 0x159   : > { %v7898_v30 = vunpack.i.h.bf16 %v7896_v29  ;;  %v7897_v31 = vunpack.i.l.bf16 %v7896_v29  ;;  %v7901_v32 = vpop.permute.xlu1 %7900 }
 0x15a   : > { %v7903_v35 = vunpack.i.h.bf16 %v7901_v32  ;;  %v7902_v38 = vunpack.i.l.bf16 %v7901_v32 }
 0x15b   : > { %v1809_v39 = vsel %vm1784_vm8, %v1779_v33, %v7897_v31  ;;  %v1810_v40 = vsel %vm1784_vm8, %v1780_v34, %v7898_v30 }
 0x15c   : > { %v1839_v48 = vsel %vm1814_vm9, %v1809_v39, %v7902_v38  ;;  %v1840_v25 = vsel %vm1814_vm9, %v1810_v40, %v7903_v35  ;;  %v9647_v39 = vld [vmem:[#allocation4 + $0x49] sm:$0xff]  ;;  %v9649_v40 = vld [vmem:[#allocation4 + $0x51] sm:$0xff] }
 0x15d   : > { %v1856_v8 = vpack.c.bf16 %v1840_v25, %v1839_v48  ;;  %v7904_v48 = vpack.i.bf16 %v9649_v40, %v9647_v39 }
 0x15f   : > { %v1970_v46 = vpop.f32.mrf.mxu0  ;;  %7206 = vmatmul.mubr.msk.bf16.gmra.mxu0 %vm1886_vm10, %v1856_v8  ;;  %7905 = vrot.lane.b32.xlu0 %v7904_v48, %s11156_s2 }
 0x160   : > { %v1971_v9 = vadd.f32 %v9599_v49, %v1970_v46  ;;  %7209 = vmatprep.mubr.msk.bf16.mxu0 %vm11163_vm1, %v8821_v16 }
 0x161   : > { %v7159_v45 = vpop.f32.mrf.mxu0 }
 0x162   : > { %vm2088_vm11 = vcmp.ge.f32.partialorder %v1971_v9, 0.0  ;;  %v2117_v43 = vmul.f32 0.01, %v1971_v9 }
 0x163   : > { %v1973_v47 = vpop.f32.mrf.mxu0 }
 0x164   : > { %v2146_v44 = vsel %vm2088_vm11, %v1971_v9, %v2117_v43  ;;  %v1974_v21 = vadd.f32 %v9599_v49, %v1973_v47 }
 0x165   : > { %2175 = vst.msk [vmem:[#allocation6] sm:$0xff] %vm1694_vm0, %v2146_v44  ;;  %v7160_v50 = vpop.f32.mrf.mxu0 }
 0x166   : > { %vm2089_vm12 = vcmp.ge.f32.partialorder %v1974_v21, 0.0  ;;  %v2118_v22 = vmul.f32 0.01, %v1974_v21 }
 0x168   : > { %v2147_v52 = vsel %vm2089_vm12, %v1974_v21, %v2118_v22 }
 0x169   : > { %2176 = vst.msk [vmem:[#allocation6 + $0x8] sm:$0xff] %vm1694_vm0, %v2147_v52 }
 0x16c   : > { %v2219_v59 = vld [vmem:[#allocation6] sm:$0xff] }
 0x16f   : > { %v1978_v51 = vpop.f32.mrf.mxu0 }
 0x170   : > { %v2220_v36 = vld [vmem:[#allocation6 + $0x8] sm:$0x7f] }
 0x171   : > { %v7163_v57 = vpop.f32.mrf.mxu0  ;;  %7218 = vmatpush3.msk.msra.mxu1 %vm2225_vm13, %v2220_v36 }
 0x172   : > { %7219 = vmatprep.subr.mxu1 %v8821_v16 }
 0x173   : > { %v1981_v60 = vpop.f32.mrf.mxu0  ;;  %7220 = vmatpush3.msra.mxu1 %v2219_v59 }
 0x174   : > { %v1982_v41 = vadd.f32 %v9599_v49, %v1981_v60  ;;  %7224 = vmatprep.subr.mxu1 %v8821_v16  ;;  %7222 = vmatmul.mubr.msk.f32.vlgmr.msra.gmra.mxu1 %vm2221_vm14, %v9612_v37  ;;  %v9661_v60 = vld [vmem:[#allocation4 + $0x4a] sm:$0xff] }
 0x175   : > { %v7164_v61 = vpop.f32.mrf.mxu0  ;;  %7228 = vmatprep.mubr.msk.f32.mxu1 %vm11163_vm1, %v8821_v16 }
 0x176   : > { %vm2091_vm15 = vcmp.ge.f32.partialorder %v1982_v41, 0.0  ;;  %v2120_v42 = vmul.f32 0.01, %v1982_v41 }
 0x178   : > { %v2149_v58 = vsel %vm2091_vm15, %v1982_v41, %v2120_v42  ;;  %v9663_v41 = vld [vmem:[#allocation4 + $0x52] sm:$0xff] }
 0x179   : > { %2178 = vst.msk [vmem:[#allocation6 + $0x18] sm:$0xff] %vm1694_vm0, %v2149_v58  ;;  %v7909_v42 = vpack.i.bf16 %v9663_v41, %v9661_v60  ;;  %v9671_v58 = vld [vmem:[#allocation4 + $0x4b] sm:$0xff] }
 0x17b   : > { %7910 = vrot.lane.b32.xlu1 %v7909_v42, %s11154_s25  ;;  %v2768_v42 = vld [vmem:[#allocation4 + $0x1] sm:$0xff] }
 0x17f   : > { %v1986_v62 = vpop.f32.mrf.mxu0 }
 0x180   : > { %v1987_v26 = vadd.f32 %v9599_v49, %v1986_v62  ;;  %v9673_v62 = vld [vmem:[#allocation4 + $0x53] sm:$0xff] }
 0x181   : > { %v7167_v63 = vpop.f32.mrf.mxu0 }
 0x182   : > { %vm2092_vm2 = vcmp.ge.f32.partialorder %v1987_v26, 0.0  ;;  %v2121_v27 = vmul.f32 0.01, %v1987_v26  ;;  %v7914_v63 = vpack.i.bf16 %v9673_v62, %v9671_v58 }
 0x183   : > { %v1989_v1 = vpop.f32.mrf.mxu0 }
 0x184   : > { %v2150_v56 = vsel %vm2092_vm2, %v1987_v26, %v2121_v27  ;;  %v1990_v55 = vadd.f32 %v9599_v49, %v1989_v1  ;;  %v9679_v27 = vld [vmem:[#allocation4 + $0x5a] sm:$0xff]  ;;  %7915 = vrot.lane.b32.xlu0 %v7914_v63, %s11161_s22 }
 0x185   : > { %2179 = vst.msk [vmem:[#allocation6 + $0x20] sm:$0xff] %vm1694_vm0, %v2150_v56  ;;  %v7168_v0 = vpop.f32.mrf.mxu0  ;;  %v7919_v56 = vpack.i.bf16 %v9679_v27, %v9663_v41 }
 0x186   : > { %vm2093_vm11 = vcmp.ge.f32.partialorder %v1990_v55, 0.0  ;;  %v2122_v2 = vmul.f32 0.01, %v1990_v55 }
 0x187   : > { %7920 = vrot.lane.b32.xlu1 %v7919_v56, %s11152_s27  ;;  %s11185_s27 = smov 4  }
 0x188   : > { %v2151_v3 = vsel %vm2093_vm11, %v1990_v55, %v2122_v2 }
 0x189   : > { %2180 = vst.msk [vmem:[#allocation6 + $0x28] sm:$0xff] %vm1694_vm0, %v2151_v3 }
 0x18c   : > { %v2301_v10 = vld [vmem:[#allocation6 + $0x1e] sm:$0xff] }
 0x18f   : > { %v1994_v6 = vpop.f32.mrf.mxu0 }
 0x190   : > { %v2302_v4 = vld [vmem:[#allocation6 + $0x26] sm:$0x7f] }
 0x191   : > { %v7171_v7 = vpop.f32.mrf.mxu0  ;;  %7225 = vmatpush3.msk.msra.mxu1 %vm2225_vm13, %v2302_v4 }
 0x192   : > { %7226 = vmatprep.subr.mxu1 %v8821_v16 }
 0x193   : > { %v1997_v5 = vpop.f32.mrf.mxu0  ;;  %7227 = vmatpush3.msra.mxu1 %v2301_v10 }
 0x194   : > { %v1998_v11 = vadd.f32 %v9599_v49, %v1997_v5  ;;  %7229 = vmatmul.mubr.msk.f32.vlgmr.msra.gmra.mxu1 %vm2221_vm14, %v9612_v37  ;;  %7231 = vmatprep.subr.mxu1 %v8821_v16 }
 0x195   : > { %v7172_v12 = vpop.f32.mrf.mxu0  ;;  %7235 = vmatprep.mubr.msk.f32.mxu1 %vm11163_vm1, %v8821_v16 }
 0x196   : > { %vm2095_vm12 = vcmp.ge.f32.partialorder %v1998_v11, 0.0  ;;  %v2124_v53 = vmul.f32 0.01, %v1998_v11 }
 0x198   : > { %v2153_v13 = vsel %vm2095_vm12, %v1998_v11, %v2124_v53 }
 0x199   : > { %2182 = vst.msk [vmem:[#allocation6 + $0x38] sm:$0xff] %vm1694_vm0, %v2153_v13 }
 0x19f   : > { %v2002_v54 = vpop.f32.mrf.mxu0 }
 0x1a0   : > { %v2003_v14 = vadd.f32 %v9599_v49, %v2002_v54 }
 0x1a1   : > { %v7175_v15 = vpop.f32.mrf.mxu0 }
 0x1a2   : > { %vm2096_vm15 = vcmp.ge.f32.partialorder %v2003_v14, 0.0  ;;  %v2125_v17 = vmul.f32 0.01, %v2003_v14 }
 0x1a3   : > { %v2005_v19 = vpop.f32.mrf.mxu0 }
 0x1a4   : > { %v2154_v20 = vsel %vm2096_vm15, %v2003_v14, %v2125_v17  ;;  %v2006_v23 = vadd.f32 %v9599_v49, %v2005_v19 }
 0x1a5   : > { %2183 = vst.msk [vmem:[#allocation6 + $0x40] sm:$0xff] %vm1694_vm0, %v2154_v20  ;;  %v7176_v24 = vpop.f32.mrf.mxu0 }
 0x1a6   : > { %vm2097_vm2 = vcmp.ge.f32.partialorder %v2006_v23, 0.0  ;;  %v2126_v18 = vmul.f32 0.01, %v2006_v23 }
 0x1a8   : > { %v2155_v28 = vsel %vm2097_vm2, %v2006_v23, %v2126_v18 }
 0x1a9   : > { %2184 = vst.msk [vmem:[#allocation6 + $0x48] sm:$0xff] %vm1694_vm0, %v2155_v28 }
 0x1ac   : > { %v2377_v32 = vld [vmem:[#allocation6 + $0x3c] sm:$0xff] }
 0x1af   : > { %v2010_v29 = vpop.f32.mrf.mxu0 }
 0x1b0   : > { %v2378_v30 = vld [vmem:[#allocation6 + $0x44] sm:$0x7f] }
 0x1b1   : > { %v7179_v31 = vpop.f32.mrf.mxu0  ;;  %7232 = vmatpush3.msk.msra.mxu1 %vm2225_vm13, %v2378_v30 }
 0x1b2   : > { %7233 = vmatprep.subr.mxu1 %v8821_v16 }
 0x1b3   : > { %v2013_v33 = vpop.f32.mrf.mxu0  ;;  %7234 = vmatpush3.msra.mxu1 %v2377_v32 }
 0x1b4   : > { %v2014_v34 = vadd.f32 %v9599_v49, %v2013_v33  ;;  %7236 = vmatmul.mubr.msk.f32.vlgmr.msra.gmra.mxu1 %vm2221_vm14, %v9612_v37  ;;  %7238 = vmatprep.subr.mxu1 %v8821_v16 }
 0x1b5   : > { %v7180_v35 = vpop.f32.mrf.mxu0  ;;  %7242 = vmatprep.mubr.msk.f32.mxu1 %vm11163_vm1, %v8821_v16 }
 0x1b6   : > { %vm2099_vm11 = vcmp.ge.f32.partialorder %v2014_v34, 0.0  ;;  %v2128_v38 = vmul.f32 0.01, %v2014_v34 }
 0x1b8   : > { %v2157_v25 = vsel %vm2099_vm11, %v2014_v34, %v2128_v38 }
 0x1b9   : > { %2186 = vst.msk [vmem:[#allocation6 + $0x58] sm:$0xff] %vm1694_vm0, %v2157_v25 }
 0x1bf   : > { %v2018_v8 = vpop.f32.mrf.mxu0 }
 0x1c0   : > { %v2019_v46 = vadd.f32 %v9599_v49, %v2018_v8 }
 0x1c1   : > { %v7183_v9 = vpop.f32.mrf.mxu0 }
 0x1c2   : > { %vm2100_vm12 = vcmp.ge.f32.partialorder %v2019_v46, 0.0  ;;  %v2129_v45 = vmul.f32 0.01, %v2019_v46 }
 0x1c3   : > { %v2021_v43 = vpop.f32.mrf.mxu0 }
 0x1c4   : > { %v2158_v47 = vsel %vm2100_vm12, %v2019_v46, %v2129_v45  ;;  %v2022_v44 = vadd.f32 %v9599_v49, %v2021_v43 }
 0x1c5   : > { %2187 = vst.msk [vmem:[#allocation6 + $0x60] sm:$0xff] %vm1694_vm0, %v2158_v47  ;;  %v7184_v21 = vpop.f32.mrf.mxu0 }
 0x1c6   : > { %vm2101_vm15 = vcmp.ge.f32.partialorder %v2022_v44, 0.0  ;;  %v2130_v50 = vmul.f32 0.01, %v2022_v44 }
 0x1c8   : > { %v2159_v22 = vsel %vm2101_vm15, %v2022_v44, %v2130_v50 }
 0x1c9   : > { %2188 = vst.msk [vmem:[#allocation6 + $0x68] sm:$0xff] %vm1694_vm0, %v2159_v22 }
 0x1cc   : > { %v2453_v57 = vld [vmem:[#allocation6 + $0x5a] sm:$0xff] }
 0x1cf   : > { %v2026_v52 = vpop.f32.mrf.mxu0 }
 0x1d0   : > { %v2454_v51 = vld [vmem:[#allocation6 + $0x62] sm:$0x7f] }
 0x1d1   : > { %v7187_v36 = vpop.f32.mrf.mxu0  ;;  %7239 = vmatpush3.msk.msra.mxu1 %vm2225_vm13, %v2454_v51 }
 0x1d2   : > { %7240 = vmatprep.subr.mxu1 %v8821_v16 }
 0x1d3   : > { %v2029_v59 = vpop.f32.mrf.mxu0  ;;  %7241 = vmatpush3.msra.mxu1 %v2453_v57 }
 0x1d4   : > { %v2030_v61 = vadd.f32 %v9599_v49, %v2029_v59  ;;  %7243 = vmatmul.mubr.msk.f32.vlgmr.msra.gmra.mxu1 %vm2221_vm14, %v9612_v37  ;;  %7245 = vmatprep.subr.mxu1 %v8821_v16 }
 0x1d5   : > { %v7188_v26 = vpop.f32.mrf.mxu0  ;;  %7249 = vmatprep.mubr.msk.f32.mxu1 %vm11163_vm1, %v8821_v16 }
 0x1d6   : > { %vm2103_vm2 = vcmp.ge.f32.partialorder %v2030_v61, 0.0  ;;  %v2132_v1 = vmul.f32 0.01, %v2030_v61  ;;  %v2779_v26 = vld [vmem:[#allocation4 + $0x2] sm:$0xff] }
 0x1d8   : > { %v2161_v55 = vsel %vm2103_vm2, %v2030_v61, %v2132_v1 }
 0x1d9   : > { %2190 = vst.msk [vmem:[#allocation6 + $0x78] sm:$0xff] %vm1694_vm0, %v2161_v55 }
 0x1df   : > { %v2034_v0 = vpop.f32.mrf.mxu0 }
 0x1e0   : > { %v2035_v2 = vadd.f32 %v9599_v49, %v2034_v0  ;;  %v2529_v11 = vld [vmem:[#allocation6 + $0x78] sm:$0xff]  ;;  %v8304_v0 = vld [vmem:[%s11178_s21 + $0x38] sm:$0xff]  }
 0x1e1   : > { %v7191_v3 = vpop.f32.mrf.mxu0 }
 0x1e2   : > { %vm2104_vm11 = vcmp.ge.f32.partialorder %v2035_v2, 0.0  ;;  %v2133_v6 = vmul.f32 0.01, %v2035_v2 }
 0x1e3   : > { %v2037_v4 = vpop.f32.mrf.mxu0 }
 0x1e4   : > { %v2162_v7 = vsel %vm2104_vm11, %v2035_v2, %v2133_v6  ;;  %v8833_v2 = vmov 0   ;;  %v8305_v6 = vld [vmem:[%s11178_s21 + $0x30] sm:$0xff]  }
 0x1e5   : > { %2191 = vst.msk [vmem:[#allocation6 + $0x80] sm:$0xff] %vm1694_vm0, %v2162_v7  ;;  %v7192_v10 = vpop.f32.mrf.mxu0  ;;  %8079 = vset.pattern.permute.xlu0 %v8833_v2  ;;  %8080 = vset.pattern.permute.xlu1 %v8833_v2  ;;  %v8306_v7 = vld [vmem:[%s11178_s21 + $0x28] sm:$0xff]  }
 0x1ec   : > { %v2530_v5 = vld [vmem:[#allocation6 + $0x80] sm:$0x7f] }
 0x1ed   : > { %7246 = vmatpush3.msk.msra.mxu1 %vm2225_vm13, %v2530_v5 }
 0x1ee   : > { %7247 = vmatprep.subr.mxu1 %v8821_v16 }
 0x1ef   : > { %v2042_v12 = vpop.f32.mrf.mxu0  ;;  %7248 = vmatpush3.msra.mxu1 %v2529_v11 }
 0x1f0   : > { %v2043_v53 = vadd.f32 %v9599_v49, %v2042_v12  ;;  %7250 = vmatmul.mubr.msk.f32.vlgmr.msra.gmra.mxu1 %vm2221_vm14, %v9612_v37  ;;  %7252 = vmatprep.subr.mxu1 %v8821_v16 }
 0x1f1   : > { %v7195_v13 = vpop.f32.mrf.mxu0  ;;  %7256 = vmatprep.mubr.msk.f32.mxu1 %vm11163_vm1, %v8821_v16 }
 0x1f2   : > { %vm2106_vm12 = vcmp.ge.f32.partialorder %v2043_v53, 0.0  ;;  %v2135_v54 = vmul.f32 0.01, %v2043_v53 }
 0x1f3   : > { %v2045_v14 = vpop.f32.mrf.mxu0 }
 0x1f4   : > { %v2164_v15 = vsel %vm2106_vm12, %v2043_v53, %v2135_v54  ;;  %v2046_v17 = vadd.f32 %v9599_v49, %v2045_v14  ;;  %v8307_v54 = vld [vmem:[%s11178_s21 + $0x20] sm:$0xff]   ;;  %v8308_v14 = vld [vmem:[%s11178_s21 + $0x18] sm:$0xff]  }
 0x1f5   : > { %2193 = vst.msk [vmem:[#allocation6 + $0x90] sm:$0xff] %vm1694_vm0, %v2164_v15  ;;  %v7196_v19 = vpop.f32.mrf.mxu0  ;;  %v8309_v15 = vld [vmem:[%s11178_s21 + $0x10] sm:$0xff]  }
 0x1f6   : > { %vm2107_vm15 = vcmp.ge.f32.partialorder %v2046_v17, 0.0  ;;  %v2136_v20 = vmul.f32 0.01, %v2046_v17  ;;  %v8311_v19 = vld [vmem:[%s11178_s21] sm:$0xff]  }
 0x1f8   : > { %v2165_v23 = vsel %vm2107_vm15, %v2046_v17, %v2136_v20  ;;  %v8310_v17 = vld [vmem:[%s11178_s21 + $0x8] sm:$0xff]   ;;  %v8312_v20 = vld [vmem:[%s11178_s21 + $0x40] sm:$0xff]   ;;  %s11183_s21 = smov 24  }
 0x1f9   : > { %2194 = vst.msk [vmem:[#allocation6 + $0x98] sm:$0xff] %vm1694_vm0, %v2165_v23 }
 0x1ff   : > { %v2050_v24 = vpop.f32.mrf.mxu0 }
 0x200   : > { %v2051_v18 = vadd.f32 %v9599_v49, %v2050_v24  ;;  %v2605_v34 = vld [vmem:[#allocation6 + $0x96] sm:$0xff] }
 0x201   : > { %v7199_v28 = vpop.f32.mrf.mxu0 }
 0x202   : > { %vm2108_vm2 = vcmp.ge.f32.partialorder %v2051_v18, 0.0  ;;  %v2137_v29 = vmul.f32 0.01, %v2051_v18 }
 0x203   : > { %v2053_v30 = vpop.f32.mrf.mxu0 }
 0x204   : > { %v2166_v31 = vsel %vm2108_vm2, %v2051_v18, %v2137_v29  ;;  %vm2299_vm2 = vcmask 129024  }
 0x205   : > { %2195 = vst.msk [vmem:[#allocation6 + $0xa0] sm:$0xff] %vm1694_vm0, %v2166_v31  ;;  %v7200_v32 = vpop.f32.mrf.mxu0 }
 0x20c   : > { %v2606_v33 = vld [vmem:[#allocation6 + $0x9e] sm:$0x7f] }
 0x20d   : > { %7253 = vmatpush3.msk.msra.mxu1 %vm2225_vm13, %v2606_v33 }
 0x20e   : > { %7254 = vmatprep.subr.mxu1 %v8821_v16 }
 0x20f   : > { %v2058_v35 = vpop.f32.mrf.mxu0  ;;  %7255 = vmatpush3.msra.mxu1 %v2605_v34 }
 0x210   : > { %v2059_v38 = vadd.f32 %v9599_v49, %v2058_v35  ;;  %7257 = vmatmul.mubr.msk.f32.vlgmr.msra.gmra.mxu1 %vm2221_vm14, %v9612_v37  ;;  %7259 = vmatprep.subr.mxu1 %v8821_v16 }
 0x211   : > { %v7203_v48 = vpop.f32.mrf.mxu0  ;;  %7263 = vmatprep.mubr.msk.f32.mxu1 %vm11163_vm1, %v8821_v16 }
 0x212   : > { %vm2110_vm11 = vcmp.ge.f32.partialorder %v2059_v38, 0.0  ;;  %v2139_v25 = vmul.f32 0.01, %v2059_v38 }
 0x213   : > { %v2061_v8 = vpop.f32.mrf.mxu0 }
 0x214   : > { %v2168_v46 = vsel %vm2110_vm11, %v2059_v38, %v2139_v25  ;;  %v2062_v9 = vadd.f32 %v9599_v49, %v2061_v8  ;;  %vm3130_vm11 = vcmask 654336  }
 0x215   : > { %2197 = vst.msk [vmem:[#allocation6 + $0xb0] sm:$0xff] %vm1694_vm0, %v2168_v46  ;;  %v7204_v45 = vpop.f32.mrf.mxu0 }
 0x216   : > { %vm2111_vm12 = vcmp.ge.f32.partialorder %v2062_v9, 0.0  ;;  %v2140_v43 = vmul.f32 0.01, %v2062_v9 }
 0x218   : > { %v2169_v47 = vsel %vm2111_vm12, %v2062_v9, %v2140_v43  ;;  %vm3142_vm12 = vcmask 785408  }
 0x219   : > { %2198 = vst.msk [vmem:[#allocation6 + $0xb8] sm:$0xff] %vm1694_vm0, %v2169_v47 }
 0x21f   : > { %v2066_v44 = vpop.f32.mrf.mxu0 }
 0x220   : > { %v2067_v21 = vadd.f32 %v9599_v49, %v2066_v44  ;;  %v2681_v59 = vld [vmem:[#allocation6 + $0xb4] sm:$0xff] }
 0x221   : > { %v7207_v50 = vpop.f32.mrf.mxu0 }
 0x222   : > { %vm2112_vm15 = vcmp.ge.f32.partialorder %v2067_v21, 0.0  ;;  %v2141_v22 = vmul.f32 0.01, %v2067_v21 }
 0x223   : > { %v2069_v52 = vpop.f32.mrf.mxu0 }
 0x224   : > { %v2170_v51 = vsel %vm2112_vm15, %v2067_v21, %v2141_v22  ;;  %vm3154_vm15 = vcmask 916480  }
 0x225   : > { %2199 = vst.msk [vmem:[#allocation6 + $0xc0] sm:$0xff] %vm1694_vm0, %v2170_v51  ;;  %v7208_v36 = vpop.f32.mrf.mxu0 }
 0x22c   : > { %v2682_v57 = vld [vmem:[#allocation6 + $0xbc] sm:$0x7f] }
 0x22d   : > { %7260 = vmatpush3.msk.msra.mxu1 %vm2225_vm13, %v2682_v57  ;;  %vm3106_vm13 = vcmask 392192  }
 0x22e   : > { %7261 = vmatprep.subr.mxu1 %v8821_v16 }
 0x22f   : > { %7262 = vmatpush3.msra.mxu1 %v2681_v59 }
 0x230   : > { %7264 = vmatmul.mubr.msk.f32.vlgmr.msra.gmra.mxu1 %vm2221_vm14, %v9612_v37  ;;  %3275 = vmatprep.subr.bf16.mxu1 %v8833_v2  ;;  %vm3118_vm14 = vcmask 523264  }
 0x231   : > { %3276 = vmatpush1.bf16.msra.mxu1 %v8304_v0 }
 0x232   : > { %3277 = vmatprep.subr.bf16.mxu1 %v8833_v2 }
 0x234   : > { %v2295_v49 = vpop.f32.mrf.mxu1 }
 0x235   : > { %2300 = vst.msk [vmem:[#allocation4 + $0xa] sm:$0x7f] %vm2299_vm2, %v2295_v49  ;;  %3278 = vmatpush1.bf16.msra.mxu1 %v8305_v6  ;;  %v9781_v49 = vpop.permute.xlu0 %7905 }
 0x236   : > { %v7223_v61 = vpop.f32.mrf.mxu1  ;;  %3279 = vmatprep.subr.bf16.mxu1 %v8833_v2 }
 0x237   : > { %v9783_v61 = vpop.permute.xlu1 %7910 }
 0x239   : > { %3280 = vmatpush1.bf16.msra.mxu1 %v8306_v7 }
 0x23a   : > { %3281 = vmatprep.subr.bf16.mxu1 %v8833_v2 }
 0x23c   : > { %v2769_v63 = vld [vmem:[#allocation4 + $0x9] sm:$0xff] }
 0x23d   : > { %v2780_v1 = vld [vmem:[#allocation4 + $0xa] sm:$0xff]  ;;  %v7924_v56 = vpack.i.bf16 %v2769_v63, %v2768_v42  ;;  %3282 = vmatpush1.bf16.msra.mxu1 %v8307_v54 }
 0x23e   : > { %v7929_v55 = vpack.i.bf16 %v2780_v1, %v2779_v26  ;;  %v2792_v4 = vld [vmem:[#allocation4 + $0xb] sm:$0xff]  ;;  %3283 = vmatprep.subr.bf16.mxu1 %v8833_v2 }
 0x23f   : > { %7925 = vrot.lane.b32.xlu0 %v7924_v56, %s11150_s29  ;;  %s11186_s29 = smov 8  }
 0x240   : > { %7930 = vrot.lane.b32.xlu1 %v7929_v55, %s11148_s1  ;;  %s11181_s1 = smov 32   ;;  %v9793_v55 = vpop.permute.xlu0 %7915 }
 0x241   : > { %3284 = vmatpush1.bf16.msra.mxu1 %v8308_v14 }
 0x242   : > { %3285 = vmatprep.subr.bf16.mxu1 %v8833_v2 }
 0x245   : > { %3286 = vmatpush1.bf16.msra.mxu1 %v8309_v15 }
 0x246   : > { %3287 = vmatprep.subr.bf16.mxu1 %v8833_v2 }
 0x249   : > { %3288 = vmatpush1.bf16.msra.mxu1 %v8310_v17 }
 0x24a   : > { %3289 = vmatprep.subr.bf16.mxu1 %v8833_v2 }
 0x24d   : > { %3290 = vmatpush1.bf16.msra.mxu1 %v8311_v19 }
 0x24e   : > { %3305 = vmatprep.subr.bf16.mxu1 %v8833_v2 }
 0x251   : > { %3306 = vmatpush2.bf16.msra.mxu1 %v8312_v20 }
 0x252   : > { %3995 = vmatprep.subr.bf16.mxu1 %v8833_v2 }
 0x254   : > { %v2372_v37 = vpop.f32.mrf.mxu1 }
 0x255   : > { %2376 = vst.msk [vmem:[#allocation4 + $0x13] sm:$0x7f] %vm2299_vm2, %v2372_v37  ;;  %v9798_v37 = vpop.permute.xlu1 %7920 }
 0x256   : > { %v7230_v3 = vpop.f32.mrf.mxu1 }
 0x25c   : > { %v2770_v10 = vld [vmem:[#allocation4 + $0x11] sm:$0xff] }
 0x25d   : > { %v2781_v5 = vld [vmem:[#allocation4 + $0x12] sm:$0xff]  ;;  %v7934_v12 = vpack.i.bf16 %v2770_v10, %v2769_v63 }
 0x25e   : > { %v2793_v11 = vld [vmem:[#allocation4 + $0x13] sm:$0xff]  ;;  %v7939_v53 = vpack.i.bf16 %v2781_v5, %v2780_v1 }
 0x25f   : > { %7935 = vrot.lane.b32.xlu0 %v7934_v12, %s11156_s2  ;;  %v7944_v13 = vpack.i.bf16 %v2793_v11, %v2792_v4  ;;  %v2805_v18 = vld [vmem:[#allocation4 + $0x14] sm:$0xff]  ;;  %v2757_v4 = vld [vmem:[#allocation4] sm:$0xff] }
 0x260   : > { %7940 = vrot.lane.b32.xlu1 %v7939_v53, %s11154_s25  ;;  %s11179_s25 = smov 96  }
 0x263   : > { %7945 = vrot.lane.b32.xlu0 %v7944_v13, %s11161_s22 }
 0x274   : > { %v2448_v23 = vpop.f32.mrf.mxu1 }
 0x275   : > { %2452 = vst.msk [vmem:[#allocation4 + $0x1c] sm:$0x7f] %vm2299_vm2, %v2448_v23 }
 0x276   : > { %v7237_v24 = vpop.f32.mrf.mxu1 }
 0x27c   : > { %v2782_v28 = vld [vmem:[#allocation4 + $0x1a] sm:$0xff] }
 0x27d   : > { %v2794_v29 = vld [vmem:[#allocation4 + $0x1b] sm:$0xff]  ;;  %v7949_v31 = vpack.i.bf16 %v2782_v28, %v2781_v5  ;;  %v2758_v5 = vld [vmem:[#allocation4 + $0x8] sm:$0xff] }
 0x27e   : > { %v2771_v30 = vld [vmem:[#allocation4 + $0x19] sm:$0xff]  ;;  %v7954_v32 = vpack.i.bf16 %v2794_v29, %v2793_v11 }
 0x27f   : > { %v2806_v33 = vld [vmem:[#allocation4 + $0x1c] sm:$0xff]  ;;  %7950 = vrot.lane.b32.xlu1 %v7949_v31, %s11179_s25  ;;  %v7959_v35 = vpack.i.bf16 %v2771_v30, %v2770_v10 }
 0x280   : > { %v3167_v34 = vpack.c.bf16 %v2806_v33, %v2805_v18  ;;  %7955 = vrot.lane.b32.xlu0 %v7954_v32, %s11159_s28 }
 0x282   : > { %6869 = vmatprep.mubr.msk.bf16.mxu1 %vm1694_vm0, %v3167_v34 }
 0x283   : > { %7960 = vrot.lane.b32.xlu1 %v7959_v35, %s11180_s20 }
 0x284   : > { %7965 = vrot.lane.b32.xlu0 %v7949_v31, %s11181_s1 }
 0x294   : > { %v2524_v38 = vpop.f32.mrf.mxu1 }
 0x295   : > { %2528 = vst.msk [vmem:[#allocation4 + $0x25] sm:$0x7f] %vm2299_vm2, %v2524_v38 }
 0x296   : > { %v7244_v48 = vpop.f32.mrf.mxu1 }
 0x29c   : > { %v2772_v25 = vld [vmem:[#allocation4 + $0x21] sm:$0xff] }
 0x29d   : > { %v2783_v8 = vld [vmem:[#allocation4 + $0x22] sm:$0xff]  ;;  %v7969_v9 = vpack.i.bf16 %v2772_v25, %v2771_v30 }
 0x29e   : > { %v2795_v46 = vld [vmem:[#allocation4 + $0x23] sm:$0xff]  ;;  %v7974_v45 = vpack.i.bf16 %v2783_v8, %v2782_v28 }
 0x29f   : > { %7970 = vrot.lane.b32.xlu1 %v7969_v9, %s11156_s2  ;;  %v7979_v43 = vpack.i.bf16 %v2795_v46, %v2794_v29 }
 0x2a0   : > { %7975 = vrot.lane.b32.xlu0 %v7974_v45, %s11182_s26 }
 0x2a3   : > { %7980 = vrot.lane.b32.xlu1 %v7979_v43, %s11161_s22 }
 0x2b0   : > { %v2600_v47 = vpop.f32.mrf.mxu1 }
 0x2b1   : > { %2604 = vst.msk [vmem:[#allocation4 + $0x2e] sm:$0x7f] %vm2299_vm2, %v2600_v47  ;;  %v7926_v3 = vpop.permute.xlu0 %7925 }
 0x2b2   : > { %v7251_v44 = vpop.f32.mrf.mxu1  ;;  %v7927_v6 = vunpack.i.l.bf16 %v7926_v3  ;;  %v7928_v7 = vunpack.i.h.bf16 %v7926_v3  ;;  %v7931_v10 = vpop.permute.xlu1 %7930 }
 0x2b3   : > { %v7932_v11 = vunpack.i.l.bf16 %v7931_v10  ;;  %v7933_v53 = vunpack.i.h.bf16 %v7931_v10 }
 0x2b4   : > { %v3084_v12 = vsel %vm1694_vm0, %v2757_v4, %v7927_v6  ;;  %v3085_v54 = vsel %vm1694_vm0, %v2758_v5, %v7928_v7 }
 0x2b5   : > { %v3095_v15 = vsel %vm1814_vm9, %v3084_v12, %v7932_v11  ;;  %v3096_v20 = vsel %vm1814_vm9, %v3085_v54, %v7933_v53 }
 0x2b8   : > { %v2784_v21 = vld [vmem:[#allocation4 + $0x2a] sm:$0xff] }
 0x2b9   : > { %v2796_v50 = vld [vmem:[#allocation4 + $0x2b] sm:$0xff]  ;;  %v7984_v52 = vpack.i.bf16 %v2784_v21, %v2783_v8 }
 0x2ba   : > { %v2773_v22 = vld [vmem:[#allocation4 + $0x29] sm:$0xff]  ;;  %v7989_v51 = vpack.i.bf16 %v2796_v50, %v2795_v46 }
 0x2bb   : > { %7985 = vrot.lane.b32.xlu0 %v7984_v52, %s11179_s25  ;;  %v7994_v36 = vpack.i.bf16 %v2773_v22, %v2772_v25 }
 0x2bc   : > { %7990 = vrot.lane.b32.xlu1 %v7989_v51, %s11159_s28 }
 0x2bf   : > { %7995 = vrot.lane.b32.xlu0 %v7994_v36, %s11180_s20 }
 0x2c0   : > { %8000 = vrot.lane.b32.xlu1 %v7984_v52, %s11181_s1  ;;  %v2808_v52 = vld [vmem:[#allocation4 + $0x2c] sm:$0xff] }
 0x2d0   : > { %v2676_v57 = vpop.f32.mrf.mxu1 }
 0x2d1   : > { %2680 = vst.msk [vmem:[#allocation4 + $0x37] sm:$0x7f] %vm2299_vm2, %v2676_v57  ;;  %v7936_v13 = vpop.permute.xlu0 %7935 }
 0x2d2   : > { %v7258_v59 = vpop.f32.mrf.mxu1  ;;  %v7937_v14 = vunpack.i.l.bf16 %v7936_v13  ;;  %v7938_v17 = vunpack.i.h.bf16 %v7936_v13  ;;  %v7941_v19 = vpop.permute.xlu1 %7940 }
 0x2d3   : > { %v7942_v23 = vunpack.i.l.bf16 %v7941_v19  ;;  %v7943_v18 = vunpack.i.h.bf16 %v7941_v19  ;;  %v3393_v19 = vld [vmem:[%s11122_s8 + $0x28] sm:$0xff] }
 0x2d4   : > { %v3107_v24 = vsel %vm3106_vm13, %v3095_v15, %v7937_v14  ;;  %v3108_v29 = vsel %vm3106_vm13, %v3096_v20, %v7938_v17  ;;  %v3390_v17 = vld [vmem:[%s11122_s8 + $0x10] sm:$0xff]  ;;  %v2759_v20 = vld [vmem:[#allocation4 + $0x10] sm:$0xff] }
 0x2d5   : > { %v7946_v28 = vpop.permute.xlu0 %7945  ;;  %v3119_v31 = vsel %vm3118_vm14, %v3107_v24, %v7942_v23  ;;  %v3120_v33 = vsel %vm3118_vm14, %v3108_v29, %v7943_v18  ;;  %v2760_v23 = vld [vmem:[#allocation4 + $0x18] sm:$0xff] }
 0x2d6   : > { %v7947_v30 = vunpack.i.l.bf16 %v7946_v28  ;;  %v7948_v32 = vunpack.i.h.bf16 %v7946_v28 }
 0x2d8   : > { %v9785_v42 = vld [vmem:[#allocation4 + $0x31] sm:$0xff]  ;;  %v3131_v35 = vsel %vm3130_vm11, %v3119_v31, %v7947_v30  ;;  %v3132_v43 = vsel %vm3130_vm11, %v3120_v33, %v7948_v32 }
 0x2d9   : > { %v9787_v26 = vld [vmem:[#allocation4 + $0x32] sm:$0xff]  ;;  %v8004_v1 = vpack.i.bf16 %v9785_v42, %v2773_v22  ;;  %v2807_v22 = vld [vmem:[#allocation4 + $0x24] sm:$0xff] }
 0x2da   : > { %v9789_v63 = vld [vmem:[#allocation4 + $0x33] sm:$0xff]  ;;  %v8009_v56 = vpack.i.bf16 %v9787_v26, %v2784_v21  ;;  %v3169_v36 = vpack.c.bf16 %v2808_v52, %v2807_v22 }
 0x2db   : > { %8005 = vrot.lane.b32.xlu0 %v8004_v1, %s11156_s2  ;;  %v8014_v0 = vpack.i.bf16 %v9789_v63, %v2796_v50 }
 0x2dc   : > { %8010 = vrot.lane.b32.xlu1 %v8009_v56, %s11182_s26 }
 0x2df   : > { %8015 = vrot.lane.b32.xlu0 %v8014_v0, %s11161_s22 }
 0x2f0   : > { %v2752_v34 = vpop.f32.mrf.mxu1 }
 0x2f1   : > { %2756 = vst.msk [vmem:[#allocation4 + $0x40] sm:$0x7f] %vm2299_vm2, %v2752_v34  ;;  %v7951_v38 = vpop.permute.xlu1 %7950  ;;  %v3392_v34 = vld [vmem:[%s11122_s8 + $0x20] sm:$0xff]  ;;  %vm3466_vm2 = vcmask 123904  }
 0x2f2   : > { %v7956_v48 = vpop.permute.xlu0 %7955  ;;  %v7953_v25 = vunpack.i.h.bf16 %v7951_v38  ;;  %v7952_v8 = vunpack.i.l.bf16 %v7951_v38  ;;  %v7265_v45 = vpop.f32.mrf.mxu1  ;;  %3467 = vst.msk [vmem:[#allocation5 + $0x8] sm:$0x3] %vm3466_vm2, %v8821_v16  ;;  %4208 = vst.msk [vmem:[#allocation2 + $0x8] sm:$0x3] %vm3466_vm2, %v8821_v16 }
 0x2f3   : > { %v7958_v46 = vunpack.i.h.bf16 %v7956_v48  ;;  %v7957_v9 = vunpack.i.l.bf16 %v7956_v48 }
 0x2f4   : > { %v3144_v47 = vsel %vm3142_vm12, %v3132_v43, %v7953_v25  ;;  %v3143_v44 = vsel %vm3142_vm12, %v3131_v35, %v7952_v8  ;;  %v3395_v35 = vld [vmem:[%s11122_s8 + $0x38] sm:$0xff] }
 0x2f5   : > { %v3155_v21 = vsel %vm3154_vm15, %v3143_v44, %v7957_v9  ;;  %v3156_v50 = vsel %vm3154_vm15, %v3144_v47, %v7958_v46  ;;  %v3394_v47 = vld [vmem:[%s11122_s8 + $0x30] sm:$0xff]  ;;  %v3397_v44 = vld [vmem:[%s11122_s8 + $0x48] sm:$0xff] }
 0x2f6   : > { %v3166_v51 = vpack.c.bf16 %v3156_v50, %v3155_v21  ;;  %v7966_v14 = vpop.permute.xlu0 %7965  ;;  %v750_v21 = vld [vmem:[%s8962_s23 + $0xee] sm:$0xff]  ;;  %v751_v50 = vld [vmem:[%s8962_s23 + $0xf6] sm:$0xff] }
 0x2f7   : > { %v7968_v24 = vunpack.i.h.bf16 %v7966_v14  ;;  %v7967_v18 = vunpack.i.l.bf16 %v7966_v14  ;;  %v755_v14 = vld [vmem:[%s8962_s23 + $0xf8] sm:$0xff] }
 0x2f8   : > { %v2798_v57 = vld [vmem:[#allocation4 + $0x3b] sm:$0xff]  ;;  %3308 = vmatmul.mubr.bf16.vlgmr.msra.gmra.mxu1 %v3166_v51 }
 0x2f9   : > { %v2786_v59 = vld [vmem:[#allocation4 + $0x3a] sm:$0xff]  ;;  %v8024_v1 = vpack.i.bf16 %v2798_v57, %v9789_v63  ;;  %6870 = vmatprep.mubr.msk.bf16.mxu1 %vm1694_vm0, %v3169_v36  ;;  %v2787_v6 = vld [vmem:[#allocation4 + $0x42] sm:$0xff] }
 0x2fa   : > { %v8019_v56 = vpack.i.bf16 %v2786_v59, %v9787_v26  ;;  %v2775_v0 = vld [vmem:[#allocation4 + $0x39] sm:$0xff]  ;;  %v2776_v4 = vld [vmem:[#allocation4 + $0x41] sm:$0xff]  ;;  %v8044_v7 = vpack.i.bf16 %v2787_v6, %v2786_v59  ;;  %v8054_v26 = vpack.i.bf16 %v9661_v60, %v2787_v6  ;;  %v8106_v6 = vpack.i.bf16 %v751_v50, %v750_v21 }
 0x2fb   : > { %8025 = vrot.lane.b32.xlu0 %v8024_v1, %s11159_s28  ;;  %v8029_v3 = vpack.i.bf16 %v2775_v0, %v9785_v42  ;;  %v8039_v10 = vpack.i.bf16 %v2776_v4, %v2775_v0  ;;  %v2799_v63 = vld [vmem:[#allocation4 + $0x43] sm:$0xff]  ;;  %v2802_v42 = vld [vmem:[#allocation4 + $0x5b] sm:$0xff]  ;;  %v8064_v11 = vpack.i.bf16 %v9647_v39, %v2776_v4 }
 0x2fc   : > { %8020 = vrot.lane.b32.xlu1 %v8019_v56, %s11179_s25  ;;  %v8049_v5 = vpack.i.bf16 %v2799_v63, %v2798_v57  ;;  %v8059_v12 = vpack.i.bf16 %v9671_v58, %v2799_v63  ;;  %v8069_v53 = vpack.i.bf16 %v2802_v42, %v9673_v62  ;;  %v2790_v60 = vld [vmem:[#allocation4 + $0x59] sm:$0xff]  ;;  %v2803_v39 = vld [vmem:[#allocation4 + $0x62] sm:$0xff] }
 0x2fd   : > { %v2804_v58 = vld [vmem:[#allocation4 + $0x63] sm:$0xff]  ;;  %v3388_v62 = vld [vmem:[%s11122_s8] sm:$0xff] }
 0x2fe   : > { %v719_v63 = vld [vmem:[%s8962_s23 + $0xef] sm:$0xff] }
 0x2ff   : > { %8035 = vrot.lane.b32.xlu0 %v8019_v56, %s11181_s1 }
 0x300   : > { %8030 = vrot.lane.b32.xlu1 %v8029_v3, %s11180_s20 }
 0x303   : > { %8045 = vrot.lane.b32.xlu0 %v8044_v7, %s11182_s26 }
 0x304   : > { %8040 = vrot.lane.b32.xlu1 %v8039_v10, %s11156_s2  ;;  %v3396_v10 = vld [vmem:[%s11122_s8 + $0x40] sm:$0xff] }
 0x307   : > { %8055 = vrot.lane.b32.xlu0 %v8054_v26, %s11179_s25 }
 0x308   : > { %8050 = vrot.lane.b32.xlu1 %v8049_v5, %s11161_s22 }
 0x30b   : > { %8065 = vrot.lane.b32.xlu0 %v8064_v11, %s11180_s20  ;;  %v2810_v11 = vld [vmem:[#allocation4 + $0x3c] sm:$0xff] }
 0x30c   : > { %8060 = vrot.lane.b32.xlu1 %v8059_v12, %s11159_s28 }
 0x30f   : > { %8070 = vrot.lane.b32.xlu0 %v8069_v53, %s11159_s28  ;;  %v2809_v53 = vld [vmem:[#allocation4 + $0x34] sm:$0xff] }
 0x310   : > { %8075 = vrot.lane.b32.xlu1 %v8054_v26, %s11181_s1  ;;  %v753_v26 = vld [vmem:[%s8962_s23 + $0xf7] sm:$0xff] }
 0x312   : > { %v7976_v32 = vpop.permute.xlu0 %7975 }
 0x313   : > { %2891 = vrot.lane.b32.xlu0 %v9663_v41, %s11181_s1  ;;  %v3389_v41 = vld [vmem:[%s11122_s8 + $0x8] sm:$0xff]  ;;  %v7978_v25 = vunpack.i.h.bf16 %v7976_v32  ;;  %v7977_v8 = vunpack.i.l.bf16 %v7976_v32 }
 0x314   : > { %2847 = vrot.lane.b32.xlu1 %v9649_v40, %s11180_s20  ;;  %v7961_v40 = vpop.permute.xlu1 %7960 }
 0x315   : > { %v7963_v13 = vunpack.i.h.bf16 %v7961_v40  ;;  %v7962_v54 = vunpack.i.l.bf16 %v7961_v40  ;;  %v8327_v40 = vld [vmem:[%s8962_s23 + $0xd9] sm:$0xff] }
 0x317   : > { %2959 = vrot.lane.b32.xlu0 %v9679_v27, %s11182_s26  ;;  %v3391_v27 = vld [vmem:[%s11122_s8 + $0x18] sm:$0xff]  ;;  %v3086_v28 = vsel %vm1694_vm0, %v2759_v20, %v7962_v54  ;;  %v3087_v29 = vsel %vm1694_vm0, %v2760_v23, %v7963_v13  ;;  %v661_v20 = vld [vmem:[%s8962_s23 + $0xe1] sm:$0xff] }
 0x318   : > { %2925 = vrot.lane.b32.xlu1 %v2790_v60, %s11156_s2  ;;  %v7971_v15 = vpop.permute.xlu1 %7970  ;;  %v3097_v38 = vsel %vm1814_vm9, %v3086_v28, %v7967_v18  ;;  %v3098_v48 = vsel %vm1814_vm9, %v3087_v29, %v7968_v24  ;;  %v8111_v60 = vpack.i.bf16 %v753_v26, %v719_v63  ;;  %v689_v13 = vld [vmem:[%s8962_s23 + $0xda] sm:$0xff]  ;;  %v8331_v24 = vld [vmem:[%s8962_s23 + $0xe8] sm:$0xff] }
 0x319   : > { %v7973_v30 = vunpack.i.h.bf16 %v7971_v15  ;;  %v7972_v31 = vunpack.i.l.bf16 %v7971_v15  ;;  %v8328_v15 = vld [vmem:[%s8962_s23 + $0xdf] sm:$0xff]  ;;  %v722_v28 = vld [vmem:[%s8962_s23 + $0xe9] sm:$0xff] }
 0x31a   : > { %v9914_v23 = vld [vmem:[%s8962_s23 + $0xe0] sm:$0xff] }
 0x31b   : > { %3037 = vrot.lane.b32.xlu0 %v2803_v39, %s11179_s25  ;;  %v3110_v46 = vsel %vm3106_vm13, %v3098_v48, %v7973_v30  ;;  %v3109_v9 = vsel %vm3106_vm13, %v3097_v38, %v7972_v31  ;;  %v3171_v39 = vpack.c.bf16 %v2810_v11, %v2809_v53  ;;  %v8096_v18 = vpack.i.bf16 %v8331_v24, %v9914_v23  ;;  %v690_v29 = vld [vmem:[%s8962_s23 + $0xe2] sm:$0xff]  ;;  %v3528_v31 = vld [vmem:[#allocation5 + $0x62] sm:$0xff] }
 0x31c   : > { %3003 = vrot.lane.b32.xlu1 %v2802_v42, %s11161_s22  ;;  %v7981_v33 = vpop.permute.xlu1 %7980  ;;  %v3121_v22 = vsel %vm3118_vm14, %v3109_v9, %v7977_v8  ;;  %v3122_v52 = vsel %vm3118_vm14, %v3110_v46, %v7978_v25  ;;  %v8101_v30 = vpack.i.bf16 %v722_v28, %v661_v20  ;;  %v2761_v48 = vld [vmem:[#allocation4 + $0x20] sm:$0xff]  ;;  %v2762_v25 = vld [vmem:[#allocation4 + $0x28] sm:$0xff]  ;;  %s11189_s22 = smov 48  }
 0x31d   : > { %v7983_v45 = vunpack.i.h.bf16 %v7981_v33  ;;  %v7982_v43 = vunpack.i.l.bf16 %v7981_v33 }
 0x31f   : > { %3401 = vperm.xlu0 %8079, %v3388_v62   ;;  %v3133_v0 = vsel %vm3130_vm11, %v3121_v22, %v7982_v43  ;;  %v3134_v3 = vsel %vm3130_vm11, %v3122_v52, %v7983_v45  ;;  %v8326_v62 = vld [vmem:[%s8962_s23 + $0xd1] sm:$0xff] }
 0x320   : > { %3071 = vrot.lane.b32.xlu1 %v2804_v58, %s11159_s28  ;;  %v3398_v58 = vld [vmem:[%s11122_s8 + $0x50] sm:$0xff]  ;;  %s11184_s28 = smov 28  }
 0x323   : > { %3416 = vperm.xlu0 %8079, %v3391_v27   ;;  %v688_v27 = vld [vmem:[%s8962_s23 + $0xd2] sm:$0xff] }
 0x324   : > { %3406 = vperm.xlu1 %8080, %v3389_v41   ;;  %v8081_v41 = vpack.i.bf16 %v8327_v40, %v8326_v62  ;;  %v8086_v54 = vpack.i.bf16 %v689_v13, %v688_v27  ;;  %v2812_v62 = vld [vmem:[#allocation4 + $0x4c] sm:$0xff] }
 0x327   : > { %3426 = vperm.xlu0 %8079, %v3393_v19  }
 0x328   : > { %3411 = vperm.xlu1 %8080, %v3390_v17   ;;  %v8329_v17 = vld [vmem:[%s8962_s23 + $0xe7] sm:$0xff] }
 0x329   : > { %v8091_v19 = vpack.i.bf16 %v8329_v17, %v8328_v15 }
 0x32b   : > { %3436 = vperm.xlu0 %8079, %v3395_v35  }
 0x32c   : > { %3421 = vperm.xlu1 %8080, %v3392_v34  }
 0x32d   : > { %v7986_v51 = vpop.permute.xlu0 %7985 }
 0x32e   : > { %v7991_v36 = vpop.permute.xlu1 %7990  ;;  %v7988_v57 = vunpack.i.h.bf16 %v7986_v51  ;;  %v7987_v59 = vunpack.i.l.bf16 %v7986_v51 }
 0x32f   : > { %v7993_v1 = vunpack.i.h.bf16 %v7991_v36  ;;  %v7992_v56 = vunpack.i.l.bf16 %v7991_v36  ;;  %3446 = vperm.xlu0 %8079, %v3397_v44  }
 0x330   : > { %3431 = vperm.xlu1 %8080, %v3394_v47   ;;  %v3145_v4 = vsel %vm3142_vm12, %v3133_v0, %v7987_v59  ;;  %v3146_v7 = vsel %vm3142_vm12, %v3134_v3, %v7988_v57 }
 0x331   : > { %v3157_v5 = vsel %vm3154_vm15, %v3145_v4, %v7992_v56  ;;  %v3158_v42 = vsel %vm3154_vm15, %v3146_v7, %v7993_v1  ;;  %v7996_v32 = vpop.permute.xlu0 %7995 }
 0x332   : > { %v3168_v12 = vpack.c.bf16 %v3158_v42, %v3157_v5  ;;  %v7998_v33 = vunpack.i.h.bf16 %v7996_v32  ;;  %v7997_v34 = vunpack.i.l.bf16 %v7996_v32  ;;  %v8001_v35 = vpop.permute.xlu1 %8000 }
 0x333   : > { %8107 = vrot.lane.b32.xlu0 %v8106_v6, %s11183_s21  ;;  %v8003_v8 = vunpack.i.h.bf16 %v8001_v35  ;;  %v8002_v46 = vunpack.i.l.bf16 %v8001_v35 }
 0x334   : > { %3441 = vperm.xlu1 %8080, %v3396_v10   ;;  %3316 = vmatmul.mubr.bf16.gmra.mxu1 %v3168_v12  ;;  %v3088_v9 = vsel %vm1694_vm0, %v2761_v48, %v7997_v34  ;;  %v3089_v45 = vsel %vm1694_vm0, %v2762_v25, %v7998_v33 }
 0x335   : > { %6871 = vmatprep.mubr.msk.bf16.mxu1 %vm1694_vm0, %v3171_v39  ;;  %v3099_v50 = vsel %vm1814_vm9, %v3088_v9, %v8002_v46  ;;  %v3100_v22 = vsel %vm1814_vm9, %v3089_v45, %v8003_v8 }
 0x337   : > { %8112 = vrot.lane.b32.xlu0 %v8111_v60, %s11184_s28 }
 0x338   : > { %3451 = vperm.xlu1 %8080, %v3398_v58   ;;  %v2811_v58 = vld [vmem:[#allocation4 + $0x44] sm:$0xff] }
 0x33b   : > { %1571 = vrot.lane.b32.xlu0 %v755_v14, %s11181_s1  ;;  %v2764_v14 = vld [vmem:[#allocation4 + $0x38] sm:$0xff] }
 0x33c   : > { %8082 = vrot.lane.b32.xlu1 %v8081_v41, %s11185_s27 }
 0x33f   : > { %842 = vrot.lane.b32.xlu0 %v661_v20, %s11185_s27  ;;  %v3173_v20 = vpack.c.bf16 %v2812_v62, %v2811_v58 }
 0x340   : > { %8087 = vrot.lane.b32.xlu1 %v8086_v54, %s11186_s29  ;;  %v2763_v54 = vld [vmem:[#allocation4 + $0x30] sm:$0xff] }
 0x343   : > { %958 = vrot.lane.b32.xlu0 %v690_v29, %s11186_s29 }
 0x344   : > { %8092 = vrot.lane.b32.xlu1 %v8091_v19, %s11187_s7 }
 0x347   : > { %1074 = vrot.lane.b32.xlu0 %v719_v63, %s11187_s7 }
 0x348   : > { %8097 = vrot.lane.b32.xlu1 %v8096_v18, %s11180_s20 }
 0x34c   : > { %8102 = vrot.lane.b32.xlu1 %v8101_v30, %s11175_s30 }
 0x34d   : > { %v8006_v38 = vpop.permute.xlu0 %8005 }
 0x34e   : > { %v8008_v43 = vunpack.i.h.bf16 %v8006_v38  ;;  %v8007_v47 = vunpack.i.l.bf16 %v8006_v38  ;;  %v8011_v44 = vpop.permute.xlu1 %8010 }
 0x34f   : > { %v8013_v52 = vunpack.i.h.bf16 %v8011_v44  ;;  %v8012_v51 = vunpack.i.l.bf16 %v8011_v44 }
 0x350   : > { %3762 = vrot.lane.b32.xlu1 %v3528_v31, %s11179_s25  ;;  %v3112_v36 = vsel %vm3106_vm13, %v3100_v22, %v8008_v43  ;;  %v3111_v57 = vsel %vm3106_vm13, %v3099_v50, %v8007_v47  ;;  %v2813_v22 = vld [vmem:[#allocation4 + $0x54] sm:$0xff] }
 0x351   : > { %v8016_v21 = vpop.permute.xlu0 %8015  ;;  %v3123_v56 = vsel %vm3118_vm14, %v3111_v57, %v8012_v51  ;;  %v3124_v0 = vsel %vm3118_vm14, %v3112_v36, %v8013_v52  ;;  %v2814_v52 = vld [vmem:[#allocation4 + $0x5c] sm:$0xff] }
 0x352   : > { %v8018_v59 = vunpack.i.h.bf16 %v8016_v21  ;;  %v8017_v1 = vunpack.i.l.bf16 %v8016_v21 }
 0x354   : > { %v3135_v26 = vsel %vm3130_vm11, %v3123_v56, %v8017_v1  ;;  %v3136_v5 = vsel %vm3130_vm11, %v3124_v0, %v8018_v59  ;;  %v2766_v0 = vld [vmem:[#allocation4 + $0x48] sm:$0xff] }
 0x36d   : > { %v8026_v3 = vpop.permute.xlu0 %8025 }
 0x36e   : > { %v8021_v6 = vpop.permute.xlu1 %8020  ;;  %v8028_v4 = vunpack.i.h.bf16 %v8026_v3  ;;  %v8027_v7 = vunpack.i.l.bf16 %v8026_v3 }
 0x36f   : > { %v8023_v10 = vunpack.i.h.bf16 %v8021_v6  ;;  %v8022_v63 = vunpack.i.l.bf16 %v8021_v6 }
 0x371   : > { %v3147_v42 = vsel %vm3142_vm12, %v3135_v26, %v8022_v63  ;;  %v3148_v11 = vsel %vm3142_vm12, %v3136_v5, %v8023_v10  ;;  %v8036_v12 = vpop.permute.xlu0 %8035  ;;  %v7907_v5 = vunpack.i.l.bf16 %v9781_v49 }
 0x372   : > { %v8031_v53 = vpop.permute.xlu1 %8030  ;;  %v3159_v60 = vsel %vm3154_vm15, %v3147_v42, %v8027_v7  ;;  %v3160_v39 = vsel %vm3154_vm15, %v3148_v11, %v8028_v4  ;;  %v8038_v27 = vunpack.i.h.bf16 %v8036_v12  ;;  %v8037_v13 = vunpack.i.l.bf16 %v8036_v12  ;;  %v2765_v11 = vld [vmem:[#allocation4 + $0x40] sm:$0xff] }
 0x373   : > { %v8033_v40 = vunpack.i.h.bf16 %v8031_v53  ;;  %v8032_v41 = vunpack.i.l.bf16 %v8031_v53  ;;  %v3170_v15 = vpack.c.bf16 %v3160_v39, %v3159_v60  ;;  %v3175_v4 = vpack.c.bf16 %v2814_v52, %v2813_v22 }
 0x374   : > { %v7908_v7 = vunpack.i.h.bf16 %v9781_v49  ;;  %v7913_v42 = vunpack.i.h.bf16 %v9783_v61  ;;  %v7912_v60 = vunpack.i.l.bf16 %v9783_v61  ;;  %v7918_v39 = vunpack.i.h.bf16 %v9793_v55 }
 0x375   : > { %v3091_v17 = vsel %vm1694_vm0, %v2764_v14, %v8033_v40  ;;  %v3090_v19 = vsel %vm1694_vm0, %v2763_v54, %v8032_v41  ;;  %3324 = vmatmul.mubr.bf16.gmra.mxu1 %v3170_v15  ;;  %v8046_v24 = vpop.permute.xlu0 %8045  ;;  %v2767_v40 = vld [vmem:[#allocation4 + $0x50] sm:$0xff]  ;;  %v7917_v41 = vunpack.i.l.bf16 %v9793_v55 }
 0x376   : > { %v8041_v18 = vpop.permute.xlu1 %8040  ;;  %6872 = vmatprep.mubr.msk.bf16.mxu1 %vm1694_vm0, %v3173_v20  ;;  %v8048_v30 = vunpack.i.h.bf16 %v8046_v24  ;;  %v8047_v31 = vunpack.i.l.bf16 %v8046_v24  ;;  %v3101_v32 = vsel %vm1814_vm9, %v3090_v19, %v8037_v13  ;;  %v3102_v33 = vsel %vm1814_vm9, %v3091_v17, %v8038_v27 }
 0x377   : > { %v8043_v28 = vunpack.i.h.bf16 %v8041_v18  ;;  %v8042_v29 = vunpack.i.l.bf16 %v8041_v18  ;;  %v7923_v27 = vunpack.i.h.bf16 %v9798_v37  ;;  %v7922_v20 = vunpack.i.l.bf16 %v9798_v37 }
 0x379   : > { %v3113_v34 = vsel %vm3106_vm13, %v3101_v32, %v8042_v29  ;;  %v3114_v35 = vsel %vm3106_vm13, %v3102_v33, %v8043_v28  ;;  %v8056_v38 = vpop.permute.xlu0 %8055  ;;  %v2815_v28 = vld [vmem:[#allocation4 + $0x64] sm:$0xff] }
 0x37a   : > { %v8051_v48 = vpop.permute.xlu1 %8050  ;;  %v8058_v46 = vunpack.i.h.bf16 %v8056_v38  ;;  %v8057_v9 = vunpack.i.l.bf16 %v8056_v38  ;;  %v3125_v45 = vsel %vm3118_vm14, %v3113_v34, %v8047_v31  ;;  %v3126_v43 = vsel %vm3118_vm14, %v3114_v35, %v8048_v30 }
 0x37b   : > { %v8053_v25 = vunpack.i.h.bf16 %v8051_v48  ;;  %v8052_v8 = vunpack.i.l.bf16 %v8051_v48  ;;  %v3177_v48 = vpack.c.bf16 %v2815_v28, %v2815_v28 }
 0x37d   : > { %v3137_v47 = vsel %vm3130_vm11, %v3125_v45, %v8052_v8  ;;  %v3138_v44 = vsel %vm3130_vm11, %v3126_v43, %v8053_v25  ;;  %v8066_v21 = vpop.permute.xlu0 %8065 }
 0x37e   : > { %v8061_v50 = vpop.permute.xlu1 %8060  ;;  %v8068_v57 = vunpack.i.h.bf16 %v8066_v21  ;;  %v8067_v59 = vunpack.i.l.bf16 %v8066_v21  ;;  %v3149_v1 = vsel %vm3142_vm12, %v3137_v47, %v8057_v9  ;;  %v3150_v56 = vsel %vm3142_vm12, %v3138_v44, %v8058_v46 }
 0x37f   : > { %v8063_v51 = vunpack.i.h.bf16 %v8061_v50  ;;  %v8062_v36 = vunpack.i.l.bf16 %v8061_v50 }
 0x380   : > { %v3093_v58 = vsel %vm1694_vm0, %v2766_v0, %v8068_v57  ;;  %v3092_v62 = vsel %vm1694_vm0, %v2765_v11, %v8067_v59 }
 0x381   : > { %v3161_v3 = vsel %vm3154_vm15, %v3149_v1, %v8062_v36  ;;  %v3162_v6 = vsel %vm3154_vm15, %v3150_v56, %v8063_v51  ;;  %v8071_v26 = vpop.permute.xlu0 %8070 }
 0x382   : > { %v8076_v10 = vpop.permute.xlu1 %8075  ;;  %v3172_v63 = vpack.c.bf16 %v3162_v6, %v3161_v3  ;;  %v8073_v14 = vunpack.i.h.bf16 %v8071_v26  ;;  %v8072_v15 = vunpack.i.l.bf16 %v8071_v26  ;;  %v10014_v26 = vld [vmem:[%s11188_s4] ss:$0 sm:$0xff] }
 0x383   : > { %v8078_v12 = vunpack.i.h.bf16 %v8076_v10  ;;  %v8077_v53 = vunpack.i.l.bf16 %v8076_v10 }
 0x384   : > { %3332 = vmatmul.mubr.bf16.gmra.mxu1 %v3172_v63 }
 0x385   : > { %v3104_v49 = vsel %vm1814_vm9, %v3093_v58, %v8078_v12  ;;  %v3103_v13 = vsel %vm1814_vm9, %v3092_v62, %v8077_v53  ;;  %6873 = vmatprep.mubr.msk.bf16.mxu1 %vm1694_vm0, %v3175_v4  ;;  %v2892_v19 = vpop.permute.xlu0 %2891  ;;  %v8332_v53 = vld [vmem:[%s8962_s23 + $0xd8] sm:$0xff] }
 0x386   : > { %v3116_v61 = vsel %vm3106_vm13, %v3104_v49, %v7908_v7  ;;  %v3115_v54 = vsel %vm3106_vm13, %v3103_v13, %v7907_v5  ;;  %v2848_v17 = vpop.permute.xlu1 %2847 }
 0x387   : > { %v3128_v55 = vsel %vm3118_vm14, %v3116_v61, %v7913_v42  ;;  %v3127_v24 = vsel %vm3118_vm14, %v3115_v54, %v7912_v60  ;;  %v3094_v18 = vsel %vm1694_vm0, %v2767_v40, %v2848_v17 }
 0x388   : > { %v3105_v29 = vsel %vm1814_vm9, %v3094_v18, %v2892_v19  ;;  %v3139_v30 = vsel %vm3130_vm11, %v3127_v24, %v7917_v41  ;;  %v3140_v31 = vsel %vm3130_vm11, %v3128_v55, %v7918_v39  ;;  %v8333_v39 = vld [vmem:[%s8962_s23 + $0xd0] sm:$0xff] }
 0x389   : > { %v3151_v32 = vsel %vm3142_vm12, %v3139_v30, %v7922_v20  ;;  %v3152_v33 = vsel %vm3142_vm12, %v3140_v31, %v7923_v27  ;;  %v2960_v35 = vpop.permute.xlu0 %2959 }
 0x38a   : > { %v2926_v34 = vpop.permute.xlu1 %2925  ;;  %v3163_v37 = vsel %vm3154_vm15, %v3151_v32, %v8072_v15  ;;  %v3164_v38 = vsel %vm3154_vm15, %v3152_v33, %v8073_v14 }
 0x38b   : > { %v3117_v25 = vsel %vm3106_vm13, %v3105_v29, %v2926_v34  ;;  %v3174_v8 = vpack.c.bf16 %v3164_v38, %v3163_v37 }
 0x38c   : > { %v3129_v46 = vsel %vm3118_vm14, %v3117_v25, %v2960_v35 }
 0x38d   : > { %3340 = vmatmul.mubr.bf16.gmra.mxu1 %v3174_v8  ;;  %v3038_v45 = vpop.permute.xlu0 %3037  ;;  %v3504_v8 = vld [vmem:[#allocation5 + $0x2] sm:$0xff] }
 0x38e   : > { %v3004_v9 = vpop.permute.xlu1 %3003  ;;  %6874 = vmatprep.mubr.msk.bf16.mxu1 %vm1694_vm0, %v3177_v48 }
 0x38f   : > { %v3141_v43 = vsel %vm3130_vm11, %v3129_v46, %v3004_v9  ;;  %v3493_v46 = vld [vmem:[#allocation5 + $0x1] sm:$0xff] }
 0x390   : > { %v3153_v47 = vsel %vm3142_vm12, %v3141_v43, %v3038_v45 }
 0x392   : > { %v3072_v44 = vpop.permute.xlu1 %3071 }
 0x393   : > { %v3165_v21 = vsel %vm3154_vm15, %v3153_v47, %v3072_v44 }
 0x394   : > { %v3176_v50 = vpack.c.bf16 %v3165_v21, %v3165_v21 }
 0x396   : > { %3348 = vmatmul.mubr.bf16.gmra.mxu1 %v3176_v50 }
 0x39a   : > { %v3402_v22 = vpop.permute.xlu0 %3401 }
 0x39e   : > { %v9987_v51 = vpop.permute.xlu0 %3416 }
 0x39f   : > { %v3407_v52 = vpop.permute.xlu1 %3406 }
 0x3a2   : > { %v9991_v57 = vpop.permute.xlu0 %3426 }
 0x3a3   : > { %v9989_v36 = vpop.permute.xlu1 %3411 }
 0x3a6   : > { %v9995_v1 = vpop.permute.xlu0 %3436 }
 0x3a7   : > { %v9993_v59 = vpop.permute.xlu1 %3421 }
 0x3aa   : > { %v9999_v0 = vpop.permute.xlu0 %3446 }
 0x3ab   : > { %v9997_v56 = vpop.permute.xlu1 %3431 }
 0x3ae   : > { %v10003_v6 = vpop.permute.xlu0 %8107 }
 0x3af   : > { %v10001_v3 = vpop.permute.xlu1 %3441  ;;  %v8110_v9 = vunpack.i.h.bf16 %v10003_v6  ;;  %v8109_v45 = vunpack.i.l.bf16 %v10003_v6 }
 0x3b2   : > { %v10007_v7 = vpop.permute.xlu0 %8112 }
 0x3b3   : > { %v10005_v4 = vpop.permute.xlu1 %3451 }
 0x3b6   : > { %v10009_v63 = vpop.permute.xlu0 %1571 }
 0x3b7   : > { %v8083_v10 = vpop.permute.xlu1 %8082 }
 0x3b8   : > { %v8085_v5 = vunpack.i.h.bf16 %v8083_v10  ;;  %v8084_v42 = vunpack.i.l.bf16 %v8083_v10  ;;  %v3309_v11 = vpop.f32.mrf.mxu1 }
 0x3b9   : > { %v3310_v12 = vadd.f32 %v10014_v26, %v3309_v11 }
 0x3ba   : > { %v1632_v60 = vsel %vm1604_vm3, %v8332_v53, %v8085_v5  ;;  %v1631_v58 = vsel %vm1604_vm3, %v8333_v39, %v8084_v42  ;;  %v843_v40 = vpop.permute.xlu0 %842  ;;  %v3311_v41 = vpop.f32.mrf.mxu1  ;;  %v8313_v39 = vld [vmem:[%s11119_s5 + $0x38] sm:$0xff]  }
 0x3bb   : > { %v8088_v62 = vpop.permute.xlu1 %8087  ;;  %v3366_v13 = vmul.f32 0.01, %v3310_v12  ;;  %vm3355_vm2 = vcmp.ge.f32.partialorder %v3310_v12, 0.0  ;;  %v1633_v61 = vsel %vm1604_vm3, %v9914_v23, %v843_v40  ;;  %3996 = vmatpush1.bf16.msra.mxu1 %v8313_v39  ;;  %v8316_v40 = vld [vmem:[%s11119_s5 + $0x20] sm:$0xff]   ;;  %v8317_v41 = vld [vmem:[%s11119_s5 + $0x18] sm:$0xff]   ;;  %vm3480_vm3 = vcmask 128000  }
 0x3bc   : > { %v8090_v27 = vunpack.i.h.bf16 %v8088_v62  ;;  %v8089_v49 = vunpack.i.l.bf16 %v8088_v62  ;;  %v3312_v54 = vpop.f32.mrf.mxu1  ;;  %3997 = vmatprep.subr.bf16.mxu1 %v8833_v2  ;;  %v8315_v62 = vld [vmem:[%s11119_s5 + $0x28] sm:$0xff]   ;;  %3481 = vst.msk [vmem:[#allocation5 + $0x6a] sm:$0x3f] %vm3480_vm3, %v8821_v16  ;;  %4221 = vst.msk [vmem:[#allocation2 + $0x6a] sm:$0x3f] %vm3480_vm3, %v8821_v16 }
 0x3bd   : > { %v3313_v17 = vadd.f32 %v10014_v26, %v3312_v54  ;;  %v3377_v19 = vsel %vm3355_vm2, %v3310_v12, %v3366_v13 }
 0x3be   : > { %v1661_v14 = vsel %vm1634_vm4, %v1631_v58, %v8089_v49  ;;  %v1662_v15 = vsel %vm1634_vm4, %v1632_v60, %v8090_v27  ;;  %v959_v55 = vpop.permute.xlu0 %958  ;;  %v3454_v24 = vmul.f32 %v3402_v22, %v3377_v19  ;;  %v3314_v18 = vpop.f32.mrf.mxu1  ;;  %v8314_v58 = vld [vmem:[%s11119_s5 + $0x30] sm:$0xff]  }
 0x3bf   : > { %v8093_v20 = vpop.permute.xlu1 %8092  ;;  %v10027_v30 = vsel %vm1634_vm4, %v1633_v61, %v959_v55  ;;  %v3367_v31 = vmul.f32 0.01, %v3313_v17  ;;  %vm3356_vm1 = vcmp.ge.f32.partialorder %v3313_v17, 0.0  ;;  %3998 = vmatpush1.bf16.msra.mxu1 %v8314_v58  ;;  %v8318_v61 = vld [vmem:[%s11119_s5 + $0x10] sm:$0xff]  }
 0x3c0   : > { %v8095_v28 = vunpack.i.h.bf16 %v8093_v20  ;;  %v8094_v29 = vunpack.i.l.bf16 %v8093_v20  ;;  %3468 = vst.msk [vmem:[#allocation5 + $0xa] sm:$0xff] %vm1694_vm0, %v3454_v24  ;;  %3999 = vmatprep.subr.bf16.mxu1 %v8833_v2  ;;  %v8319_v24 = vld [vmem:[%s11119_s5 + $0x8] sm:$0xff]  }
 0x3c1   : > { %v3378_v33 = vsel %vm3356_vm1, %v3313_v17, %v3367_v31 }
 0x3c2   : > { %v1691_v23 = vsel %vm1664_vm5, %v1661_v14, %v8094_v29  ;;  %v1692_v32 = vsel %vm1664_vm5, %v1662_v15, %v8095_v28  ;;  %v3455_v35 = vmul.f32 %v3407_v52, %v3378_v33 }
 0x3c3   : > { %v8098_v34 = vpop.permute.xlu1 %8097  ;;  %4000 = vmatpush1.bf16.msra.mxu1 %v8315_v62 }
 0x3c4   : > { %v8100_v37 = vunpack.i.h.bf16 %v8098_v34  ;;  %v8099_v38 = vunpack.i.l.bf16 %v8098_v34  ;;  %3469 = vst.msk [vmem:[#allocation5 + $0x12] sm:$0xff] %vm1694_vm0, %v3455_v35  ;;  %4001 = vmatprep.subr.bf16.mxu1 %v8833_v2 }
 0x3c6   : > { %v1721_v48 = vsel %vm1694_vm0, %v1691_v23, %v8099_v38  ;;  %v1722_v25 = vsel %vm1694_vm0, %v1692_v32, %v8100_v37 }
 0x3c7   : > { %v8103_v43 = vpop.permute.xlu1 %8102  ;;  %v3505_v21 = vld [vmem:[#allocation5 + $0xa] sm:$0xff]  ;;  %4002 = vmatpush1.bf16.msra.mxu1 %v8316_v40 }
 0x3c8   : > { %v8105_v47 = vunpack.i.h.bf16 %v8103_v43  ;;  %v8104_v44 = vunpack.i.l.bf16 %v8103_v43  ;;  %v3494_v50 = vld [vmem:[#allocation5 + $0x9] sm:$0xff]  ;;  %v8121_v22 = vpack.i.bf16 %v3505_v21, %v3504_v8  ;;  %4003 = vmatprep.subr.bf16.mxu1 %v8833_v2 }
 0x3c9   : > { %v8116_v52 = vpack.i.bf16 %v3494_v50, %v3493_v46 }
 0x3ca   : > { %v1751_v10 = vsel %vm1724_vm6, %v1721_v48, %v8104_v44  ;;  %v1752_v5 = vsel %vm1724_vm6, %v1722_v25, %v8105_v47  ;;  %8122 = vrot.lane.b32.xlu1 %v8121_v22, %s11181_s1 }
 0x3cb   : > { %v10040_v42 = vsel %vm1754_vm7, %v1751_v10, %v8109_v45  ;;  %v10043_v11 = vsel %vm1754_vm7, %v1752_v5, %v8110_v9  ;;  %8117 = vrot.lane.b32.xlu0 %v8116_v52, %s11180_s20  ;;  %v3506_v6 = vld [vmem:[#allocation5 + $0x12] sm:$0xff]  ;;  %4004 = vmatpush1.bf16.msra.mxu1 %v8317_v41  ;;  %v8115_v9 = vunpack.i.h.bf16 %v10007_v7  ;;  %v8114_v45 = vunpack.i.l.bf16 %v10007_v7 }
 0x3cc   : > { %v10047_v12 = vld [vmem:[#allocation5 + $0x11] sm:$0xff]  ;;  %v8131_v53 = vpack.i.bf16 %v3506_v6, %v3505_v21  ;;  %4005 = vmatprep.subr.bf16.mxu1 %v8833_v2 }
 0x3cd   : > { %v8126_v60 = vpack.i.bf16 %v10047_v12, %v3494_v50  ;;  %v3517_v31 = vld [vmem:[#allocation5 + $0xb] sm:$0xff]  ;;  %v10107_v44 = vsel %vm1784_vm8, %v10040_v42, %v8114_v45  ;;  %v10111_v21 = vsel %vm1784_vm8, %v10043_v11, %v8115_v9 }
 0x3ce   : > { %8132 = vrot.lane.b32.xlu1 %v8131_v53, %s11182_s26 }
 0x3cf   : > { %8127 = vrot.lane.b32.xlu0 %v8126_v60, %s11189_s22  ;;  %4006 = vmatpush1.bf16.msra.mxu1 %v8318_v61 }
 0x3d0   : > { %4007 = vmatprep.subr.bf16.mxu1 %v8833_v2 }
 0x3d3   : > { %4008 = vmatpush1.bf16.msra.mxu1 %v8319_v24 }
 0x3d4   : > { %4009 = vmatprep.subr.bf16.mxu1 %v8833_v2 }
 0x3f4   : > { %v3317_v27 = vpop.f32.mrf.mxu1 }
 0x3f5   : > { %v3318_v49 = vadd.f32 %v10014_v26, %v3317_v27 }
 0x3f6   : > { %v3319_v13 = vpop.f32.mrf.mxu1 }
 0x3f7   : > { %v3368_v54 = vmul.f32 0.01, %v3318_v49  ;;  %vm3357_vm1 = vcmp.ge.f32.partialorder %v3318_v49, 0.0 }
 0x3f8   : > { %v3320_v14 = vpop.f32.mrf.mxu1 }
 0x3f9   : > { %v3321_v15 = vadd.f32 %v10014_v26, %v3320_v14  ;;  %v3379_v17 = vsel %vm3357_vm1, %v3318_v49, %v3368_v54 }
 0x3fa   : > { %v3456_v19 = vmul.f32 %v9989_v36, %v3379_v17  ;;  %v3322_v20 = vpop.f32.mrf.mxu1  ;;  %v8320_v36 = vld [vmem:[%s11119_s5] sm:$0xff]  }
 0x3fb   : > { %v3369_v55 = vmul.f32 0.01, %v3321_v15  ;;  %vm3358_vm2 = vcmp.ge.f32.partialorder %v3321_v15, 0.0  ;;  %4010 = vmatpush1.bf16.msra.mxu1 %v8320_v36 }
 0x3fc   : > { %3470 = vst.msk [vmem:[#allocation5 + $0x1a] sm:$0xff] %vm1694_vm0, %v3456_v19  ;;  %4025 = vmatprep.subr.bf16.mxu1 %v8833_v2 }
 0x3fd   : > { %v3380_v18 = vsel %vm3358_vm2, %v3321_v15, %v3369_v55 }
 0x3fe   : > { %v3457_v28 = vmul.f32 %v9987_v51, %v3380_v18  ;;  %v8321_v51 = vld [vmem:[%s11119_s5 + $0x40] sm:$0xff]  }
 0x3ff   : > { %4026 = vmatpush2.bf16.msra.mxu1 %v8321_v51 }
 0x400   : > { %3471 = vst.msk [vmem:[#allocation5 + $0x22] sm:$0xff] %vm1694_vm0, %v3457_v28 }
 0x403   : > { %v3507_v29 = vld [vmem:[#allocation5 + $0x1a] sm:$0xff] }
 0x404   : > { %v3518_v23 = vld [vmem:[#allocation5 + $0x13] sm:$0xff]  ;;  %v8141_v32 = vpack.i.bf16 %v3507_v29, %v3506_v6 }
 0x405   : > { %v8136_v33 = vpack.i.bf16 %v3518_v23, %v3517_v31  ;;  %v3496_v34 = vld [vmem:[#allocation5 + $0x19] sm:$0xff] }
 0x406   : > { %8142 = vrot.lane.b32.xlu1 %v8141_v32, %s11179_s25  ;;  %v3530_v35 = vld [vmem:[#allocation5 + $0x14] sm:$0xff]  ;;  %v8146_v2 = vpack.i.bf16 %v3496_v34, %v10047_v12 }
 0x407   : > { %8137 = vrot.lane.b32.xlu0 %v8136_v33, %s11190_s19  ;;  %v3531_v37 = vld [vmem:[#allocation5 + $0x1c] sm:$0xff] }
 0x408   : > { %v3887_v38 = vpack.c.bf16 %v3531_v37, %v3530_v35  ;;  %v3497_v48 = vld [vmem:[#allocation5 + $0x21] sm:$0xff] }
 0x409   : > { %v3519_v25 = vld [vmem:[#allocation5 + $0x1b] sm:$0xff]  ;;  %v8161_v8 = vpack.i.bf16 %v3497_v48, %v3496_v34 }
 0x40a   : > { %6885 = vmatprep.mubr.msk.bf16.mxu1 %vm1694_vm0, %v3887_v38  ;;  %8147 = vrot.lane.b32.xlu1 %v8146_v2, %s11180_s20  ;;  %v8156_v46 = vpack.i.bf16 %v3519_v25, %v3518_v23  ;;  %v3508_v43 = vld [vmem:[#allocation5 + $0x22] sm:$0xff] }
 0x40b   : > { %8152 = vrot.lane.b32.xlu0 %v8141_v32, %s11181_s1  ;;  %v8166_v47 = vpack.i.bf16 %v3508_v43, %v3507_v29 }
 0x40e   : > { %8162 = vrot.lane.b32.xlu1 %v8161_v8, %s11189_s22 }
 0x40f   : > { %8157 = vrot.lane.b32.xlu0 %v8156_v46, %s11191_s24 }
 0x413   : > { %8167 = vrot.lane.b32.xlu0 %v8166_v47, %s11182_s26 }
 0x435   : > { %v3325_v50 = vpop.f32.mrf.mxu1 }
 0x436   : > { %v3326_v22 = vadd.f32 %v10014_v26, %v3325_v50 }
 0x437   : > { %v3327_v7 = vpop.f32.mrf.mxu1 }
 0x438   : > { %vm3359_vm1 = vcmp.ge.f32.partialorder %v3326_v22, 0.0  ;;  %v3370_v52 = vmul.f32 0.01, %v3326_v22 }
 0x439   : > { %v3328_v10 = vpop.f32.mrf.mxu1 }
 0x43a   : > { %v3381_v5 = vsel %vm3359_vm1, %v3326_v22, %v3370_v52  ;;  %v3329_v6 = vadd.f32 %v10014_v26, %v3328_v10 }
 0x43b   : > { %v3458_v12 = vmul.f32 %v9993_v59, %v3381_v5  ;;  %v3330_v42 = vpop.f32.mrf.mxu1 }
 0x43c   : > { %vm3360_vm3 = vcmp.ge.f32.partialorder %v3329_v6, 0.0  ;;  %v3371_v53 = vmul.f32 0.01, %v3329_v6 }
 0x43d   : > { %3472 = vst.msk [vmem:[#allocation5 + $0x2a] sm:$0xff] %vm1694_vm0, %v3458_v12 }
 0x43e   : > { %v3382_v11 = vsel %vm3360_vm3, %v3329_v6, %v3371_v53 }
 0x43f   : > { %v3459_v60 = vmul.f32 %v9991_v57, %v3382_v11 }
 0x441   : > { %3473 = vst.msk [vmem:[#allocation5 + $0x32] sm:$0xff] %vm1694_vm0, %v3459_v60 }
 0x444   : > { %v3333_v39 = vpop.f32.mrf.mxu1  ;;  %v3520_v62 = vld [vmem:[#allocation5 + $0x23] sm:$0xff] }
 0x445   : > { %v3334_v58 = vadd.f32 %v10014_v26, %v3333_v39  ;;  %v3509_v40 = vld [vmem:[#allocation5 + $0x2a] sm:$0xff]  ;;  %v8171_v27 = vpack.i.bf16 %v3520_v62, %v3519_v25 }
 0x446   : > { %v3335_v41 = vpop.f32.mrf.mxu1  ;;  %v8176_v49 = vpack.i.bf16 %v3509_v40, %v3508_v43  ;;  %v3498_v13 = vld [vmem:[#allocation5 + $0x29] sm:$0xff] }
 0x447   : > { %vm3361_vm2 = vcmp.ge.f32.partialorder %v3334_v58, 0.0  ;;  %v3372_v59 = vmul.f32 0.01, %v3334_v58  ;;  %8172 = vrot.lane.b32.xlu1 %v8171_v27, %s11190_s19  ;;  %v8181_v17 = vpack.i.bf16 %v3498_v13, %v3497_v48  ;;  %v10152_v27 = vpop.permute.xlu0 %1074 }
 0x448   : > { %8177 = vrot.lane.b32.xlu0 %v8176_v49, %s11179_s25  ;;  %v3336_v61 = vpop.f32.mrf.mxu1  ;;  %v3521_v20 = vld [vmem:[#allocation5 + $0x2b] sm:$0xff] }
 0x449   : > { %v3383_v54 = vsel %vm3361_vm2, %v3334_v58, %v3372_v59  ;;  %v3337_v57 = vadd.f32 %v10014_v26, %v3336_v61  ;;  %v3499_v55 = vld [vmem:[#allocation5 + $0x31] sm:$0xff]  ;;  %v8191_v29 = vpack.i.bf16 %v3521_v20, %v3520_v62 }
 0x44a   : > { %v3460_v14 = vmul.f32 %v9997_v56, %v3383_v54  ;;  %v3338_v15 = vpop.f32.mrf.mxu1  ;;  %v8196_v56 = vpack.i.bf16 %v3499_v55, %v3498_v13  ;;  %v3510_v23 = vld [vmem:[#allocation5 + $0x32] sm:$0xff]  ;;  %v10157_v54 = vpop.permute.xlu1 %3762 }
 0x44b   : > { %vm3362_vm1 = vcmp.ge.f32.partialorder %v3337_v57, 0.0  ;;  %v3373_v19 = vmul.f32 0.01, %v3337_v57  ;;  %8187 = vrot.lane.b32.xlu1 %v8176_v49, %s11181_s1  ;;  %v8201_v35 = vpack.i.bf16 %v3510_v23, %v3509_v40  ;;  %v721_v59 = vld [vmem:[%s8962_s23 + $0xf0] sm:$0xff] }
 0x44c   : > { %3474 = vst.msk [vmem:[#allocation5 + $0x3a] sm:$0xff] %vm1694_vm0, %v3460_v14  ;;  %8182 = vrot.lane.b32.xlu0 %v8181_v17, %s11180_s20  ;;  %v8118_v14 = vpop.permute.xlu0 %8117 }
 0x44d   : > { %v3384_v24 = vsel %vm3362_vm1, %v3337_v57, %v3373_v19  ;;  %v3341_v18 = vpop.f32.mrf.mxu1 }
 0x44e   : > { %v3461_v28 = vmul.f32 %v9995_v1, %v3384_v24  ;;  %v3342_v36 = vadd.f32 %v10014_v26, %v3341_v18  ;;  %v8120_v18 = vunpack.i.h.bf16 %v8118_v14 }
 0x44f   : > { %v3343_v31 = vpop.f32.mrf.mxu1  ;;  %8192 = vrot.lane.b32.xlu1 %v8191_v29, %s11191_s24  ;;  %v3482_v29 = vld [vmem:[#allocation5] sm:$0xff] }
 0x450   : > { %3475 = vst.msk [vmem:[#allocation5 + $0x42] sm:$0xff] %vm1694_vm0, %v3461_v28  ;;  %vm3363_vm3 = vcmp.ge.f32.partialorder %v3342_v36, 0.0  ;;  %v3374_v32 = vmul.f32 0.01, %v3342_v36  ;;  %8197 = vrot.lane.b32.xlu0 %v8196_v56, %s11189_s22  ;;  %v8119_v28 = vunpack.i.l.bf16 %v8118_v14  ;;  %v4131_v14 = vld [vmem:[%s11122_s8 + $0x8] sm:$0xff] }
 0x451   : > { %v3344_v33 = vpop.f32.mrf.mxu1 }
 0x452   : > { %v3385_v34 = vsel %vm3363_vm3, %v3342_v36, %v3374_v32  ;;  %v3345_v51 = vadd.f32 %v10014_v26, %v3344_v33  ;;  %v8128_v36 = vpop.permute.xlu0 %8127  ;;  %v3483_v33 = vld [vmem:[#allocation5 + $0x8] sm:$0xff]  ;;  %vm11192_vm3 = vmmov 0  }
 0x453   : > { %v3462_v1 = vmul.f32 %v10001_v3, %v3385_v34  ;;  %v3346_v37 = vpop.f32.mrf.mxu1  ;;  %v3522_v38 = vld [vmem:[#allocation5 + $0x33] sm:$0xff]  ;;  %8202 = vrot.lane.b32.xlu1 %v8201_v35, %s11182_s26  ;;  %v3810_v35 = vsel %vm1694_vm0, %v3483_v33, %v8120_v18  ;;  %v8340_v18 = vld [vmem:[%s11122_s8 + $0x40] sm:$0xff] }
 0x454   : > { %v3511_v2 = vld [vmem:[#allocation5 + $0x3a] sm:$0xff]  ;;  %vm3364_vm2 = vcmp.ge.f32.partialorder %v3345_v51, 0.0  ;;  %v3375_v48 = vmul.f32 0.01, %v3345_v51  ;;  %v8206_v25 = vpack.i.bf16 %v3522_v38, %v3521_v20  ;;  %v8123_v20 = vpop.permute.xlu1 %8122  ;;  %v8130_v37 = vunpack.i.h.bf16 %v8128_v36 }
 0x455   : > { %v8211_v8 = vpack.i.bf16 %v3511_v2, %v3510_v23  ;;  %3476 = vst.msk [vmem:[#allocation5 + $0x4a] sm:$0xff] %vm1694_vm0, %v3462_v1  ;;  %v3500_v3 = vld [vmem:[#allocation5 + $0x39] sm:$0xff]  ;;  %v8125_v23 = vunpack.i.h.bf16 %v8123_v20  ;;  %v8124_v32 = vunpack.i.l.bf16 %v8123_v20  ;;  %v8337_v20 = vld [vmem:[%s11122_s8 + $0x28] sm:$0xff] }
 0x456   : > { %v3386_v46 = vsel %vm3364_vm2, %v3345_v51, %v3375_v48  ;;  %v3349_v9 = vpop.f32.mrf.mxu1  ;;  %8207 = vrot.lane.b32.xlu0 %v8206_v25, %s11190_s19  ;;  %v8216_v7 = vpack.i.bf16 %v3500_v3, %v3499_v55  ;;  %v3809_v51 = vsel %vm1694_vm0, %v3482_v29, %v8119_v28  ;;  %v8341_v28 = vld [vmem:[%s11122_s8 + $0x48] sm:$0xff]  ;;  %v3485_v33 = vld [vmem:[#allocation5 + $0x18] sm:$0xff] }
 0x457   : > { %v3463_v45 = vmul.f32 %v9999_v0, %v3386_v46  ;;  %v3350_v43 = vadd.f32 %v10014_v26, %v3349_v9  ;;  %8212 = vrot.lane.b32.xlu1 %v8211_v8, %s11179_s25  ;;  %v3523_v22 = vld [vmem:[#allocation5 + $0x3b] sm:$0xff]  ;;  %v3820_v46 = vsel %vm1814_vm9, %v3809_v51, %v8124_v32  ;;  %v3821_v9 = vsel %vm1814_vm9, %v3810_v35, %v8125_v23 }
 0x458   : > { %v3351_v47 = vpop.f32.mrf.mxu1  ;;  %v3501_v5 = vld [vmem:[#allocation5 + $0x41] sm:$0xff]  ;;  %v8226_v0 = vpack.i.bf16 %v3523_v22, %v3522_v38  ;;  %v8133_v1 = vpop.permute.xlu1 %8132  ;;  %v8129_v38 = vunpack.i.l.bf16 %v8128_v36  ;;  %v8342_v36 = vld [vmem:[%s11122_s8 + $0x50] sm:$0xff] }
 0x459   : > { %3477 = vst.msk [vmem:[#allocation5 + $0x52] sm:$0xff] %vm1694_vm0, %v3463_v45  ;;  %vm3365_vm1 = vcmp.ge.f32.partialorder %v3350_v43, 0.0  ;;  %v3376_v50 = vmul.f32 0.01, %v3350_v43  ;;  %v3512_v12 = vld [vmem:[#allocation5 + $0x42] sm:$0xff]  ;;  %v8231_v42 = vpack.i.bf16 %v3501_v5, %v3500_v3  ;;  %v8135_v25 = vunpack.i.h.bf16 %v8133_v1 }
 0x45a   : > { %8222 = vrot.lane.b32.xlu0 %v8211_v8, %s11181_s1  ;;  %v3352_v52 = vpop.f32.mrf.mxu1  ;;  %v8236_v11 = vpack.i.bf16 %v3512_v12, %v3511_v2  ;;  %v8134_v8 = vunpack.i.l.bf16 %v8133_v1  ;;  %v3831_v45 = vsel %vm3106_vm13, %v3820_v46, %v8129_v38 }
 0x45b   : > { %v3387_v10 = vsel %vm3365_vm1, %v3350_v43, %v3376_v50  ;;  %8217 = vrot.lane.b32.xlu1 %v8216_v7, %s11180_s20  ;;  %v3832_v43 = vsel %vm3106_vm13, %v3821_v9, %v8130_v37  ;;  %v3529_v7 = vld [vmem:[#allocation5 + $0x63] sm:$0xff] }
 0x45c   : > { %v3464_v6 = vmul.f32 %v10005_v4, %v3387_v10  ;;  %v3353_v26 = vpop.f32.mrf.mxu1  ;;  %v3524_v53 = vld [vmem:[#allocation5 + $0x43] sm:$0xff] }
 0x45d   : > { %v3513_v60 = vld [vmem:[#allocation5 + $0x4a] sm:$0xff]  ;;  %v8241_v39 = vpack.i.bf16 %v3524_v53, %v3523_v22 }
 0x45e   : > { %3478 = vst.msk [vmem:[#allocation5 + $0x5a] sm:$0xff] %vm1694_vm0, %v3464_v6  ;;  %8227 = vrot.lane.b32.xlu0 %v8226_v0, %s11191_s24  ;;  %v8246_v4 = vpack.i.bf16 %v3513_v60, %v3512_v12  ;;  %v3502_v58 = vld [vmem:[#allocation5 + $0x49] sm:$0xff]  ;;  %v3843_v6 = vsel %vm3118_vm14, %v3832_v43, %v8135_v25  ;;  %v723_v0 = vld [vmem:[%s8962_s23 + $0xf1] sm:$0xff] }
 0x45f   : > { %8232 = vrot.lane.b32.xlu1 %v8231_v42, %s11189_s22  ;;  %v8251_v40 = vpack.i.bf16 %v3502_v58, %v3501_v5  ;;  %v3842_v5 = vsel %vm3118_vm14, %v3831_v45, %v8134_v8 }
 0x460   : > { %v3525_v62 = vld [vmem:[#allocation5 + $0x4b] sm:$0xff] }
 0x461   : > { %v3503_v41 = vld [vmem:[#allocation5 + $0x51] sm:$0xff]  ;;  %v8261_v49 = vpack.i.bf16 %v3525_v62, %v3524_v53  ;;  %v752_v53 = vld [vmem:[%s8962_s23 + $0xfe] sm:$0xff] }
 0x462   : > { %8237 = vrot.lane.b32.xlu0 %v8236_v11, %s11182_s26  ;;  %v8266_v13 = vpack.i.bf16 %v3503_v41, %v3502_v58  ;;  %v3514_v61 = vld [vmem:[#allocation5 + $0x52] sm:$0xff]  ;;  %v8276_v57 = vpack.i.bf16 %v721_v59, %v3503_v41  ;;  %v754_v58 = vld [vmem:[%s8962_s23 + $0xff] sm:$0xff] }
 0x463   : > { %8242 = vrot.lane.b32.xlu1 %v8241_v39, %s11190_s19  ;;  %v8271_v15 = vpack.i.bf16 %v3514_v61, %v3513_v60  ;;  %v8281_v19 = vpack.i.bf16 %v721_v59, %v3514_v61  ;;  %v3532_v59 = vld [vmem:[#allocation5 + $0x24] sm:$0xff] }
 0x465   : > { %v3526_v17 = vld [vmem:[#allocation5 + $0x53] sm:$0xff]  ;;  %v3527_v34 = vld [vmem:[#allocation5 + $0x5b] sm:$0xff] }
 0x466   : > { %8247 = vrot.lane.b32.xlu0 %v8246_v4, %s11179_s25  ;;  %v8286_v55 = vpack.i.bf16 %v3526_v17, %v3525_v62  ;;  %v3516_v24 = vld [vmem:[#allocation5 + $0x5a] sm:$0xff]  ;;  %v8296_v48 = vpack.i.bf16 %v3527_v34, %v3526_v17  ;;  %v3533_v62 = vld [vmem:[#allocation5 + $0x2c] sm:$0xff] }
 0x467   : > { %8257 = vrot.lane.b32.xlu1 %v8246_v4, %s11181_s1  ;;  %v3515_v56 = vld [vmem:[#allocation5 + $0x59] sm:$0xff]  ;;  %v8291_v31 = vpack.i.bf16 %v3516_v24, %v3514_v61  ;;  %v3889_v61 = vpack.c.bf16 %v3533_v62, %v3532_v59 }
 0x468   : > { %v8335_v17 = vld [vmem:[%s11122_s8 + $0x18] sm:$0xff] }
 0x46a   : > { %8252 = vrot.lane.b32.xlu0 %v8251_v40, %s11180_s20 }
 0x46b   : > { %8262 = vrot.lane.b32.xlu1 %v8261_v49, %s11191_s24 }
 0x46e   : > { %8267 = vrot.lane.b32.xlu0 %v8266_v13, %s11189_s22  ;;  %v756_v13 = vld [vmem:[%s8962_s23 + $0x100] sm:$0xff] }
 0x46f   : > { %8277 = vrot.lane.b32.xlu1 %v8276_v57, %s11180_s20  ;;  %v4130_v57 = vld [vmem:[%s11122_s8] sm:$0xff] }
 0x472   : > { %8272 = vrot.lane.b32.xlu0 %v8271_v15, %s11182_s26  ;;  %v8334_v15 = vld [vmem:[%s11122_s8 + $0x10] sm:$0xff] }
 0x473   : > { %8282 = vrot.lane.b32.xlu1 %v8281_v19, %s11181_s1  ;;  %v8336_v19 = vld [vmem:[%s11122_s8 + $0x20] sm:$0xff] }
 0x476   : > { %8287 = vrot.lane.b32.xlu0 %v8286_v55, %s11190_s19  ;;  %v8338_v55 = vld [vmem:[%s11122_s8 + $0x30] sm:$0xff] }
 0x477   : > { %3650 = vrot.lane.b32.xlu1 %v3515_v56, %s11189_s22 }
 0x478   : > { %v8143_v3 = vpop.permute.xlu1 %8142 }
 0x479   : > { %v8138_v2 = vpop.permute.xlu0 %8137  ;;  %v8145_v52 = vunpack.i.h.bf16 %v8143_v3  ;;  %v8144_v10 = vunpack.i.l.bf16 %v8143_v3 }
 0x47a   : > { %8292 = vrot.lane.b32.xlu0 %v8291_v31, %s11179_s25  ;;  %v8140_v47 = vunpack.i.h.bf16 %v8138_v2  ;;  %v8139_v50 = vunpack.i.l.bf16 %v8138_v2 }
 0x47b   : > { %3684 = vrot.lane.b32.xlu1 %v3516_v24, %s11182_s26  ;;  %v8339_v24 = vld [vmem:[%s11122_s8 + $0x38] sm:$0xff] }
 0x47c   : > { %v3853_v26 = vsel %vm3130_vm11, %v3842_v5, %v8139_v50  ;;  %v3854_v12 = vsel %vm3130_vm11, %v3843_v6, %v8140_v47  ;;  %v8148_v29 = vpop.permute.xlu1 %8147 }
 0x47d   : > { %v10174_v22 = vpop.permute.xlu0 %8152  ;;  %v3864_v39 = vsel %vm3142_vm12, %v3853_v26, %v8144_v10  ;;  %v3865_v4 = vsel %vm3142_vm12, %v3854_v12, %v8145_v52  ;;  %v8150_v23 = vunpack.i.h.bf16 %v8148_v29  ;;  %v8149_v32 = vunpack.i.l.bf16 %v8148_v29 }
 0x47e   : > { %8297 = vrot.lane.b32.xlu0 %v8296_v48, %s11191_s24  ;;  %v8155_v51 = vunpack.i.h.bf16 %v10174_v22  ;;  %v8154_v35 = vunpack.i.l.bf16 %v10174_v22 }
 0x47f   : > { %3728 = vrot.lane.b32.xlu1 %v3527_v34, %s11190_s19  ;;  %v3484_v34 = vld [vmem:[#allocation5 + $0x10] sm:$0xff]  ;;  %v3812_v38 = vsel %vm1694_vm0, %v3485_v33, %v8150_v23 }
 0x480   : > { %v8163_v56 = vpop.permute.xlu1 %8162  ;;  %v3811_v2 = vsel %vm1694_vm0, %v3484_v34, %v8149_v32  ;;  %v3823_v43 = vsel %vm1814_vm9, %v3812_v38, %v8155_v51 }
 0x481   : > { %v8158_v42 = vpop.permute.xlu0 %8157  ;;  %v8165_v48 = vunpack.i.h.bf16 %v8163_v56  ;;  %v8164_v25 = vunpack.i.l.bf16 %v8163_v56  ;;  %v3822_v3 = vsel %vm1814_vm9, %v3811_v2, %v8154_v35 }
 0x482   : > { %3796 = vrot.lane.b32.xlu0 %v3529_v7, %s11191_s24  ;;  %v8160_v11 = vunpack.i.h.bf16 %v8158_v42  ;;  %v8159_v60 = vunpack.i.l.bf16 %v8158_v42 }
 0x483   : > { %1279 = vrot.lane.b32.xlu1 %v723_v0, %s11175_s30  ;;  %v3833_v22 = vsel %vm3106_vm13, %v3822_v3, %v8164_v25  ;;  %v3834_v7 = vsel %vm3106_vm13, %v3823_v43, %v8165_v48 }
 0x484   : > { %v3875_v40 = vsel %vm3154_vm15, %v3864_v39, %v8159_v60  ;;  %v3876_v41 = vsel %vm3154_vm15, %v3865_v4, %v8160_v11  ;;  %v3535_v4 = vld [vmem:[#allocation5 + $0x3c] sm:$0xff] }
 0x485   : > { %v3886_v49 = vpack.c.bf16 %v3876_v41, %v3875_v40  ;;  %v8168_v31 = vpop.permute.xlu0 %8167 }
 0x486   : > { %1395 = vrot.lane.b32.xlu0 %v752_v53, %s11183_s21  ;;  %v8170_v8 = vunpack.i.h.bf16 %v8168_v31  ;;  %v8169_v46 = vunpack.i.l.bf16 %v8168_v31 }
 0x487   : > { %1484 = vrot.lane.b32.xlu1 %v754_v58, %s11184_s28  ;;  %4028 = vmatmul.mubr.bf16.vlgmr.msra.gmra.mxu1 %v3886_v49 }
 0x488   : > { %6886 = vmatprep.mubr.msk.bf16.mxu1 %vm1694_vm0, %v3889_v61  ;;  %v3844_v52 = vsel %vm3118_vm14, %v3833_v22, %v8169_v46  ;;  %v3845_v10 = vsel %vm3118_vm14, %v3834_v7, %v8170_v8 }
 0x48a   : > { %1573 = vrot.lane.b32.xlu0 %v756_v13, %s11181_s1  ;;  %v3534_v13 = vld [vmem:[#allocation5 + $0x34] sm:$0xff] }
 0x48b   : > { %4143 = vperm.xlu1 %8080, %v4130_v57   ;;  %v3891_v61 = vpack.c.bf16 %v3535_v4, %v3534_v13 }
 0x48e   : > { %4148 = vperm.xlu0 %8079, %v4131_v14  }
 0x48f   : > { %4153 = vperm.xlu1 %8080, %v8334_v15   ;;  %v3486_v15 = vld [vmem:[#allocation5 + $0x20] sm:$0xff] }
 0x492   : > { %4158 = vperm.xlu0 %8079, %v8335_v17   ;;  %v3487_v17 = vld [vmem:[#allocation5 + $0x28] sm:$0xff] }
 0x493   : > { %4163 = vperm.xlu1 %8080, %v8336_v19  }
 0x496   : > { %4168 = vperm.xlu0 %8079, %v8337_v20  }
 0x497   : > { %4173 = vperm.xlu1 %8080, %v8338_v55  }
 0x49a   : > { %4178 = vperm.xlu0 %8079, %v8339_v24  }
 0x49b   : > { %4183 = vperm.xlu1 %8080, %v8340_v18  }
 0x49e   : > { %4188 = vperm.xlu0 %8079, %v8341_v28  }
 0x49f   : > { %4193 = vperm.xlu1 %8080, %v8342_v36  }
 0x4b9   : > { %v8173_v1 = vpop.permute.xlu1 %8172 }
 0x4ba   : > { %v8178_v37 = vpop.permute.xlu0 %8177  ;;  %v8175_v9 = vunpack.i.h.bf16 %v8173_v1  ;;  %v8174_v45 = vunpack.i.l.bf16 %v8173_v1 }
 0x4bb   : > { %v8180_v5 = vunpack.i.h.bf16 %v8178_v37  ;;  %v8179_v6 = vunpack.i.l.bf16 %v8178_v37 }
 0x4bc   : > { %v3855_v0 = vsel %vm3130_vm11, %v3844_v52, %v8174_v45  ;;  %v3856_v26 = vsel %vm3130_vm11, %v3845_v10, %v8175_v9 }
 0x4bd   : > { %v8188_v47 = vpop.permute.xlu1 %8187  ;;  %v3866_v11 = vsel %vm3142_vm12, %v3855_v0, %v8179_v6  ;;  %v3867_v60 = vsel %vm3142_vm12, %v3856_v26, %v8180_v5  ;;  %v3536_v6 = vld [vmem:[#allocation5 + $0x44] sm:$0xff]  ;;  %v3488_v26 = vld [vmem:[#allocation5 + $0x30] sm:$0xff] }
 0x4be   : > { %v8183_v50 = vpop.permute.xlu0 %8182  ;;  %v8190_v57 = vunpack.i.h.bf16 %v8188_v47  ;;  %v8189_v14 = vunpack.i.l.bf16 %v8188_v47  ;;  %v3537_v47 = vld [vmem:[#allocation5 + $0x4c] sm:$0xff] }
 0x4bf   : > { %v8185_v58 = vunpack.i.h.bf16 %v8183_v50  ;;  %v8184_v62 = vunpack.i.l.bf16 %v8183_v50  ;;  %v3893_v0 = vpack.c.bf16 %v3537_v47, %v3536_v6 }
 0x4c1   : > { %v8193_v12 = vpop.permute.xlu1 %8192  ;;  %v3814_v20 = vsel %vm1694_vm0, %v3487_v17, %v8185_v58  ;;  %v3813_v55 = vsel %vm1694_vm0, %v3486_v15, %v8184_v62 }
 0x4c2   : > { %v8195_v42 = vunpack.i.h.bf16 %v8193_v12  ;;  %v8194_v53 = vunpack.i.l.bf16 %v8193_v12  ;;  %v8198_v39 = vpop.permute.xlu0 %8197  ;;  %v3824_v23 = vsel %vm1814_vm9, %v3813_v55, %v8189_v14  ;;  %v3825_v32 = vsel %vm1814_vm9, %v3814_v20, %v8190_v57  ;;  %v3489_v12 = vld [vmem:[#allocation5 + $0x38] sm:$0xff] }
 0x4c3   : > { %v8200_v24 = vunpack.i.h.bf16 %v8198_v39  ;;  %v8199_v18 = vunpack.i.l.bf16 %v8198_v39 }
 0x4c4   : > { %v3877_v40 = vsel %vm3154_vm15, %v3866_v11, %v8194_v53  ;;  %v3878_v41 = vsel %vm3154_vm15, %v3867_v60, %v8195_v42 }
 0x4c5   : > { %v8203_v49 = vpop.permute.xlu1 %8202  ;;  %v3888_v59 = vpack.c.bf16 %v3878_v41, %v3877_v40  ;;  %v3835_v34 = vsel %vm3106_vm13, %v3824_v23, %v8199_v18  ;;  %v3836_v51 = vsel %vm3106_vm13, %v3825_v32, %v8200_v24 }
 0x4c6   : > { %v8205_v28 = vunpack.i.h.bf16 %v8203_v49  ;;  %v8204_v36 = vunpack.i.l.bf16 %v8203_v49 }
 0x4c7   : > { %4036 = vmatmul.mubr.bf16.gmra.mxu1 %v3888_v59 }
 0x4c8   : > { %v8208_v19 = vpop.permute.xlu0 %8207  ;;  %6887 = vmatprep.mubr.msk.bf16.mxu1 %vm1694_vm0, %v3891_v61  ;;  %v3846_v35 = vsel %vm3118_vm14, %v3835_v34, %v8204_v36  ;;  %v3847_v1 = vsel %vm3118_vm14, %v3836_v51, %v8205_v28  ;;  %v3539_v34 = vld [vmem:[#allocation5 + $0x5c] sm:$0xff] }
 0x4c9   : > { %v8213_v29 = vpop.permute.xlu1 %8212  ;;  %v8210_v56 = vunpack.i.h.bf16 %v8208_v19  ;;  %v8209_v31 = vunpack.i.l.bf16 %v8208_v19 }
 0x4ca   : > { %v8215_v37 = vunpack.i.h.bf16 %v8213_v29  ;;  %v8214_v38 = vunpack.i.l.bf16 %v8213_v29 }
 0x4cb   : > { %v3857_v48 = vsel %vm3130_vm11, %v3846_v35, %v8209_v31  ;;  %v3858_v25 = vsel %vm3130_vm11, %v3847_v1, %v8210_v56 }
 0x4cc   : > { %v8223_v33 = vpop.permute.xlu0 %8222  ;;  %v3868_v45 = vsel %vm3142_vm12, %v3857_v48, %v8214_v38  ;;  %v3869_v43 = vsel %vm3142_vm12, %v3858_v25, %v8215_v37 }
 0x4cd   : > { %v8218_v2 = vpop.permute.xlu1 %8217  ;;  %v8225_v4 = vunpack.i.h.bf16 %v8223_v33  ;;  %v8224_v58 = vunpack.i.l.bf16 %v8223_v33  ;;  %v3538_v33 = vld [vmem:[#allocation5 + $0x54] sm:$0xff] }
 0x4ce   : > { %v8220_v50 = vunpack.i.h.bf16 %v8218_v2  ;;  %v8219_v22 = vunpack.i.l.bf16 %v8218_v2  ;;  %v3895_v38 = vpack.c.bf16 %v3539_v34, %v3538_v33  ;;  %v1693_v34 = vsel %vm1664_vm5, %v10027_v30, %v10152_v27 }
 0x4d0   : > { %v8228_v8 = vpop.permute.xlu0 %8227  ;;  %v3816_v53 = vsel %vm1694_vm0, %v3489_v12, %v8220_v50  ;;  %v3815_v11 = vsel %vm1694_vm0, %v3488_v26, %v8219_v22  ;;  %v1842_v50 = vsel %vm1814_vm9, %v10111_v21, %v10009_v63 }
 0x4d1   : > { %v8230_v46 = vunpack.i.h.bf16 %v8228_v8  ;;  %v8229_v9 = vunpack.i.l.bf16 %v8228_v8  ;;  %v8233_v3 = vpop.permute.xlu1 %8232  ;;  %v3826_v49 = vsel %vm1814_vm9, %v3815_v11, %v8224_v58  ;;  %v3827_v59 = vsel %vm1814_vm9, %v3816_v53, %v8225_v4 }
 0x4d2   : > { %v8235_v60 = vunpack.i.h.bf16 %v8233_v3  ;;  %v8234_v39 = vunpack.i.l.bf16 %v8233_v3 }
 0x4d3   : > { %v3879_v7 = vsel %vm3154_vm15, %v3868_v45, %v8229_v9  ;;  %v3880_v52 = vsel %vm3154_vm15, %v3869_v43, %v8230_v46  ;;  %v3491_v9 = vld [vmem:[#allocation5 + $0x48] sm:$0xff]  ;;  %v3490_v43 = vld [vmem:[#allocation5 + $0x40] sm:$0xff] }
 0x4d4   : > { %v8238_v10 = vpop.permute.xlu0 %8237  ;;  %v3890_v5 = vpack.c.bf16 %v3880_v52, %v3879_v7  ;;  %v3837_v61 = vsel %vm3106_vm13, %v3826_v49, %v8234_v39  ;;  %v3838_v57 = vsel %vm3106_vm13, %v3827_v59, %v8235_v60  ;;  %v3492_v60 = vld [vmem:[#allocation5 + $0x50] sm:$0xff] }
 0x4d5   : > { %v8243_v42 = vpop.permute.xlu1 %8242  ;;  %v8240_v62 = vunpack.i.h.bf16 %v8238_v10  ;;  %v8239_v40 = vunpack.i.l.bf16 %v8238_v10 }
 0x4d6   : > { %4044 = vmatmul.mubr.bf16.gmra.mxu1 %v3890_v5  ;;  %v8245_v14 = vunpack.i.h.bf16 %v8243_v42  ;;  %v8244_v15 = vunpack.i.l.bf16 %v8243_v42 }
 0x4d7   : > { %6888 = vmatprep.mubr.msk.bf16.mxu1 %vm1694_vm0, %v3893_v0  ;;  %v3848_v17 = vsel %vm3118_vm14, %v3837_v61, %v8239_v40  ;;  %v3849_v19 = vsel %vm3118_vm14, %v3838_v57, %v8240_v62  ;;  %v3540_v61 = vld [vmem:[#allocation5 + $0x64] sm:$0xff] }
 0x4d8   : > { %v8248_v41 = vpop.permute.xlu0 %8247  ;;  %v3859_v28 = vsel %vm3130_vm11, %v3848_v17, %v8244_v15  ;;  %v3860_v36 = vsel %vm3130_vm11, %v3849_v19, %v8245_v14 }
 0x4d9   : > { %v8258_v13 = vpop.permute.xlu1 %8257  ;;  %v8250_v20 = vunpack.i.h.bf16 %v8248_v41  ;;  %v8249_v55 = vunpack.i.l.bf16 %v8248_v41 }
 0x4da   : > { %v8260_v0 = vunpack.i.h.bf16 %v8258_v13  ;;  %v8259_v26 = vunpack.i.l.bf16 %v8258_v13 }
 0x4db   : > { %v3870_v31 = vsel %vm3142_vm12, %v3859_v28, %v8249_v55  ;;  %v3871_v23 = vsel %vm3142_vm12, %v3860_v36, %v8250_v20  ;;  %v3897_v36 = vpack.c.bf16 %v3540_v61, %v3540_v61 }
 0x4dc   : > { %v8253_v24 = vpop.permute.xlu0 %8252 }
 0x4dd   : > { %v8263_v18 = vpop.permute.xlu1 %8262  ;;  %v8255_v48 = vunpack.i.h.bf16 %v8253_v24  ;;  %v8254_v25 = vunpack.i.l.bf16 %v8253_v24 }
 0x4de   : > { %v8265_v29 = vunpack.i.h.bf16 %v8263_v18  ;;  %v8264_v56 = vunpack.i.l.bf16 %v8263_v18 }
 0x4df   : > { %v3818_v3 = vsel %vm1694_vm0, %v3491_v9, %v8255_v48  ;;  %v3817_v7 = vsel %vm1694_vm0, %v3490_v43, %v8254_v25  ;;  %v10322_v9 = vld [vmem:[%s11120_s6] ss:$0 sm:$0xff] }
 0x4e0   : > { %v8268_v32 = vpop.permute.xlu0 %8267  ;;  %v3881_v51 = vsel %vm3154_vm15, %v3870_v31, %v8264_v56  ;;  %v3882_v35 = vsel %vm3154_vm15, %v3871_v23, %v8265_v29  ;;  %v3828_v63 = vsel %vm1814_vm9, %v3817_v7, %v8259_v26 }
 0x4e1   : > { %v10274_v1 = vpop.permute.xlu1 %8277  ;;  %v3892_v37 = vpack.c.bf16 %v3882_v35, %v3881_v51  ;;  %v8269_v52 = vunpack.i.l.bf16 %v8268_v32  ;;  %v8270_v12 = vunpack.i.h.bf16 %v8268_v32 }
 0x4e2   : > { %v8279_v47 = vunpack.i.l.bf16 %v10274_v1  ;;  %v8280_v29 = vunpack.i.h.bf16 %v10274_v1 }
 0x4e3   : > { %4052 = vmatmul.mubr.bf16.gmra.mxu1 %v3892_v37  ;;  %v3839_v58 = vsel %vm3106_vm13, %v3828_v63, %v8269_v52 }
 0x4e4   : > { %v8273_v2 = vpop.permute.xlu0 %8272  ;;  %6889 = vmatprep.mubr.msk.bf16.mxu1 %vm1694_vm0, %v3895_v38  ;;  %v3819_v4 = vsel %vm1694_vm0, %v3492_v60, %v8279_v47  ;;  %v1723_v37 = vsel %vm1694_vm0, %v1693_v34, %v8280_v29 }
 0x4e5   : > { %v8283_v8 = vpop.permute.xlu1 %8282  ;;  %v8274_v42 = vunpack.i.l.bf16 %v8273_v2  ;;  %v8275_v53 = vunpack.i.h.bf16 %v8273_v2 }
 0x4e6   : > { %v8285_v46 = vunpack.i.h.bf16 %v8283_v8  ;;  %v8284_v5 = vunpack.i.l.bf16 %v8283_v8 }
 0x4e7   : > { %v3850_v13 = vsel %vm3118_vm14, %v3839_v58, %v8274_v42 }
 0x4e8   : > { %v8288_v45 = vpop.permute.xlu0 %8287  ;;  %v1841_v22 = vsel %vm1814_vm9, %v10107_v44, %v8285_v46  ;;  %v3829_v44 = vsel %vm1814_vm9, %v3818_v3, %v8260_v0  ;;  %v3830_v62 = vsel %vm1814_vm9, %v3819_v4, %v8284_v5  ;;  %v4075_v3 = vld [vmem:[#allocation4 + $0xa] sm:$0xff] }
 0x4e9   : > { %v1857_v10 = vpack.c.bf16 %v1842_v50, %v1841_v22  ;;  %v3651_v6 = vpop.permute.xlu1 %3650  ;;  %v8289_v11 = vunpack.i.l.bf16 %v8288_v45  ;;  %v8290_v21 = vunpack.i.h.bf16 %v8288_v45  ;;  %v3840_v59 = vsel %vm3106_vm13, %v3829_v44, %v8270_v12  ;;  %v4077_v44 = vld [vmem:[#allocation4 + $0x1a] sm:$0xff] }
 0x4ea   : > { %v3851_v57 = vsel %vm3118_vm14, %v3840_v59, %v8275_v53 }
 0x4eb   : > { %7210 = vmatmul.mubr.msk.bf16.gmra.mxu0 %vm1886_vm10, %v1857_v10  ;;  %v3861_v14 = vsel %vm3130_vm11, %v3850_v13, %v8289_v11  ;;  %v3862_v17 = vsel %vm3130_vm11, %v3851_v57, %v8290_v21  ;;  %v4076_v10 = vld [vmem:[#allocation4 + $0x12] sm:$0xff] }
 0x4ec   : > { %v8293_v39 = vpop.permute.xlu0 %8292  ;;  %7213 = vmatprep.mubr.msk.bf16.mxu0 %vm11192_vm3, %v8821_v16  ;;  %v3841_v16 = vsel %vm3106_vm13, %v3830_v62, %v3651_v6 }
 0x4ed   : > { %v8295_v40 = vunpack.i.h.bf16 %v8293_v39  ;;  %v8294_v41 = vunpack.i.l.bf16 %v8293_v39  ;;  %v3685_v49 = vpop.permute.xlu1 %3684 }
 0x4ee   : > { %v3852_v18 = vsel %vm3118_vm14, %v3841_v16, %v3685_v49 }
 0x4ef   : > { %v3872_v55 = vsel %vm3142_vm12, %v3861_v14, %v8294_v41  ;;  %v3873_v24 = vsel %vm3142_vm12, %v3862_v17, %v8295_v40  ;;  %v4078_v41 = vld [vmem:[#allocation4 + $0x22] sm:$0xff] }
 0x4f0   : > { %v8298_v15 = vpop.permute.xlu0 %8297 }
 0x4f1   : > { %v8300_v19 = vunpack.i.h.bf16 %v8298_v15  ;;  %v8299_v20 = vunpack.i.l.bf16 %v8298_v15  ;;  %v3729_v28 = vpop.permute.xlu1 %3728 }
 0x4f2   : > { %v3863_v56 = vsel %vm3130_vm11, %v3852_v18, %v3729_v28 }
 0x4f3   : > { %v3883_v31 = vsel %vm3154_vm15, %v3872_v55, %v8299_v20  ;;  %v3884_v23 = vsel %vm3154_vm15, %v3873_v24, %v8300_v19  ;;  %v3874_v51 = vsel %vm3142_vm12, %v3863_v56, %v10157_v54  ;;  %v4079_v55 = vld [vmem:[#allocation4 + $0x2a] sm:$0xff]  ;;  %v4080_v56 = vld [vmem:[#allocation4 + $0x32] sm:$0xff] }
 0x4f4   : > { %v3797_v32 = vpop.permute.xlu0 %3796  ;;  %v3894_v33 = vpack.c.bf16 %v3884_v23, %v3883_v31 }
 0x4f5   : > { %v1280_v35 = vpop.permute.xlu1 %1279  ;;  %v3885_v2 = vsel %vm3154_vm15, %v3874_v51, %v3797_v32 }
 0x4f6   : > { %4060 = vmatmul.mubr.bf16.gmra.mxu1 %v3894_v33  ;;  %v1753_v1 = vsel %vm1724_vm6, %v1723_v37, %v1280_v35  ;;  %v3896_v8 = vpack.c.bf16 %v3885_v2, %v3885_v2 }
 0x4f7   : > { %6890 = vmatprep.mubr.msk.bf16.mxu1 %vm1694_vm0, %v3897_v36 }
 0x4f8   : > { %v1396_v38 = vpop.permute.xlu0 %1395 }
 0x4f9   : > { %v1783_v48 = vsel %vm1754_vm7, %v1753_v1, %v1396_v38  ;;  %v1485_v25 = vpop.permute.xlu1 %1484 }
 0x4fa   : > { %v1813_v30 = vsel %vm1784_vm8, %v1783_v48, %v1485_v25  ;;  %v4081_v48 = vld [vmem:[#allocation4 + $0x3a] sm:$0xff] }
 0x4fc   : > { %v1574_v27 = vpop.permute.xlu0 %1573 }
 0x4fd   : > { %v1843_v54 = vsel %vm1814_vm9, %v1813_v30, %v1574_v27 }
 0x4fe   : > { %v1858_v46 = vpack.c.bf16 %v1843_v54, %v1843_v54  ;;  %4068 = vmatmul.mubr.bf16.gmra.mxu1 %v3896_v8 }
 0x500   : > { %7214 = vmatmul.mubr.msk.bf16.gmra.mxu0 %vm1886_vm10, %v1858_v46  ;;  %v4082_v46 = vld [vmem:[#allocation4 + $0x42] sm:$0xff] }
 0x506   : > { %v4144_v6 = vpop.permute.xlu1 %4143 }
 0x509   : > { %v4149_v53 = vpop.permute.xlu0 %4148 }
 0x50a   : > { %v4154_v59 = vpop.permute.xlu1 %4153 }
 0x50d   : > { %v4159_v15 = vpop.permute.xlu0 %4158 }
 0x50e   : > { %v4164_v23 = vpop.permute.xlu1 %4163 }
 0x511   : > { %v4169_v35 = vpop.permute.xlu0 %4168 }
 0x547   : > { %v4029_v45 = vpop.f32.mrf.mxu1 }
 0x548   : > { %v4030_v43 = vadd.f32 %v10322_v9, %v4029_v45 }
 0x549   : > { %v4031_v47 = vpop.f32.mrf.mxu1 }
 0x54a   : > { %v4086_v50 = vadd.f32 %v4075_v3, %v4030_v43  ;;  %v4174_v43 = vpop.permute.xlu1 %4173 }
 0x54b   : > { %v4032_v22 = vpop.f32.mrf.mxu1 }
 0x54c   : > { %vm4097_vm5 = vcmp.ge.f32.partialorder %v4086_v50, 0.0  ;;  %v4108_v7 = vmul.f32 0.01, %v4086_v50  ;;  %v4033_v52 = vadd.f32 %v10322_v9, %v4032_v22 }
 0x54d   : > { %v4034_v5 = vpop.f32.mrf.mxu1 }
 0x54e   : > { %v4119_v0 = vsel %vm4097_vm5, %v4086_v50, %v4108_v7  ;;  %v4087_v26 = vadd.f32 %v4076_v10, %v4033_v52  ;;  %v4179_v10 = vpop.permute.xlu0 %4178 }
 0x54f   : > { %v4196_v12 = vmul.f32 %v4144_v6, %v4119_v0 }
 0x550   : > { %vm4098_vm6 = vcmp.ge.f32.partialorder %v4087_v26, 0.0  ;;  %v4109_v42 = vmul.f32 0.01, %v4087_v26 }
 0x551   : > { %4209 = vst.msk [vmem:[#allocation2 + $0xa] sm:$0xff] %vm1694_vm0, %v4196_v12 }
 0x552   : > { %v4120_v11 = vsel %vm4098_vm6, %v4087_v26, %v4109_v42  ;;  %v4083_v42 = vld [vmem:[#allocation4 + $0x4a] sm:$0xff] }
 0x553   : > { %v4197_v60 = vmul.f32 %v4149_v53, %v4120_v11 }
 0x555   : > { %4210 = vst.msk [vmem:[#allocation2 + $0x12] sm:$0xff] %vm1694_vm0, %v4197_v60 }
 0x587   : > { %v4037_v39 = vpop.f32.mrf.mxu1 }
 0x588   : > { %v4038_v63 = vadd.f32 %v10322_v9, %v4037_v39 }
 0x589   : > { %v4039_v21 = vpop.f32.mrf.mxu1 }
 0x58a   : > { %v4088_v4 = vadd.f32 %v4077_v44, %v4038_v63  ;;  %v4084_v63 = vld [vmem:[#allocation4 + $0x52] sm:$0xff] }
 0x58b   : > { %v4040_v58 = vpop.f32.mrf.mxu1 }
 0x58c   : > { %vm4099_vm7 = vcmp.ge.f32.partialorder %v4088_v4, 0.0  ;;  %v4110_v62 = vmul.f32 0.01, %v4088_v4  ;;  %v4041_v40 = vadd.f32 %v10322_v9, %v4040_v58  ;;  %v4184_v58 = vpop.permute.xlu1 %4183 }
 0x58d   : > { %v4042_v49 = vpop.f32.mrf.mxu1 }
 0x58e   : > { %v4121_v13 = vsel %vm4099_vm7, %v4088_v4, %v4110_v62  ;;  %v4089_v61 = vadd.f32 %v4078_v41, %v4041_v40 }
 0x58f   : > { %v4198_v57 = vmul.f32 %v4154_v59, %v4121_v13  ;;  %v4085_v59 = vld [vmem:[#allocation4 + $0x5a] sm:$0xff] }
 0x590   : > { %vm4100_vm8 = vcmp.ge.f32.partialorder %v4089_v61, 0.0  ;;  %v4111_v14 = vmul.f32 0.01, %v4089_v61 }
 0x591   : > { %4211 = vst.msk [vmem:[#allocation2 + $0x1a] sm:$0xff] %vm1694_vm0, %v4198_v57 }
 0x592   : > { %v4122_v17 = vsel %vm4100_vm8, %v4089_v61, %v4111_v14 }
 0x593   : > { %v4199_v16 = vmul.f32 %v4159_v15, %v4122_v17  ;;  %v4189_v15 = vpop.permute.xlu0 %4188 }
 0x595   : > { %4212 = vst.msk [vmem:[#allocation2 + $0x22] sm:$0xff] %vm1694_vm0, %v4199_v16 }
 0x596   : > { %v4045_v19 = vpop.f32.mrf.mxu1 }
 0x597   : > { %v4046_v20 = vadd.f32 %v10322_v9, %v4045_v19 }
 0x598   : > { %v4047_v24 = vpop.f32.mrf.mxu1 }
 0x599   : > { %v4090_v18 = vadd.f32 %v4079_v55, %v4046_v20 }
 0x59a   : > { %v4048_v28 = vpop.f32.mrf.mxu1 }
 0x59b   : > { %vm4101_vm10 = vcmp.ge.f32.partialorder %v4090_v18, 0.0  ;;  %v4112_v36 = vmul.f32 0.01, %v4090_v18  ;;  %v4049_v29 = vadd.f32 %v10322_v9, %v4048_v28 }
 0x59c   : > { %v4050_v31 = vpop.f32.mrf.mxu1 }
 0x59d   : > { %v4123_v32 = vsel %vm4101_vm10, %v4090_v18, %v4112_v36  ;;  %v4091_v33 = vadd.f32 %v4080_v56, %v4049_v29  ;;  %v4194_v36 = vpop.permute.xlu1 %4193 }
 0x59e   : > { %v4200_v34 = vmul.f32 %v4164_v23, %v4123_v32 }
 0x59f   : > { %vm4102_vm2 = vcmp.ge.f32.partialorder %v4091_v33, 0.0  ;;  %v4113_v51 = vmul.f32 0.01, %v4091_v33 }
 0x5a0   : > { %4213 = vst.msk [vmem:[#allocation2 + $0x2a] sm:$0xff] %vm1694_vm0, %v4200_v34 }
 0x5a1   : > { %v4124_v37 = vsel %vm4102_vm2, %v4091_v33, %v4113_v51 }
 0x5a2   : > { %v4201_v1 = vmul.f32 %v4169_v35, %v4124_v37 }
 0x5a3   : > { %v4053_v38 = vpop.f32.mrf.mxu1 }
 0x5a4   : > { %4214 = vst.msk [vmem:[#allocation2 + $0x32] sm:$0xff] %vm1694_vm0, %v4201_v1  ;;  %v4054_v2 = vadd.f32 %v10322_v9, %v4053_v38 }
 0x5a5   : > { %v4055_v25 = vpop.f32.mrf.mxu1 }
 0x5a6   : > { %v4092_v8 = vadd.f32 %v4081_v48, %v4054_v2 }
 0x5a7   : > { %v4056_v30 = vpop.f32.mrf.mxu1 }
 0x5a8   : > { %vm4103_vm1 = vcmp.ge.f32.partialorder %v4092_v8, 0.0  ;;  %v4114_v27 = vmul.f32 0.01, %v4092_v8  ;;  %v4057_v54 = vadd.f32 %v10322_v9, %v4056_v30 }
 0x5a9   : > { %v4058_v45 = vpop.f32.mrf.mxu1 }
 0x5aa   : > { %v4125_v3 = vsel %vm4103_vm1, %v4092_v8, %v4114_v27  ;;  %v4093_v47 = vadd.f32 %v4082_v46, %v4057_v54 }
 0x5ab   : > { %v4202_v50 = vmul.f32 %v4174_v43, %v4125_v3  ;;  %v2074_v22 = vpop.f32.mrf.mxu0 }
 0x5ac   : > { %vm4104_vm3 = vcmp.ge.f32.partialorder %v4093_v47, 0.0  ;;  %v4115_v7 = vmul.f32 0.01, %v4093_v47 }
 0x5ad   : > { %4215 = vst.msk [vmem:[#allocation2 + $0x3a] sm:$0xff] %vm1694_vm0, %v4202_v50  ;;  %v7211_v52 = vpop.f32.mrf.mxu0 }
 0x5ae   : > { %v4126_v5 = vsel %vm4104_vm3, %v4093_v47, %v4115_v7 }
 0x5af   : > { %v4203_v6 = vmul.f32 %v4179_v10, %v4126_v5  ;;  %v2077_v0 = vpop.f32.mrf.mxu0 }
 0x5b1   : > { %4216 = vst.msk [vmem:[#allocation2 + $0x42] sm:$0xff] %vm1694_vm0, %v4203_v6  ;;  %v7212_v26 = vpop.f32.mrf.mxu0 }
 0x5b6   : > { %v4061_v12 = vpop.f32.mrf.mxu1 }
 0x5b7   : > { %v4062_v53 = vadd.f32 %v10322_v9, %v4061_v12 }
 0x5b8   : > { %v4063_v11 = vpop.f32.mrf.mxu1 }
 0x5b9   : > { %v4094_v60 = vadd.f32 %v4083_v42, %v4062_v53 }
 0x5ba   : > { %v4064_v39 = vpop.f32.mrf.mxu1 }
 0x5bb   : > { %vm4105_vm5 = vcmp.ge.f32.partialorder %v4094_v60, 0.0  ;;  %v4116_v44 = vmul.f32 0.01, %v4094_v60  ;;  %v4065_v21 = vadd.f32 %v10322_v9, %v4064_v39 }
 0x5bc   : > { %v4066_v4 = vpop.f32.mrf.mxu1 }
 0x5bd   : > { %v4127_v62 = vsel %vm4105_vm5, %v4094_v60, %v4116_v44  ;;  %v4095_v40 = vadd.f32 %v4084_v63, %v4065_v21 }
 0x5be   : > { %v4204_v41 = vmul.f32 %v4184_v58, %v4127_v62  ;;  %v4069_v49 = vpop.f32.mrf.mxu1 }
 0x5bf   : > { %vm4106_vm6 = vcmp.ge.f32.partialorder %v4095_v40, 0.0  ;;  %v4117_v13 = vmul.f32 0.01, %v4095_v40  ;;  %v4070_v61 = vadd.f32 %v10322_v9, %v4069_v49 }
 0x5c0   : > { %4217 = vst.msk [vmem:[#allocation2 + $0x4a] sm:$0xff] %vm1694_vm0, %v4204_v41  ;;  %v2082_v57 = vpop.f32.mrf.mxu0  ;;  %v4071_v14 = vpop.f32.mrf.mxu1 }
 0x5c1   : > { %v4128_v17 = vsel %vm4106_vm6, %v4095_v40, %v4117_v13  ;;  %v4096_v16 = vadd.f32 %v4085_v59, %v4070_v61 }
 0x5c2   : > { %v4205_v19 = vmul.f32 %v4189_v15, %v4128_v17  ;;  %v7215_v20 = vpop.f32.mrf.mxu0  ;;  %v4072_v55 = vpop.f32.mrf.mxu1 }
 0x5c3   : > { %vm4107_vm7 = vcmp.ge.f32.partialorder %v4096_v16, 0.0  ;;  %v4118_v24 = vmul.f32 0.01, %v4096_v16 }
 0x5c4   : > { %4218 = vst.msk [vmem:[#allocation2 + $0x52] sm:$0xff] %vm1694_vm0, %v4205_v19  ;;  %v2085_v18 = vpop.f32.mrf.mxu0  ;;  %v4073_v28 = vpop.f32.mrf.mxu1 }
 0x5c5   : > { %v4129_v29 = vsel %vm4107_vm7, %v4096_v16, %v4118_v24 }
 0x5c6   : > { %v4206_v56 = vmul.f32 %v4194_v36, %v4129_v29  ;;  %v7216_v9 = vpop.f32.mrf.mxu0 }
 0x5c8   : > { %4219 = vst.msk [vmem:[#allocation2 + $0x5a] sm:$0xff] %vm1694_vm0, %v4206_v56 }
 0x5c9   : > { %v4233_v31 = vld [vmem:[#allocation2 + $0x1] sm:$0xff]  ;;  %v4234_v23 = vld [vmem:[#allocation2 + $0x9] sm:$0xff]  ;;  %v4235_v32 = vld [vmem:[#allocation2 + $0x11] sm:$0xff]  ;;  %v8835_v37 = vmov 0   ;;  %s8836_s2 = smov 16   ;;  %s8837_s27 = smov 48  }
 0x5ca   : > { %v8344_v33 = vpack.i.bf16 %v4234_v23, %v4233_v31  ;;  %v8354_v34 = vpack.i.bf16 %v4235_v32, %v4234_v23  ;;  %v4244_v51 = vld [vmem:[#allocation2 + $0x2] sm:$0xff]  ;;  %v4245_v35 = vld [vmem:[#allocation2 + $0xa] sm:$0xff]  ;;  %4742 = vmatprep.subr.bf16.mxu0 %v8835_v37  ;;  %8594 = vset.pattern.permute.xlu1 %v8835_v37  ;;  %v4246_v1 = vld [vmem:[#allocation2 + $0x12] sm:$0xff]  ;;  %s8838_s1 = smov 32   ;;  %s8839_s29 = smov 64   ;;  %vm8844_vm8 = vmmov 0  }
 0x5cb   : > { %8595 = vset.pattern.permute.xlu0 %v8835_v37  ;;  %v8349_v38 = vpack.i.bf16 %v4245_v35, %v4244_v51  ;;  %v8359_v2 = vpack.i.bf16 %v4246_v1, %v4245_v35  ;;  %v4257_v48 = vld [vmem:[#allocation2 + $0xb] sm:$0xff]  ;;  %v4258_v25 = vld [vmem:[#allocation2 + $0x13] sm:$0xff]  ;;  %v4259_v46 = vld [vmem:[#allocation2 + $0x1b] sm:$0xff]  ;;  %s8840_s19 = smov 80   ;;  %s8841_s24 = smov 96   ;;  %vm4880_vm1 = vcmask 1040384  }
 0x5cc   : > { %8345 = vrot.lane.b32.xlu0 %v8344_v33, %s8836_s2  ;;  %8355 = vrot.lane.b32.xlu1 %v8354_v34, %s8837_s27  ;;  %v4247_v8 = vld [vmem:[#allocation2 + $0x1a] sm:$0xff]  ;;  %v8364_v30 = vpack.i.bf16 %v4258_v25, %v4257_v48  ;;  %v8374_v3 = vpack.i.bf16 %v4259_v46, %v4258_v25  ;;  %v8672_v50 = vld [vmem:[%s11123_s9 + $0x30] sm:$0xff]   ;;  %v4248_v22 = vld [vmem:[#allocation2 + $0x22] sm:$0xff]  ;;  %s8842_s20 = smov 112   ;;  %vm4876_vm5 = vcmask 72704   ;;  %s8849_s7 = smov 96  }
 0x5cd   : > { %v8369_v27 = vpack.i.bf16 %v4247_v8, %v4246_v1  ;;  %v4236_v54 = vld [vmem:[#allocation2 + $0x19] sm:$0xff]  ;;  %v4237_v47 = vld [vmem:[#allocation2 + $0x21] sm:$0xff]  ;;  %v8394_v5 = vpack.i.bf16 %v4248_v22, %v4247_v8  ;;  %v4249_v0 = vld [vmem:[#allocation2 + $0x2a] sm:$0xff] }
 0x5ce   : > { %v8671_v45 = vld [vmem:[%s11123_s9 + $0x38] sm:$0xff]   ;;  %v8379_v43 = vpack.i.bf16 %v4236_v54, %v4235_v32  ;;  %v8389_v7 = vpack.i.bf16 %v4237_v47, %v4236_v54  ;;  %v4260_v52 = vld [vmem:[#allocation2 + $0x23] sm:$0xff]  ;;  %v4261_v12 = vld [vmem:[#allocation2 + $0x2b] sm:$0xff]  ;;  %v8404_v39 = vpack.i.bf16 %v4249_v0, %v4248_v22 }
 0x5cf   : > { %4743 = vmatpush1.bf16.msra.mxu0 %v8671_v45  ;;  %v8673_v10 = vld [vmem:[%s11123_s9 + $0x28] sm:$0xff]   ;;  %v8399_v6 = vpack.i.bf16 %v4260_v52, %v4259_v46  ;;  %v4270_v26 = vld [vmem:[#allocation2 + $0x14] sm:$0xff]  ;;  %v8674_v42 = vld [vmem:[%s11123_s9 + $0x20] sm:$0xff]   ;;  %v8409_v63 = vpack.i.bf16 %v4261_v12, %v4260_v52 }
 0x5d0   : > { %8350 = vrot.lane.b32.xlu0 %v8349_v38, %s8838_s1  ;;  %8360 = vrot.lane.b32.xlu1 %v8359_v2, %s8839_s29  ;;  %v4271_v53 = vld [vmem:[#allocation2 + $0x1c] sm:$0xff]  ;;  %v4238_v44 = vld [vmem:[#allocation2 + $0x29] sm:$0xff]  ;;  %v4239_v21 = vld [vmem:[#allocation2 + $0x31] sm:$0xff] }
 0x5d1   : > { %4744 = vmatprep.subr.bf16.mxu0 %v8835_v37  ;;  %v4634_v11 = vpack.c.bf16 %v4271_v53, %v4270_v26  ;;  %v8675_v60 = vld [vmem:[%s11123_s9 + $0x18] sm:$0xff]   ;;  %v8676_v4 = vld [vmem:[%s11123_s9 + $0x10] sm:$0xff]   ;;  %v8414_v58 = vpack.i.bf16 %v4238_v44, %v4237_v47  ;;  %v8424_v40 = vpack.i.bf16 %v4239_v21, %v4238_v44  ;;  %v8677_v13 = vld [vmem:[%s11123_s9 + $0x8] sm:$0xff]  }
 0x5d2   : > { %v4250_v62 = vld [vmem:[#allocation2 + $0x32] sm:$0xff]  ;;  %v4251_v59 = vld [vmem:[#allocation2 + $0x3a] sm:$0xff]  ;;  %v4252_v24 = vld [vmem:[#allocation2 + $0x42] sm:$0xff] }
 0x5d3   : > { %4745 = vmatpush1.bf16.msra.mxu0 %v8672_v50  ;;  %6901 = vmatprep.mubr.msk.bf16.mxu0 %vm1694_vm0, %v4634_v11  ;;  %v8429_v41 = vpack.i.bf16 %v4250_v62, %v4249_v0  ;;  %v4262_v49 = vld [vmem:[#allocation2 + $0x33] sm:$0xff]  ;;  %v4263_v61 = vld [vmem:[#allocation2 + $0x3b] sm:$0xff]  ;;  %v8439_v15 = vpack.i.bf16 %v4251_v59, %v4250_v62  ;;  %v4264_v28 = vld [vmem:[#allocation2 + $0x43] sm:$0xff]  ;;  %v8464_v36 = vpack.i.bf16 %v4252_v24, %v4251_v59 }
 0x5d4   : > { %8365 = vrot.lane.b32.xlu0 %v8364_v30, %s8840_s19  ;;  %8370 = vrot.lane.b32.xlu1 %v8369_v27, %s8841_s24  ;;  %v8678_v57 = vld [vmem:[%s11123_s9] sm:$0xff]   ;;  %v8434_v14 = vpack.i.bf16 %v4262_v49, %v4261_v12  ;;  %v8444_v19 = vpack.i.bf16 %v4263_v61, %v4262_v49  ;;  %v8469_v29 = vpack.i.bf16 %v4264_v28, %v4263_v61  ;;  %v10412_v56 = vld [vmem:[#allocation2 + $0x4a] sm:$0xff] }
 0x5d5   : > { %4746 = vmatprep.subr.bf16.mxu0 %v8835_v37  ;;  %v4240_v17 = vld [vmem:[#allocation2 + $0x39] sm:$0xff]  ;;  %v10404_v55 = vld [vmem:[#allocation2 + $0x41] sm:$0xff]  ;;  %v10414_v9 = vld [vmem:[#allocation2 + $0x4b] sm:$0xff]  ;;  %v10419_v31 = vpack.i.bf16 %v10412_v56, %v4252_v24 }
 0x5d6   : > { %v8679_v16 = vld [vmem:[%s11123_s9 + $0x40] sm:$0xff]   ;;  %v8449_v20 = vpack.i.bf16 %v4240_v17, %v4239_v21  ;;  %v8459_v18 = vpack.i.bf16 %v10404_v55, %v4240_v17  ;;  %v8479_v23 = vpack.i.bf16 %v10414_v9, %v4264_v28 }
 0x5d7   : > { %4747 = vmatpush1.bf16.msra.mxu0 %v8673_v10  ;;  %v4222_v35 = vld [vmem:[#allocation2] sm:$0xff] }
 0x5d8   : > { %8375 = vrot.lane.b32.xlu0 %v8374_v3, %s8842_s20  ;;  %8380 = vrot.lane.b32.xlu1 %v8379_v43, %s8836_s2  ;;  %v4272_v11 = vld [vmem:[#allocation2 + $0x24] sm:$0xff] }
 0x5d9   : > { %4748 = vmatprep.subr.bf16.mxu0 %v8835_v37 }
 0x5db   : > { %4749 = vmatpush1.bf16.msra.mxu0 %v8674_v42 }
 0x5dc   : > { %8385 = vrot.lane.b32.xlu0 %v8369_v27, %s8838_s1  ;;  %8390 = vrot.lane.b32.xlu1 %v8389_v7, %s8837_s27 }
 0x5dd   : > { %4750 = vmatprep.subr.bf16.mxu0 %v8835_v37 }
 0x5df   : > { %4751 = vmatpush1.bf16.msra.mxu0 %v8675_v60  ;;  %v4273_v60 = vld [vmem:[#allocation2 + $0x2c] sm:$0xff] }
 0x5e0   : > { %8395 = vrot.lane.b32.xlu0 %v8394_v5, %s8839_s29  ;;  %8400 = vrot.lane.b32.xlu1 %v8399_v6, %s8840_s19  ;;  %v4636_v59 = vpack.c.bf16 %v4273_v60, %v4272_v11 }
 0x5e1   : > { %4752 = vmatprep.subr.bf16.mxu0 %v8835_v37 }
 0x5e3   : > { %4753 = vmatpush1.bf16.msra.mxu0 %v8676_v4  ;;  %v4224_v4 = vld [vmem:[#allocation2 + $0x10] sm:$0xff] }
 0x5e4   : > { %8405 = vrot.lane.b32.xlu0 %v8404_v39, %s8841_s24  ;;  %8410 = vrot.lane.b32.xlu1 %v8409_v63, %s8842_s20 }
 0x5e5   : > { %4754 = vmatprep.subr.bf16.mxu0 %v8835_v37 }
 0x5e7   : > { %4755 = vmatpush1.bf16.msra.mxu0 %v8677_v13 }
 0x5e8   : > { %8415 = vrot.lane.b32.xlu0 %v8414_v58, %s8836_s2  ;;  %8420 = vrot.lane.b32.xlu1 %v8404_v39, %s8838_s1  ;;  %v4225_v58 = vld [vmem:[#allocation2 + $0x18] sm:$0xff] }
 0x5e9   : > { %4756 = vmatprep.subr.bf16.mxu0 %v8835_v37 }
 0x5eb   : > { %4757 = vmatpush1.bf16.msra.mxu0 %v8678_v57 }
 0x5ec   : > { %8425 = vrot.lane.b32.xlu0 %v8424_v40, %s8837_s27  ;;  %8430 = vrot.lane.b32.xlu1 %v8429_v41, %s8839_s29 }
 0x5ed   : > { %4772 = vmatprep.subr.bf16.mxu0 %v8835_v37  ;;  %v4223_v37 = vld [vmem:[#allocation2 + $0x8] sm:$0xff] }
 0x5ef   : > { %4773 = vmatpush2.bf16.msra.mxu0 %v8679_v16 }
 0x5f0   : > { %8435 = vrot.lane.b32.xlu0 %v8434_v14, %s8840_s19  ;;  %8440 = vrot.lane.b32.xlu1 %v8439_v15, %s8841_s24 }
 0x5f4   : > { %8445 = vrot.lane.b32.xlu0 %v8444_v19, %s8842_s20  ;;  %8450 = vrot.lane.b32.xlu1 %v8449_v20, %s8836_s2 }
 0x5f8   : > { %8455 = vrot.lane.b32.xlu0 %v8439_v15, %s8838_s1  ;;  %8460 = vrot.lane.b32.xlu1 %v8459_v18, %s8837_s27 }
 0x5fc   : > { %8465 = vrot.lane.b32.xlu0 %v8464_v36, %s8839_s29  ;;  %8470 = vrot.lane.b32.xlu1 %v8469_v29, %s8840_s19 }
 0x600   : > { %8475 = vrot.lane.b32.xlu0 %v10419_v31, %s8841_s24  ;;  %8480 = vrot.lane.b32.xlu1 %v8479_v23, %s8842_s20 }
 0x604   : > { %8490 = vrot.lane.b32.xlu1 %v10419_v31, %s8838_s1 }
 0x63e   : > { %v8346_v32 = vpop.permute.xlu0 %8345  ;;  %v8356_v33 = vpop.permute.xlu1 %8355 }
 0x63f   : > { %v8348_v34 = vunpack.i.h.bf16 %v8346_v32  ;;  %v8347_v51 = vunpack.i.l.bf16 %v8346_v32  ;;  %v8358_v54 = vunpack.i.h.bf16 %v8356_v33  ;;  %v8357_v46 = vunpack.i.l.bf16 %v8356_v33 }
 0x641   : > { %v4550_v30 = vsel %vm1694_vm0, %v4222_v35, %v8347_v51  ;;  %v4551_v27 = vsel %vm1694_vm0, %v4223_v37, %v8348_v34 }
 0x642   : > { %v8351_v1 = vpop.permute.xlu0 %8350  ;;  %v8361_v38 = vpop.permute.xlu1 %8360 }
 0x643   : > { %v8353_v2 = vunpack.i.h.bf16 %v8351_v1  ;;  %v8352_v48 = vunpack.i.l.bf16 %v8351_v1  ;;  %v8363_v25 = vunpack.i.h.bf16 %v8361_v38  ;;  %v8362_v8 = vunpack.i.l.bf16 %v8361_v38 }
 0x645   : > { %v4562_v45 = vsel %vm1814_vm9, %v4550_v30, %v8352_v48  ;;  %v4563_v43 = vsel %vm1814_vm9, %v4551_v27, %v8353_v2 }
 0x646   : > { %v4574_v3 = vsel %vm3106_vm13, %v4562_v45, %v8357_v46  ;;  %v4575_v47 = vsel %vm3106_vm13, %v4563_v43, %v8358_v54  ;;  %v8366_v50 = vpop.permute.xlu0 %8365  ;;  %v8371_v22 = vpop.permute.xlu1 %8370  ;;  %v4274_v54 = vld [vmem:[#allocation2 + $0x34] sm:$0xff]  ;;  %v4275_v46 = vld [vmem:[#allocation2 + $0x3c] sm:$0xff] }
 0x647   : > { %v4586_v7 = vsel %vm3118_vm14, %v4574_v3, %v8362_v8  ;;  %v4587_v52 = vsel %vm3118_vm14, %v4575_v47, %v8363_v25  ;;  %v8368_v10 = vunpack.i.h.bf16 %v8366_v50  ;;  %v8367_v5 = vunpack.i.l.bf16 %v8366_v50 }
 0x648   : > { %v8373_v6 = vunpack.i.h.bf16 %v8371_v22  ;;  %v8372_v0 = vunpack.i.l.bf16 %v8371_v22  ;;  %v4226_v22 = vld [vmem:[#allocation2 + $0x20] sm:$0xff] }
 0x649   : > { %v4598_v26 = vsel %vm3130_vm11, %v4586_v7, %v8367_v5  ;;  %v4599_v12 = vsel %vm3130_vm11, %v4587_v52, %v8368_v10  ;;  %v4227_v7 = vld [vmem:[#allocation2 + $0x28] sm:$0xff] }
 0x64a   : > { %v8376_v42 = vpop.permute.xlu0 %8375  ;;  %v8381_v53 = vpop.permute.xlu1 %8380  ;;  %v4610_v62 = vsel %vm3142_vm12, %v4598_v26, %v8372_v0  ;;  %v4611_v40 = vsel %vm3142_vm12, %v4599_v12, %v8373_v6  ;;  %v4638_v6 = vpack.c.bf16 %v4275_v46, %v4274_v54 }
 0x64b   : > { %v8378_v39 = vunpack.i.h.bf16 %v8376_v42  ;;  %v8377_v63 = vunpack.i.l.bf16 %v8376_v42  ;;  %v8383_v44 = vunpack.i.h.bf16 %v8381_v53  ;;  %v8382_v21 = vunpack.i.l.bf16 %v8381_v53 }
 0x64d   : > { %v4622_v41 = vsel %vm3154_vm15, %v4610_v62, %v8377_v63  ;;  %v4623_v49 = vsel %vm3154_vm15, %v4611_v40, %v8378_v39  ;;  %v4552_v13 = vsel %vm1694_vm0, %v4224_v4, %v8382_v21  ;;  %v4553_v61 = vsel %vm1694_vm0, %v4225_v58, %v8383_v44 }
 0x64e   : > { %v8386_v57 = vpop.permute.xlu0 %8385  ;;  %v8391_v14 = vpop.permute.xlu1 %8390  ;;  %v4633_v15 = vpack.c.bf16 %v4623_v49, %v4622_v41 }
 0x64f   : > { %v8388_v17 = vunpack.i.h.bf16 %v8386_v57  ;;  %v8387_v16 = vunpack.i.l.bf16 %v8386_v57  ;;  %v8393_v19 = vunpack.i.h.bf16 %v8391_v14  ;;  %v8392_v20 = vunpack.i.l.bf16 %v8391_v14 }
 0x650   : > { %4775 = vmatmul.mubr.bf16.vlgmr.msra.gmra.mxu0 %v4633_v15 }
 0x651   : > { %v4564_v24 = vsel %vm1814_vm9, %v4552_v13, %v8387_v16  ;;  %v4565_v18 = vsel %vm1814_vm9, %v4553_v61, %v8388_v17  ;;  %6902 = vmatprep.mubr.msk.bf16.mxu0 %vm1694_vm0, %v4636_v59 }
 0x652   : > { %v8396_v28 = vpop.permute.xlu0 %8395  ;;  %v8401_v36 = vpop.permute.xlu1 %8400  ;;  %v4576_v32 = vsel %vm3106_vm13, %v4564_v24, %v8392_v20  ;;  %v4577_v33 = vsel %vm3106_vm13, %v4565_v18, %v8393_v19  ;;  %v4276_v24 = vld [vmem:[#allocation2 + $0x44] sm:$0xff]  ;;  %v4277_v18 = vld [vmem:[#allocation2 + $0x4c] sm:$0xff] }
 0x653   : > { %v8398_v29 = vunpack.i.h.bf16 %v8396_v28  ;;  %v8397_v23 = vunpack.i.l.bf16 %v8396_v28  ;;  %v8403_v34 = vunpack.i.h.bf16 %v8401_v36  ;;  %v8402_v51 = vunpack.i.l.bf16 %v8401_v36 }
 0x655   : > { %v4588_v35 = vsel %vm3118_vm14, %v4576_v32, %v8397_v23  ;;  %v4589_v37 = vsel %vm3118_vm14, %v4577_v33, %v8398_v29  ;;  %v4228_v32 = vld [vmem:[#allocation2 + $0x30] sm:$0xff]  ;;  %v4229_v33 = vld [vmem:[#allocation2 + $0x38] sm:$0xff] }
 0x656   : > { %v8406_v1 = vpop.permute.xlu0 %8405  ;;  %v8411_v38 = vpop.permute.xlu1 %8410  ;;  %v4600_v30 = vsel %vm3130_vm11, %v4588_v35, %v8402_v51  ;;  %v4601_v27 = vsel %vm3130_vm11, %v4589_v37, %v8403_v34 }
 0x657   : > { %v8408_v2 = vunpack.i.h.bf16 %v8406_v1  ;;  %v8407_v48 = vunpack.i.l.bf16 %v8406_v1  ;;  %v8413_v25 = vunpack.i.h.bf16 %v8411_v38  ;;  %v8412_v8 = vunpack.i.l.bf16 %v8411_v38 }
 0x658   : > { %v4640_v1 = vpack.c.bf16 %v4277_v18, %v4276_v24 }
 0x659   : > { %v4612_v45 = vsel %vm3142_vm12, %v4600_v30, %v8407_v48  ;;  %v4613_v43 = vsel %vm3142_vm12, %v4601_v27, %v8408_v2 }
 0x65a   : > { %v4624_v3 = vsel %vm3154_vm15, %v4612_v45, %v8412_v8  ;;  %v4625_v47 = vsel %vm3154_vm15, %v4613_v43, %v8413_v25  ;;  %v8416_v50 = vpop.permute.xlu0 %8415  ;;  %v8421_v52 = vpop.permute.xlu1 %8420 }
 0x65b   : > { %v8418_v10 = vunpack.i.h.bf16 %v8416_v50  ;;  %v8417_v5 = vunpack.i.l.bf16 %v8416_v50  ;;  %v8423_v0 = vunpack.i.h.bf16 %v8421_v52  ;;  %v8422_v26 = vunpack.i.l.bf16 %v8421_v52 }
 0x65c   : > { %v4635_v12 = vpack.c.bf16 %v4625_v47, %v4624_v3 }
 0x65d   : > { %v4554_v42 = vsel %vm1694_vm0, %v4226_v22, %v8417_v5  ;;  %v4555_v53 = vsel %vm1694_vm0, %v4227_v7, %v8418_v10 }
 0x65e   : > { %4783 = vmatmul.mubr.bf16.gmra.mxu0 %v4635_v12  ;;  %v8426_v11 = vpop.permute.xlu0 %8425  ;;  %v8431_v60 = vpop.permute.xlu1 %8430  ;;  %v4566_v44 = vsel %vm1814_vm9, %v4554_v42, %v8422_v26  ;;  %v4567_v21 = vsel %vm1814_vm9, %v4555_v53, %v8423_v0 }
 0x65f   : > { %v8428_v39 = vunpack.i.h.bf16 %v8426_v11  ;;  %v8427_v63 = vunpack.i.l.bf16 %v8426_v11  ;;  %6903 = vmatprep.mubr.msk.bf16.mxu0 %vm1694_vm0, %v4638_v6  ;;  %v8433_v4 = vunpack.i.h.bf16 %v8431_v60  ;;  %v8432_v58 = vunpack.i.l.bf16 %v8431_v60 }
 0x661   : > { %v4578_v62 = vsel %vm3106_vm13, %v4566_v44, %v8427_v63  ;;  %v4579_v40 = vsel %vm3106_vm13, %v4567_v21, %v8428_v39 }
 0x662   : > { %v8436_v41 = vpop.permute.xlu0 %8435  ;;  %v8441_v49 = vpop.permute.xlu1 %8440  ;;  %v4590_v61 = vsel %vm3118_vm14, %v4578_v62, %v8432_v58  ;;  %v4591_v57 = vsel %vm3118_vm14, %v4579_v40, %v8433_v4  ;;  %v8843_v40 = vmov 0.0  }
 0x663   : > { %v8438_v59 = vunpack.i.h.bf16 %v8436_v41  ;;  %v8437_v13 = vunpack.i.l.bf16 %v8436_v41  ;;  %v8443_v14 = vunpack.i.h.bf16 %v8441_v49  ;;  %v8442_v15 = vunpack.i.l.bf16 %v8441_v49  ;;  %7266 = vmatprep.subr.mxu1 %v8843_v40  ;;  %4866 = vst.msk [vmem:[#allocation7] sm:$0xff] %vm1814_vm9, %v8843_v40  ;;  %4867 = vst.msk [vmem:[#allocation7 + $0x8] sm:$0xff] %vm1814_vm9, %v8843_v40  ;;  %7270 = vmatprep.mubr.msk.f32.mxu1 %vm8844_vm8, %v8843_v40  ;;  %v10505_v41 = vld [vmem:[#allocation2 + $0x49] sm:$0xff] }
 0x664   : > { %4868 = vst.msk [vmem:[#allocation7 + $0x10] sm:$0xff] %vm1814_vm9, %v8843_v40  ;;  %4869 = vst.msk [vmem:[#allocation7 + $0x18] sm:$0xff] %vm1814_vm9, %v8843_v40  ;;  %v8484_v49 = vpack.i.bf16 %v10505_v41, %v10404_v55 }
 0x665   : > { %v4602_v17 = vsel %vm3130_vm11, %v4590_v61, %v8437_v13  ;;  %v4603_v16 = vsel %vm3130_vm11, %v4591_v57, %v8438_v59  ;;  %4870 = vst.msk [vmem:[#allocation7 + $0x20] sm:$0xff] %vm1814_vm9, %v8843_v40  ;;  %4871 = vst.msk [vmem:[#allocation7 + $0x28] sm:$0xff] %vm1814_vm9, %v8843_v40  ;;  %v10513_v59 = vld [vmem:[%s11124_s10] ss:$0 sm:$0xff] }
 0x666   : > { %v8446_v19 = vpop.permute.xlu0 %8445  ;;  %v8451_v20 = vpop.permute.xlu1 %8450  ;;  %v4614_v34 = vsel %vm3142_vm12, %v4602_v17, %v8442_v15  ;;  %v4615_v51 = vsel %vm3142_vm12, %v4603_v16, %v8443_v14  ;;  %4872 = vst.msk [vmem:[#allocation7 + $0x30] sm:$0xff] %vm1814_vm9, %v8843_v40  ;;  %5709 = vst.msk [vmem:[#allocation8 + $0x2f] sm:$0xff] %vm1814_vm9, %v8843_v40  ;;  %8485 = vrot.lane.b32.xlu0 %v8484_v49, %s8836_s2  ;;  %v8680_v49 = vld [vmem:[%s11125_s11 + $0x88] sm:$0xff]  }
 0x667   : > { %v8448_v28 = vunpack.i.h.bf16 %v8446_v19  ;;  %v8447_v36 = vunpack.i.l.bf16 %v8446_v19  ;;  %v8453_v29 = vunpack.i.h.bf16 %v8451_v20  ;;  %v8452_v23 = vunpack.i.l.bf16 %v8451_v20  ;;  %6246 = vst.msk [vmem:[#allocation3 + $0x2f] sm:$0xff] %vm1814_vm9, %v8843_v40 }
 0x669   : > { %v4626_v35 = vsel %vm3154_vm15, %v4614_v34, %v8447_v36  ;;  %v4627_v37 = vsel %vm3154_vm15, %v4615_v51, %v8448_v28  ;;  %v4556_v38 = vsel %vm1694_vm0, %v4228_v32, %v8452_v23  ;;  %v4557_v2 = vsel %vm1694_vm0, %v4229_v33, %v8453_v29  ;;  %v10524_v32 = vld [vmem:[%s11129_s15] sm:$0xf] }
 0x66a   : > { %v8456_v48 = vpop.permute.xlu0 %8455  ;;  %v8461_v25 = vpop.permute.xlu1 %8460  ;;  %v4637_v8 = vpack.c.bf16 %v4627_v37, %v4626_v35 }
 0x66b   : > { %v8458_v30 = vunpack.i.h.bf16 %v8456_v48  ;;  %v8457_v27 = vunpack.i.l.bf16 %v8456_v48  ;;  %v8463_v54 = vunpack.i.h.bf16 %v8461_v25  ;;  %v8462_v46 = vunpack.i.l.bf16 %v8461_v25 }
 0x66c   : > { %4791 = vmatmul.mubr.bf16.gmra.mxu0 %v4637_v8 }
 0x66d   : > { %v4568_v45 = vsel %vm1814_vm9, %v4556_v38, %v8457_v27  ;;  %v4569_v43 = vsel %vm1814_vm9, %v4557_v2, %v8458_v30  ;;  %6904 = vmatprep.mubr.msk.bf16.mxu0 %vm1694_vm0, %v4640_v1 }
 0x66e   : > { %v8466_v3 = vpop.permute.xlu0 %8465  ;;  %v8471_v47 = vpop.permute.xlu1 %8470  ;;  %v4580_v7 = vsel %vm3106_vm13, %v4568_v45, %v8462_v46  ;;  %v4581_v52 = vsel %vm3106_vm13, %v4569_v43, %v8463_v54 }
 0x66f   : > { %v8468_v50 = vunpack.i.h.bf16 %v8466_v3  ;;  %v8467_v22 = vunpack.i.l.bf16 %v8466_v3  ;;  %v8473_v10 = vunpack.i.h.bf16 %v8471_v47  ;;  %v8472_v5 = vunpack.i.l.bf16 %v8471_v47 }
 0x671   : > { %v4592_v6 = vsel %vm3118_vm14, %v4580_v7, %v8467_v22  ;;  %v4593_v0 = vsel %vm3118_vm14, %v4581_v52, %v8468_v50 }
 0x672   : > { %v8476_v26 = vpop.permute.xlu0 %8475  ;;  %v8481_v12 = vpop.permute.xlu1 %8480  ;;  %v4604_v39 = vsel %vm3130_vm11, %v4592_v6, %v8472_v5  ;;  %v4605_v63 = vsel %vm3130_vm11, %v4593_v0, %v8473_v10 }
 0x673   : > { %v8478_v42 = vunpack.i.h.bf16 %v8476_v26  ;;  %v8477_v53 = vunpack.i.l.bf16 %v8476_v26  ;;  %v8483_v11 = vunpack.i.h.bf16 %v8481_v12  ;;  %v8482_v60 = vunpack.i.l.bf16 %v8481_v12 }
 0x675   : > { %v4616_v44 = vsel %vm3142_vm12, %v4604_v39, %v8477_v53  ;;  %v4617_v21 = vsel %vm3142_vm12, %v4605_v63, %v8478_v42  ;;  %v10568_v63 = vld [vmem:[#allocation2 + $0x52] sm:$0xff] }
 0x676   : > { %v4628_v4 = vsel %vm3154_vm15, %v4616_v44, %v8482_v60  ;;  %v4629_v58 = vsel %vm3154_vm15, %v4617_v21, %v8483_v11  ;;  %v4243_v60 = vld [vmem:[#allocation2 + $0x51] sm:$0xff]  ;;  %v8499_v44 = vpack.i.bf16 %v10568_v63, %v10412_v56  ;;  %v4255_v56 = vld [vmem:[#allocation2 + $0x59] sm:$0xff] }
 0x677   : > { %v4639_v62 = vpack.c.bf16 %v4629_v58, %v4628_v4  ;;  %v8494_v39 = vpack.i.bf16 %v4243_v60, %v10505_v41  ;;  %v4266_v21 = vld [vmem:[#allocation2 + $0x53] sm:$0xff] }
 0x678   : > { %v8504_v4 = vpack.i.bf16 %v4266_v21, %v10414_v9  ;;  %8500 = vrot.lane.b32.xlu1 %v8499_v44, %s8839_s29  ;;  %v10574_v58 = vld [vmem:[#allocation2 + $0x5a] sm:$0xff]  ;;  %v4269_v9 = vld [vmem:[#allocation2 + $0x63] sm:$0xff] }
 0x679   : > { %4799 = vmatmul.mubr.bf16.gmra.mxu0 %v4639_v62  ;;  %8495 = vrot.lane.b32.xlu0 %v8494_v39, %s8837_s27  ;;  %v4267_v62 = vld [vmem:[#allocation2 + $0x5b] sm:$0xff]  ;;  %v8509_v31 = vpack.i.bf16 %v10574_v58, %v10568_v63  ;;  %v8687_v39 = vld [vmem:[%s11125_s11 + $0x28] sm:$0xff]  }
 0x67a   : > { %v8514_v41 = vpack.i.bf16 %v4267_v62, %v4266_v21  ;;  %v8688_v44 = vld [vmem:[%s11125_s11 + $0x60] sm:$0xff]  }
 0x67b   : > { %v8689_v21 = vld [vmem:[%s11125_s11 + $0x20] sm:$0xff]  }
 0x67c   : > { %8510 = vrot.lane.b32.xlu1 %v8509_v31, %s8841_s24 }
 0x67d   : > { %8505 = vrot.lane.b32.xlu0 %v8504_v4, %s8840_s19 }
 0x680   : > { %4312 = vrot.lane.b32.xlu1 %v4243_v60, %s8836_s2 }
 0x681   : > { %8515 = vrot.lane.b32.xlu0 %v8514_v41, %s8842_s20  ;;  %v8690_v41 = vld [vmem:[%s11125_s11 + $0x58] sm:$0xff]  }
 0x684   : > { %4390 = vrot.lane.b32.xlu1 %v4255_v56, %s8837_s27  ;;  %v8691_v56 = vld [vmem:[%s11125_s11 + $0x18] sm:$0xff]  }
 0x688   : > { %4468 = vrot.lane.b32.xlu1 %v4267_v62, %s8840_s19  ;;  %s8847_s19 = smov 32  }
 0x68c   : > { %4536 = vrot.lane.b32.xlu1 %v4269_v9, %s8842_s20 }
 0x710   : > { %v4776_v13 = vpop.f32.mrf.mxu0 }
 0x711   : > { %v4777_v61 = vadd.f32 %v10513_v59, %v4776_v13  ;;  %v8682_v13 = vld [vmem:[%s11125_s11 + $0x78] sm:$0xff]  }
 0x712   : > { %v4778_v57 = vpop.f32.mrf.mxu0  ;;  %7034 = vmatprep.subr.bf16.mxu0 %v8682_v13 }
 0x713   : > { %vm4822_vm10 = vcmp.ge.f32.partialorder %v4777_v61, 0.0  ;;  %v4833_v14 = vmul.f32 0.01, %v4777_v61  ;;  %v8684_v57 = vld [vmem:[%s11125_s11 + $0x70] sm:$0xff]  }
 0x714   : > { %v4779_v15 = vpop.f32.mrf.mxu0 }
 0x715   : > { %v4844_v17 = vsel %vm4822_vm10, %v4777_v61, %v4833_v14  ;;  %v4780_v16 = vadd.f32 %v10513_v59, %v4779_v15  ;;  %v8683_v61 = vld [vmem:[%s11125_s11 + $0x38] sm:$0xff]   ;;  %v8486_v14 = vpop.permute.xlu0 %8485 }
 0x716   : > { %4855 = vst.msk [vmem:[#allocation9] sm:$0xff] %vm1814_vm9, %v4844_v17  ;;  %v4781_v55 = vpop.f32.mrf.mxu0  ;;  %7035 = vmatpush3.bf16.msra.mxu0 %v8683_v61  ;;  %v8488_v15 = vunpack.i.h.bf16 %v8486_v14  ;;  %v8487_v17 = vunpack.i.l.bf16 %v8486_v14 }
 0x717   : > { %vm4823_vm2 = vcmp.ge.f32.partialorder %v4780_v16, 0.0  ;;  %v4834_v19 = vmul.f32 0.01, %v4780_v16  ;;  %7036 = vmatprep.subr.bf16.mxu0 %v8684_v57  ;;  %v4231_v55 = vld [vmem:[#allocation2 + $0x48] sm:$0xff] }
 0x719   : > { %v4845_v20 = vsel %vm4823_vm2, %v4780_v16, %v4834_v19  ;;  %v4230_v16 = vld [vmem:[#allocation2 + $0x40] sm:$0xff]  ;;  %v8491_v19 = vpop.permute.xlu1 %8490 }
 0x71a   : > { %4856 = vst.msk [vmem:[#allocation9 + $0x8] sm:$0xff] %vm1814_vm9, %v4845_v20  ;;  %v8493_v20 = vunpack.i.h.bf16 %v8491_v19 }
 0x71d   : > { %v4874_v51 = vld [vmem:[#allocation9] sm:$0xff] }
 0x71e   : > { %v4784_v24 = vpop.f32.mrf.mxu0 }
 0x71f   : > { %v4785_v18 = vadd.f32 %v10513_v59, %v4784_v24  ;;  %v8492_v24 = vunpack.i.l.bf16 %v8491_v19 }
 0x720   : > { %v4786_v28 = vpop.f32.mrf.mxu0 }
 0x721   : > { %vm4824_vm3 = vcmp.ge.f32.partialorder %v4785_v18, 0.0  ;;  %v4835_v36 = vmul.f32 0.01, %v4785_v18  ;;  %v4875_v29 = vld [vmem:[#allocation9 + $0x8] sm:$0x1]  ;;  %v4559_v28 = vsel %vm1694_vm0, %v4231_v55, %v8488_v15  ;;  %v4268_v15 = vld [vmem:[#allocation2 + $0x62] sm:$0xff] }
 0x722   : > { %v4787_v23 = vpop.f32.mrf.mxu0  ;;  %7267 = vmatpush3.msk.msra.mxu1 %vm4880_vm1, %v4875_v29  ;;  %v8693_v55 = vld [vmem:[%s11125_s11 + $0x10] sm:$0xff]  }
 0x723   : > { %v4846_v33 = vsel %vm4824_vm3, %v4785_v18, %v4835_v36  ;;  %v4788_v34 = vadd.f32 %v10513_v59, %v4787_v23  ;;  %7268 = vmatprep.subr.mxu1 %v8843_v40  ;;  %v4558_v18 = vsel %vm1694_vm0, %v4230_v16, %v8487_v17  ;;  %v8496_v36 = vpop.permute.xlu0 %8495  ;;  %v8692_v16 = vld [vmem:[%s11125_s11 + $0x50] sm:$0xff]  }
 0x724   : > { %4857 = vst.msk [vmem:[#allocation9 + $0x10] sm:$0xff] %vm1814_vm9, %v4846_v33  ;;  %v4789_v35 = vpop.f32.mrf.mxu0  ;;  %7269 = vmatpush3.msra.mxu1 %v4874_v51  ;;  %v8498_v29 = vunpack.i.h.bf16 %v8496_v36  ;;  %v8497_v23 = vunpack.i.l.bf16 %v8496_v36  ;;  %v4571_v33 = vsel %vm1814_vm9, %v4559_v28, %v8493_v20  ;;  %v8694_v20 = vld [vmem:[%s11125_s11 + $0x48] sm:$0xff]  }
 0x725   : > { %vm4825_vm6 = vcmp.ge.f32.partialorder %v4788_v34, 0.0  ;;  %v4836_v37 = vmul.f32 0.01, %v4788_v34  ;;  %7271 = vmatmul.mubr.msk.f32.vlgmr.msra.gmra.mxu1 %vm4876_vm5, %v10524_v32  ;;  %7273 = vmatprep.subr.mxu1 %v8843_v40 }
 0x726   : > { %7277 = vmatprep.mubr.msk.f32.mxu1 %vm8844_vm8, %v8843_v40  ;;  %v4583_v35 = vsel %vm3106_vm13, %v4571_v33, %v8498_v29  ;;  %v8696_v33 = vld [vmem:[%s11125_s11 + $0x40] sm:$0xff]  }
 0x727   : > { %v4847_v1 = vsel %vm4825_vm6, %v4788_v34, %v4836_v37  ;;  %v8501_v37 = vpop.permute.xlu1 %8500 }
 0x728   : > { %4858 = vst.msk [vmem:[#allocation9 + $0x18] sm:$0xff] %vm1814_vm9, %v4847_v1 }
 0x72c   : > { %v4792_v38 = vpop.f32.mrf.mxu0 }
 0x72d   : > { %v4793_v2 = vadd.f32 %v10513_v59, %v4792_v38  ;;  %v8503_v38 = vunpack.i.h.bf16 %v8501_v37 }
 0x72e   : > { %v4794_v48 = vpop.f32.mrf.mxu0 }
 0x72f   : > { %vm4826_vm7 = vcmp.ge.f32.partialorder %v4793_v2, 0.0  ;;  %v4837_v25 = vmul.f32 0.01, %v4793_v2  ;;  %v4957_v8 = vld [vmem:[#allocation9 + $0x1a] sm:$0x1]  ;;  %v4956_v46 = vld [vmem:[#allocation9 + $0x12] sm:$0xff]  ;;  %v8506_v48 = vpop.permute.xlu0 %8505 }
 0x730   : > { %7274 = vmatpush3.msk.msra.mxu1 %vm4880_vm1, %v4957_v8  ;;  %v4795_v30 = vpop.f32.mrf.mxu0  ;;  %v8507_v8 = vunpack.i.l.bf16 %v8506_v48 }
 0x731   : > { %v4848_v27 = vsel %vm4826_vm7, %v4793_v2, %v4837_v25  ;;  %v4796_v54 = vadd.f32 %v10513_v59, %v4795_v30  ;;  %7275 = vmatprep.subr.mxu1 %v8843_v40  ;;  %v8502_v2 = vunpack.i.l.bf16 %v8501_v37  ;;  %v8508_v25 = vunpack.i.h.bf16 %v8506_v48 }
 0x732   : > { %4859 = vst.msk [vmem:[#allocation9 + $0x20] sm:$0xff] %vm1814_vm9, %v4848_v27  ;;  %7276 = vmatpush3.msra.mxu1 %v4956_v46  ;;  %v4797_v45 = vpop.f32.mrf.mxu0  ;;  %v4595_v27 = vsel %vm3118_vm14, %v4583_v35, %v8503_v38 }
 0x733   : > { %vm4827_vm10 = vcmp.ge.f32.partialorder %v4796_v54, 0.0  ;;  %v4838_v43 = vmul.f32 0.01, %v4796_v54  ;;  %7278 = vmatmul.mubr.msk.f32.vlgmr.msra.gmra.mxu1 %vm4876_vm5, %v10524_v32  ;;  %7280 = vmatprep.subr.mxu1 %v8843_v40  ;;  %v4607_v46 = vsel %vm3130_vm11, %v4595_v27, %v8508_v25  ;;  %v8511_v45 = vpop.permute.xlu1 %8510 }
 0x734   : > { %7284 = vmatprep.mubr.msk.f32.mxu1 %vm8844_vm8, %v8843_v40 }
 0x735   : > { %v4849_v3 = vsel %vm4827_vm10, %v4796_v54, %v4838_v43  ;;  %v8513_v43 = vunpack.i.h.bf16 %v8511_v45 }
 0x736   : > { %4860 = vst.msk [vmem:[#allocation9 + $0x28] sm:$0xff] %vm1814_vm9, %v4849_v3  ;;  %v8512_v3 = vunpack.i.l.bf16 %v8511_v45  ;;  %v5209_v45 = vld [vmem:[#allocation7 + $0x28] sm:$0xff] }
 0x739   : > { %v4800_v47 = vpop.f32.mrf.mxu0 }
 0x73a   : > { %v4801_v50 = vadd.f32 %v10513_v59, %v4800_v47  ;;  %v8516_v47 = vpop.permute.xlu0 %8515 }
 0x73b   : > { %v4802_v22 = vpop.f32.mrf.mxu0 }
 0x73c   : > { %vm4828_vm2 = vcmp.ge.f32.partialorder %v4801_v50, 0.0  ;;  %v4839_v7 = vmul.f32 0.01, %v4801_v50  ;;  %v8517_v22 = vunpack.i.l.bf16 %v8516_v47 }
 0x73d   : > { %v4803_v52 = vpop.f32.mrf.mxu0  ;;  %v5033_v10 = vld [vmem:[#allocation9 + $0x2c] sm:$0x1]  ;;  %v5032_v26 = vld [vmem:[#allocation9 + $0x24] sm:$0xff] }
 0x73e   : > { %v4850_v5 = vsel %vm4828_vm2, %v4801_v50, %v4839_v7  ;;  %v4804_v6 = vadd.f32 %v10513_v59, %v4803_v52  ;;  %7281 = vmatpush3.msk.msra.mxu1 %vm4880_vm1, %v5033_v10  ;;  %v8681_v59 = vld [vmem:[%s11125_s11 + $0x80] sm:$0xff]   ;;  %v8518_v50 = vunpack.i.h.bf16 %v8516_v47  ;;  %v4619_v52 = vsel %vm3142_vm12, %v4607_v46, %v8513_v43  ;;  %v5203_v47 = vld [vmem:[#allocation7 + $0x26] sm:$0xff] }
 0x73f   : > { %4861 = vst.msk [vmem:[#allocation9 + $0x30] sm:$0xff] %vm1814_vm9, %v4850_v5  ;;  %v4805_v0 = vpop.f32.mrf.mxu0  ;;  %7282 = vmatprep.subr.mxu1 %v8843_v40 }
 0x740   : > { %vm4829_vm3 = vcmp.ge.f32.partialorder %v4804_v6, 0.0  ;;  %v4840_v12 = vmul.f32 0.01, %v4804_v6  ;;  %7283 = vmatpush3.msra.mxu1 %v5032_v26  ;;  %v4631_v5 = vsel %vm3154_vm15, %v4619_v52, %v8518_v50  ;;  %v4279_v0 = vld [vmem:[#allocation2 + $0x5c] sm:$0xff] }
 0x741   : > { %7285 = vmatmul.mubr.msk.f32.vlgmr.msra.gmra.mxu1 %vm4876_vm5, %v10524_v32  ;;  %7287 = vmatprep.subr.mxu1 %v8843_v40 }
 0x742   : > { %v4851_v42 = vsel %vm4829_vm3, %v4804_v6, %v4840_v12  ;;  %7291 = vmatprep.mubr.msk.f32.mxu1 %vm8844_vm8, %v8843_v40  ;;  %v4278_v6 = vld [vmem:[#allocation2 + $0x54] sm:$0xff] }
 0x743   : > { %4862 = vst.msk [vmem:[#allocation9 + $0x38] sm:$0xff] %vm1814_vm9, %v4851_v42  ;;  %v4642_v26 = vpack.c.bf16 %v4279_v0, %v4278_v6  ;;  %v5218_v0 = vld [vmem:[#allocation7 + $0x25] sm:$0xff] }
 0x745   : > { %6905 = vmatprep.mubr.msk.bf16.mxu0 %vm1694_vm0, %v4642_v26 }
 0x74a   : > { %v5109_v53 = vld [vmem:[#allocation9 + $0x3e] sm:$0x1]  ;;  %v5108_v11 = vld [vmem:[#allocation9 + $0x36] sm:$0xff] }
 0x74b   : > { %7288 = vmatpush3.msk.msra.mxu1 %vm4880_vm1, %v5109_v53  ;;  %vm4954_vm1 = vcmask 257024   ;;  %v8685_v53 = vld [vmem:[%s11125_s11 + $0x30] sm:$0xff]  }
 0x74c   : > { %7289 = vmatprep.subr.mxu1 %v8843_v40  ;;  %7037 = vmatpush3.bf16.msra.mxu0 %v8685_v53  ;;  %v5214_v53 = vld [vmem:[#allocation7 + $0x2c] sm:$0xff] }
 0x74d   : > { %7290 = vmatpush3.msra.mxu1 %v5108_v11  ;;  %v8686_v11 = vld [vmem:[%s11125_s11 + $0x68] sm:$0xff]  }
 0x74e   : > { %7292 = vmatmul.mubr.msk.f32.vlgmr.msra.gmra.mxu1 %vm4876_vm5, %v10524_v32  ;;  %7294 = vmatprep.subr.bf16.mxu1 %v8843_v40  ;;  %v4570_v32 = vsel %vm1814_vm9, %v4558_v18, %v8492_v24  ;;  %v8695_v24 = vld [vmem:[%s11125_s11 + $0x8] sm:$0xff]  }
 0x74f   : > { %7298 = vmatprep.mubr.msk.bf16.mxu1 %vm8844_vm8, %v8843_v40  ;;  %7295 = vmatpush3.bf16.msra.mxu1 %v8680_v49  ;;  %v4582_v51 = vsel %vm3106_vm13, %v4570_v32, %v8497_v23  ;;  %v5217_v49 = vld [vmem:[#allocation7 + $0x1d] sm:$0xff] }
 0x750   : > { %7296 = vmatprep.subr.bf16.mxu1 %v8843_v40  ;;  %v4594_v30 = vsel %vm3118_vm14, %v4582_v51, %v8502_v2  ;;  %7038 = vmatprep.subr.bf16.mxu0 %v8686_v11  ;;  %v10667_v23 = vld [vmem:[#allocation7 + $0x20] sm:$0xff] }
 0x751   : > { %v4606_v54 = vsel %vm3130_vm11, %v4594_v30, %v8507_v8  ;;  %7039 = vmatpush3.bf16.msra.mxu0 %v8687_v39  ;;  %v8697_v8 = vld [vmem:[%s11125_s11] sm:$0xff]   ;;  %v5193_v11 = vld [vmem:[#allocation7 + $0x21] sm:$0xff]  ;;  %v5219_v39 = vld [vmem:[#allocation7 + $0x2d] sm:$0xff] }
 0x752   : > { %v4618_v7 = vsel %vm3142_vm12, %v4606_v54, %v8512_v3  ;;  %7040 = vmatprep.subr.bf16.mxu0 %v8688_v44  ;;  %v5202_v3 = vld [vmem:[#allocation7 + $0x1e] sm:$0xff]  ;;  %v5220_v44 = vld [vmem:[#allocation7 + $0x2e] sm:$0xff] }
 0x753   : > { %7297 = vmatpush3.bf16.msra.mxu1 %v8681_v59  ;;  %v4630_v10 = vsel %vm3154_vm15, %v4618_v7, %v8517_v22  ;;  %v4280_v59 = vld [vmem:[#allocation2 + $0x64] sm:$0xff]  ;;  %v5376_v22 = vpack.c.bf16 %v5203_v47, %v5202_v3 }
 0x754   : > { %7310 = vmatprep.subr.bf16.mxu1 %v8843_v40  ;;  %v4641_v12 = vpack.c.bf16 %v4631_v5, %v4630_v10  ;;  %v5213_v5 = vld [vmem:[#allocation7 + $0x24] sm:$0xff] }
 0x755   : > { %7041 = vmatpush3.bf16.msra.mxu0 %v8689_v21  ;;  %v5379_v21 = vpack.c.bf16 %v5220_v44, %v5220_v44 }
 0x756   : > { %4807 = vmatmul.mubr.bf16.gmra.mxu0 %v4641_v12  ;;  %7042 = vmatprep.subr.bf16.mxu0 %v8690_v41  ;;  %v10710_v41 = vld [vmem:[%s11130_s16 + $0x8] sm:$0xff] }
 0x759   : > { %7043 = vmatpush3.bf16.msra.mxu0 %v8691_v56  ;;  %v10717_v56 = vld [vmem:[%s11130_s16 + $0x10] sm:$0xff] }
 0x75a   : > { %7044 = vmatprep.subr.bf16.mxu0 %v8692_v16 }
 0x75d   : > { %7045 = vmatpush3.bf16.msra.mxu0 %v8693_v55 }
 0x75e   : > { %7046 = vmatprep.subr.bf16.mxu0 %v8694_v20 }
 0x761   : > { %7047 = vmatpush3.bf16.msra.mxu0 %v8695_v24 }
 0x762   : > { %7048 = vmatprep.subr.bf16.mxu0 %v8696_v33 }
 0x765   : > { %7049 = vmatpush3.bf16.msra.mxu0 %v8697_v8 }
 0x7e5   : > { %v4950_v34 = vpop.f32.mrf.mxu1 }
 0x7e6   : > { %4955 = vst.msk [vmem:[#allocation7 + $0x7] sm:$0xf] %vm4954_vm1, %v4950_v34 }
 0x7e7   : > { %v7272_v1 = vpop.f32.mrf.mxu1 }
 0x7ed   : > { %v5189_v36 = vld [vmem:[#allocation7 + $0x1] sm:$0xff] }
 0x7ee   : > { %v5194_v25 = vld [vmem:[#allocation7 + $0x2] sm:$0xff] }
 0x7f3   : > { %v5027_v42 = vpop.f32.mrf.mxu1 }
 0x7f4   : > { %5031 = vst.msk [vmem:[#allocation7 + $0xd] sm:$0xf] %vm4954_vm1, %v5027_v42  ;;  %v5198_v42 = vld [vmem:[#allocation7 + $0x22] sm:$0xff] }
 0x7f5   : > { %v7279_v60 = vpop.f32.mrf.mxu1 }
 0x7f6   : > { %v8584_v60 = vpack.i.bf16 %v5198_v42, %v5214_v53 }
 0x7fb   : > { %v10634_v4 = vld [vmem:[#allocation7 + $0x8] sm:$0xff] }
 0x7fc   : > { %v8519_v62 = vpack.i.bf16 %v10634_v4, %v10568_v63  ;;  %v4644_v63 = vpack.c.bf16 %v4280_v59, %v4280_v59  ;;  %v5190_v37 = vld [vmem:[#allocation7 + $0x9] sm:$0xff]  ;;  %v4313_v59 = vpop.permute.xlu1 %4312 }
 0x7fd   : > { %v5195_v27 = vld [vmem:[#allocation7 + $0xa] sm:$0xff] }
 0x7fe   : > { %8520 = vrot.lane.b32.xlu0 %v8519_v62, %s8838_s1  ;;  %6906 = vmatprep.mubr.msk.bf16.mxu0 %vm1694_vm0, %v4644_v63  ;;  %v5199_v50 = vld [vmem:[#allocation7 + $0x6] sm:$0xff]  ;;  %v8589_v62 = vpack.i.bf16 %v5203_v47, %v5219_v39 }
 0x800   : > { %v4391_v63 = vpop.permute.xlu1 %4390 }
 0x801   : > { %v5103_v31 = vpop.f32.mrf.mxu1 }
 0x802   : > { %5107 = vst.msk [vmem:[#allocation7 + $0x13] sm:$0xf] %vm4954_vm1, %v5103_v31  ;;  %v10705_v31 = vld [vmem:[%s11130_s16] sm:$0xff] }
 0x803   : > { %v7286_v9 = vpop.f32.mrf.mxu1 }
 0x804   : > { %v10722_v9 = vld [vmem:[%s11130_s16 + $0x20] sm:$0xff] }
 0x809   : > { %v5210_v13 = vld [vmem:[#allocation7 + $0xc] sm:$0xff] }
 0x80a   : > { %v5200_v61 = vld [vmem:[#allocation7 + $0xe] sm:$0xff]  ;;  %v8524_v57 = vpack.i.bf16 %v5210_v13, %v10574_v58 }
 0x80b   : > { %v8539_v14 = vpack.i.bf16 %v5217_v49, %v5200_v61  ;;  %v5215_v17 = vld [vmem:[#allocation7 + $0xd] sm:$0xff] }
 0x80c   : > { %8525 = vrot.lane.b32.xlu0 %v8524_v57, %s8839_s29  ;;  %v8529_v58 = vpack.i.bf16 %v5215_v17, %v4268_v15  ;;  %v10663_v18 = vld [vmem:[#allocation7 + $0x10] sm:$0xff]  ;;  %v4232_v13 = vld [vmem:[#allocation2 + $0x50] sm:$0xff]  ;;  %v4469_v15 = vpop.permute.xlu1 %4468 }
 0x80d   : > { %8540 = vrot.lane.b32.xlu1 %v8539_v14, %s8841_s24  ;;  %v8534_v29 = vpack.i.bf16 %v5189_v36, %v10663_v18  ;;  %v5191_v32 = vld [vmem:[#allocation7 + $0x11] sm:$0xff]  ;;  %v4560_v14 = vsel %vm1694_vm0, %v4232_v13, %v4313_v59  ;;  %vm5702_vm0 = vcmask 260096  }
 0x80e   : > { %v5179_v19 = vpop.f32.mrf.mxu1  ;;  %v8544_v34 = vpack.i.bf16 %v5191_v32, %v10667_v23  ;;  %v10729_v49 = vld [vmem:[%s11130_s16 + $0x18] sm:$0xff]  ;;  %5703 = vst.msk [vmem:[#allocation8] sm:$0x7f] %vm5702_vm0, %v8843_v40  ;;  %6240 = vst.msk [vmem:[#allocation3] sm:$0x7f] %vm5702_vm0, %v8843_v40  ;;  %vm6762_vm0 = vcmask 57344  }
 0x80f   : > { %5183 = vst.msk [vmem:[#allocation7 + $0x19] sm:$0xf] %vm4954_vm1, %v5179_v19  ;;  %vm6754_vm1 = vcmask 63488  }
 0x810   : > { %8530 = vrot.lane.b32.xlu0 %v8529_v58, %s8841_s24  ;;  %v7293_v28 = vpop.f32.mrf.mxu1  ;;  %v4537_v58 = vpop.permute.xlu1 %4536 }
 0x814   : > { %8535 = vrot.lane.b32.xlu0 %v8534_v29, %s8838_s1 }
 0x816   : > { %v5201_v51 = vld [vmem:[#allocation7 + $0x16] sm:$0xff] }
 0x817   : > { %v10674_v35 = vld [vmem:[#allocation7 + $0x18] sm:$0xff]  ;;  %v5373_v1 = vpack.c.bf16 %v5201_v51, %v5200_v61  ;;  %v8579_v12 = vpack.i.bf16 %v5201_v51, %v5218_v0 }
 0x818   : > { %v8549_v38 = vpack.i.bf16 %v10674_v35, %v5190_v37  ;;  %v5211_v2 = vld [vmem:[#allocation7 + $0x14] sm:$0xff]  ;;  %8545 = vrot.lane.b32.xlu0 %v8544_v34, %s8838_s1  ;;  %v5212_v48 = vld [vmem:[#allocation7 + $0x1c] sm:$0xff] }
 0x819   : > { %7299 = vmatmul.mubr.msk.bf16.vlgmr.msra.gmra.mxu1 %vm1814_vm9, %v5373_v1  ;;  %v8554_v30 = vpack.i.bf16 %v5194_v25, %v5211_v2  ;;  %v8559_v54 = vpack.i.bf16 %v5212_v48, %v5195_v27  ;;  %v5216_v46 = vld [vmem:[#allocation7 + $0x15] sm:$0xff] }
 0x81a   : > { %8550 = vrot.lane.b32.xlu1 %v8549_v38, %s8838_s1  ;;  %7302 = vmatprep.mubr.msk.bf16.mxu1 %vm8844_vm8, %v8843_v40  ;;  %v5192_v43 = vld [vmem:[#allocation7 + $0x19] sm:$0xff]  ;;  %v8564_v7 = vpack.i.bf16 %v5199_v50, %v5216_v46 }
 0x81b   : > { %v8569_v52 = vpack.i.bf16 %v5209_v45, %v5192_v43  ;;  %v5196_v10 = vld [vmem:[#allocation7 + $0x12] sm:$0xff]  ;;  %v5197_v26 = vld [vmem:[#allocation7 + $0x1a] sm:$0xff] }
 0x81c   : > { %8555 = vrot.lane.b32.xlu0 %v8554_v30, %s8839_s29  ;;  %v8574_v6 = vpack.i.bf16 %v5196_v10, %v5213_v5  ;;  %v10746_v10 = vld [vmem:[#allocation7 + $0xf] sm:$0xff] }
 0x81e   : > { %8560 = vrot.lane.b32.xlu1 %v8559_v54, %s8839_s29  ;;  %v5204_v54 = vld [vmem:[#allocation7 + $0x7] sm:$0xff] }
 0x820   : > { %8565 = vrot.lane.b32.xlu0 %v8564_v7, %s8841_s24 }
 0x821   : > { %7303 = vmatmul.mubr.msk.bf16.gmra.mxu1 %vm1814_vm9, %v5376_v22 }
 0x822   : > { %8570 = vrot.lane.b32.xlu1 %v8569_v52, %s8838_s1  ;;  %7306 = vmatprep.mubr.msk.bf16.mxu1 %vm8844_vm8, %v8843_v40  ;;  %v5184_v52 = vld [vmem:[#allocation7] sm:$0xff] }
 0x824   : > { %8575 = vrot.lane.b32.xlu0 %v8574_v6, %s8839_s29 }
 0x826   : > { %5252 = vrot.lane.b32.xlu1 %v5197_v26, %s8839_s29 }
 0x828   : > { %8580 = vrot.lane.b32.xlu0 %v8579_v12, %s8841_s24 }
 0x829   : > { %7307 = vmatmul.mubr.msk.bf16.gmra.mxu1 %vm1814_vm9, %v5379_v21 }
 0x82a   : > { %5272 = vrot.lane.b32.xlu1 %v5202_v3, %s8841_s24  ;;  %7314 = vmatprep.mubr.msk.bf16.mxu1 %vm8844_vm8, %v8843_v40 }
 0x82c   : > { %5234 = vrot.lane.b32.xlu0 %v5193_v11, %s8838_s1 }
 0x82e   : > { %8585 = vrot.lane.b32.xlu1 %v8584_v60, %s8839_s29 }
 0x830   : > { %8590 = vrot.lane.b32.xlu0 %v8589_v62, %s8841_s24 }
 0x832   : > { %5674 = vperm.xlu1 %8594, %v10705_v31  }
 0x834   : > { %5679 = vperm.xlu0 %8595, %v10710_v41  }
 0x836   : > { %5684 = vperm.xlu1 %8594, %v10717_v56  }
 0x838   : > { %5694 = vperm.xlu0 %8595, %v10722_v9  }
 0x83a   : > { %5689 = vperm.xlu1 %8594, %v10729_v49  }
 0x870   : > { %v8521_v61 = vpop.permute.xlu0 %8520 }
 0x871   : > { %v8522_v57 = vunpack.i.l.bf16 %v8521_v61  ;;  %v8523_v38 = vunpack.i.h.bf16 %v8521_v61 }
 0x873   : > { %v4572_v17 = vsel %vm1814_vm9, %v4560_v14, %v8522_v57  ;;  %v5356_v47 = vsel %vm1814_vm9, %v5204_v54, %v8523_v38 }
 0x874   : > { %v4584_v19 = vsel %vm3106_vm13, %v4572_v17, %v4391_v63 }
 0x87e   : > { %v8526_v16 = vpop.permute.xlu0 %8525 }
 0x87f   : > { %v8527_v55 = vunpack.i.l.bf16 %v8526_v16  ;;  %v10739_v34 = vpop.permute.xlu1 %8540  ;;  %v8528_v48 = vunpack.i.h.bf16 %v8526_v16  ;;  %v10758_v16 = vld [vmem:[#allocation7 + $0x1f] sm:$0xff] }
 0x880   : > { %v8542_v7 = vunpack.i.l.bf16 %v10739_v34 }
 0x881   : > { %v4596_v20 = vsel %vm3118_vm14, %v4584_v19, %v8527_v55  ;;  %v5361_v22 = vsel %vm3118_vm14, %v5356_v47, %v8528_v48  ;;  %v10760_v55 = vld [vmem:[#allocation7 + $0x17] sm:$0xff] }
 0x882   : > { %v8531_v24 = vpop.permute.xlu0 %8530  ;;  %v4608_v36 = vsel %vm3130_vm11, %v4596_v20, %v4469_v15 }
 0x883   : > { %v8532_v28 = vunpack.i.l.bf16 %v8531_v24  ;;  %v8533_v46 = vunpack.i.h.bf16 %v8531_v24 }
 0x885   : > { %v4620_v29 = vsel %vm3142_vm12, %v4608_v36, %v8532_v28  ;;  %v8543_v28 = vunpack.i.h.bf16 %v10739_v34 }
 0x886   : > { %v8536_v32 = vpop.permute.xlu0 %8535  ;;  %v4632_v33 = vsel %vm3154_vm15, %v4620_v29, %v4537_v58 }
 0x887   : > { %v4643_v51 = vpack.c.bf16 %v4632_v33, %v4632_v33  ;;  %v8538_v8 = vunpack.i.h.bf16 %v8536_v32  ;;  %v8537_v30 = vunpack.i.l.bf16 %v8536_v32 }
 0x889   : > { %4815 = vmatmul.mubr.bf16.gmra.mxu0 %v4643_v51  ;;  %v5341_v0 = vsel %vm1814_vm9, %v5184_v52, %v8538_v8  ;;  %v5357_v26 = vsel %vm1814_vm9, %v10746_v10, %v8537_v30 }
 0x88a   : > { %v8546_v37 = vpop.permute.xlu0 %8545 }
 0x88b   : > { %v8548_v63 = vunpack.i.h.bf16 %v8546_v37  ;;  %v8547_v15 = vunpack.i.l.bf16 %v8546_v37 }
 0x88c   : > { %v8551_v1 = vpop.permute.xlu1 %8550 }
 0x88d   : > { %v8552_v2 = vunpack.i.l.bf16 %v8551_v1  ;;  %v8553_v44 = vunpack.i.h.bf16 %v8551_v1  ;;  %v5343_v36 = vsel %vm1814_vm9, %v10663_v18, %v8548_v63  ;;  %v5359_v33 = vsel %vm1814_vm9, %v10758_v16, %v8547_v15 }
 0x88e   : > { %v8556_v25 = vpop.permute.xlu0 %8555 }
 0x88f   : > { %v8558_v45 = vunpack.i.h.bf16 %v8556_v25  ;;  %v8557_v43 = vunpack.i.l.bf16 %v8556_v25  ;;  %v5342_v50 = vsel %vm1814_vm9, %v10634_v4, %v8552_v2  ;;  %v5366_v4 = vsel %vm3142_vm12, %v5361_v22, %v8533_v46 }
 0x890   : > { %v8561_v27 = vpop.permute.xlu1 %8560  ;;  %v5358_v24 = vsel %vm1814_vm9, %v10760_v55, %v8553_v44 }
 0x891   : > { %v8562_v3 = vunpack.i.l.bf16 %v8561_v27  ;;  %v5346_v11 = vsel %vm3118_vm14, %v5341_v0, %v8558_v45  ;;  %v5362_v60 = vsel %vm3118_vm14, %v5357_v26, %v8557_v43  ;;  %v8563_v13 = vunpack.i.h.bf16 %v8561_v27  ;;  %v10781_v43 = vld [vmem:[#allocation7 + $0x27] sm:$0xff] }
 0x892   : > { %v8566_v6 = vpop.permute.xlu0 %8565 }
 0x893   : > { %v5347_v5 = vsel %vm3118_vm14, %v5342_v50, %v8562_v3  ;;  %v8568_v12 = vunpack.i.h.bf16 %v8566_v6  ;;  %v8567_v42 = vunpack.i.l.bf16 %v8566_v6  ;;  %v5363_v29 = vsel %vm3118_vm14, %v5358_v24, %v8563_v13  ;;  %v8702_v24 = vld [vmem:[%s11127_s13 + $0x70] sm:$0xff]  }
 0x894   : > { %v8571_v53 = vpop.permute.xlu1 %8570  ;;  %v5352_v21 = vsel %vm3142_vm12, %v5347_v5, %v8542_v7  ;;  %v5368_v48 = vsel %vm3142_vm12, %v5363_v29, %v8543_v28  ;;  %v8703_v28 = vld [vmem:[%s11127_s13 + $0x30] sm:$0xff]   ;;  %v8705_v29 = vld [vmem:[%s11127_s13 + $0x28] sm:$0xff]  }
 0x895   : > { %v8572_v39 = vunpack.i.l.bf16 %v8571_v53  ;;  %v5351_v62 = vsel %vm3142_vm12, %v5346_v11, %v8568_v12  ;;  %v5367_v59 = vsel %vm3142_vm12, %v5362_v60, %v8567_v42  ;;  %v8573_v54 = vunpack.i.h.bf16 %v8571_v53  ;;  %v4808_v42 = vpop.f32.mrf.mxu0 }
 0x896   : > { %v5371_v61 = vpack.c.bf16 %v5352_v21, %v5351_v62  ;;  %v8576_v57 = vpop.permute.xlu0 %8575  ;;  %v5372_v14 = vpack.c.bf16 %v5367_v59, %v5366_v4 }
 0x897   : > { %v8578_v19 = vunpack.i.h.bf16 %v8576_v57  ;;  %v8577_v58 = vunpack.i.l.bf16 %v8576_v57  ;;  %v5344_v20 = vsel %vm1814_vm9, %v10674_v35, %v8572_v39  ;;  %v5360_v7 = vsel %vm1814_vm9, %v10781_v43, %v8573_v54  ;;  %v4810_v53 = vpop.f32.mrf.mxu0 }
 0x898   : > { %v5253_v17 = vpop.permute.xlu1 %5252  ;;  %5572 = vmatprep.mubr.bf16.mxu0 %v5372_v14  ;;  %v8698_v14 = vld [vmem:[%s11127_s13 + $0x88] sm:$0xff]  }
 0x899   : > { %5573 = vmatmul.mubr.bf16.vlgmr.msra.gmra.mxu0 %v5371_v61  ;;  %v5349_v51 = vsel %vm3118_vm14, %v5344_v20, %v5253_v17  ;;  %v5364_v38 = vsel %vm3118_vm14, %v5359_v33, %v8577_v58  ;;  %v5348_v2 = vsel %vm3118_vm14, %v5343_v36, %v8578_v19  ;;  %v4811_v4 = vpop.f32.mrf.mxu0  ;;  %7311 = vmatpush3.bf16.msra.mxu1 %v8698_v14  ;;  %v8699_v19 = vld [vmem:[%s11127_s13 + $0x80] sm:$0xff]   ;;  %v8700_v58 = vld [vmem:[%s11127_s13 + $0x78] sm:$0xff]   ;;  %v8704_v36 = vld [vmem:[%s11127_s13 + $0x68] sm:$0xff]  }
 0x89a   : > { %v8581_v32 = vpop.permute.xlu0 %8580  ;;  %7312 = vmatprep.subr.bf16.mxu1 %v8843_v40  ;;  %v8701_v20 = vld [vmem:[%s11127_s13 + $0x38] sm:$0xff]   ;;  %7073 = vmatprep.subr.bf16.mxu0 %v8700_v58  ;;  %v8707_v33 = vld [vmem:[%s11127_s13 + $0x20] sm:$0xff]  }
 0x89b   : > { %v8583_v37 = vunpack.i.h.bf16 %v8581_v32  ;;  %v8582_v35 = vunpack.i.l.bf16 %v8581_v32  ;;  %v4813_v11 = vpop.f32.mrf.mxu0  ;;  %7074 = vmatpush3.bf16.msra.mxu0 %v8701_v20  ;;  %v8706_v32 = vld [vmem:[%s11127_s13 + $0x60] sm:$0xff]  }
 0x89c   : > { %v5273_v1 = vpop.permute.xlu1 %5272  ;;  %7075 = vmatprep.subr.bf16.mxu0 %v8702_v24  ;;  %v8710_v24 = vld [vmem:[%s11127_s13 + $0x50] sm:$0xff]  }
 0x89d   : > { %v5354_v34 = vsel %vm3142_vm12, %v5349_v51, %v5273_v1  ;;  %v5369_v18 = vsel %vm3142_vm12, %v5364_v38, %v8582_v35  ;;  %v5353_v25 = vsel %vm3142_vm12, %v5348_v2, %v8583_v37  ;;  %7313 = vmatpush3.bf16.msra.mxu1 %v8699_v19  ;;  %v6915_v2 = vld [vmem:[%s11126_s12] ss:$0 sm:$0xff] }
 0x89e   : > { %v5374_v8 = vpack.c.bf16 %v5354_v34, %v5353_v25  ;;  %v5235_v30 = vpop.permute.xlu0 %5234  ;;  %v5375_v27 = vpack.c.bf16 %v5369_v18, %v5368_v48 }
 0x89f   : > { %v5345_v46 = vsel %vm1814_vm9, %v10667_v23, %v5235_v30  ;;  %7076 = vmatpush3.bf16.msra.mxu0 %v8703_v28 }
 0x8a0   : > { %v8586_v45 = vpop.permute.xlu1 %8585  ;;  %5580 = vmatprep.mubr.bf16.mxu0 %v5375_v27  ;;  %7077 = vmatprep.subr.bf16.mxu0 %v8704_v36 }
 0x8a1   : > { %v8588_v3 = vunpack.i.h.bf16 %v8586_v45  ;;  %v8587_v47 = vunpack.i.l.bf16 %v8586_v45  ;;  %5581 = vmatmul.mubr.bf16.gmra.mxu0 %v5374_v8 }
 0x8a2   : > { %v8591_v22 = vpop.permute.xlu0 %8590 }
 0x8a3   : > { %v5350_v50 = vsel %vm3118_vm14, %v5345_v46, %v8588_v3  ;;  %v8593_v52 = vunpack.i.h.bf16 %v8591_v22  ;;  %v8592_v5 = vunpack.i.l.bf16 %v8591_v22  ;;  %v5365_v6 = vsel %vm3118_vm14, %v5360_v7, %v8587_v47  ;;  %7078 = vmatpush3.bf16.msra.mxu0 %v8705_v29 }
 0x8a4   : > { %7079 = vmatprep.subr.bf16.mxu0 %v8706_v32 }
 0x8a5   : > { %v5355_v0 = vsel %vm3142_vm12, %v5350_v50, %v8593_v52  ;;  %v5370_v23 = vsel %vm3142_vm12, %v5365_v6, %v8592_v5 }
 0x8a6   : > { %v5378_v26 = vpack.c.bf16 %v5370_v23, %v5370_v23  ;;  %v5377_v12 = vpack.c.bf16 %v5355_v0, %v5355_v0 }
 0x8a7   : > { %7080 = vmatpush3.bf16.msra.mxu0 %v8707_v33 }
 0x8a8   : > { %5588 = vmatprep.mubr.bf16.mxu0 %v5378_v26 }
 0x8a9   : > { %5589 = vmatmul.mubr.bf16.gmra.mxu0 %v5377_v12 }
 0x8ad   : > { %v5675_v50 = vpop.permute.xlu1 %5674 }
 0x8af   : > { %v5680_v0 = vpop.permute.xlu0 %5679 }
 0x8d9   : > { %v5630_v60 = vpop.f32.mrf.mxu1 }
 0x8db   : > { %v7300_v39 = vpop.f32.mrf.mxu1 }
 0x8dd   : > { %v5633_v44 = vpop.f32.mrf.mxu1 }
 0x8df   : > { %v7301_v21 = vpop.f32.mrf.mxu1 }
 0x8e0   : > { %v8708_v21 = vld [vmem:[%s11127_s13 + $0x58] sm:$0xff]  }
 0x8e1   : > { %v5638_v62 = vpop.f32.mrf.mxu1  ;;  %7081 = vmatprep.subr.bf16.mxu0 %v8708_v21 }
 0x8e3   : > { %v7304_v59 = vpop.f32.mrf.mxu1 }
 0x8e4   : > { %v8709_v59 = vld [vmem:[%s11127_s13 + $0x18] sm:$0xff]  }
 0x8e5   : > { %v10789_v63 = vpop.f32.mrf.mxu1  ;;  %7082 = vmatpush3.bf16.msra.mxu0 %v8709_v59 }
 0x8e6   : > { %7083 = vmatprep.subr.bf16.mxu0 %v8710_v24 }
 0x8e7   : > { %v7305_v13 = vpop.f32.mrf.mxu1 }
 0x8e9   : > { %v10793_v61 = vpop.f32.mrf.mxu1 }
 0x8eb   : > { %v7308_v57 = vpop.f32.mrf.mxu1 }
 0x8ed   : > { %v5649_v15 = vpop.f32.mrf.mxu1 }
 0x8ef   : > { %v7309_v17 = vpop.f32.mrf.mxu1 }
 0x949   : > { %v4816_v51 = vpop.f32.mrf.mxu0 }
 0x94b   : > { %v4818_v37 = vpop.f32.mrf.mxu0 }
 0x94d   : > { %v4819_v35 = vpop.f32.mrf.mxu0 }
 0x94f   : > { %v4820_v1 = vpop.f32.mrf.mxu0 }
 0x950   : > { %v5695_v1 = vpop.permute.xlu0 %5694 }
 0x959   : > { %v7050_v38 = vpop.f32.mrf.mxu0 }
 0x95b   : > { %v7051_v34 = vpop.f32.mrf.mxu0 }
 0x95c   : > { %v7052_v48 = vadd.f32 %v7051_v34, %v7050_v38  ;;  %v8713_v34 = vld [vmem:[%s11127_s13 + $0x8] sm:$0xff]  }
 0x95d   : > { %v7053_v18 = vpop.f32.mrf.mxu0 }
 0x95e   : > { %v5575_v25 = vadd.f32 %v7052_v48, %v6915_v2 }
 0x95f   : > { %v7054_v8 = vpop.f32.mrf.mxu0 }
 0x960   : > { %v5631_v30 = vadd.f32 %v5630_v60, %v5575_v25  ;;  %v7055_v27 = vadd.f32 %v7054_v8, %v7053_v18  ;;  %v5685_v60 = vpop.permute.xlu1 %5684 }
 0x961   : > { %v7056_v54 = vpop.f32.mrf.mxu0 }
 0x962   : > { %v5578_v46 = vadd.f32 %v7055_v27, %v6915_v2  ;;  %vm5652_vm13 = vcmp.ge.f32.partialorder %v5631_v30, 0.0  ;;  %v5657_v45 = vmul.f32 0.01, %v5631_v30 }
 0x963   : > { %v7057_v3 = vpop.f32.mrf.mxu0 }
 0x964   : > { %v5634_v47 = vadd.f32 %v5633_v44, %v5578_v46  ;;  %v5662_v22 = vsel %vm5652_vm13, %v5631_v30, %v5657_v45  ;;  %v7058_v7 = vadd.f32 %v7057_v3, %v7056_v54  ;;  %v5690_v28 = vpop.permute.xlu1 %5689  ;;  %v8714_v3 = vld [vmem:[%s11127_s13 + $0x40] sm:$0xff]   ;;  %vm8848_vm13 = vmmov 0  }
 0x965   : > { %v5697_v52 = vmul.f32 %v5675_v50, %v5662_v22  ;;  %v7059_v5 = vpop.f32.mrf.mxu0 }
 0x966   : > { %v5583_v6 = vadd.f32 %v7058_v7, %v6915_v2  ;;  %vm5653_vm11 = vcmp.ge.f32.partialorder %v5634_v47, 0.0  ;;  %v5658_v23 = vmul.f32 0.01, %v5634_v47 }
 0x967   : > { %5704 = vst.msk [vmem:[#allocation8 + $0x7] sm:$0xff] %vm1814_vm9, %v5697_v52  ;;  %v7060_v26 = vpop.f32.mrf.mxu0 }
 0x968   : > { %v5639_v12 = vadd.f32 %v5638_v62, %v5583_v6  ;;  %v7061_v42 = vadd.f32 %v7060_v26, %v7059_v5  ;;  %v5663_v53 = vsel %vm5653_vm11, %v5634_v47, %v5658_v23  ;;  %v8715_v47 = vld [vmem:[%s11127_s13] sm:$0xff]  }
 0x969   : > { %v5698_v4 = vmul.f32 %v5680_v0, %v5663_v53  ;;  %v7062_v11 = vpop.f32.mrf.mxu0 }
 0x96a   : > { %vm5654_vm15 = vcmp.ge.f32.partialorder %v5639_v12, 0.0  ;;  %v5659_v39 = vmul.f32 0.01, %v5639_v12  ;;  %v5586_v44 = vadd.f32 %v7061_v42, %v6915_v2 }
 0x96b   : > { %5705 = vst.msk [vmem:[#allocation8 + $0xf] sm:$0xff] %vm1814_vm9, %v5698_v4  ;;  %v7063_v13 = vpop.f32.mrf.mxu0 }
 0x96c   : > { %v5664_v62 = vsel %vm5654_vm15, %v5639_v12, %v5659_v39  ;;  %v5642_v57 = vadd.f32 %v10789_v63, %v5586_v44  ;;  %v7064_v14 = vadd.f32 %v7063_v13, %v7062_v11  ;;  %v8711_v63 = vld [vmem:[%s11127_s13 + $0x10] sm:$0xff]  }
 0x96d   : > { %v5699_v15 = vmul.f32 %v5685_v60, %v5664_v62  ;;  %v7065_v17 = vpop.f32.mrf.mxu0  ;;  %7084 = vmatpush3.bf16.msra.mxu0 %v8711_v63 }
 0x96e   : > { %vm5655_vm5 = vcmp.ge.f32.partialorder %v5642_v57, 0.0  ;;  %v5660_v19 = vmul.f32 0.01, %v5642_v57  ;;  %v5591_v58 = vadd.f32 %v7064_v14, %v6915_v2  ;;  %v5717_v51 = vld [vmem:[#allocation8 + $0x1] sm:$0xff] }
 0x96f   : > { %5706 = vst.msk [vmem:[#allocation8 + $0x17] sm:$0xff] %vm1814_vm9, %v5699_v15  ;;  %v7066_v20 = vpop.f32.mrf.mxu0  ;;  %v5722_v18 = vld [vmem:[#allocation8 + $0x2] sm:$0xff] }
 0x970   : > { %v5665_v36 = vsel %vm5655_vm5, %v5642_v57, %v5660_v19  ;;  %v5647_v29 = vadd.f32 %v10793_v61, %v5591_v58  ;;  %v8712_v61 = vld [vmem:[%s11127_s13 + $0x48] sm:$0xff]  }
 0x971   : > { %v5700_v32 = vmul.f32 %v5690_v28, %v5665_v36  ;;  %7085 = vmatprep.subr.bf16.mxu0 %v8712_v61  ;;  %v5727_v22 = vld [vmem:[#allocation8 + $0x6] sm:$0xff] }
 0x972   : > { %vm5656_vm6 = vcmp.ge.f32.partialorder %v5647_v29, 0.0  ;;  %v5661_v33 = vmul.f32 0.01, %v5647_v29  ;;  %v5718_v37 = vld [vmem:[#allocation8 + $0x9] sm:$0xff]  ;;  %7086 = vmatpush3.bf16.msra.mxu0 %v8713_v34 }
 0x973   : > { %5707 = vst.msk [vmem:[#allocation8 + $0x1f] sm:$0xff] %vm1814_vm9, %v5700_v32  ;;  %v8596_v35 = vpack.i.bf16 %v5718_v37, %v5717_v51  ;;  %v5723_v2 = vld [vmem:[#allocation8 + $0xa] sm:$0xff]  ;;  %7087 = vmatprep.subr.bf16.mxu0 %v8714_v3 }
 0x974   : > { %v5666_v38 = vsel %vm5656_vm6, %v5647_v29, %v5661_v33  ;;  %v5728_v25 = vld [vmem:[#allocation8 + $0xe] sm:$0xff]  ;;  %v8601_v54 = vpack.i.bf16 %v5723_v2, %v5722_v18 }
 0x975   : > { %v5701_v48 = vmul.f32 %v5695_v1, %v5666_v38  ;;  %8597 = vrot.lane.b32.xlu0 %v8596_v35, %s8838_s1  ;;  %v10854_v30 = vld [vmem:[#allocation8 + $0x8] sm:$0xff]  ;;  %v8606_v7 = vpack.i.bf16 %v5728_v25, %v5727_v22 }
 0x976   : > { %v5729_v8 = vld [vmem:[#allocation8 + $0x16] sm:$0xff]  ;;  %v5738_v52 = vld [vmem:[#allocation8 + $0xc] sm:$0xff]  ;;  %7088 = vmatpush3.bf16.msra.mxu0 %v8715_v47 }
 0x977   : > { %v10856_v27 = vld [vmem:[#allocation8 + $0x10] sm:$0xff]  ;;  %5708 = vst.msk [vmem:[#allocation8 + $0x27] sm:$0xff] %vm1814_vm9, %v5701_v48  ;;  %v5901_v46 = vpack.c.bf16 %v5729_v8, %v5728_v25 }
 0x978   : > { %v8611_v45 = vpack.i.bf16 %v10856_v27, %v10854_v30  ;;  %v5739_v50 = vld [vmem:[#allocation8 + $0x14] sm:$0xff] }
 0x979   : > { %8602 = vrot.lane.b32.xlu0 %v8601_v54, %s8839_s29  ;;  %7315 = vmatmul.mubr.msk.bf16.vlgmr.msra.gmra.mxu1 %vm1814_vm9, %v5901_v46  ;;  %v8616_v5 = vpack.i.bf16 %v5739_v50, %v5738_v52  ;;  %v5744_v0 = vld [vmem:[#allocation8 + $0x15] sm:$0xff]  ;;  %v5743_v42 = vld [vmem:[#allocation8 + $0xd] sm:$0xff] }
 0x97a   : > { %8612 = vrot.lane.b32.xlu1 %v8611_v45, %s8838_s1  ;;  %7318 = vmatprep.mubr.msk.bf16.mxu1 %vm8844_vm8, %v8843_v40  ;;  %v5720_v6 = vld [vmem:[#allocation8 + $0x19] sm:$0xff]  ;;  %v5719_v23 = vld [vmem:[#allocation8 + $0x11] sm:$0xff]  ;;  %v8621_v11 = vpack.i.bf16 %v5744_v0, %v5743_v42  ;;  %v5732_v50 = vld [vmem:[#allocation8 + $0x7] sm:$0xff] }
 0x97b   : > { %v5730_v26 = vld [vmem:[#allocation8 + $0x1e] sm:$0xff]  ;;  %v8626_v53 = vpack.i.bf16 %v5720_v6, %v5719_v23  ;;  %v5724_v44 = vld [vmem:[#allocation8 + $0x12] sm:$0xff] }
 0x97c   : > { %v5725_v60 = vld [vmem:[#allocation8 + $0x1a] sm:$0xff]  ;;  %v8636_v14 = vpack.i.bf16 %v5730_v26, %v5729_v8  ;;  %v5733_v22 = vld [vmem:[#allocation8 + $0xf] sm:$0xff] }
 0x97d   : > { %8607 = vrot.lane.b32.xlu0 %v8606_v7, %s8841_s24  ;;  %v8631_v21 = vpack.i.bf16 %v5725_v60, %v5724_v44  ;;  %v10881_v59 = vld [vmem:[#allocation8 + $0x18] sm:$0xff] }
 0x97e   : > { %8617 = vrot.lane.b32.xlu1 %v8616_v5, %s8839_s29  ;;  %v5731_v12 = vld [vmem:[#allocation8 + $0x26] sm:$0xff]  ;;  %v5748_v62 = vld [vmem:[#allocation8 + $0x2e] sm:$0xff]  ;;  %v5740_v17 = vld [vmem:[#allocation8 + $0x1c] sm:$0xff] }
 0x97f   : > { %v5904_v4 = vpack.c.bf16 %v5731_v12, %v5730_v26  ;;  %v10876_v39 = vld [vmem:[#allocation8 + $0x20] sm:$0xff]  ;;  %v5907_v15 = vpack.c.bf16 %v5748_v62, %v5748_v62  ;;  %v5742_v20 = vld [vmem:[#allocation8 + $0x2c] sm:$0xff] }
 0x980   : > { %v8641_v13 = vpack.i.bf16 %v10876_v39, %v10881_v59  ;;  %v5741_v57 = vld [vmem:[#allocation8 + $0x24] sm:$0xff]  ;;  %v5747_v33 = vld [vmem:[#allocation8 + $0x2d] sm:$0xff] }
 0x981   : > { %8627 = vrot.lane.b32.xlu0 %v8626_v53, %s8838_s1  ;;  %7319 = vmatmul.mubr.msk.bf16.gmra.mxu1 %vm1814_vm9, %v5904_v4  ;;  %v8646_v19 = vpack.i.bf16 %v5741_v57, %v5740_v17  ;;  %v5726_v58 = vld [vmem:[#allocation8 + $0x22] sm:$0xff]  ;;  %v8666_v51 = vpack.i.bf16 %v5731_v12, %v5747_v33 }
 0x982   : > { %8622 = vrot.lane.b32.xlu1 %v8621_v11, %s8841_s24  ;;  %7322 = vmatprep.mubr.msk.bf16.mxu1 %vm8844_vm8, %v8843_v40  ;;  %v5746_v40 = vld [vmem:[#allocation8 + $0x25] sm:$0xff]  ;;  %v8661_v24 = vpack.i.bf16 %v5726_v58, %v5742_v20  ;;  %v5745_v28 = vld [vmem:[#allocation8 + $0x1d] sm:$0xff] }
 0x983   : > { %v8651_v36 = vpack.i.bf16 %v5746_v40, %v5745_v28  ;;  %v5721_v29 = vld [vmem:[#allocation8 + $0x21] sm:$0xff] }
 0x984   : > { %v5737_v63 = vld [vmem:[#allocation8 + $0x28] sm:$0xff]  ;;  %v5735_v33 = vld [vmem:[#allocation8 + $0x1f] sm:$0xff] }
 0x985   : > { %8632 = vrot.lane.b32.xlu0 %v8631_v21, %s8839_s29  ;;  %v8656_v32 = vpack.i.bf16 %v5721_v29, %v5737_v63 }
 0x986   : > { %8642 = vrot.lane.b32.xlu1 %v8641_v13, %s8838_s1 }
 0x989   : > { %8637 = vrot.lane.b32.xlu0 %v8636_v14, %s8841_s24  ;;  %7323 = vmatmul.mubr.msk.bf16.gmra.mxu1 %vm1814_vm9, %v5907_v15 }
 0x98a   : > { %8647 = vrot.lane.b32.xlu1 %v8646_v19, %s8839_s29 }
 0x98d   : > { %8662 = vrot.lane.b32.xlu0 %v8661_v24, %s8839_s29 }
 0x98e   : > { %8652 = vrot.lane.b32.xlu1 %v8651_v36, %s8841_s24 }
 0x991   : > { %6212 = vperm.xlu0 %8595, %v10705_v31  }
 0x992   : > { %8657 = vrot.lane.b32.xlu1 %v8656_v32, %s8838_s1  ;;  %v5734_v32 = vld [vmem:[#allocation8 + $0x17] sm:$0xff] }
 0x995   : > { %6222 = vperm.xlu0 %8595, %v10717_v56   ;;  %v5712_v56 = vld [vmem:[#allocation8] sm:$0xff] }
 0x996   : > { %8667 = vrot.lane.b32.xlu1 %v8666_v51, %s8841_s24  ;;  %s8846_s24 = smov 64  }
 0x999   : > { %6232 = vperm.xlu0 %8595, %v10722_v9  }
 0x99a   : > { %6217 = vperm.xlu1 %8594, %v10710_v41  }
 0x99e   : > { %6227 = vperm.xlu1 %8594, %v10729_v49  }
 0x9e7   : > { %v8598_v37 = vpop.permute.xlu0 %8597 }
 0x9e8   : > { %v8600_v38 = vunpack.i.h.bf16 %v8598_v37  ;;  %v8599_v2 = vunpack.i.l.bf16 %v8598_v37 }
 0x9ea   : > { %v5869_v41 = vsel %vm1814_vm9, %v5712_v56, %v8599_v2  ;;  %v5870_v49 = vsel %vm1814_vm9, %v10854_v30, %v8600_v38 }
 0x9eb   : > { %v8603_v35 = vpop.permute.xlu0 %8602 }
 0x9ec   : > { %v8613_v1 = vpop.permute.xlu1 %8612  ;;  %v8605_v61 = vunpack.i.h.bf16 %v8603_v35  ;;  %v8604_v34 = vunpack.i.l.bf16 %v8603_v35 }
 0x9ed   : > { %v8615_v18 = vunpack.i.h.bf16 %v8613_v1  ;;  %v8614_v25 = vunpack.i.l.bf16 %v8613_v1 }
 0x9ee   : > { %v5874_v3 = vsel %vm3118_vm14, %v5869_v41, %v8604_v34  ;;  %v5875_v47 = vsel %vm3118_vm14, %v5870_v49, %v8605_v61 }
 0x9ef   : > { %v8608_v31 = vpop.permute.xlu0 %8607  ;;  %v5885_v52 = vsel %vm1814_vm9, %v5733_v22, %v8615_v18  ;;  %v5884_v5 = vsel %vm1814_vm9, %v5732_v50, %v8614_v25 }
 0x9f0   : > { %v8618_v48 = vpop.permute.xlu1 %8617  ;;  %v8610_v8 = vunpack.i.h.bf16 %v8608_v31  ;;  %v8609_v54 = vunpack.i.l.bf16 %v8608_v31 }
 0x9f1   : > { %v8620_v46 = vunpack.i.h.bf16 %v8618_v48  ;;  %v8619_v9 = vunpack.i.l.bf16 %v8618_v48 }
 0x9f2   : > { %v5879_v23 = vsel %vm3142_vm12, %v5874_v3, %v8609_v54  ;;  %v5880_v26 = vsel %vm3142_vm12, %v5875_v47, %v8610_v8 }
 0x9f3   : > { %v8628_v45 = vpop.permute.xlu0 %8627  ;;  %v5889_v30 = vsel %vm3118_vm14, %v5884_v5, %v8619_v9  ;;  %v5890_v12 = vsel %vm3118_vm14, %v5885_v52, %v8620_v46  ;;  %v5899_v44 = vpack.c.bf16 %v5880_v26, %v5879_v23  ;;  %v5736_v46 = vld [vmem:[#allocation8 + $0x27] sm:$0xff] }
 0x9f4   : > { %v8623_v7 = vpop.permute.xlu1 %8622  ;;  %v8630_v21 = vunpack.i.h.bf16 %v8628_v45  ;;  %v8629_v13 = vunpack.i.l.bf16 %v8628_v45 }
 0x9f5   : > { %v8625_v6 = vunpack.i.h.bf16 %v8623_v7  ;;  %v8624_v0 = vunpack.i.l.bf16 %v8623_v7 }
 0x9f6   : > { %v5871_v28 = vsel %vm1814_vm9, %v10856_v27, %v8629_v13  ;;  %v5872_v36 = vsel %vm1814_vm9, %v10881_v59, %v8630_v21 }
 0x9f7   : > { %v5894_v42 = vsel %vm3142_vm12, %v5889_v30, %v8624_v0  ;;  %v5895_v53 = vsel %vm3142_vm12, %v5890_v12, %v8625_v6  ;;  %v8633_v4 = vpop.permute.xlu0 %8632 }
 0x9f8   : > { %v8643_v11 = vpop.permute.xlu1 %8642  ;;  %v5900_v60 = vpack.c.bf16 %v5895_v53, %v5894_v42  ;;  %v8635_v57 = vunpack.i.h.bf16 %v8633_v4  ;;  %v8634_v14 = vunpack.i.l.bf16 %v8633_v4 }
 0x9f9   : > { %v8645_v17 = vunpack.i.h.bf16 %v8643_v11  ;;  %v8644_v19 = vunpack.i.l.bf16 %v8643_v11 }
 0x9fa   : > { %6100 = vmatprep.mubr.bf16.mxu0 %v5900_v60  ;;  %v5876_v29 = vsel %vm3118_vm14, %v5871_v28, %v8634_v14  ;;  %v5877_v63 = vsel %vm3118_vm14, %v5872_v36, %v8635_v57 }
 0x9fb   : > { %6101 = vmatmul.mubr.bf16.vlgmr.msra.gmra.mxu0 %v5899_v44  ;;  %v8638_v62 = vpop.permute.xlu0 %8637  ;;  %v5887_v37 = vsel %vm1814_vm9, %v5735_v33, %v8645_v17  ;;  %v5886_v35 = vsel %vm1814_vm9, %v5734_v32, %v8644_v19 }
 0x9fc   : > { %v8648_v15 = vpop.permute.xlu1 %8647  ;;  %v8640_v58 = vunpack.i.h.bf16 %v8638_v62  ;;  %v8639_v20 = vunpack.i.l.bf16 %v8638_v62  ;;  %v6937_v62 = vld [vmem:[%s11128_s14] ss:$0 sm:$0xff] }
 0x9fd   : > { %v8650_v40 = vunpack.i.h.bf16 %v8648_v15  ;;  %v8649_v24 = vunpack.i.l.bf16 %v8648_v15 }
 0x9fe   : > { %v5881_v2 = vsel %vm3142_vm12, %v5876_v29, %v8639_v20  ;;  %v5882_v27 = vsel %vm3142_vm12, %v5877_v63, %v8640_v58 }
 0x9ff   : > { %v5891_v31 = vsel %vm3118_vm14, %v5886_v35, %v8649_v24  ;;  %v5892_v59 = vsel %vm3118_vm14, %v5887_v37, %v8650_v40  ;;  %v8663_v25 = vpop.permute.xlu0 %8662  ;;  %v5902_v54 = vpack.c.bf16 %v5882_v27, %v5881_v2  ;;  %v6180_v40 = vld [vmem:[#allocation7 + $0x7] sm:$0xff] }
 0xa00   : > { %v8653_v51 = vpop.permute.xlu1 %8652  ;;  %v8665_v49 = vunpack.i.h.bf16 %v8663_v25  ;;  %v8664_v45 = vunpack.i.l.bf16 %v8663_v25 }
 0xa01   : > { %v8655_v1 = vunpack.i.h.bf16 %v8653_v51  ;;  %v8654_v38 = vunpack.i.l.bf16 %v8653_v51 }
 0xa03   : > { %v5896_v61 = vsel %vm3142_vm12, %v5891_v31, %v8654_v38  ;;  %v5897_v34 = vsel %vm3142_vm12, %v5892_v59, %v8655_v1 }
 0xa04   : > { %v8658_v48 = vpop.permute.xlu1 %8657  ;;  %v5903_v18 = vpack.c.bf16 %v5897_v34, %v5896_v61 }
 0xa05   : > { %v8660_v56 = vunpack.i.h.bf16 %v8658_v48  ;;  %v8659_v8 = vunpack.i.l.bf16 %v8658_v48 }
 0xa06   : > { %6108 = vmatprep.mubr.bf16.mxu0 %v5903_v18 }
 0xa07   : > { %v5873_v9 = vsel %vm1814_vm9, %v10876_v39, %v8660_v56  ;;  %v5888_v41 = vsel %vm1814_vm9, %v5736_v46, %v8659_v8  ;;  %6109 = vmatmul.mubr.bf16.gmra.mxu0 %v5902_v54 }
 0xa08   : > { %v8668_v3 = vpop.permute.xlu1 %8667  ;;  %v5878_v22 = vsel %vm3118_vm14, %v5873_v9, %v8665_v49  ;;  %v5893_v7 = vsel %vm3118_vm14, %v5888_v41, %v8664_v45 }
 0xa09   : > { %v8670_v47 = vunpack.i.h.bf16 %v8668_v3  ;;  %v8669_v50 = vunpack.i.l.bf16 %v8668_v3 }
 0xa0b   : > { %v5883_v52 = vsel %vm3142_vm12, %v5878_v22, %v8670_v47  ;;  %v5898_v5 = vsel %vm3142_vm12, %v5893_v7, %v8669_v50 }
 0xa0c   : > { %v5906_v6 = vpack.c.bf16 %v5898_v5, %v5898_v5  ;;  %v5905_v0 = vpack.c.bf16 %v5883_v52, %v5883_v52  ;;  %v6213_v32 = vpop.permute.xlu0 %6212 }
 0xa0e   : > { %6116 = vmatprep.mubr.bf16.mxu0 %v5906_v6 }
 0xa0f   : > { %6117 = vmatmul.mubr.bf16.gmra.mxu0 %v5905_v0 }
 0xa10   : > { %v6223_v49 = vpop.permute.xlu0 %6222 }
 0xa15   : > { %v6218_v27 = vpop.permute.xlu1 %6217 }
 0xa39   : > { %v6158_v39 = vpop.f32.mrf.mxu1 }
 0xa3b   : > { %v7316_v23 = vpop.f32.mrf.mxu1 }
 0xa3c   : > { %v6233_v23 = vpop.permute.xlu0 %6232 }
 0xa3d   : > { %v6161_v26 = vpop.f32.mrf.mxu1 }
 0xa3f   : > { %v7317_v30 = vpop.f32.mrf.mxu1 }
 0xa41   : > { %v6166_v12 = vpop.f32.mrf.mxu1 }
 0xa43   : > { %v7320_v42 = vpop.f32.mrf.mxu1 }
 0xa45   : > { %v6169_v53 = vpop.f32.mrf.mxu1 }
 0xa47   : > { %v7321_v4 = vpop.f32.mrf.mxu1 }
 0xa49   : > { %v6174_v11 = vpop.f32.mrf.mxu1 }
 0xa4b   : > { %v7324_v60 = vpop.f32.mrf.mxu1 }
 0xa4c   : > { %v8845_v60 = vmov 0.0  }
 0xa4d   : > { %v6177_v44 = vpop.f32.mrf.mxu1  ;;  %7326 = vmatprep.subr.bf16.mxu0 %v8845_v60  ;;  %6755 = vst.msk [vmem:[%s8967_s3] sm:$0x7f] %vm6754_vm1, %v8845_v60  ;;  %7330 = vmatprep.mubr.msk.bf16.mxu0 %vm8848_vm13, %v8845_v60 }
 0xa4e   : > { %6763 = vst.msk [vmem:[%s8967_s3 + $0x2f] sm:$0x1] %vm6762_vm0, %v8845_v60 }
 0xa4f   : > { %v7325_v21 = vpop.f32.mrf.mxu1 }
 0xabb   : > { %v7089_v13 = vpop.f32.mrf.mxu0 }
 0xabd   : > { %v7090_v57 = vpop.f32.mrf.mxu0 }
 0xabe   : > { %v7091_v14 = vadd.f32 %v7090_v57, %v7089_v13 }
 0xabf   : > { %v7092_v15 = vpop.f32.mrf.mxu0 }
 0xac0   : > { %v6103_v17 = vadd.f32 %v7091_v14, %v6937_v62 }
 0xac1   : > { %v7093_v19 = vpop.f32.mrf.mxu0 }
 0xac2   : > { %v6159_v58 = vadd.f32 %v6158_v39, %v6103_v17  ;;  %v7094_v20 = vadd.f32 %v7093_v19, %v7092_v15 }
 0xac4   : > { %v6185_v24 = vadd.f32 %v6180_v40, %v6159_v58  ;;  %v6106_v28 = vadd.f32 %v7094_v20, %v6937_v62 }
 0xac6   : > { %vm6190_vm8 = vcmp.ge.f32.partialorder %v6185_v24, 0.0  ;;  %v6195_v36 = vmul.f32 0.01, %v6185_v24  ;;  %v6162_v29 = vadd.f32 %v6161_v26, %v6106_v28 }
 0xac7   : > { %v7095_v63 = vpop.f32.mrf.mxu0 }
 0xac8   : > { %v6200_v33 = vsel %vm6190_vm8, %v6185_v24, %v6195_v36  ;;  %v6186_v51 = vadd.f32 %v6162_v29, %v10746_v10 }
 0xac9   : > { %v6235_v37 = vmul.f32 %v6213_v32, %v6200_v33  ;;  %v7096_v35 = vpop.f32.mrf.mxu0  ;;  %v8793_v32 = vld [vmem:[%s11131_s17 + $0x78] sm:$0xff]  }
 0xaca   : > { %vm6191_vm7 = vcmp.ge.f32.partialorder %v6186_v51, 0.0  ;;  %v6196_v1 = vmul.f32 0.01, %v6186_v51  ;;  %v7097_v38 = vadd.f32 %v7096_v35, %v7095_v63  ;;  %v8794_v35 = vld [vmem:[%s11131_s17 + $0x38] sm:$0xff]   ;;  %7112 = vmatprep.subr.bf16.mxu1 %v8793_v32 }
 0xacb   : > { %6241 = vst.msk [vmem:[#allocation3 + $0x7] sm:$0xff] %vm1814_vm9, %v6235_v37  ;;  %v7098_v2 = vpop.f32.mrf.mxu0  ;;  %7113 = vmatpush3.bf16.msra.mxu1 %v8794_v35 }
 0xacc   : > { %v6201_v31 = vsel %vm6191_vm7, %v6186_v51, %v6196_v1  ;;  %v6111_v59 = vadd.f32 %v7097_v38, %v6937_v62  ;;  %v8795_v38 = vld [vmem:[%s11131_s17 + $0x70] sm:$0xff]  }
 0xacd   : > { %v6236_v61 = vmul.f32 %v6218_v27, %v6201_v31  ;;  %v7099_v34 = vpop.f32.mrf.mxu0  ;;  %7114 = vmatprep.subr.bf16.mxu1 %v8795_v38 }
 0xace   : > { %v6167_v48 = vadd.f32 %v6166_v12, %v6111_v59  ;;  %v7100_v18 = vadd.f32 %v7099_v34, %v7098_v2  ;;  %v8796_v2 = vld [vmem:[%s11131_s17 + $0x30] sm:$0xff]   ;;  %v8797_v59 = vld [vmem:[%s11131_s17 + $0x68] sm:$0xff]  }
 0xacf   : > { %6242 = vst.msk [vmem:[#allocation3 + $0xf] sm:$0xff] %vm1814_vm9, %v6236_v61  ;;  %v7101_v25 = vpop.f32.mrf.mxu0  ;;  %7115 = vmatpush3.bf16.msra.mxu1 %v8796_v2 }
 0xad0   : > { %v6187_v10 = vadd.f32 %v6167_v48, %v10760_v55  ;;  %v6114_v56 = vadd.f32 %v7100_v18, %v6937_v62  ;;  %v6228_v55 = vpop.permute.xlu1 %6227  ;;  %7116 = vmatprep.subr.bf16.mxu1 %v8797_v59 }
 0xad1   : > { %v7102_v8 = vpop.f32.mrf.mxu0 }
 0xad2   : > { %vm6192_vm10 = vcmp.ge.f32.partialorder %v6187_v10, 0.0  ;;  %v6197_v54 = vmul.f32 0.01, %v6187_v10  ;;  %v6170_v46 = vadd.f32 %v6169_v53, %v6114_v56  ;;  %v7103_v9 = vadd.f32 %v7102_v8, %v7101_v25  ;;  %v6253_v21 = vld [vmem:[#allocation3 + $0x1] sm:$0xff]  ;;  %v8798_v25 = vld [vmem:[%s11131_s17 + $0x28] sm:$0xff]  }
 0xad3   : > { %v7104_v41 = vpop.f32.mrf.mxu0  ;;  %v6263_v14 = vld [vmem:[#allocation3 + $0x6] sm:$0xff]  ;;  %7117 = vmatpush3.bf16.msra.mxu1 %v8798_v25 }
 0xad4   : > { %v6202_v45 = vsel %vm6192_vm10, %v6187_v10, %v6197_v54  ;;  %v6188_v3 = vadd.f32 %v6170_v46, %v10758_v16  ;;  %v6119_v47 = vadd.f32 %v7103_v9, %v6937_v62  ;;  %v8799_v10 = vld [vmem:[%s11131_s17 + $0x60] sm:$0xff]  }
 0xad5   : > { %v6237_v50 = vmul.f32 %v6223_v49, %v6202_v45  ;;  %v7105_v22 = vpop.f32.mrf.mxu0  ;;  %v8800_v49 = vld [vmem:[%s11131_s17 + $0x20] sm:$0xff]   ;;  %7118 = vmatprep.subr.bf16.mxu1 %v8799_v10  ;;  %v8801_v45 = vld [vmem:[%s11131_s17 + $0x58] sm:$0xff]  }
 0xad6   : > { %vm6193_vm2 = vcmp.ge.f32.partialorder %v6188_v3, 0.0  ;;  %v6198_v7 = vmul.f32 0.01, %v6188_v3  ;;  %v6175_v52 = vadd.f32 %v6174_v11, %v6119_v47  ;;  %v6274_v30 = vld [vmem:[#allocation3 + $0xc] sm:$0xff] }
 0xad7   : > { %6243 = vst.msk [vmem:[#allocation3 + $0x17] sm:$0xff] %vm1814_vm9, %v6237_v50  ;;  %v10945_v42 = vld [vmem:[#allocation3 + $0x8] sm:$0xff]  ;;  %7119 = vmatpush3.bf16.msra.mxu1 %v8800_v49 }
 0xad8   : > { %v6203_v5 = vsel %vm6193_vm2, %v6188_v3, %v6198_v7  ;;  %v6189_v6 = vadd.f32 %v6175_v52, %v10781_v43  ;;  %v6258_v43 = vld [vmem:[#allocation3 + $0x2] sm:$0xff]  ;;  %v6259_v11 = vld [vmem:[#allocation3 + $0xa] sm:$0xff]  ;;  %7120 = vmatprep.subr.bf16.mxu1 %v8801_v45 }
 0xad9   : > { %v6238_v0 = vmul.f32 %v6228_v55, %v6203_v5  ;;  %v6254_v13 = vld [vmem:[#allocation3 + $0x9] sm:$0xff]  ;;  %v8731_v62 = vpack.i.bf16 %v6259_v11, %v6258_v43  ;;  %v8803_v52 = vld [vmem:[%s11131_s17 + $0x50] sm:$0xff]   ;;  %v8808_v55 = vld [vmem:[%s11131_s17 + $0x88] sm:$0xff]   ;;  %v8850_v5 = vmov 0  }
 0xada   : > { %vm6194_vm3 = vcmp.ge.f32.partialorder %v6189_v6, 0.0  ;;  %v6199_v39 = vmul.f32 0.01, %v6189_v6  ;;  %v8721_v57 = vpack.i.bf16 %v6254_v13, %v6253_v21  ;;  %v10958_v15 = vld [vmem:[#allocation3 + $0xe] sm:$0xff]  ;;  %8791 = vset.pattern.permute.xlu1 %v8850_v5  ;;  %8792 = vset.pattern.permute.xlu0 %v8850_v5 }
 0xadb   : > { %6244 = vst.msk [vmem:[#allocation3 + $0x1f] sm:$0xff] %vm1814_vm9, %v6238_v0  ;;  %v6279_v17 = vld [vmem:[#allocation3 + $0xd] sm:$0xff]  ;;  %v8741_v58 = vpack.i.bf16 %v10958_v15, %v6263_v14  ;;  %7327 = vmatpush3.bf16.msra.mxu0 %v8808_v55  ;;  %v8804_v0 = vld [vmem:[%s11131_s17 + $0x10] sm:$0xff]  }
 0xadc   : > { %v6204_v26 = vsel %vm6194_vm3, %v6189_v6, %v6199_v39  ;;  %v8802_v7 = vld [vmem:[%s11131_s17 + $0x18] sm:$0xff]   ;;  %7328 = vmatprep.subr.bf16.mxu0 %v8845_v60  ;;  %v8810_v39 = vld [vmem:[%s11131_s17 + $0x80] sm:$0xff]  }
 0xadd   : > { %v6239_v16 = vmul.f32 %v6233_v23, %v6204_v26  ;;  %7121 = vmatpush3.bf16.msra.mxu1 %v8802_v7  ;;  %v8805_v23 = vld [vmem:[%s11131_s17 + $0x48] sm:$0xff]   ;;  %v6719_v26 = vld [vmem:[%s11130_s16] sm:$0xff]  ;;  %v6722_v11 = vld [vmem:[%s11130_s16 + $0x18] sm:$0xff] }
 0xade   : > { %v6275_v12 = vld [vmem:[#allocation3 + $0x14] sm:$0xff]  ;;  %7122 = vmatprep.subr.bf16.mxu1 %v8803_v52 }
 0xadf   : > { %6245 = vst.msk [vmem:[#allocation3 + $0x27] sm:$0xff] %vm1814_vm9, %v6239_v16  ;;  %v8726_v53 = vpack.i.bf16 %v6275_v12, %v6274_v30  ;;  %v10947_v4 = vld [vmem:[#allocation3 + $0x10] sm:$0xff]  ;;  %7329 = vmatpush3.bf16.msra.mxu0 %v8810_v39  ;;  %v6721_v30 = vld [vmem:[%s11130_s16 + $0x10] sm:$0xff]  ;;  %v8806_v12 = vld [vmem:[%s11131_s17 + $0x8] sm:$0xff]  }
 0xae0   : > { %v8716_v44 = vpack.i.bf16 %v10947_v4, %v10945_v42  ;;  %v6280_v19 = vld [vmem:[#allocation3 + $0x15] sm:$0xff] }
 0xae1   : > { %8727 = vrot.lane.b32.xlu1 %v8726_v53, %s8846_s24  ;;  %v8736_v20 = vpack.i.bf16 %v6280_v19, %v6279_v17  ;;  %v6255_v40 = vld [vmem:[#allocation3 + $0x11] sm:$0xff]  ;;  %7123 = vmatpush3.bf16.msra.mxu1 %v8804_v0 }
 0xae2   : > { %8717 = vrot.lane.b32.xlu0 %v8716_v44, %s8847_s19  ;;  %v6256_v24 = vld [vmem:[#allocation3 + $0x19] sm:$0xff]  ;;  %7124 = vmatprep.subr.bf16.mxu1 %v8805_v23  ;;  %v8807_v43 = vld [vmem:[%s11131_s17 + $0x40] sm:$0xff]  }
 0xae3   : > { %v10965_v28 = vld [vmem:[#allocation3 + $0x18] sm:$0xff]  ;;  %v8751_v33 = vpack.i.bf16 %v6256_v24, %v6255_v40  ;;  %v8809_v44 = vld [vmem:[%s11131_s17] sm:$0xff]   ;;  %v6248_v40 = vld [vmem:[#allocation3] sm:$0xff] }
 0xae4   : > { %v6260_v29 = vld [vmem:[#allocation3 + $0x12] sm:$0xff]  ;;  %v6261_v63 = vld [vmem:[#allocation3 + $0x1a] sm:$0xff]  ;;  %v6268_v24 = vld [vmem:[#allocation3 + $0x7] sm:$0xff] }
 0xae5   : > { %8732 = vrot.lane.b32.xlu1 %v8731_v62, %s8846_s24  ;;  %v6276_v51 = vld [vmem:[#allocation3 + $0x1c] sm:$0xff]  ;;  %v8761_v61 = vpack.i.bf16 %v6261_v63, %v6260_v29  ;;  %7125 = vmatpush3.bf16.msra.mxu1 %v8806_v12  ;;  %v6723_v21 = vld [vmem:[%s11130_s16 + $0x20] sm:$0xff] }
 0xae6   : > { %8722 = vrot.lane.b32.xlu0 %v8721_v57, %s8847_s19  ;;  %v10967_v36 = vld [vmem:[#allocation3 + $0x20] sm:$0xff]  ;;  %v6265_v27 = vld [vmem:[#allocation3 + $0x16] sm:$0xff]  ;;  %v6273_v54 = vld [vmem:[#allocation3 + $0x28] sm:$0xff]  ;;  %7126 = vmatprep.subr.bf16.mxu1 %v8807_v43 }
 0xae7   : > { %v6277_v37 = vld [vmem:[#allocation3 + $0x24] sm:$0xff]  ;;  %v8746_v1 = vpack.i.bf16 %v10967_v36, %v10965_v28  ;;  %v6278_v41 = vld [vmem:[#allocation3 + $0x2c] sm:$0xff]  ;;  %v6440_v16 = vpack.c.bf16 %v6265_v27, %v10958_v15  ;;  %v6720_v53 = vld [vmem:[%s11130_s16 + $0x8] sm:$0xff] }
 0xae8   : > { %v10985_v31 = vld [vmem:[#allocation3 + $0x1e] sm:$0xff]  ;;  %v8756_v48 = vpack.i.bf16 %v6277_v37, %v6276_v51  ;;  %v6267_v47 = vld [vmem:[#allocation3 + $0x26] sm:$0xff]  ;;  %v6284_v62 = vld [vmem:[#allocation3 + $0x2e] sm:$0xff] }
 0xae9   : > { %8742 = vrot.lane.b32.xlu1 %v8741_v58, %s8849_s7  ;;  %v6281_v34 = vld [vmem:[#allocation3 + $0x1d] sm:$0xff]  ;;  %v6282_v18 = vld [vmem:[#allocation3 + $0x25] sm:$0xff]  ;;  %v8771_v56 = vpack.i.bf16 %v10985_v31, %v6265_v27  ;;  %v6283_v50 = vld [vmem:[#allocation3 + $0x2d] sm:$0xff]  ;;  %7331 = vmatmul.mubr.msk.bf16.vlgmr.msra.gmra.mxu0 %vm1814_vm9, %v6440_v16  ;;  %v6443_v13 = vpack.c.bf16 %v6267_v47, %v10985_v31  ;;  %v6446_v57 = vpack.c.bf16 %v6284_v62, %v6284_v62 }
 0xaea   : > { %8737 = vrot.lane.b32.xlu0 %v8736_v20, %s8849_s7  ;;  %v6257_v8 = vld [vmem:[#allocation3 + $0x21] sm:$0xff]  ;;  %v8766_v9 = vpack.i.bf16 %v6282_v18, %v6281_v34  ;;  %v8786_v6 = vpack.i.bf16 %v6267_v47, %v6283_v50  ;;  %7334 = vmatprep.mubr.msk.bf16.mxu0 %vm8848_vm13, %v8845_v60  ;;  %v6269_v29 = vld [vmem:[#allocation3 + $0xf] sm:$0xff]  ;;  %v6270_v55 = vld [vmem:[#allocation3 + $0x17] sm:$0xff] }
 0xaeb   : > { %v6262_v46 = vld [vmem:[#allocation3 + $0x22] sm:$0xff]  ;;  %v8776_v22 = vpack.i.bf16 %v6257_v8, %v6273_v54  ;;  %7127 = vmatpush3.bf16.msra.mxu1 %v8809_v44 }
 0xaec   : > { %v8781_v3 = vpack.i.bf16 %v6262_v46, %v6278_v41  ;;  %v6271_v5 = vld [vmem:[#allocation3 + $0x1f] sm:$0xff] }
 0xaed   : > { %8752 = vrot.lane.b32.xlu1 %v8751_v33, %s8847_s19 }
 0xaee   : > { %8747 = vrot.lane.b32.xlu0 %v8746_v1, %s8847_s19 }
 0xaf1   : > { %8762 = vrot.lane.b32.xlu1 %v8761_v61, %s8846_s24  ;;  %7335 = vmatmul.mubr.msk.bf16.gmra.mxu0 %vm1814_vm9, %v6443_v13 }
 0xaf2   : > { %8757 = vrot.lane.b32.xlu0 %v8756_v48, %s8846_s24  ;;  %7338 = vmatprep.mubr.msk.bf16.mxu0 %vm8848_vm13, %v8845_v60 }
 0xaf5   : > { %8772 = vrot.lane.b32.xlu1 %v8771_v56, %s8849_s7 }
 0xaf6   : > { %8767 = vrot.lane.b32.xlu0 %v8766_v9, %s8849_s7 }
 0xaf9   : > { %8782 = vrot.lane.b32.xlu1 %v8781_v3, %s8846_s24  ;;  %7339 = vmatmul.mubr.msk.bf16.gmra.mxu0 %vm1814_vm9, %v6446_v57 }
 0xafa   : > { %8777 = vrot.lane.b32.xlu0 %v8776_v22, %s8847_s19 }
 0xafd   : > { %6726 = vperm.xlu1 %8791, %v6719_v26  }
 0xafe   : > { %8787 = vrot.lane.b32.xlu0 %v8786_v6, %s8849_s7 }
 0xb01   : > { %6736 = vperm.xlu1 %8791, %v6721_v30  }
 0xb02   : > { %6731 = vperm.xlu0 %8792, %v6720_v53  }
 0xb05   : > { %6741 = vperm.xlu1 %8791, %v6722_v11  }
 0xb06   : > { %6746 = vperm.xlu0 %8792, %v6723_v21  }
 0xb53   : > { %v8728_v14 = vpop.permute.xlu1 %8727 }
 0xb54   : > { %v8718_v15 = vpop.permute.xlu0 %8717  ;;  %v8730_v37 = vunpack.i.h.bf16 %v8728_v14  ;;  %v8729_v35 = vunpack.i.l.bf16 %v8728_v14 }
 0xb55   : > { %v8720_v17 = vunpack.i.h.bf16 %v8718_v15  ;;  %v8719_v19 = vunpack.i.l.bf16 %v8718_v15 }
 0xb57   : > { %v8733_v58 = vpop.permute.xlu1 %8732  ;;  %v6423_v2 = vsel %vm1814_vm9, %v6268_v24, %v8719_v19  ;;  %v6424_v27 = vsel %vm1814_vm9, %v6269_v29, %v8720_v17 }
 0xb58   : > { %v8723_v20 = vpop.permute.xlu0 %8722  ;;  %v8735_v63 = vunpack.i.h.bf16 %v8733_v58  ;;  %v8734_v32 = vunpack.i.l.bf16 %v8733_v58  ;;  %v6428_v56 = vsel %vm3118_vm14, %v6423_v2, %v8729_v35  ;;  %v6429_v8 = vsel %vm3118_vm14, %v6424_v27, %v8730_v37 }
 0xb59   : > { %v8725_v33 = vunpack.i.h.bf16 %v8723_v20  ;;  %v8724_v51 = vunpack.i.l.bf16 %v8723_v20 }
 0xb5b   : > { %v6407_v60 = vsel %vm1814_vm9, %v10945_v42, %v8725_v33  ;;  %v6406_v1 = vsel %vm1814_vm9, %v6248_v40, %v8724_v51  ;;  %v8743_v38 = vpop.permute.xlu1 %8742  ;;  %v6272_v40 = vld [vmem:[#allocation3 + $0x27] sm:$0xff] }
 0xb5c   : > { %v8745_v31 = vunpack.i.h.bf16 %v8743_v38  ;;  %v8744_v59 = vunpack.i.l.bf16 %v8743_v38  ;;  %v8738_v61 = vpop.permute.xlu0 %8737  ;;  %v6412_v34 = vsel %vm3118_vm14, %v6406_v1, %v8734_v32  ;;  %v6413_v48 = vsel %vm3118_vm14, %v6407_v60, %v8735_v63 }
 0xb5d   : > { %v8740_v18 = vunpack.i.h.bf16 %v8738_v61  ;;  %v8739_v25 = vunpack.i.l.bf16 %v8738_v61 }
 0xb5e   : > { %v6418_v10 = vsel %vm3142_vm12, %v6412_v34, %v8744_v59  ;;  %v6419_v42 = vsel %vm3142_vm12, %v6413_v48, %v8745_v31 }
 0xb5f   : > { %v8753_v54 = vpop.permute.xlu1 %8752  ;;  %v6433_v46 = vsel %vm3142_vm12, %v6428_v56, %v8739_v25  ;;  %v6434_v9 = vsel %vm3142_vm12, %v6429_v8, %v8740_v18  ;;  %v6438_v41 = vpack.c.bf16 %v6419_v42, %v6418_v10 }
 0xb60   : > { %v8748_v49 = vpop.permute.xlu0 %8747  ;;  %v6439_v45 = vpack.c.bf16 %v6434_v9, %v6433_v46  ;;  %v8755_v3 = vunpack.i.h.bf16 %v8753_v54  ;;  %v8754_v47 = vunpack.i.l.bf16 %v8753_v54 }
 0xb61   : > { %v8750_v22 = vunpack.i.h.bf16 %v8748_v49  ;;  %v8749_v7 = vunpack.i.l.bf16 %v8748_v49 }
 0xb62   : > { %6639 = vmatprep.mubr.bf16.mxu1 %v6439_v45  ;;  %v6408_v26 = vsel %vm1814_vm9, %v10947_v4, %v8754_v47  ;;  %v6409_v16 = vsel %vm1814_vm9, %v10965_v28, %v8755_v3  ;;  %v6959_v3 = vld [vmem:[%s11132_s18] ss:$0 sm:$0xff] }
 0xb63   : > { %6640 = vmatmul.mubr.bf16.vlgmr.msra.gmra.mxu1 %v6438_v41  ;;  %v8763_v50 = vpop.permute.xlu1 %8762  ;;  %v6426_v12 = vsel %vm1814_vm9, %v6271_v5, %v8750_v22  ;;  %v6425_v53 = vsel %vm1814_vm9, %v6270_v55, %v8749_v7 }
 0xb64   : > { %v8758_v52 = vpop.permute.xlu0 %8757  ;;  %v8765_v6 = vunpack.i.h.bf16 %v8763_v50  ;;  %v8764_v0 = vunpack.i.l.bf16 %v8763_v50 }
 0xb65   : > { %v8760_v39 = vunpack.i.h.bf16 %v8758_v52  ;;  %v8759_v23 = vunpack.i.l.bf16 %v8758_v52 }
 0xb66   : > { %v6414_v21 = vsel %vm3118_vm14, %v6408_v26, %v8764_v0  ;;  %v6415_v13 = vsel %vm3118_vm14, %v6409_v16, %v8765_v6 }
 0xb67   : > { %v8773_v30 = vpop.permute.xlu1 %8772  ;;  %v6430_v14 = vsel %vm3118_vm14, %v6425_v53, %v8759_v23  ;;  %v6431_v4 = vsel %vm3118_vm14, %v6426_v12, %v8760_v39 }
 0xb68   : > { %v8775_v43 = vunpack.i.h.bf16 %v8773_v30  ;;  %v8774_v11 = vunpack.i.l.bf16 %v8773_v30  ;;  %v8768_v44 = vpop.permute.xlu0 %8767 }
 0xb69   : > { %v8770_v62 = vunpack.i.h.bf16 %v8768_v44  ;;  %v8769_v57 = vunpack.i.l.bf16 %v8768_v44 }
 0xb6a   : > { %v6420_v28 = vsel %vm3142_vm12, %v6414_v21, %v8774_v11  ;;  %v6421_v15 = vsel %vm3142_vm12, %v6415_v13, %v8775_v43 }
 0xb6b   : > { %v6435_v17 = vsel %vm3142_vm12, %v6430_v14, %v8769_v57  ;;  %v6436_v19 = vsel %vm3142_vm12, %v6431_v4, %v8770_v62  ;;  %v8783_v58 = vpop.permute.xlu1 %8782  ;;  %v6441_v20 = vpack.c.bf16 %v6421_v15, %v6420_v28 }
 0xb6c   : > { %v8778_v24 = vpop.permute.xlu0 %8777  ;;  %v6442_v29 = vpack.c.bf16 %v6436_v19, %v6435_v17  ;;  %v8785_v33 = vunpack.i.h.bf16 %v8783_v58  ;;  %v8784_v51 = vunpack.i.l.bf16 %v8783_v58 }
 0xb6d   : > { %v8780_v63 = vunpack.i.h.bf16 %v8778_v24  ;;  %v8779_v32 = vunpack.i.l.bf16 %v8778_v24 }
 0xb6e   : > { %6647 = vmatprep.mubr.bf16.mxu1 %v6442_v29 }
 0xb6f   : > { %v6410_v37 = vsel %vm1814_vm9, %v10967_v36, %v8780_v63  ;;  %v6427_v35 = vsel %vm1814_vm9, %v6272_v40, %v8779_v32  ;;  %6648 = vmatmul.mubr.bf16.gmra.mxu1 %v6441_v20 }
 0xb70   : > { %v8788_v60 = vpop.permute.xlu0 %8787  ;;  %v6416_v2 = vsel %vm3118_vm14, %v6410_v37, %v8785_v33  ;;  %v6432_v27 = vsel %vm3118_vm14, %v6427_v35, %v8784_v51 }
 0xb71   : > { %v8790_v1 = vunpack.i.h.bf16 %v8788_v60  ;;  %v8789_v38 = vunpack.i.l.bf16 %v8788_v60 }
 0xb73   : > { %v6422_v31 = vsel %vm3142_vm12, %v6416_v2, %v8790_v1  ;;  %v6437_v59 = vsel %vm3142_vm12, %v6432_v27, %v8789_v38 }
 0xb74   : > { %v6445_v61 = vpack.c.bf16 %v6437_v59, %v6437_v59  ;;  %v6444_v34 = vpack.c.bf16 %v6422_v31, %v6422_v31 }
 0xb76   : > { %6655 = vmatprep.mubr.bf16.mxu1 %v6445_v61 }
 0xb77   : > { %6656 = vmatmul.mubr.bf16.gmra.mxu1 %v6444_v34 }
 0xb78   : > { %v6727_v52 = vpop.permute.xlu1 %6726 }
 0xb7c   : > { %v6737_v11 = vpop.permute.xlu1 %6736 }
 0xb7d   : > { %v6732_v39 = vpop.permute.xlu0 %6731 }
 0xb80   : > { %v6742_v17 = vpop.permute.xlu1 %6741 }
 0xb81   : > { %v6747_v29 = vpop.permute.xlu0 %6746 }
 0xba9   : > { %v6697_v48 = vpop.f32.mrf.mxu0 }
 0xbab   : > { %v7332_v36 = vpop.f32.mrf.mxu0 }
 0xbad   : > { %v6700_v18 = vpop.f32.mrf.mxu0 }
 0xbaf   : > { %v7333_v25 = vpop.f32.mrf.mxu0 }
 0xbb1   : > { %v6705_v10 = vpop.f32.mrf.mxu0 }
 0xbb3   : > { %v7336_v42 = vpop.f32.mrf.mxu0 }
 0xbb5   : > { %v6708_v56 = vpop.f32.mrf.mxu0 }
 0xbb7   : > { %v7337_v8 = vpop.f32.mrf.mxu0 }
 0xbb9   : > { %v6713_v54 = vpop.f32.mrf.mxu0 }
 0xbbb   : > { %v7340_v46 = vpop.f32.mrf.mxu0 }
 0xbbd   : > { %v6716_v9 = vpop.f32.mrf.mxu0 }
 0xbbf   : > { %v7341_v41 = vpop.f32.mrf.mxu0 }
 0xc23   : > { %v7128_v49 = vpop.f32.mrf.mxu1 }
 0xc25   : > { %v7129_v45 = vpop.f32.mrf.mxu1 }
 0xc26   : > { %v7130_v47 = vadd.f32 %v7129_v45, %v7128_v49 }
 0xc27   : > { %v7131_v50 = vpop.f32.mrf.mxu1 }
 0xc28   : > { %v6642_v22 = vadd.f32 %v7130_v47, %v6959_v3 }
 0xc29   : > { %v7132_v7 = vpop.f32.mrf.mxu1 }
 0xc2a   : > { %v6698_v55 = vadd.f32 %v6697_v48, %v6642_v22  ;;  %v7133_v5 = vadd.f32 %v7132_v7, %v7131_v50 }
 0xc2c   : > { %v6645_v6 = vadd.f32 %v7133_v5, %v6959_v3  ;;  %v6749_v0 = vmul.f32 %v6727_v52, %v6698_v55 }
 0xc2e   : > { %v6701_v23 = vadd.f32 %v6700_v18, %v6645_v6  ;;  %6757 = vst.msk [vmem:[%s8967_s3 + $0x7] sm:$0xff] %vm1634_vm4, %v6749_v0 }
 0xc2f   : > { %v7134_v26 = vpop.f32.mrf.mxu1 }
 0xc30   : > { %v6750_v16 = vmul.f32 %v6732_v39, %v6701_v23 }
 0xc31   : > { %v7135_v30 = vpop.f32.mrf.mxu1 }
 0xc32   : > { %6758 = vst.msk [vmem:[%s8967_s3 + $0xf] sm:$0xff] %vm1634_vm4, %v6750_v16  ;;  %v7136_v12 = vadd.f32 %v7135_v30, %v7134_v26 }
 0xc33   : > { %v7137_v53 = vpop.f32.mrf.mxu1 }
 0xc34   : > { %v6650_v43 = vadd.f32 %v7136_v12, %v6959_v3 }
 0xc35   : > { %v7138_v44 = vpop.f32.mrf.mxu1 }
 0xc36   : > { %v6706_v21 = vadd.f32 %v6705_v10, %v6650_v43  ;;  %v7139_v13 = vadd.f32 %v7138_v44, %v7137_v53 }
 0xc37   : > { %v7140_v62 = vpop.f32.mrf.mxu1 }
 0xc38   : > { %v6751_v57 = vmul.f32 %v6737_v11, %v6706_v21  ;;  %v6653_v14 = vadd.f32 %v7139_v13, %v6959_v3 }
 0xc39   : > { %v7141_v4 = vpop.f32.mrf.mxu1 }
 0xc3a   : > { %6759 = vst.msk [vmem:[%s8967_s3 + $0x17] sm:$0xff] %vm1634_vm4, %v6751_v57  ;;  %v6709_v28 = vadd.f32 %v6708_v56, %v6653_v14  ;;  %v7142_v15 = vadd.f32 %v7141_v4, %v7140_v62 }
 0xc3b   : > { %v7143_v19 = vpop.f32.mrf.mxu1 }
 0xc3c   : > { %v6752_v58 = vmul.f32 %v6742_v17, %v6709_v28  ;;  %v6658_v20 = vadd.f32 %v7142_v15, %v6959_v3 }
 0xc3d   : > { %v7144_v40 = vpop.f32.mrf.mxu1 }
 0xc3e   : > { %6760 = vst.msk [vmem:[%s8967_s3 + $0x1f] sm:$0xff] %vm1634_vm4, %v6752_v58  ;;  %v6714_v24 = vadd.f32 %v6713_v54, %v6658_v20 }
 0xc40   : > { %v6753_v63 = vmul.f32 %v6747_v29, %v6714_v24 }
 0xc42   : > { %6761 = vst.msk [vmem:[%s8967_s3 + $0x27] sm:$0xff] %vm1634_vm4, %v6753_v63 }
 0xc43 PF: > { %s29_s0 = sadd.s32 1, %s8817_s0  }
 0xc44   : > { %p26_p4 = scmp.ge.s32.totalorder %s29_s0, 4  }
 0xc46   :  { %28 = sbr.rel (!%p26_p4) target bundleno = 8 (0x8), region = 128 }

</bundles_post_ra>
